<compile_context>
chip_gen: v5e
topology: v5e:2x2
jax: 0.10.0
libtpu: 0.0.40
codegen_flags: <defaults>
</compile_context>

<pallas_src>
import jax
import jax.numpy as jnp
from jax.experimental import pallas as pl
from jax.experimental.pallas import tpu as pltpu

HIDDEN = 256
TRG_SEQLEN = 3
HEAD_OUT = 8  # lane-packed head output: [transl(3) | rot(3) | pad(2)]


# ----------------------------------------------------------------------------
# Fused rollout kernel: 3 agent steps + env math + final point-cloud transform
# ----------------------------------------------------------------------------
def _generate_seq_kernel(
    x_ref,          # (B, F)      f32   corr_feature
    pc_ref,         # (B, 3, N)   f32   ds_pc_source, channel-major (lane = N)
    pos_src_ref,    # (B, 6)      f32
    pos_tgt_ref,    # (B, 6)      f32
    wih1_ref, whh1_ref, b1_ref,   # (F,1024) bf16, (256,1024) bf16, (1,1024) f32
    wih2_ref, whh2_ref, b2_ref,   # (256,1024) bf16, (256,1024) bf16, (1,1024) f32
    whead_ref, bhead_ref,         # (256, 8) f32, (1, 8) f32
    actions_ref,    # (T, B, 8)   f32   per-step agent actions [t | r | pad]
    expert_ref,     # (T, B, 6)   f32   per-step expert actions [t | r]
    pos_out_ref,    # (B, 6)      f32   final pos_src
    src_out_ref,    # (B, 3, N)   f32   current_source (last step's transform)
):
    f32 = jnp.float32
    bf16 = jnp.bfloat16

    x = x_ref[...]
    pos_tgt = pos_tgt_ref[...]

    # Weights loaded to VMEM once, resident for the whole sequence.
    wih1 = wih1_ref[...]
    whh1 = whh1_ref[...]
    wih2 = wih2_ref[...]
    whh2 = whh2_ref[...]
    b1 = b1_ref[...]
    b2 = b2_ref[...]
    whead = whead_ref[...]
    bhead = bhead_ref[...]

    B = x.shape[0]

    # corr_feature is identical every step -> hoist its gate matmul out of the loop.
    ih1 = jnp.dot(x.astype(bf16), wih1, preferred_element_type=f32) + b1

    def lstm_gates(pre, c):
        # pre: (B, 4*HIDDEN) packed [i|f|g|o], sliced at 256-aligned lane offsets.
        i_g = jax.nn.sigmoid(pre[:, 0 * HIDDEN:1 * HIDDEN])
        f_g = jax.nn.sigmoid(pre[:, 1 * HIDDEN:2 * HIDDEN])
        g_g = jnp.tanh(pre[:, 2 * HIDDEN:3 * HIDDEN])
        o_g = jax.nn.sigmoid(pre[:, 3 * HIDDEN:4 * HIDDEN])
        c_new = f_g * c + i_g * g_g
        h_new = o_g * jnp.tanh(c_new)
        return h_new, c_new

    h1 = jnp.zeros((B, HIDDEN), f32)
    c1 = jnp.zeros((B, HIDDEN), f32)
    h2 = jnp.zeros((B, HIDDEN), f32)
    c2 = jnp.zeros((B, HIDDEN), f32)

    exp_pos = pos_src_ref[...]
    cur_pos = pos_src_ref[...]

    for step in range(TRG_SEQLEN):  # static unroll, T = 3
        # ---- expert step (pose delta only; its point-cloud transform is unused) ----
        exp_delta = pos_tgt - exp_pos               # == expert_action flattened (B, 6)
        expert_ref[step] = exp_delta
        exp_pos = exp_pos + exp_delta               # synthetic env: additive pose update

        # ---- agent: 2-layer LSTM step + fused tanh heads (MXU) ----
        pre1 = ih1 + jnp.dot(h1.astype(bf16), whh1, preferred_element_type=f32)
        h1, c1 = lstm_gates(pre1, c1)

        pre2 = (jnp.dot(h1.astype(bf16), wih2, preferred_element_type=f32)
                + jnp.dot(h2.astype(bf16), whh2, preferred_element_type=f32)
                + b2)
        h2, c2 = lstm_gates(pre2, c2)

        a8 = jnp.tanh(jnp.dot(h2, whead, preferred_element_type=f32) + bhead)  # (B, 8)
        actions_ref[step] = a8

        # ---- env.step_continous: additive pose update ----
        cur_pos = cur_pos + a8[:, 0:6]              # [transl(3) | rot(3)]

        # Only the final step's transformed cloud is observable (current_source is
        # overwritten every iteration and each step transforms the original source).
        if step == TRG_SEQLEN - 1:
            action_t = a8[:, 0:3]
            action_r = a8[:, 3:6]
            pc = pc_ref[...]                        # (B, 3, N)
            px = pc[:, 0, :]
            py = pc[:, 1, :]
            pz = pc[:, 2, :]
            rx, ry, rz = action_r[:, 0:1], action_r[:, 1:2], action_r[:, 2:3]
            cx, sx = jnp.cos(rx), jnp.sin(rx)
            cy, sy = jnp.cos(ry), jnp.sin(ry)
            cz, sz = jnp.cos(rz), jnp.sin(rz)
            # R = Rz @ Ry @ Rx; each coefficient is (B, 1) and broadcasts over N lanes.
            r00 = cz * cy
            r01 = cz * sy * sx - sz * cx
            r02 = cz * sy * cx + sz * sx
            r10 = sz * cy
            r11 = sz * sy * sx + cz * cx
            r12 = sz * sy * cx - cz * sx
            r20 = -sy
            r21 = cy * sx
            r22 = cy * cx
            tx, ty, tz = action_t[:, 0:1], action_t[:, 1:2], action_t[:, 2:3]
            nx = r00 * px + r01 * py + r02 * pz + tx
            ny = r10 * px + r11 * py + r12 * pz + ty
            nz = r20 * px + r21 * py + r22 * pz + tz
            src_out_ref[...] = jnp.stack([nx, ny, nz], axis=1)  # (B, 3, N)

    pos_out_ref[...] = cur_pos


# ----------------------------------------------------------------------------
# GenerateSeq.forward equivalent (single fused pallas_call)
# ----------------------------------------------------------------------------
def generate_seq(ds_pc_source, corr_feature, pos_src, pos_tgt, params):
    B, N, _ = ds_pc_source.shape
    pc_cmaj = jnp.transpose(ds_pc_source, (0, 2, 1))  # (B, 3, N) lane-dense layout

    out_shapes = (
        jax.ShapeDtypeStruct((TRG_SEQLEN, B, HEAD_OUT), jnp.float32),  # agent actions
        jax.ShapeDtypeStruct((TRG_SEQLEN, B, 6), jnp.float32),         # expert actions
        jax.ShapeDtypeStruct((B, 6), jnp.float32),                     # final pos_src
        jax.ShapeDtypeStruct((B, 3, N), jnp.float32),                  # current_source
    )
    actions, expert, pos_out, src_cmaj = pl.pallas_call(
        _generate_seq_kernel,
        out_shape=out_shapes,
        compiler_params=pltpu.CompilerParams(vmem_limit_bytes=32 * 1024 * 1024),
    )(corr_feature, pc_cmaj, pos_src, pos_tgt,
      params['wih1'], params['whh1'], params['b1'],
      params['wih2'], params['whh2'], params['b2'],
      params['whead'], params['bhead'])

    # Layout plumbing back to the module's output convention.
    outputs_save_transl = jnp.transpose(actions[:, :, 0:3], (1, 0, 2))       # (B, T, 3)
    outputs_save_rot = jnp.transpose(actions[:, :, 3:6], (1, 0, 2))
    exp_outputs_save_transl = jnp.transpose(expert[:, :, 0:3], (1, 0, 2))
    exp_outputs_save_rot = jnp.transpose(expert[:, :, 3:6], (1, 0, 2))
    current_source = jnp.transpose(src_cmaj, (0, 2, 1))                      # (B, N, 3)
    return (exp_outputs_save_transl, exp_outputs_save_rot,
            outputs_save_transl, outputs_save_rot, pos_out, current_source)


# ----------------------------------------------------------------------------
# Deterministic parameters for the synthetic agent
# ----------------------------------------------------------------------------
def init_params(key, feat_dim):
    ks = jax.random.split(key, 6)
    s = 0.02
    wt = s * jax.random.normal(ks[4], (HIDDEN, 3), jnp.float32)
    wr = s * jax.random.normal(ks[5], (HIDDEN, 3), jnp.float32)
    whead = jnp.concatenate(
        [wt, wr, jnp.zeros((HIDDEN, HEAD_OUT - 6), jnp.float32)], axis=1)
    return {
        # Gate weights stored bf16 (halved HBM->VMEM traffic); f32 accumulation in-kernel.
        'wih1': (s * jax.random.normal(ks[0], (feat_dim, 4 * HIDDEN))).astype(jnp.bfloat16),
        'whh1': (s * jax.random.normal(ks[1], (HIDDEN, 4 * HIDDEN))).astype(jnp.bfloat16),
        'b1': jnp.zeros((1, 4 * HIDDEN), jnp.float32),
        'wih2': (s * jax.random.normal(ks[2], (HIDDEN, 4 * HIDDEN))).astype(jnp.bfloat16),
        'whh2': (s * jax.random.normal(ks[3], (HIDDEN, 4 * HIDDEN))).astype(jnp.bfloat16),
        'b2': jnp.zeros((1, 4 * HIDDEN), jnp.float32),
        'whead': whead,
        'bhead': jnp.zeros((1, HEAD_OUT), jnp.float32),
    }


if __name__ == "__main__":
    key = jax.random.PRNGKey(0)
    B, FEAT, N = 2, 64, 128
    k1, k2, k3, k4, kp = jax.random.split(key, 5)

    ds_pc_source = jax.random.normal(k1, (B, N, 3), jnp.float32)
    corr_feature = jax.random.normal(k2, (B, FEAT), jnp.float32)
    pos_src = 0.1 * jax.random.normal(k3, (B, 6), jnp.float32)
    pos_tgt = 0.1 * jax.random.normal(k4, (B, 6), jnp.float32)
    params = init_params(kp, FEAT)

    fn = jax.jit(generate_seq)
    outs = fn(ds_pc_source, corr_feature, pos_src, pos_tgt, params)
    jax.block_until_ready(outs)

    (e_t, e_r, a_t, a_r, final_pos, final_src) = outs
    assert e_t.shape == (B, TRG_SEQLEN, 3) and e_r.shape == (B, TRG_SEQLEN, 3)
    assert a_t.shape == (B, TRG_SEQLEN, 3) and a_r.shape == (B, TRG_SEQLEN, 3)
    assert final_pos.shape == (B, 6) and final_src.shape == (B, N, 3)
    assert bool(jnp.all(jnp.isfinite(final_src))) and bool(jnp.all(jnp.isfinite(final_pos)))
    print("KERNEL_OK")
</pallas_src>

<mosaic_0001>
module attributes {stable_mosaic.version = 11 : i64} {
  func.func @_generate_seq_kernel(%arg0: memref<2x64xf32, #tpu.memory_space<vmem>>, %arg1: memref<2x3x128xf32, #tpu.memory_space<vmem>>, %arg2: memref<2x6xf32, #tpu.memory_space<vmem>>, %arg3: memref<2x6xf32, #tpu.memory_space<vmem>>, %arg4: memref<64x1024xbf16, #tpu.memory_space<vmem>>, %arg5: memref<256x1024xbf16, #tpu.memory_space<vmem>>, %arg6: memref<1x1024xf32, #tpu.memory_space<vmem>>, %arg7: memref<256x1024xbf16, #tpu.memory_space<vmem>>, %arg8: memref<256x1024xbf16, #tpu.memory_space<vmem>>, %arg9: memref<1x1024xf32, #tpu.memory_space<vmem>>, %arg10: memref<256x8xf32, #tpu.memory_space<vmem>>, %arg11: memref<1x8xf32, #tpu.memory_space<vmem>>, %arg12: memref<3x2x8xf32, #tpu.memory_space<vmem>>, %arg13: memref<3x2x6xf32, #tpu.memory_space<vmem>>, %arg14: memref<2x6xf32, #tpu.memory_space<vmem>>, %arg15: memref<2x3x128xf32, #tpu.memory_space<vmem>>) attributes {dimension_semantics = [], scalar_prefetch = 0 : i64, scratch_operands = 0 : i64, tpu.core_type = #tpu.core_type<tc>} {
    %c0 = arith.constant 0 : index
    %c0_0 = arith.constant 0 : index
    %0 = vector.load %arg0[%c0, %c0_0] : memref<2x64xf32, #tpu.memory_space<vmem>>, vector<2x64xf32>
    %c0_1 = arith.constant 0 : index
    %c0_2 = arith.constant 0 : index
    %1 = vector.load %arg3[%c0_1, %c0_2] : memref<2x6xf32, #tpu.memory_space<vmem>>, vector<2x6xf32>
    %c0_3 = arith.constant 0 : index
    %c0_4 = arith.constant 0 : index
    %2 = vector.load %arg4[%c0_3, %c0_4] : memref<64x1024xbf16, #tpu.memory_space<vmem>>, vector<64x1024xbf16>
    %c0_5 = arith.constant 0 : index
    %c0_6 = arith.constant 0 : index
    %3 = vector.load %arg5[%c0_5, %c0_6] : memref<256x1024xbf16, #tpu.memory_space<vmem>>, vector<256x1024xbf16>
    %c0_7 = arith.constant 0 : index
    %c0_8 = arith.constant 0 : index
    %4 = vector.load %arg7[%c0_7, %c0_8] : memref<256x1024xbf16, #tpu.memory_space<vmem>>, vector<256x1024xbf16>
    %c0_9 = arith.constant 0 : index
    %c0_10 = arith.constant 0 : index
    %5 = vector.load %arg8[%c0_9, %c0_10] : memref<256x1024xbf16, #tpu.memory_space<vmem>>, vector<256x1024xbf16>
    %c0_11 = arith.constant 0 : index
    %c0_12 = arith.constant 0 : index
    %6 = vector.load %arg6[%c0_11, %c0_12] : memref<1x1024xf32, #tpu.memory_space<vmem>>, vector<1x1024xf32>
    %c0_13 = arith.constant 0 : index
    %c0_14 = arith.constant 0 : index
    %7 = vector.load %arg9[%c0_13, %c0_14] : memref<1x1024xf32, #tpu.memory_space<vmem>>, vector<1x1024xf32>
    %c0_15 = arith.constant 0 : index
    %c0_16 = arith.constant 0 : index
    %8 = vector.load %arg10[%c0_15, %c0_16] : memref<256x8xf32, #tpu.memory_space<vmem>>, vector<256x8xf32>
    %c0_17 = arith.constant 0 : index
    %c0_18 = arith.constant 0 : index
    %9 = vector.load %arg11[%c0_17, %c0_18] : memref<1x8xf32, #tpu.memory_space<vmem>>, vector<1x8xf32>
    %10 = arith.truncf %0 : vector<2x64xf32> to vector<2x64xbf16>
    %cst = arith.constant dense<0.000000e+00> : vector<2x1024xf32>
    %11 = tpu.matmul %10, %2, %cst {dimension_numbers = #tpu.dot_dimension_numbers<[1], [0], [0], [1], [0, 0, 1, 1], [], []>} : vector<2x64xbf16>, vector<64x1024xbf16>, vector<2x1024xf32> -> vector<2x1024xf32>
    %12 = vector.broadcast %6 : vector<1x1024xf32> to vector<2x1024xf32>
    %13 = arith.addf %11, %12 : vector<2x1024xf32>
    %cst_19 = arith.constant 0.000000e+00 : f32
    %14 = vector.broadcast %cst_19 : f32 to vector<2x256xf32>
    %cst_20 = arith.constant 0.000000e+00 : f32
    %15 = vector.broadcast %cst_20 : f32 to vector<2x256xf32>
    %cst_21 = arith.constant 0.000000e+00 : f32
    %16 = vector.broadcast %cst_21 : f32 to vector<2x256xf32>
    %cst_22 = arith.constant 0.000000e+00 : f32
    %17 = vector.broadcast %cst_22 : f32 to vector<2x256xf32>
    %c0_23 = arith.constant 0 : index
    %c0_24 = arith.constant 0 : index
    %18 = vector.load %arg2[%c0_23, %c0_24] : memref<2x6xf32, #tpu.memory_space<vmem>>, vector<2x6xf32>
    %c0_25 = arith.constant 0 : index
    %c0_26 = arith.constant 0 : index
    %19 = vector.load %arg2[%c0_25, %c0_26] : memref<2x6xf32, #tpu.memory_space<vmem>>, vector<2x6xf32>
    %20 = arith.subf %1, %18 : vector<2x6xf32>
    %c0_27 = arith.constant 0 : index
    %c0_28 = arith.constant 0 : index
    %c0_29 = arith.constant 0 : index
    %21 = vector.load %arg13[%c0_27, %c0_28, %c0_29] : memref<3x2x6xf32, #tpu.memory_space<vmem>>, vector<1x2x6xf32>
    %22 = vector.shape_cast %21 : vector<1x2x6xf32> to vector<2x6xf32>
    %23 = vector.shape_cast %20 : vector<2x6xf32> to vector<1x2x6xf32>
    tpu.vector_store %arg13[%c0_27, %c0_28, %c0_29], %23 {strides = array<i32>} : memref<3x2x6xf32, #tpu.memory_space<vmem>>, vector<1x2x6xf32>,
    %24 = arith.addf %18, %20 : vector<2x6xf32>
    %25 = arith.truncf %14 : vector<2x256xf32> to vector<2x256xbf16>
    %cst_30 = arith.constant dense<0.000000e+00> : vector<2x1024xf32>
    %26 = tpu.matmul %25, %3, %cst_30 {dimension_numbers = #tpu.dot_dimension_numbers<[1], [0], [0], [1], [0, 0, 1, 1], [], []>} : vector<2x256xbf16>, vector<256x1024xbf16>, vector<2x1024xf32> -> vector<2x1024xf32>
    %27 = arith.addf %13, %26 : vector<2x1024xf32>
    %28 = vector.extract_strided_slice %27 {offsets = [0, 0], sizes = [2, 256], strides = [1, 1]} : vector<2x1024xf32> to vector<2x256xf32>
    %29 = arith.negf %28 : vector<2x256xf32>
    %30 = math.exp %29 : vector<2x256xf32>
    %cst_31 = arith.constant 1.000000e+00 : f32
    %31 = vector.broadcast %cst_31 : f32 to vector<2x256xf32>
    %32 = arith.addf %31, %30 : vector<2x256xf32>
    %33 = arith.divf %31, %32 : vector<2x256xf32>
    %34 = vector.extract_strided_slice %27 {offsets = [0, 256], sizes = [2, 256], strides = [1, 1]} : vector<2x1024xf32> to vector<2x256xf32>
    %35 = arith.negf %34 : vector<2x256xf32>
    %36 = math.exp %35 : vector<2x256xf32>
    %cst_32 = arith.constant 1.000000e+00 : f32
    %37 = vector.broadcast %cst_32 : f32 to vector<2x256xf32>
    %38 = arith.addf %37, %36 : vector<2x256xf32>
    %39 = arith.divf %37, %38 : vector<2x256xf32>
    %40 = vector.extract_strided_slice %27 {offsets = [0, 512], sizes = [2, 256], strides = [1, 1]} : vector<2x1024xf32> to vector<2x256xf32>
    %41 = math.tanh %40 : vector<2x256xf32>
    %42 = vector.extract_strided_slice %27 {offsets = [0, 768], sizes = [2, 256], strides = [1, 1]} : vector<2x1024xf32> to vector<2x256xf32>
    %43 = arith.negf %42 : vector<2x256xf32>
    %44 = math.exp %43 : vector<2x256xf32>
    %cst_33 = arith.constant 1.000000e+00 : f32
    %45 = vector.broadcast %cst_33 : f32 to vector<2x256xf32>
    %46 = arith.addf %45, %44 : vector<2x256xf32>
    %47 = arith.divf %45, %46 : vector<2x256xf32>
    %48 = arith.mulf %39, %15 : vector<2x256xf32>
    %49 = arith.mulf %33, %41 : vector<2x256xf32>
    %50 = arith.addf %48, %49 : vector<2x256xf32>
    %51 = math.tanh %50 : vector<2x256xf32>
    %52 = arith.mulf %47, %51 : vector<2x256xf32>
    %53 = arith.truncf %52 : vector<2x256xf32> to vector<2x256xbf16>
    %cst_34 = arith.constant dense<0.000000e+00> : vector<2x1024xf32>
    %54 = tpu.matmul %53, %4, %cst_34 {dimension_numbers = #tpu.dot_dimension_numbers<[1], [0], [0], [1], [0, 0, 1, 1], [], []>} : vector<2x256xbf16>, vector<256x1024xbf16>, vector<2x1024xf32> -> vector<2x1024xf32>
    %55 = arith.truncf %16 : vector<2x256xf32> to vector<2x256xbf16>
    %cst_35 = arith.constant dense<0.000000e+00> : vector<2x1024xf32>
    %56 = tpu.matmul %55, %5, %cst_35 {dimension_numbers = #tpu.dot_dimension_numbers<[1], [0], [0], [1], [0, 0, 1, 1], [], []>} : vector<2x256xbf16>, vector<256x1024xbf16>, vector<2x1024xf32> -> vector<2x1024xf32>
    %57 = arith.addf %54, %56 : vector<2x1024xf32>
    %58 = vector.broadcast %7 : vector<1x1024xf32> to vector<2x1024xf32>
    %59 = arith.addf %57, %58 : vector<2x1024xf32>
    %60 = vector.extract_strided_slice %59 {offsets = [0, 0], sizes = [2, 256], strides = [1, 1]} : vector<2x1024xf32> to vector<2x256xf32>
    %61 = arith.negf %60 : vector<2x256xf32>
    %62 = math.exp %61 : vector<2x256xf32>
    %cst_36 = arith.constant 1.000000e+00 : f32
    %63 = vector.broadcast %cst_36 : f32 to vector<2x256xf32>
    %64 = arith.addf %63, %62 : vector<2x256xf32>
    %65 = arith.divf %63, %64 : vector<2x256xf32>
    %66 = vector.extract_strided_slice %59 {offsets = [0, 256], sizes = [2, 256], strides = [1, 1]} : vector<2x1024xf32> to vector<2x256xf32>
    %67 = arith.negf %66 : vector<2x256xf32>
    %68 = math.exp %67 : vector<2x256xf32>
    %cst_37 = arith.constant 1.000000e+00 : f32
    %69 = vector.broadcast %cst_37 : f32 to vector<2x256xf32>
    %70 = arith.addf %69, %68 : vector<2x256xf32>
    %71 = arith.divf %69, %70 : vector<2x256xf32>
    %72 = vector.extract_strided_slice %59 {offsets = [0, 512], sizes = [2, 256], strides = [1, 1]} : vector<2x1024xf32> to vector<2x256xf32>
    %73 = math.tanh %72 : vector<2x256xf32>
    %74 = vector.extract_strided_slice %59 {offsets = [0, 768], sizes = [2, 256], strides = [1, 1]} : vector<2x1024xf32> to vector<2x256xf32>
    %75 = arith.negf %74 : vector<2x256xf32>
    %76 = math.exp %75 : vector<2x256xf32>
    %cst_38 = arith.constant 1.000000e+00 : f32
    %77 = vector.broadcast %cst_38 : f32 to vector<2x256xf32>
    %78 = arith.addf %77, %76 : vector<2x256xf32>
    %79 = arith.divf %77, %78 : vector<2x256xf32>
    %80 = arith.mulf %71, %17 : vector<2x256xf32>
    %81 = arith.mulf %65, %73 : vector<2x256xf32>
    %82 = arith.addf %80, %81 : vector<2x256xf32>
    %83 = math.tanh %82 : vector<2x256xf32>
    %84 = arith.mulf %79, %83 : vector<2x256xf32>
    %cst_39 = arith.constant dense<0.000000e+00> : vector<2x8xf32>
    %85 = tpu.matmul %84, %8, %cst_39 {dimension_numbers = #tpu.dot_dimension_numbers<[1], [0], [0], [1], [0, 0, 1, 1], [], []>} : vector<2x256xf32>, vector<256x8xf32>, vector<2x8xf32> -> vector<2x8xf32>
    %86 = vector.broadcast %9 : vector<1x8xf32> to vector<2x8xf32>
    %87 = arith.addf %85, %86 : vector<2x8xf32>
    %88 = math.tanh %87 : vector<2x8xf32>
    %c0_40 = arith.constant 0 : index
    %c0_41 = arith.constant 0 : index
    %c0_42 = arith.constant 0 : index
    %89 = vector.load %arg12[%c0_40, %c0_41, %c0_42] : memref<3x2x8xf32, #tpu.memory_space<vmem>>, vector<1x2x8xf32>
    %90 = vector.shape_cast %89 : vector<1x2x8xf32> to vector<2x8xf32>
    %91 = vector.shape_cast %88 : vector<2x8xf32> to vector<1x2x8xf32>
    tpu.vector_store %arg12[%c0_40, %c0_41, %c0_42], %91 {strides = array<i32>} : memref<3x2x8xf32, #tpu.memory_space<vmem>>, vector<1x2x8xf32>,
    %92 = vector.extract_strided_slice %88 {offsets = [0, 0], sizes = [2, 6], strides = [1, 1]} : vector<2x8xf32> to vector<2x6xf32>
    %93 = arith.addf %19, %92 : vector<2x6xf32>
    %94 = arith.subf %1, %24 : vector<2x6xf32>
    %c1 = arith.constant 1 : index
    %c0_43 = arith.constant 0 : index
    %c0_44 = arith.constant 0 : index
    %95 = vector.load %arg13[%c1, %c0_43, %c0_44] : memref<3x2x6xf32, #tpu.memory_space<vmem>>, vector<1x2x6xf32>
    %96 = vector.shape_cast %95 : vector<1x2x6xf32> to vector<2x6xf32>
    %97 = vector.shape_cast %94 : vector<2x6xf32> to vector<1x2x6xf32>
    tpu.vector_store %arg13[%c1, %c0_43, %c0_44], %97 {strides = array<i32>} : memref<3x2x6xf32, #tpu.memory_space<vmem>>, vector<1x2x6xf32>,
    %98 = arith.addf %24, %94 : vector<2x6xf32>
    %99 = arith.truncf %52 : vector<2x256xf32> to vector<2x256xbf16>
    %cst_45 = arith.constant dense<0.000000e+00> : vector<2x1024xf32>
    %100 = tpu.matmul %99, %3, %cst_45 {dimension_numbers = #tpu.dot_dimension_numbers<[1], [0], [0], [1], [0, 0, 1, 1], [], []>} : vector<2x256xbf16>, vector<256x1024xbf16>, vector<2x1024xf32> -> vector<2x1024xf32>
    %101 = arith.addf %13, %100 : vector<2x1024xf32>
    %102 = vector.extract_strided_slice %101 {offsets = [0, 0], sizes = [2, 256], strides = [1, 1]} : vector<2x1024xf32> to vector<2x256xf32>
    %103 = arith.negf %102 : vector<2x256xf32>
    %104 = math.exp %103 : vector<2x256xf32>
    %cst_46 = arith.constant 1.000000e+00 : f32
    %105 = vector.broadcast %cst_46 : f32 to vector<2x256xf32>
    %106 = arith.addf %105, %104 : vector<2x256xf32>
    %107 = arith.divf %105, %106 : vector<2x256xf32>
    %108 = vector.extract_strided_slice %101 {offsets = [0, 256], sizes = [2, 256], strides = [1, 1]} : vector<2x1024xf32> to vector<2x256xf32>
    %109 = arith.negf %108 : vector<2x256xf32>
    %110 = math.exp %109 : vector<2x256xf32>
    %cst_47 = arith.constant 1.000000e+00 : f32
    %111 = vector.broadcast %cst_47 : f32 to vector<2x256xf32>
    %112 = arith.addf %111, %110 : vector<2x256xf32>
    %113 = arith.divf %111, %112 : vector<2x256xf32>
    %114 = vector.extract_strided_slice %101 {offsets = [0, 512], sizes = [2, 256], strides = [1, 1]} : vector<2x1024xf32> to vector<2x256xf32>
    %115 = math.tanh %114 : vector<2x256xf32>
    %116 = vector.extract_strided_slice %101 {offsets = [0, 768], sizes = [2, 256], strides = [1, 1]} : vector<2x1024xf32> to vector<2x256xf32>
    %117 = arith.negf %116 : vector<2x256xf32>
    %118 = math.exp %117 : vector<2x256xf32>
    %cst_48 = arith.constant 1.000000e+00 : f32
    %119 = vector.broadcast %cst_48 : f32 to vector<2x256xf32>
    %120 = arith.addf %119, %118 : vector<2x256xf32>
    %121 = arith.divf %119, %120 : vector<2x256xf32>
    %122 = arith.mulf %113, %50 : vector<2x256xf32>
    %123 = arith.mulf %107, %115 : vector<2x256xf32>
    %124 = arith.addf %122, %123 : vector<2x256xf32>
    %125 = math.tanh %124 : vector<2x256xf32>
    %126 = arith.mulf %121, %125 : vector<2x256xf32>
    %127 = arith.truncf %126 : vector<2x256xf32> to vector<2x256xbf16>
    %cst_49 = arith.constant dense<0.000000e+00> : vector<2x1024xf32>
    %128 = tpu.matmul %127, %4, %cst_49 {dimension_numbers = #tpu.dot_dimension_numbers<[1], [0], [0], [1], [0, 0, 1, 1], [], []>} : vector<2x256xbf16>, vector<256x1024xbf16>, vector<2x1024xf32> -> vector<2x1024xf32>
    %129 = arith.truncf %84 : vector<2x256xf32> to vector<2x256xbf16>
    %cst_50 = arith.constant dense<0.000000e+00> : vector<2x1024xf32>
    %130 = tpu.matmul %129, %5, %cst_50 {dimension_numbers = #tpu.dot_dimension_numbers<[1], [0], [0], [1], [0, 0, 1, 1], [], []>} : vector<2x256xbf16>, vector<256x1024xbf16>, vector<2x1024xf32> -> vector<2x1024xf32>
    %131 = arith.addf %128, %130 : vector<2x1024xf32>
    %132 = vector.broadcast %7 : vector<1x1024xf32> to vector<2x1024xf32>
    %133 = arith.addf %131, %132 : vector<2x1024xf32>
    %134 = vector.extract_strided_slice %133 {offsets = [0, 0], sizes = [2, 256], strides = [1, 1]} : vector<2x1024xf32> to vector<2x256xf32>
    %135 = arith.negf %134 : vector<2x256xf32>
    %136 = math.exp %135 : vector<2x256xf32>
    %cst_51 = arith.constant 1.000000e+00 : f32
    %137 = vector.broadcast %cst_51 : f32 to vector<2x256xf32>
    %138 = arith.addf %137, %136 : vector<2x256xf32>
    %139 = arith.divf %137, %138 : vector<2x256xf32>
    %140 = vector.extract_strided_slice %133 {offsets = [0, 256], sizes = [2, 256], strides = [1, 1]} : vector<2x1024xf32> to vector<2x256xf32>
    %141 = arith.negf %140 : vector<2x256xf32>
    %142 = math.exp %141 : vector<2x256xf32>
    %cst_52 = arith.constant 1.000000e+00 : f32
    %143 = vector.broadcast %cst_52 : f32 to vector<2x256xf32>
    %144 = arith.addf %143, %142 : vector<2x256xf32>
    %145 = arith.divf %143, %144 : vector<2x256xf32>
    %146 = vector.extract_strided_slice %133 {offsets = [0, 512], sizes = [2, 256], strides = [1, 1]} : vector<2x1024xf32> to vector<2x256xf32>
    %147 = math.tanh %146 : vector<2x256xf32>
    %148 = vector.extract_strided_slice %133 {offsets = [0, 768], sizes = [2, 256], strides = [1, 1]} : vector<2x1024xf32> to vector<2x256xf32>
    %149 = arith.negf %148 : vector<2x256xf32>
    %150 = math.exp %149 : vector<2x256xf32>
    %cst_53 = arith.constant 1.000000e+00 : f32
    %151 = vector.broadcast %cst_53 : f32 to vector<2x256xf32>
    %152 = arith.addf %151, %150 : vector<2x256xf32>
    %153 = arith.divf %151, %152 : vector<2x256xf32>
    %154 = arith.mulf %145, %82 : vector<2x256xf32>
    %155 = arith.mulf %139, %147 : vector<2x256xf32>
    %156 = arith.addf %154, %155 : vector<2x256xf32>
    %157 = math.tanh %156 : vector<2x256xf32>
    %158 = arith.mulf %153, %157 : vector<2x256xf32>
    %cst_54 = arith.constant dense<0.000000e+00> : vector<2x8xf32>
    %159 = tpu.matmul %158, %8, %cst_54 {dimension_numbers = #tpu.dot_dimension_numbers<[1], [0], [0], [1], [0, 0, 1, 1], [], []>} : vector<2x256xf32>, vector<256x8xf32>, vector<2x8xf32> -> vector<2x8xf32>
    %160 = vector.broadcast %9 : vector<1x8xf32> to vector<2x8xf32>
    %161 = arith.addf %159, %160 : vector<2x8xf32>
    %162 = math.tanh %161 : vector<2x8xf32>
    %c1_55 = arith.constant 1 : index
    %c0_56 = arith.constant 0 : index
    %c0_57 = arith.constant 0 : index
    %163 = vector.load %arg12[%c1_55, %c0_56, %c0_57] : memref<3x2x8xf32, #tpu.memory_space<vmem>>, vector<1x2x8xf32>
    %164 = vector.shape_cast %163 : vector<1x2x8xf32> to vector<2x8xf32>
    %165 = vector.shape_cast %162 : vector<2x8xf32> to vector<1x2x8xf32>
    tpu.vector_store %arg12[%c1_55, %c0_56, %c0_57], %165 {strides = array<i32>} : memref<3x2x8xf32, #tpu.memory_space<vmem>>, vector<1x2x8xf32>,
    %166 = vector.extract_strided_slice %162 {offsets = [0, 0], sizes = [2, 6], strides = [1, 1]} : vector<2x8xf32> to vector<2x6xf32>
    %167 = arith.addf %93, %166 : vector<2x6xf32>
    %168 = arith.subf %1, %98 : vector<2x6xf32>
    %c2 = arith.constant 2 : index
    %c0_58 = arith.constant 0 : index
    %c0_59 = arith.constant 0 : index
    %169 = vector.load %arg13[%c2, %c0_58, %c0_59] : memref<3x2x6xf32, #tpu.memory_space<vmem>>, vector<1x2x6xf32>
    %170 = vector.shape_cast %169 : vector<1x2x6xf32> to vector<2x6xf32>
    %171 = vector.shape_cast %168 : vector<2x6xf32> to vector<1x2x6xf32>
    tpu.vector_store %arg13[%c2, %c0_58, %c0_59], %171 {strides = array<i32>} : memref<3x2x6xf32, #tpu.memory_space<vmem>>, vector<1x2x6xf32>,
    %172 = arith.truncf %126 : vector<2x256xf32> to vector<2x256xbf16>
    %cst_60 = arith.constant dense<0.000000e+00> : vector<2x1024xf32>
    %173 = tpu.matmul %172, %3, %cst_60 {dimension_numbers = #tpu.dot_dimension_numbers<[1], [0], [0], [1], [0, 0, 1, 1], [], []>} : vector<2x256xbf16>, vector<256x1024xbf16>, vector<2x1024xf32> -> vector<2x1024xf32>
    %174 = arith.addf %13, %173 : vector<2x1024xf32>
    %175 = vector.extract_strided_slice %174 {offsets = [0, 0], sizes = [2, 256], strides = [1, 1]} : vector<2x1024xf32> to vector<2x256xf32>
    %176 = arith.negf %175 : vector<2x256xf32>
    %177 = math.exp %176 : vector<2x256xf32>
    %cst_61 = arith.constant 1.000000e+00 : f32
    %178 = vector.broadcast %cst_61 : f32 to vector<2x256xf32>
    %179 = arith.addf %178, %177 : vector<2x256xf32>
    %180 = arith.divf %178, %179 : vector<2x256xf32>
    %181 = vector.extract_strided_slice %174 {offsets = [0, 256], sizes = [2, 256], strides = [1, 1]} : vector<2x1024xf32> to vector<2x256xf32>
    %182 = arith.negf %181 : vector<2x256xf32>
    %183 = math.exp %182 : vector<2x256xf32>
    %cst_62 = arith.constant 1.000000e+00 : f32
    %184 = vector.broadcast %cst_62 : f32 to vector<2x256xf32>
    %185 = arith.addf %184, %183 : vector<2x256xf32>
    %186 = arith.divf %184, %185 : vector<2x256xf32>
    %187 = vector.extract_strided_slice %174 {offsets = [0, 512], sizes = [2, 256], strides = [1, 1]} : vector<2x1024xf32> to vector<2x256xf32>
    %188 = math.tanh %187 : vector<2x256xf32>
    %189 = vector.extract_strided_slice %174 {offsets = [0, 768], sizes = [2, 256], strides = [1, 1]} : vector<2x1024xf32> to vector<2x256xf32>
    %190 = arith.negf %189 : vector<2x256xf32>
    %191 = math.exp %190 : vector<2x256xf32>
    %cst_63 = arith.constant 1.000000e+00 : f32
    %192 = vector.broadcast %cst_63 : f32 to vector<2x256xf32>
    %193 = arith.addf %192, %191 : vector<2x256xf32>
    %194 = arith.divf %192, %193 : vector<2x256xf32>
    %195 = arith.mulf %186, %124 : vector<2x256xf32>
    %196 = arith.mulf %180, %188 : vector<2x256xf32>
    %197 = arith.addf %195, %196 : vector<2x256xf32>
    %198 = math.tanh %197 : vector<2x256xf32>
    %199 = arith.mulf %194, %198 : vector<2x256xf32>
    %200 = arith.truncf %199 : vector<2x256xf32> to vector<2x256xbf16>
    %cst_64 = arith.constant dense<0.000000e+00> : vector<2x1024xf32>
    %201 = tpu.matmul %200, %4, %cst_64 {dimension_numbers = #tpu.dot_dimension_numbers<[1], [0], [0], [1], [0, 0, 1, 1], [], []>} : vector<2x256xbf16>, vector<256x1024xbf16>, vector<2x1024xf32> -> vector<2x1024xf32>
    %202 = arith.truncf %158 : vector<2x256xf32> to vector<2x256xbf16>
    %cst_65 = arith.constant dense<0.000000e+00> : vector<2x1024xf32>
    %203 = tpu.matmul %202, %5, %cst_65 {dimension_numbers = #tpu.dot_dimension_numbers<[1], [0], [0], [1], [0, 0, 1, 1], [], []>} : vector<2x256xbf16>, vector<256x1024xbf16>, vector<2x1024xf32> -> vector<2x1024xf32>
    %204 = arith.addf %201, %203 : vector<2x1024xf32>
    %205 = vector.broadcast %7 : vector<1x1024xf32> to vector<2x1024xf32>
    %206 = arith.addf %204, %205 : vector<2x1024xf32>
    %207 = vector.extract_strided_slice %206 {offsets = [0, 0], sizes = [2, 256], strides = [1, 1]} : vector<2x1024xf32> to vector<2x256xf32>
    %208 = arith.negf %207 : vector<2x256xf32>
    %209 = math.exp %208 : vector<2x256xf32>
    %cst_66 = arith.constant 1.000000e+00 : f32
    %210 = vector.broadcast %cst_66 : f32 to vector<2x256xf32>
    %211 = arith.addf %210, %209 : vector<2x256xf32>
    %212 = arith.divf %210, %211 : vector<2x256xf32>
    %213 = vector.extract_strided_slice %206 {offsets = [0, 256], sizes = [2, 256], strides = [1, 1]} : vector<2x1024xf32> to vector<2x256xf32>
    %214 = arith.negf %213 : vector<2x256xf32>
    %215 = math.exp %214 : vector<2x256xf32>
    %cst_67 = arith.constant 1.000000e+00 : f32
    %216 = vector.broadcast %cst_67 : f32 to vector<2x256xf32>
    %217 = arith.addf %216, %215 : vector<2x256xf32>
    %218 = arith.divf %216, %217 : vector<2x256xf32>
    %219 = vector.extract_strided_slice %206 {offsets = [0, 512], sizes = [2, 256], strides = [1, 1]} : vector<2x1024xf32> to vector<2x256xf32>
    %220 = math.tanh %219 : vector<2x256xf32>
    %221 = vector.extract_strided_slice %206 {offsets = [0, 768], sizes = [2, 256], strides = [1, 1]} : vector<2x1024xf32> to vector<2x256xf32>
    %222 = arith.negf %221 : vector<2x256xf32>
    %223 = math.exp %222 : vector<2x256xf32>
    %cst_68 = arith.constant 1.000000e+00 : f32
    %224 = vector.broadcast %cst_68 : f32 to vector<2x256xf32>
    %225 = arith.addf %224, %223 : vector<2x256xf32>
    %226 = arith.divf %224, %225 : vector<2x256xf32>
    %227 = arith.mulf %218, %156 : vector<2x256xf32>
    %228 = arith.mulf %212, %220 : vector<2x256xf32>
    %229 = arith.addf %227, %228 : vector<2x256xf32>
    %230 = math.tanh %229 : vector<2x256xf32>
    %231 = arith.mulf %226, %230 : vector<2x256xf32>
    %cst_69 = arith.constant dense<0.000000e+00> : vector<2x8xf32>
    %232 = tpu.matmul %231, %8, %cst_69 {dimension_numbers = #tpu.dot_dimension_numbers<[1], [0], [0], [1], [0, 0, 1, 1], [], []>} : vector<2x256xf32>, vector<256x8xf32>, vector<2x8xf32> -> vector<2x8xf32>
    %233 = vector.broadcast %9 : vector<1x8xf32> to vector<2x8xf32>
    %234 = arith.addf %232, %233 : vector<2x8xf32>
    %235 = math.tanh %234 : vector<2x8xf32>
    %c2_70 = arith.constant 2 : index
    %c0_71 = arith.constant 0 : index
    %c0_72 = arith.constant 0 : index
    %236 = vector.load %arg12[%c2_70, %c0_71, %c0_72] : memref<3x2x8xf32, #tpu.memory_space<vmem>>, vector<1x2x8xf32>
    %237 = vector.shape_cast %236 : vector<1x2x8xf32> to vector<2x8xf32>
    %238 = vector.shape_cast %235 : vector<2x8xf32> to vector<1x2x8xf32>
    tpu.vector_store %arg12[%c2_70, %c0_71, %c0_72], %238 {strides = array<i32>} : memref<3x2x8xf32, #tpu.memory_space<vmem>>, vector<1x2x8xf32>,
    %239 = vector.extract_strided_slice %235 {offsets = [0, 0], sizes = [2, 6], strides = [1, 1]} : vector<2x8xf32> to vector<2x6xf32>
    %240 = arith.addf %167, %239 : vector<2x6xf32>
    %241 = vector.extract_strided_slice %235 {offsets = [0, 0], sizes = [2, 3], strides = [1, 1]} : vector<2x8xf32> to vector<2x3xf32>
    %242 = vector.extract_strided_slice %235 {offsets = [0, 3], sizes = [2, 3], strides = [1, 1]} : vector<2x8xf32> to vector<2x3xf32>
    %c0_73 = arith.constant 0 : index
    %c0_74 = arith.constant 0 : index
    %c0_75 = arith.constant 0 : index
    %243 = vector.load %arg1[%c0_73, %c0_74, %c0_75] : memref<2x3x128xf32, #tpu.memory_space<vmem>>, vector<2x3x128xf32>
    %244 = vector.extract_strided_slice %243 {offsets = [0, 0, 0], sizes = [2, 1, 128], strides = [1, 1, 1]} : vector<2x3x128xf32> to vector<2x1x128xf32>
    %245 = vector.shape_cast %244 : vector<2x1x128xf32> to vector<2x128xf32>
    %246 = vector.extract_strided_slice %243 {offsets = [0, 1, 0], sizes = [2, 1, 128], strides = [1, 1, 1]} : vector<2x3x128xf32> to vector<2x1x128xf32>
    %247 = vector.shape_cast %246 : vector<2x1x128xf32> to vector<2x128xf32>
    %248 = vector.extract_strided_slice %243 {offsets = [0, 2, 0], sizes = [2, 1, 128], strides = [1, 1, 1]} : vector<2x3x128xf32> to vector<2x1x128xf32>
    %249 = vector.shape_cast %248 : vector<2x1x128xf32> to vector<2x128xf32>
    %250 = vector.extract_strided_slice %242 {offsets = [0, 0], sizes = [2, 1], strides = [1, 1]} : vector<2x3xf32> to vector<2x1xf32>
    %251 = vector.extract_strided_slice %242 {offsets = [0, 1], sizes = [2, 1], strides = [1, 1]} : vector<2x3xf32> to vector<2x1xf32>
    %252 = vector.extract_strided_slice %242 {offsets = [0, 2], sizes = [2, 1], strides = [1, 1]} : vector<2x3xf32> to vector<2x1xf32>
    %253 = math.cos %250 : vector<2x1xf32>
    %254 = math.sin %250 : vector<2x1xf32>
    %255 = math.cos %251 : vector<2x1xf32>
    %256 = math.sin %251 : vector<2x1xf32>
    %257 = math.cos %252 : vector<2x1xf32>
    %258 = math.sin %252 : vector<2x1xf32>
    %259 = arith.mulf %257, %255 : vector<2x1xf32>
    %260 = arith.mulf %257, %256 : vector<2x1xf32>
    %261 = arith.mulf %260, %254 : vector<2x1xf32>
    %262 = arith.mulf %258, %253 : vector<2x1xf32>
    %263 = arith.subf %261, %262 : vector<2x1xf32>
    %264 = arith.mulf %257, %256 : vector<2x1xf32>
    %265 = arith.mulf %264, %253 : vector<2x1xf32>
    %266 = arith.mulf %258, %254 : vector<2x1xf32>
    %267 = arith.addf %265, %266 : vector<2x1xf32>
    %268 = arith.mulf %258, %255 : vector<2x1xf32>
    %269 = arith.mulf %258, %256 : vector<2x1xf32>
    %270 = arith.mulf %269, %254 : vector<2x1xf32>
    %271 = arith.mulf %257, %253 : vector<2x1xf32>
    %272 = arith.addf %270, %271 : vector<2x1xf32>
    %273 = arith.mulf %258, %256 : vector<2x1xf32>
    %274 = arith.mulf %273, %253 : vector<2x1xf32>
    %275 = arith.mulf %257, %254 : vector<2x1xf32>
    %276 = arith.subf %274, %275 : vector<2x1xf32>
    %cst_76 = arith.constant 0.000000e+00 : f32
    %277 = vector.broadcast %cst_76 : f32 to vector<2x1xf32>
    %278 = arith.subf %277, %256 : vector<2x1xf32>
    %279 = arith.mulf %255, %254 : vector<2x1xf32>
    %280 = arith.mulf %255, %253 : vector<2x1xf32>
    %281 = vector.extract_strided_slice %241 {offsets = [0, 0], sizes = [2, 1], strides = [1, 1]} : vector<2x3xf32> to vector<2x1xf32>
    %282 = vector.extract_strided_slice %241 {offsets = [0, 1], sizes = [2, 1], strides = [1, 1]} : vector<2x3xf32> to vector<2x1xf32>
    %283 = vector.extract_strided_slice %241 {offsets = [0, 2], sizes = [2, 1], strides = [1, 1]} : vector<2x3xf32> to vector<2x1xf32>
    %284 = vector.broadcast %259 : vector<2x1xf32> to vector<2x128xf32>
    %285 = arith.mulf %284, %245 : vector<2x128xf32>
    %286 = vector.broadcast %263 : vector<2x1xf32> to vector<2x128xf32>
    %287 = arith.mulf %286, %247 : vector<2x128xf32>
    %288 = arith.addf %285, %287 : vector<2x128xf32>
    %289 = vector.broadcast %267 : vector<2x1xf32> to vector<2x128xf32>
    %290 = arith.mulf %289, %249 : vector<2x128xf32>
    %291 = arith.addf %288, %290 : vector<2x128xf32>
    %292 = vector.broadcast %281 : vector<2x1xf32> to vector<2x128xf32>
    %293 = arith.addf %291, %292 : vector<2x128xf32>
    %294 = vector.broadcast %268 : vector<2x1xf32> to vector<2x128xf32>
    %295 = arith.mulf %294, %245 : vector<2x128xf32>
    %296 = vector.broadcast %272 : vector<2x1xf32> to vector<2x128xf32>
    %297 = arith.mulf %296, %247 : vector<2x128xf32>
    %298 = arith.addf %295, %297 : vector<2x128xf32>
    %299 = vector.broadcast %276 : vector<2x1xf32> to vector<2x128xf32>
    %300 = arith.mulf %299, %249 : vector<2x128xf32>
    %301 = arith.addf %298, %300 : vector<2x128xf32>
    %302 = vector.broadcast %282 : vector<2x1xf32> to vector<2x128xf32>
    %303 = arith.addf %301, %302 : vector<2x128xf32>
    %304 = vector.broadcast %278 : vector<2x1xf32> to vector<2x128xf32>
    %305 = arith.mulf %304, %245 : vector<2x128xf32>
    %306 = vector.broadcast %279 : vector<2x1xf32> to vector<2x128xf32>
    %307 = arith.mulf %306, %247 : vector<2x128xf32>
    %308 = arith.addf %305, %307 : vector<2x128xf32>
    %309 = vector.broadcast %280 : vector<2x1xf32> to vector<2x128xf32>
    %310 = arith.mulf %309, %249 : vector<2x128xf32>
    %311 = arith.addf %308, %310 : vector<2x128xf32>
    %312 = vector.broadcast %283 : vector<2x1xf32> to vector<2x128xf32>
    %313 = arith.addf %311, %312 : vector<2x128xf32>
    %314 = vector.shape_cast %293 : vector<2x128xf32> to vector<2x1x128xf32>
    %315 = vector.shape_cast %303 : vector<2x128xf32> to vector<2x1x128xf32>
    %316 = vector.shape_cast %313 : vector<2x128xf32> to vector<2x1x128xf32>
    %317 = tpu.concatenate %314, %315, %316 in 1 : vector<2x1x128xf32>, vector<2x1x128xf32>, vector<2x1x128xf32> -> vector<2x3x128xf32>
    %c0_77 = arith.constant 0 : index
    %c0_78 = arith.constant 0 : index
    %c0_79 = arith.constant 0 : index
    %318 = vector.load %arg15[%c0_77, %c0_78, %c0_79] : memref<2x3x128xf32, #tpu.memory_space<vmem>>, vector<2x3x128xf32>
    tpu.vector_store %arg15[%c0_77, %c0_78, %c0_79], %317 {strides = array<i32>} : memref<2x3x128xf32, #tpu.memory_space<vmem>>, vector<2x3x128xf32>,
    %c0_80 = arith.constant 0 : index
    %c0_81 = arith.constant 0 : index
    %319 = vector.load %arg14[%c0_80, %c0_81] : memref<2x6xf32, #tpu.memory_space<vmem>>, vector<2x6xf32>
    tpu.vector_store %arg14[%c0_80, %c0_81], %240 {strides = array<i32>} : memref<2x6xf32, #tpu.memory_space<vmem>>, vector<2x6xf32>,
    return
  }
}

</mosaic_0001>

<bundles_post_ra>
// kernel: generate_seq.1
= control target key start
LH: loop header
LB: loop body
LE: loop exit
PB: predicated region body
PF: predicated region fallthrough
CT: control target
= control target key end

     0   :  { %21 = vsyncpa [#allocation3], 0  ;;  %s12322_s0 = inlined_call_operand.vmem [shape: f32[2,64], index: 0, kind: input, shape index: {}]   ;;  %s12323_s1 = inlined_call_operand.vmem [shape: f32[2,3,128], index: 1, kind: input, shape index: {}]   ;;  %s12324_s2 = inlined_call_operand.vmem [shape: f32[2,6], index: 2, kind: input, shape index: {}]   ;;  %s12325_s3 = inlined_call_operand.hbm [shape: f32[2,6], index: 3, kind: input, shape index: {}]   ;;  %s12326_s4 = inlined_call_operand.vmem [shape: bf16[64,1024], index: 4, kind: input, shape index: {}]   ;;  %s12327_s5 = inlined_call_operand.hbm [shape: bf16[256,1024], index: 5, kind: input, shape index: {}]   ;;  %s12328_s6 = inlined_call_operand.vmem [shape: f32[1,1024], index: 6, kind: input, shape index: {}]   ;;  %s12329_s7 = inlined_call_operand.hbm [shape: bf16[256,1024], index: 7, kind: input, shape index: {}]   ;;  %s12330_s8 = inlined_call_operand.hbm [shape: bf16[256,1024], index: 8, kind: input, shape index: {}]   ;;  %s12331_s9 = inlined_call_operand.vmem [shape: f32[1,1024], index: 9, kind: input, shape index: {}]   ;;  %s12332_s10 = inlined_call_operand.vmem [shape: f32[256,8], index: 10, kind: input, shape index: {}]   ;;  %s12333_s11 = inlined_call_operand.hbm [shape: f32[1,8], index: 11, kind: input, shape index: {}]   ;;  %s12334_s12 = inlined_call_operand.vmem [shape: f32[3,2,8], index: 12, kind: output, shape index: {0}]   ;;  %s12335_s13 = inlined_call_operand.vmem [shape: f32[3,2,6], index: 13, kind: output, shape index: {1}]   ;;  %s12336_s14 = inlined_call_operand.hbm [shape: f32[2,6], index: 14, kind: output, shape index: {2}]   ;;  %s12337_s15 = inlined_call_operand.vmem [shape: f32[2,3,128], index: 15, kind: output, shape index: {3}]  }
   0x1   :  { %22 = vsyncpa [#allocation6], 0 }
   0x2   :  { %23 = vsyncpa [#allocation9], 0  ;;  %s48_s20 = sshll.u32 %s12327_s5, 4  ;;  %s49_s20 = int_to_ptr.hbm [resolvable:$true] %s48_s20 }
   0x3   :  { %24 = vsyncpa [#allocation4], 0  ;;  %s8697_s21 = smov [#allocation5]   ;;  %s76_s25 = sshll.u32 %s12330_s8, 4  ;;  %s77_s25 = int_to_ptr.hbm [resolvable:$true] %s76_s25 }
   0x4   :  { %s50_s22 = sshll.u32 %s8697_s21, 4  ;;  %s8698_s26 = smov 512   ;;  %s51_s22 = int_to_ptr.vmem [resolvable:$true] %s50_s22 }
   0x5   :  { %s8699_s27 = smov 32   ;;  %s8700_s28 = smov [#allocation8]  }
   0x6   :  { %56 = dma.hbm_to_vmem [thread:$0]  %s49_s20, 16384, %s51_s22, [#allocation6], %s8698_s26, %s8698_s26, %s8699_s27  }
   0x7   :  { %s78_s29 = sshll.u32 %s8700_s28, 4  ;;  %s36_s17 = sshll.u32 %s12325_s3, 4  ;;  %s79_s29 = int_to_ptr.vmem [resolvable:$true] %s78_s29  ;;  %s37_s17 = int_to_ptr.hbm [resolvable:$true] %s36_s17 }
   0x8   :  { %84 = dma.hbm_to_vmem [thread:$0]  %s77_s25, 16384, %s79_s29, [#allocation9], %s8698_s26, %s8698_s26, %s8699_s27  }
   0x9   :  { %s63_s19 = sshll.u32 %s12329_s7, 4  ;;  %s8701_s21 = smov [#allocation2]   ;;  %s64_s19 = int_to_ptr.hbm [resolvable:$true] %s63_s19 }
   0xa   :  { %s38_s23 = sshll.u32 %s8701_s21, 4  ;;  %s8702_s8 = smov [#allocation7]   ;;  %s39_s23 = int_to_ptr.vmem [resolvable:$true] %s38_s23 }
   0xb   :  { %41 = dma.hbm_to_vmem [thread:$0]  %s37_s17, 32, %s39_s23, [#allocation3]  }
   0xc   :  { %s65_s20 = sshll.u32 %s8702_s8, 4  ;;  %s94_s28 = sshll.u32 %s12333_s11, 4  ;;  %s66_s20 = int_to_ptr.vmem [resolvable:$true] %s65_s20  ;;  %s95_s28 = int_to_ptr.hbm [resolvable:$true] %s94_s28 }
   0xd   :  { %71 = dma.hbm_to_vmem [thread:$0]  %s64_s19, 16384, %s66_s20, [#allocation6], %s8698_s26, %s8698_s26, %s8699_s27  }
   0xe   :  { %s8703_s3 = smov [#allocation10]  }
   0xf   :  { %s96_s25 = sshll.u32 %s8703_s3, 4  ;;  %s97_s25 = int_to_ptr.vmem [resolvable:$true] %s96_s25 }
  0x10   :  { %99 = dma.hbm_to_vmem [thread:$0]  %s95_s28, 16, %s97_s25, [#allocation9]  }
  0x11   :  { %8689 = dma.done.wait [#allocation3], 32  }
  0x12   :  { %8690 = vsyncadd [#allocation3], 4294967264 }
  0x13   :  { %8691 = dma.done.wait [#allocation6], 32768  }
  0x14   :  { %8692 = vsyncadd [#allocation6], 4294934528 }
  0x15   :  { %8693 = dma.done.wait [#allocation9], 16400  }
  0x16   :  { %8694 = vsyncadd [#allocation9], 4294950896  ;;  %v6213_v0 = vld [vmem:[%s12326_s4 + $0xc0] sm:$0xf]  ;;  %v7857_v2 = vld [vmem:[%s12326_s4 + $0xc4] sm:$0xf] }
  0x17   :  { %v7861_v1 = vld [vmem:[%s12326_s4 + $0xdc] sm:$0xf0]  ;;  %v6215_v4 = vld [vmem:[%s12326_s4 + $0xe0] sm:$0xf0]  ;;  %v6229_v5 = vld [vmem:[%s12326_s4 + $0xd0] sm:$0xf] }
  0x18   :  { %v6214_v3 = vor.u32 %v7861_v1, %v6213_v0  ;;  %v7863_v6 = vld [vmem:[%s12326_s4 + $0xec] sm:$0xf0]  ;;  %v6218_v7 = vor.u32 %v7857_v2, %v6215_v4  ;;  %v7859_v9 = vld [vmem:[%s12326_s4 + $0xd4] sm:$0xf]  ;;  %v6181_v11 = vld [vmem:[%s12326_s4 + $0x80] sm:$0xf] }
  0x19   :  { %v6230_v8 = vor.u32 %v7863_v6, %v6229_v5  ;;  %v6231_v10 = vld [vmem:[%s12326_s4 + $0xf0] sm:$0xf0]  ;;  %v7853_v13 = vld [vmem:[%s12326_s4 + $0x9c] sm:$0xf0]  ;;  %v7849_v14 = vld [vmem:[%s12326_s4 + $0x84] sm:$0xf] }
  0x1a   :  { %760 = vmatpush.bf16.msra.mxu2 %v6214_v3  ;;  %v6234_v12 = vor.u32 %v7859_v9, %v6231_v10  ;;  %v6183_v15 = vld [vmem:[%s12326_s4 + $0xa0] sm:$0xf0]  ;;  %773 = vmatpush.bf16.msra.mxu3 %v6218_v7  ;;  %v6182_v16 = vor.u32 %v7853_v13, %v6181_v11  ;;  %v6197_v18 = vld [vmem:[%s12326_s4 + $0x90] sm:$0xf]  ;;  %v7851_v20 = vld [vmem:[%s12326_s4 + $0x94] sm:$0xf] }
  0x1b   :  { %812 = vmatpush.bf16.msra.mxu0 %v6230_v8  ;;  %v6186_v17 = vor.u32 %v7849_v14, %v6183_v15  ;;  %v7855_v19 = vld [vmem:[%s12326_s4 + $0xac] sm:$0xf0]  ;;  %v6199_v22 = vld [vmem:[%s12326_s4 + $0xb0] sm:$0xf0]  ;;  %v6149_v23 = vld [vmem:[%s12326_s4 + $0x40] sm:$0xf] }
  0x1c   :  { %825 = vmatpush.bf16.msra.mxu1 %v6234_v12  ;;  %v6198_v21 = vor.u32 %v7855_v19, %v6197_v18  ;;  %v7845_v24 = vld [vmem:[%s12326_s4 + $0x5c] sm:$0xf0]  ;;  %v6202_v25 = vor.u32 %v7851_v20, %v6199_v22  ;;  %v7841_v26 = vld [vmem:[%s12326_s4 + $0x44] sm:$0xf]  ;;  %v6165_v28 = vld [vmem:[%s12326_s4 + $0x50] sm:$0xf] }
  0x1d   :  { %v6151_v27 = vld [vmem:[%s12326_s4 + $0x60] sm:$0xf0]  ;;  %v6150_v29 = vor.u32 %v7845_v24, %v6149_v23  ;;  %v7847_v30 = vld [vmem:[%s12326_s4 + $0x6c] sm:$0xf0]  ;;  %v7843_v31 = vld [vmem:[%s12326_s4 + $0x54] sm:$0xf] }
  0x1e   :  { %761 = vmatpush.bf16.msra.mxu2 %v6182_v16  ;;  %v6167_v32 = vld [vmem:[%s12326_s4 + $0x70] sm:$0xf0]  ;;  %774 = vmatpush.bf16.msra.mxu3 %v6186_v17  ;;  %v6154_v33 = vor.u32 %v7841_v26, %v6151_v27  ;;  %v6166_v34 = vor.u32 %v7847_v30, %v6165_v28  ;;  %v6117_v35 = vld [vmem:[%s12326_s4] sm:$0xf]  ;;  %v7833_v37 = vld [vmem:[%s12326_s4 + $0x4] sm:$0xf] }
  0x1f   :  { %813 = vmatpush.bf16.msra.mxu0 %v6198_v21  ;;  %v7837_v36 = vld [vmem:[%s12326_s4 + $0x1c] sm:$0xf0]  ;;  %v6170_v38 = vor.u32 %v7843_v31, %v6167_v32  ;;  %v6119_v39 = vld [vmem:[%s12326_s4 + $0x20] sm:$0xf0]  ;;  %v6133_v40 = vld [vmem:[%s12326_s4 + $0x10] sm:$0xf] }
  0x20   :  { %826 = vmatpush.bf16.msra.mxu1 %v6202_v25  ;;  %v7839_v41 = vld [vmem:[%s12326_s4 + $0x2c] sm:$0xf0]  ;;  %v7835_v42 = vld [vmem:[%s12326_s4 + $0x14] sm:$0xf]  ;;  %v6221_v44 = vld [vmem:[%s12326_s4 + $0xc8] sm:$0xf]  ;;  %v6118_v45 = vor.u32 %v7837_v36, %v6117_v35  ;;  %v6122_v49 = vor.u32 %v7833_v37, %v6119_v39 }
  0x21   :  { %v6135_v43 = vld [vmem:[%s12326_s4 + $0x30] sm:$0xf0]  ;;  %v7862_v46 = vld [vmem:[%s12326_s4 + $0xe4] sm:$0xf0]  ;;  %v7858_v47 = vld [vmem:[%s12326_s4 + $0xcc] sm:$0xf]  ;;  %v6134_v50 = vor.u32 %v7839_v41, %v6133_v40 }
  0x22   :  { %762 = vmatpush.bf16.msra.mxu2 %v6150_v29  ;;  %v6223_v48 = vld [vmem:[%s12326_s4 + $0xe8] sm:$0xf0]  ;;  %775 = vmatpush.bf16.msra.mxu3 %v6154_v33  ;;  %v6477_v51 = vld [vmem:[#allocation5 + $0x1c0] sm:$0xf]  ;;  %v6138_v54 = vor.u32 %v7835_v42, %v6135_v43  ;;  %v6222_v55 = vor.u32 %v7862_v46, %v6221_v44  ;;  %v121_v57 = vld [vmem:[%s12322_s0] sm:$0x3] }
  0x23   :  { %814 = vmatpush.bf16.msra.mxu0 %v6166_v34  ;;  %v7925_v52 = vld [vmem:[#allocation5 + $0x1dc] sm:$0xf0]  ;;  %v6226_v58 = vor.u32 %v7858_v47, %v6223_v48  ;;  %v6189_v60 = vld [vmem:[%s12326_s4 + $0x88] sm:$0xf]  ;;  %v7850_v62 = vld [vmem:[%s12326_s4 + $0x8c] sm:$0xf]  ;;  %v8937_v0 = vpack.c.bf16 %v121_v57, %v121_v57 }
  0x24   :  { %v6733_v53 = vld [vmem:[#allocation5 + $0x3c0] sm:$0xf]  ;;  %827 = vmatpush.bf16.msra.mxu1 %v6170_v38  ;;  %v8924_v59 = vor.u32 %v7925_v52, %v6477_v51  ;;  %v7854_v61 = vld [vmem:[%s12326_s4 + $0xa4] sm:$0xf0]  ;;  %v6191_v1 = vld [vmem:[%s12326_s4 + $0xa8] sm:$0xf0] }
  0x25   :  { %v7989_v56 = vld [vmem:[#allocation5 + $0x3dc] sm:$0xf0]  ;;  %vm752_vm0 = vcmask 523264   ;;  %v6190_v6 = vor.u32 %v7854_v61, %v6189_v60  ;;  %v6194_v7 = vor.u32 %v7850_v62, %v6191_v1  ;;  %v6157_v9 = vld [vmem:[%s12326_s4 + $0x48] sm:$0xf]  ;;  %s8713_s24 = smov 2  }
  0x26   :  { %763 = vmatpush.bf16.msra.mxu2 %v6118_v45  ;;  %v8935_v63 = vor.u32 %v7989_v56, %v6733_v53  ;;  %v6445_v2 = vld [vmem:[#allocation5 + $0x180] sm:$0xf]  ;;  %776 = vmatpush.bf16.msra.mxu3 %v6122_v49  ;;  %v7846_v10 = vld [vmem:[%s12326_s4 + $0x64] sm:$0xf0]  ;;  %v7842_v11 = vld [vmem:[%s12326_s4 + $0x4c] sm:$0xf] }
  0x27   :  { %v7917_v3 = vld [vmem:[#allocation5 + $0x19c] sm:$0xf0]  ;;  %815 = vmatpush.bf16.msra.mxu0 %v6134_v50  ;;  %v6159_v13 = vld [vmem:[%s12326_s4 + $0x68] sm:$0xf0]  ;;  %v6158_v18 = vor.u32 %v7846_v10, %v6157_v9  ;;  %v6125_v19 = vld [vmem:[%s12326_s4 + $0x8] sm:$0xf] }
  0x28   :  { %v6701_v4 = vld [vmem:[#allocation5 + $0x380] sm:$0xf]  ;;  %828 = vmatpush.bf16.msra.mxu1 %v6138_v54  ;;  %v8943_v8 = vor.u32 %v7917_v3, %v6445_v2  ;;  %v6162_v20 = vor.u32 %v7842_v11, %v6159_v13  ;;  %v7838_v22 = vld [vmem:[%s12326_s4 + $0x24] sm:$0xf0]  ;;  %v7834_v23 = vld [vmem:[%s12326_s4 + $0xc] sm:$0xf] }
  0x29   :  { %v7981_v5 = vld [vmem:[#allocation5 + $0x39c] sm:$0xf0]  ;;  %6243 = vmatmul.msk.bf16.vlgmr.msra.gmra.mxu2 %vm752_vm0, %v8937_v0  ;;  %6244 = vmatmul.msk.bf16.vlgmr.msra.gmra.mxu3 %vm752_vm0, %v8937_v0  ;;  %v6127_v24 = vld [vmem:[%s12326_s4 + $0x28] sm:$0xf0]  ;;  %v6237_v30 = vld [vmem:[%s12326_s4 + $0xd8] sm:$0xf]  ;;  %v6126_v32 = vor.u32 %v7838_v22, %v6125_v19 }
  0x2a   :  { %786 = vmatpush.bf16.msrb.mxu2 %v6222_v55  ;;  %799 = vmatpush.bf16.msrb.mxu3 %v6226_v58  ;;  %v8957_v12 = vor.u32 %v7981_v5, %v6701_v4  ;;  %v6413_v14 = vld [vmem:[#allocation5 + $0x140] sm:$0xf]  ;;  %v7864_v31 = vld [vmem:[%s12326_s4 + $0xf4] sm:$0xf0]  ;;  %v7860_v33 = vld [vmem:[%s12326_s4 + $0xdc] sm:$0xf]  ;;  %v6130_v35 = vor.u32 %v7834_v23, %v6127_v24 }
  0x2b   :  { %1505 = vmatpush.bf16.msrb.mxu0 %v8924_v59  ;;  %v7909_v15 = vld [vmem:[#allocation5 + $0x15c] sm:$0xf0]  ;;  %6248 = vmatmul.msk.bf16.vlgmr.msra.gmra.mxu1 %vm752_vm0, %v8937_v0  ;;  %v6239_v34 = vld [vmem:[%s12326_s4 + $0xf8] sm:$0xf0]  ;;  %v6238_v38 = vor.u32 %v7864_v31, %v6237_v30  ;;  %v6205_v44 = vld [vmem:[%s12326_s4 + $0x98] sm:$0xf] }
  0x2c   :  { %1518 = vmatpush.bf16.msrb.mxu1 %v8935_v63  ;;  %v6669_v16 = vld [vmem:[#allocation5 + $0x340] sm:$0xf]  ;;  %6247 = vmatmul.msk.bf16.vlgmr.msra.gmra.mxu0 %vm752_vm0, %v8937_v0  ;;  %v8972_v21 = vor.u32 %v7909_v15, %v6413_v14  ;;  %v6242_v42 = vor.u32 %v7860_v33, %v6239_v34  ;;  %v7856_v45 = vld [vmem:[%s12326_s4 + $0xb4] sm:$0xf0]  ;;  %v7852_v46 = vld [vmem:[%s12326_s4 + $0x9c] sm:$0xf] }
  0x2d   :  { %v7973_v17 = vld [vmem:[#allocation5 + $0x35c] sm:$0xf0]  ;;  %v6207_v47 = vld [vmem:[%s12326_s4 + $0xb8] sm:$0xf0]  ;;  %v6206_v50 = vor.u32 %v7856_v45, %v6205_v44  ;;  %v6173_v56 = vld [vmem:[%s12326_s4 + $0x58] sm:$0xf] }
  0x2e   :  { %787 = vmatpush.bf16.msrb.mxu2 %v6190_v6  ;;  %800 = vmatpush.bf16.msrb.mxu3 %v6194_v7  ;;  %v8984_v25 = vor.u32 %v7973_v17, %v6669_v16  ;;  %v6381_v26 = vld [vmem:[#allocation5 + $0x100] sm:$0xf]  ;;  %v6210_v54 = vor.u32 %v7852_v46, %v6207_v47  ;;  %v7848_v57 = vld [vmem:[%s12326_s4 + $0x74] sm:$0xf0]  ;;  %v7844_v58 = vld [vmem:[%s12326_s4 + $0x5c] sm:$0xf] }
  0x2f   :  { %1506 = vmatpush.bf16.msrb.mxu0 %v8943_v8  ;;  %v7901_v27 = vld [vmem:[#allocation5 + $0x11c] sm:$0xf0]  ;;  %v6175_v60 = vld [vmem:[%s12326_s4 + $0x78] sm:$0xf0]  ;;  %v6174_v3 = vor.u32 %v7848_v57, %v6173_v56  ;;  %v6141_v6 = vld [vmem:[%s12326_s4 + $0x18] sm:$0xf] }
  0x30   :  { %1519 = vmatpush.bf16.msrb.mxu1 %v8957_v12  ;;  %13095 = vst [vmem:[#allocation16_spill] sm:$0xff] %v8984_v25  ;;  %v6637_v28 = vld [vmem:[#allocation5 + $0x300] sm:$0xf]  ;;  %v8999_v36 = vor.u32 %v7901_v27, %v6381_v26  ;;  %v6178_v7 = vor.u32 %v7844_v58, %v6175_v60  ;;  %v7840_v9 = vld [vmem:[%s12326_s4 + $0x34] sm:$0xf0]  ;;  %v12338_v15 = vmov 0  }
  0x31   :  { %v7965_v29 = vld [vmem:[#allocation5 + $0x31c] sm:$0xf0]  ;;  %v7836_v10 = vld [vmem:[%s12326_s4 + $0x1c] sm:$0xf]  ;;  %v7921_v13 = vld [vmem:[#allocation5 + $0x1c4] sm:$0xf]  ;;  %8270 = vset.pattern.permute.xlu1 %v12338_v15  ;;  %v6142_v22 = vor.u32 %v7840_v9, %v6141_v6 }
  0x32   :  { %788 = vmatpush.bf16.msrb.mxu2 %v6158_v18  ;;  %801 = vmatpush.bf16.msrb.mxu3 %v6162_v20  ;;  %v9002_v37 = vor.u32 %v7965_v29, %v6637_v28  ;;  %v6349_v39 = vld [vmem:[#allocation5 + $0xc0] sm:$0xf]  ;;  %v6143_v11 = vld [vmem:[%s12326_s4 + $0x38] sm:$0xf0]  ;;  %v6479_v14 = vld [vmem:[#allocation5 + $0x1e0] sm:$0xf0] }
  0x33   :  { %1507 = vmatpush.bf16.msrb.mxu0 %v8972_v21  ;;  %v7893_v40 = vld [vmem:[#allocation5 + $0xdc] sm:$0xf0]  ;;  %v7985_v17 = vld [vmem:[#allocation5 + $0x3c4] sm:$0xf]  ;;  %v6146_v27 = vor.u32 %v7836_v10, %v6143_v11  ;;  %v9063_v28 = vor.u32 %v7921_v13, %v6479_v14  ;;  %v6485_v29 = vld [vmem:[#allocation5 + $0x1c8] sm:$0xf] }
  0x34   :  { %1520 = vmatpush.bf16.msrb.mxu1 %v8984_v25  ;;  %13096 = vst [vmem:[#allocation17_spill] sm:$0xff] %v9002_v37  ;;  %v6605_v41 = vld [vmem:[#allocation5 + $0x2c0] sm:$0xf]  ;;  %v9017_v48 = vor.u32 %v7893_v40, %v6349_v39  ;;  %v6735_v18 = vld [vmem:[#allocation5 + $0x3e0] sm:$0xf0]  ;;  %s8715_s28 = smov [#allocation11]  }
  0x35   :  { %v7957_v43 = vld [vmem:[#allocation5 + $0x2dc] sm:$0xf0]  ;;  %13102 = vst [vmem:[#allocation23_spill] sm:$0xff] %v9063_v28  ;;  %v7926_v30 = vld [vmem:[#allocation5 + $0x1e4] sm:$0xf0]  ;;  %s6093_s3 = sshll.u32 %s8715_s28, 4  ;;  %s6094_s3 = int_to_ptr.vmem [resolvable:$true] %s6093_s3 }
  0x36   :  { %789 = vmatpush.bf16.msrb.mxu2 %v6126_v32  ;;  %802 = vmatpush.bf16.msrb.mxu3 %v6130_v35  ;;  %v9020_v49 = vor.u32 %v7957_v43, %v6605_v41  ;;  %v6317_v51 = vld [vmem:[#allocation5 + $0x80] sm:$0xf]  ;;  %v6741_v31 = vld [vmem:[#allocation5 + $0x3c8] sm:$0xf]  ;;  %v9065_v32 = vor.u32 %v7985_v17, %v6735_v18  ;;  %v7913_v34 = vld [vmem:[#allocation5 + $0x184] sm:$0xf] }
  0x37   :  { %1508 = vmatpush.bf16.msrb.mxu0 %v8999_v36  ;;  %v7885_v52 = vld [vmem:[#allocation5 + $0x9c] sm:$0xf0]  ;;  %v7990_v33 = vld [vmem:[#allocation5 + $0x3e4] sm:$0xf0]  ;;  %v6447_v35 = vld [vmem:[#allocation5 + $0x1a0] sm:$0xf0] }
  0x38   :  { %1521 = vmatpush.bf16.msrb.mxu1 %v9002_v37  ;;  %13097 = vst [vmem:[#allocation18_spill] sm:$0xff] %v9020_v49  ;;  %v6573_v53 = vld [vmem:[#allocation5 + $0x280] sm:$0xf]  ;;  %v9035_v61 = vor.u32 %v7885_v52, %v6317_v51  ;;  %v7977_v39 = vld [vmem:[#allocation5 + $0x384] sm:$0xf]  ;;  %v9076_v43 = vor.u32 %v7990_v33, %v6741_v31  ;;  %v9078_v44 = vor.u32 %v7913_v34, %v6447_v35 }
  0x39   :  { %v7949_v55 = vld [vmem:[#allocation5 + $0x29c] sm:$0xf0]  ;;  %6245 = vmatmul.msk.bf16.vlgmr.msrb.gmra.mxu2 %vm752_vm0, %v8937_v0  ;;  %6246 = vmatmul.msk.bf16.vlgmr.msrb.gmra.mxu3 %vm752_vm0, %v8937_v0  ;;  %13103 = vst [vmem:[#allocation24_spill] sm:$0xff] %v9065_v32  ;;  %v6703_v40 = vld [vmem:[#allocation5 + $0x3a0] sm:$0xf0] }
  0x3a   :  { %838 = vmatpush.bf16.msra.mxu2 %v6238_v38  ;;  %851 = vmatpush.bf16.msra.mxu3 %v6242_v42  ;;  %13098 = vst [vmem:[#allocation19_spill] sm:$0xff] %v9035_v61  ;;  %v6285_v62 = vld [vmem:[#allocation5 + $0x40] sm:$0xf]  ;;  %v9038_v2 = vor.u32 %v7949_v55, %v6573_v53  ;;  %v9073_v42 = vor.u32 %v7926_v30, %v6485_v29  ;;  %v6453_v45 = vld [vmem:[#allocation5 + $0x188] sm:$0xf] }
  0x3b   :  { %1509 = vmatpush.bf16.msrb.mxu0 %v9017_v48  ;;  %v7877_v1 = vld [vmem:[#allocation5 + $0x5c] sm:$0xf0]  ;;  %13107 = vst [vmem:[#allocation28_spill] sm:$0xff] %v9076_v43  ;;  %v7918_v46 = vld [vmem:[#allocation5 + $0x1a4] sm:$0xf0] }
  0x3c   :  { %1522 = vmatpush.bf16.msrb.mxu1 %v9020_v49  ;;  %13099 = vst [vmem:[#allocation20_spill] sm:$0xff] %v9038_v2  ;;  %v6541_v4 = vld [vmem:[#allocation5 + $0x240] sm:$0xf]  ;;  %v9058_v16 = vor.u32 %v7877_v1, %v6285_v62  ;;  %v6709_v47 = vld [vmem:[#allocation5 + $0x388] sm:$0xf]  ;;  %v9086_v56 = vor.u32 %v7918_v46, %v6453_v45 }
  0x3d   :  { %v7941_v5 = vld [vmem:[#allocation5 + $0x25c] sm:$0xf0]  ;;  %13106 = vst [vmem:[#allocation27_spill] sm:$0xff] %v9073_v42  ;;  %v7982_v51 = vld [vmem:[#allocation5 + $0x3a4] sm:$0xf0] }
  0x3e   :  { %839 = vmatpush.bf16.msra.mxu2 %v6206_v50  ;;  %852 = vmatpush.bf16.msra.mxu3 %v6210_v54  ;;  %13100 = vst [vmem:[#allocation21_spill] sm:$0xff] %v9058_v16  ;;  %v6253_v19 = vld [vmem:[#allocation5] sm:$0xf]  ;;  %v9061_v20 = vor.u32 %v7941_v5, %v6541_v4  ;;  %v9081_v50 = vor.u32 %v7977_v39, %v6703_v40  ;;  %v7905_v52 = vld [vmem:[#allocation5 + $0x144] sm:$0xf] }
  0x3f   :  { %1510 = vmatpush.bf16.msrb.mxu0 %v9035_v61  ;;  %v7869_v23 = vld [vmem:[#allocation5 + $0x1c] sm:$0xf0]  ;;  %13108 = vst [vmem:[#allocation29_spill] sm:$0xff] %v9078_v44  ;;  %v6415_v53 = vld [vmem:[#allocation5 + $0x160] sm:$0xf0]  ;;  %v9090_v57 = vor.u32 %v7982_v51, %v6709_v47 }
  0x40   :  { %1523 = vmatpush.bf16.msrb.mxu1 %v9038_v2  ;;  %13101 = vst [vmem:[#allocation22_spill] sm:$0xff] %v9061_v20  ;;  %v6509_v24 = vld [vmem:[#allocation5 + $0x200] sm:$0xf]  ;;  %v9068_v38 = vor.u32 %v7869_v23, %v6253_v19  ;;  %v7969_v54 = vld [vmem:[#allocation5 + $0x344] sm:$0xf]  ;;  %v9092_v58 = vor.u32 %v7905_v52, %v6415_v53 }
  0x41   :  { %v7933_v26 = vld [vmem:[#allocation5 + $0x21c] sm:$0xf0]  ;;  %13109 = vst [vmem:[#allocation30_spill] sm:$0xff] %v9081_v50  ;;  %v6671_v55 = vld [vmem:[#allocation5 + $0x360] sm:$0xf0] }
  0x42   :  { %840 = vmatpush.bf16.msra.mxu2 %v6174_v3  ;;  %853 = vmatpush.bf16.msra.mxu3 %v6178_v7  ;;  %13104 = vst [vmem:[#allocation25_spill] sm:$0xff] %v9068_v38  ;;  %v9071_v41 = vor.u32 %v7933_v26, %v6509_v24  ;;  %v6421_v60 = vld [vmem:[#allocation5 + $0x148] sm:$0xf]  ;;  %v9096_v3 = vor.u32 %v7969_v54, %v6671_v55  ;;  %v7897_v5 = vld [vmem:[#allocation5 + $0x104] sm:$0xf] }
  0x43   :  { %1511 = vmatpush.bf16.msrb.mxu0 %v9058_v16  ;;  %13110 = vst [vmem:[#allocation31_spill] sm:$0xff] %v9086_v56  ;;  %v7910_v62 = vld [vmem:[#allocation5 + $0x164] sm:$0xf0]  ;;  %v6383_v6 = vld [vmem:[#allocation5 + $0x120] sm:$0xf0] }
  0x44   :  { %1524 = vmatpush.bf16.msrb.mxu1 %v9061_v20  ;;  %13105 = vst [vmem:[#allocation26_spill] sm:$0xff] %v9071_v41  ;;  %v6677_v1 = vld [vmem:[#allocation5 + $0x348] sm:$0xf]  ;;  %v7961_v7 = vld [vmem:[#allocation5 + $0x304] sm:$0xf]  ;;  %v9100_v10 = vor.u32 %v7910_v62, %v6421_v60  ;;  %v9106_v13 = vor.u32 %v7897_v5, %v6383_v6 }
  0x45   :  { %13111 = vst [vmem:[#allocation32_spill] sm:$0xff] %v9090_v57  ;;  %v7974_v4 = vld [vmem:[#allocation5 + $0x364] sm:$0xf0]  ;;  %v6639_v9 = vld [vmem:[#allocation5 + $0x320] sm:$0xf0] }
  0x46   :  { %841 = vmatpush.bf16.msra.mxu2 %v6142_v22  ;;  %854 = vmatpush.bf16.msra.mxu3 %v6146_v27  ;;  %13112 = vst [vmem:[#allocation33_spill] sm:$0xff] %v9092_v58  ;;  %v9104_v11 = vor.u32 %v7974_v4, %v6677_v1  ;;  %v6389_v14 = vld [vmem:[#allocation5 + $0x108] sm:$0xf]  ;;  %v9109_v19 = vor.u32 %v7961_v7, %v6639_v9  ;;  %v7889_v23 = vld [vmem:[#allocation5 + $0xc4] sm:$0xf] }
  0x47   :  { %1512 = vmatpush.bf16.msrb.mxu0 %v9068_v38  ;;  %13113 = vst [vmem:[#allocation34_spill] sm:$0xff] %v9096_v3  ;;  %v7902_v17 = vld [vmem:[#allocation5 + $0x124] sm:$0xf0]  ;;  %v6351_v24 = vld [vmem:[#allocation5 + $0xe0] sm:$0xf0] }
  0x48   :  { %1525 = vmatpush.bf16.msrb.mxu1 %v9071_v41  ;;  %13114 = vst [vmem:[#allocation35_spill] sm:$0xff] %v9100_v10  ;;  %v6645_v18 = vld [vmem:[#allocation5 + $0x308] sm:$0xf]  ;;  %v7953_v26 = vld [vmem:[#allocation5 + $0x2c4] sm:$0xf]  ;;  %v9116_v29 = vor.u32 %v7902_v17, %v6389_v14  ;;  %v9122_v31 = vor.u32 %v7889_v23, %v6351_v24 }
  0x49   :  { %13115 = vst [vmem:[#allocation36_spill] sm:$0xff] %v9104_v11  ;;  %6249 = vmatmul.msk.bf16.vlgmr.msra.gmra.mxu2 %vm752_vm0, %v8937_v0  ;;  %v7966_v22 = vld [vmem:[#allocation5 + $0x324] sm:$0xf0]  ;;  %6250 = vmatmul.msk.bf16.vlgmr.msra.gmra.mxu3 %vm752_vm0, %v8937_v0  ;;  %v6607_v27 = vld [vmem:[#allocation5 + $0x2e0] sm:$0xf0] }
  0x4a   :  { %1531 = vmatpush.bf16.msrb.mxu2 %v9063_v28  ;;  %1544 = vmatpush.bf16.msrb.mxu3 %v9065_v32  ;;  %13116 = vst [vmem:[#allocation37_spill] sm:$0xff] %v9106_v13  ;;  %v9120_v30 = vor.u32 %v7966_v22, %v6645_v18  ;;  %v6357_v33 = vld [vmem:[#allocation5 + $0xc8] sm:$0xf]  ;;  %v9125_v0 = vor.u32 %v7953_v26, %v6607_v27  ;;  %v7881_v40 = vld [vmem:[#allocation5 + $0x84] sm:$0xf] }
  0x4b   :  { %1557 = vmatpush.bf16.msra.mxu0 %v9073_v42  ;;  %1526 = vmatmul.bf16.vlgmr.msrb.gmra.mxu1 %v12338_v15  ;;  %13117 = vst [vmem:[#allocation38_spill] sm:$0xff] %v9109_v19  ;;  %v7894_v34 = vld [vmem:[#allocation5 + $0xe4] sm:$0xf0]  ;;  %v6319_v45 = vld [vmem:[#allocation5 + $0xa0] sm:$0xf0] }
  0x4c   :  { %1570 = vmatpush.bf16.msra.mxu1 %v9076_v43  ;;  %1513 = vmatmul.bf16.vlgmr.msrb.gmra.mxu0 %v12338_v15  ;;  %13118 = vst [vmem:[#allocation39_spill] sm:$0xff] %v9116_v29  ;;  %v6613_v35 = vld [vmem:[#allocation5 + $0x2c8] sm:$0xf]  ;;  %v7945_v46 = vld [vmem:[#allocation5 + $0x284] sm:$0xf]  ;;  %v9128_v51 = vor.u32 %v7894_v34, %v6357_v33  ;;  %v9134_v53 = vor.u32 %v7881_v40, %v6319_v45 }
  0x4d   :  { %13119 = vst [vmem:[#allocation40_spill] sm:$0xff] %v9120_v30  ;;  %v7958_v39 = vld [vmem:[#allocation5 + $0x2e4] sm:$0xf0]  ;;  %v6575_v47 = vld [vmem:[#allocation5 + $0x2a0] sm:$0xf0] }
  0x4e   :  { %1532 = vmatpush.bf16.msrb.mxu2 %v9078_v44  ;;  %1545 = vmatpush.bf16.msrb.mxu3 %v9081_v50  ;;  %13120 = vst [vmem:[#allocation41_spill] sm:$0xff] %v9122_v31  ;;  %v9132_v52 = vor.u32 %v7958_v39, %v6613_v35  ;;  %v6325_v54 = vld [vmem:[#allocation5 + $0x88] sm:$0xf]  ;;  %v9137_v62 = vor.u32 %v7945_v46, %v6575_v47  ;;  %v7873_v4 = vld [vmem:[#allocation5 + $0x44] sm:$0xf] }
  0x4f   :  { %1558 = vmatpush.bf16.msra.mxu0 %v9086_v56  ;;  %13121 = vst [vmem:[#allocation42_spill] sm:$0xff] %v9125_v0  ;;  %v7886_v55 = vld [vmem:[#allocation5 + $0xa4] sm:$0xf0]  ;;  %v6287_v5 = vld [vmem:[#allocation5 + $0x60] sm:$0xf0] }
  0x50   :  { %1571 = vmatpush.bf16.msra.mxu1 %v9090_v57  ;;  %13122 = vst [vmem:[#allocation43_spill] sm:$0xff] %v9128_v51  ;;  %v6581_v60 = vld [vmem:[#allocation5 + $0x288] sm:$0xf]  ;;  %v7937_v6 = vld [vmem:[#allocation5 + $0x244] sm:$0xf]  ;;  %v9140_v9 = vor.u32 %v7886_v55, %v6325_v54  ;;  %v9146_v18 = vor.u32 %v7873_v4, %v6287_v5 }
  0x51   :  { %13123 = vst [vmem:[#allocation44_spill] sm:$0xff] %v9132_v52  ;;  %v7950_v1 = vld [vmem:[#allocation5 + $0x2a4] sm:$0xf0]  ;;  %v6543_v7 = vld [vmem:[#allocation5 + $0x260] sm:$0xf0] }
  0x52   :  { %1533 = vmatpush.bf16.msrb.mxu2 %v9092_v58  ;;  %1546 = vmatpush.bf16.msrb.mxu3 %v9096_v3  ;;  %13124 = vst [vmem:[#allocation45_spill] sm:$0xff] %v9134_v53  ;;  %v6293_v14 = vld [vmem:[#allocation5 + $0x48] sm:$0xf]  ;;  %v9144_v17 = vor.u32 %v7950_v1, %v6581_v60  ;;  %v9149_v26 = vor.u32 %v7937_v6, %v6543_v7  ;;  %v7865_v27 = vld [vmem:[#allocation5 + $0x4] sm:$0xf] }
  0x53   :  { %1559 = vmatpush.bf16.msra.mxu0 %v9100_v10  ;;  %13125 = vst [vmem:[#allocation46_spill] sm:$0xff] %v9137_v62  ;;  %v7878_v22 = vld [vmem:[#allocation5 + $0x64] sm:$0xf0]  ;;  %v6255_v33 = vld [vmem:[#allocation5 + $0x20] sm:$0xf0] }
  0x54   :  { %1572 = vmatpush.bf16.msra.mxu1 %v9104_v11  ;;  %13126 = vst [vmem:[#allocation47_spill] sm:$0xff] %v9140_v9  ;;  %v6549_v23 = vld [vmem:[#allocation5 + $0x248] sm:$0xf]  ;;  %v7929_v34 = vld [vmem:[#allocation5 + $0x204] sm:$0xf]  ;;  %v9152_v45 = vor.u32 %v7878_v22, %v6293_v14  ;;  %v9158_v55 = vor.u32 %v7865_v27, %v6255_v33 }
  0x55   :  { %13127 = vst [vmem:[#allocation48_spill] sm:$0xff] %v9144_v17  ;;  %v7942_v24 = vld [vmem:[#allocation5 + $0x264] sm:$0xf0]  ;;  %v6511_v35 = vld [vmem:[#allocation5 + $0x220] sm:$0xf0] }
  0x56   :  { %1534 = vmatpush.bf16.msrb.mxu2 %v9106_v13  ;;  %1547 = vmatpush.bf16.msrb.mxu3 %v9109_v19  ;;  %13128 = vst [vmem:[#allocation49_spill] sm:$0xff] %v9146_v18  ;;  %v7922_v39 = vld [vmem:[#allocation5 + $0x1cc] sm:$0xf]  ;;  %v9156_v54 = vor.u32 %v7942_v24, %v6549_v23  ;;  %v6261_v60 = vld [vmem:[#allocation5 + $0x8] sm:$0xf]  ;;  %v9161_v5 = vor.u32 %v7929_v34, %v6511_v35 }
  0x57   :  { %1560 = vmatpush.bf16.msra.mxu0 %v9116_v29  ;;  %13129 = vst [vmem:[#allocation50_spill] sm:$0xff] %v9149_v26  ;;  %v6487_v40 = vld [vmem:[#allocation5 + $0x1e8] sm:$0xf0]  ;;  %v7870_v1 = vld [vmem:[#allocation5 + $0x24] sm:$0xf0] }
  0x58   :  { %1573 = vmatpush.bf16.msra.mxu1 %v9120_v30  ;;  %13130 = vst [vmem:[#allocation51_spill] sm:$0xff] %v9152_v45  ;;  %v7986_v46 = vld [vmem:[#allocation5 + $0x3cc] sm:$0xf]  ;;  %v6517_v4 = vld [vmem:[#allocation5 + $0x208] sm:$0xf]  ;;  %v9163_v6 = vor.u32 %v7922_v39, %v6487_v40  ;;  %v9168_v24 = vor.u32 %v7870_v1, %v6261_v60 }
  0x59   :  { %v6743_v47 = vld [vmem:[#allocation5 + $0x3e8] sm:$0xf0]  ;;  %13131 = vst [vmem:[#allocation52_spill] sm:$0xff] %v9156_v54  ;;  %v7934_v7 = vld [vmem:[#allocation5 + $0x224] sm:$0xf0] }
  0x5a   :  { %1535 = vmatpush.bf16.msrb.mxu2 %v9122_v31  ;;  %1548 = vmatpush.bf16.msrb.mxu3 %v9125_v0  ;;  %13132 = vst [vmem:[#allocation53_spill] sm:$0xff] %v9158_v55  ;;  %v6493_v14 = vld [vmem:[#allocation5 + $0x1d0] sm:$0xf]  ;;  %v9165_v15 = vor.u32 %v7986_v46, %v6743_v47  ;;  %v7914_v23 = vld [vmem:[#allocation5 + $0x18c] sm:$0xf]  ;;  %v9172_v34 = vor.u32 %v7934_v7, %v6517_v4  ;;  %v13142_v7 = vmov 0  }
  0x5b   :  { %1561 = vmatpush.bf16.msra.mxu0 %v9128_v51  ;;  %13133 = vst [vmem:[#allocation54_spill] sm:$0xff] %v9161_v5  ;;  %v7927_v22 = vld [vmem:[#allocation5 + $0x1ec] sm:$0xf0]  ;;  %v6455_v27 = vld [vmem:[#allocation5 + $0x1a8] sm:$0xf0] }
  0x5c   :  { %1574 = vmatpush.bf16.msra.mxu1 %v9132_v52  ;;  %13134 = vst [vmem:[#allocation55_spill] sm:$0xff] %v9163_v6  ;;  %v7991_v0 = vld [vmem:[#allocation5 + $0x3ec] sm:$0xf0]  ;;  %v7978_v33 = vld [vmem:[#allocation5 + $0x38c] sm:$0xf]  ;;  %v9176_v35 = vor.u32 %v7927_v22, %v6493_v14  ;;  %v9181_v47 = vor.u32 %v7914_v23, %v6455_v27 }
  0x5d   :  { %13135 = vst [vmem:[#allocation56_spill] sm:$0xff] %v9165_v15  ;;  %v6711_v19 = vld [vmem:[#allocation5 + $0x3a8] sm:$0xf0]  ;;  %v6461_v40 = vld [vmem:[#allocation5 + $0x190] sm:$0xf] }
  0x5e   :  { %1536 = vmatpush.bf16.msrb.mxu2 %v9134_v53  ;;  %1549 = vmatpush.bf16.msrb.mxu3 %v9137_v62  ;;  %v6749_v62 = vld [vmem:[#allocation5 + $0x3d0] sm:$0xf]  ;;  %13136 = vst [vmem:[#allocation57_spill] sm:$0xff] %v9168_v24  ;;  %v9183_v60 = vor.u32 %v7978_v33, %v6711_v19  ;;  %v7906_v4 = vld [vmem:[#allocation5 + $0x14c] sm:$0xf] }
  0x5f   :  { %1562 = vmatpush.bf16.msra.mxu0 %v9140_v9  ;;  %13137 = vst [vmem:[#allocation58_spill] sm:$0xff] %v9172_v34  ;;  %v9178_v39 = vor.u32 %v7991_v0, %v6749_v62  ;;  %v7919_v46 = vld [vmem:[#allocation5 + $0x1ac] sm:$0xf0]  ;;  %v7970_v14 = vld [vmem:[#allocation5 + $0x34c] sm:$0xf] }
  0x60   :  { %1575 = vmatpush.bf16.msra.mxu1 %v9144_v17  ;;  %13138 = vst [vmem:[#allocation59_spill] sm:$0xff] %v9176_v35  ;;  %v6717_v1 = vld [vmem:[#allocation5 + $0x390] sm:$0xf]  ;;  %v6679_v22 = vld [vmem:[#allocation5 + $0x368] sm:$0xf0]  ;;  %v9191_v19 = vor.u32 %v7919_v46, %v6461_v40 }
  0x61   :  { %13139 = vst [vmem:[#allocation60_spill] sm:$0xff] %v9178_v39  ;;  %v6429_v62 = vld [vmem:[#allocation5 + $0x150] sm:$0xf]  ;;  %v9199_v33 = vor.u32 %v7970_v14, %v6679_v22  ;;  %v6391_v40 = vld [vmem:[#allocation5 + $0x128] sm:$0xf0] }
  0x62   :  { %1537 = vmatpush.bf16.msrb.mxu2 %v9146_v18  ;;  %1550 = vmatpush.bf16.msrb.mxu3 %v9149_v26  ;;  %13140 = vst [vmem:[#allocation61_spill] sm:$0xff] %v9181_v47  ;;  %v7983_v26 = vld [vmem:[#allocation5 + $0x3ac] sm:$0xf0]  ;;  %v6647_v46 = vld [vmem:[#allocation5 + $0x328] sm:$0xf0] }
  0x63   :  { %1563 = vmatpush.bf16.msra.mxu0 %v9152_v45  ;;  %13141 = vst [vmem:[#allocation62_spill] sm:$0xff] %v9183_v60  ;;  %v9193_v0 = vor.u32 %v7983_v26, %v6717_v1  ;;  %v7911_v23 = vld [vmem:[#allocation5 + $0x16c] sm:$0xf0]  ;;  %v7962_v26 = vld [vmem:[#allocation5 + $0x30c] sm:$0xf] }
  0x64   :  { %1576 = vmatpush.bf16.msra.mxu1 %v9156_v54  ;;  %13143 = vst [vmem:[#allocation63_spill] sm:$0xff] %v9191_v19  ;;  %v9205_v1 = vor.u32 %v7911_v23, %v6429_v62  ;;  %v7903_v14 = vld [vmem:[#allocation5 + $0x12c] sm:$0xf0]  ;;  %v7890_v3 = vld [vmem:[#allocation5 + $0xcc] sm:$0xf] }
  0x65   :  { %13144 = vst [vmem:[#allocation64_spill] sm:$0xff] %v9193_v0  ;;  %v7967_v18 = vld [vmem:[#allocation5 + $0x32c] sm:$0xf0]  ;;  %v6359_v53 = vld [vmem:[#allocation5 + $0xe8] sm:$0xf0] }
  0x66   :  { %1538 = vmatpush.bf16.msrb.mxu2 %v9158_v55  ;;  %1551 = vmatpush.bf16.msrb.mxu3 %v9161_v5  ;;  %13146 = vst [vmem:[#allocation66_spill] sm:$0xff] %v9199_v33  ;;  %v7975_v5 = vld [vmem:[#allocation5 + $0x36c] sm:$0xf0]  ;;  %v7898_v55 = vld [vmem:[#allocation5 + $0x10c] sm:$0xf] }
  0x67   :  { %1564 = vmatpush.bf16.msra.mxu0 %v9168_v24  ;;  %13147 = vst [vmem:[#allocation67_spill] sm:$0xff] %v9205_v1  ;;  %v9211_v22 = vor.u32 %v7898_v55, %v6391_v40  ;;  %v7954_v50 = vld [vmem:[#allocation5 + $0x2cc] sm:$0xf]  ;;  %v6365_v62 = vld [vmem:[#allocation5 + $0xd0] sm:$0xf]  ;;  %v9223_v40 = vor.u32 %v7890_v3, %v6359_v53 }
  0x68   :  { %1577 = vmatpush.bf16.msra.mxu1 %v9172_v34  ;;  %v6615_v31 = vld [vmem:[#allocation5 + $0x2e8] sm:$0xf0]  ;;  %v7895_v23 = vld [vmem:[#allocation5 + $0xec] sm:$0xf0]  ;;  %v8179_v52 = vld [vmem:[#allocation8 + $0x1d4] sm:$0xf] }
  0x69   :  { %1539 = vmatmul.bf16.vlgmr.msrb.gmra.mxu2 %v13142_v7  ;;  %1552 = vmatmul.bf16.vlgmr.msrb.gmra.mxu3 %v13142_v7  ;;  %13149 = vst [vmem:[#allocation69_spill] sm:$0xff] %v9211_v22  ;;  %v6621_v55 = vld [vmem:[#allocation5 + $0x2d0] sm:$0xf]  ;;  %v7946_v32 = vld [vmem:[#allocation5 + $0x28c] sm:$0xf] }
  0x6a   :  { %1583 = vmatpush.bf16.msra.mxu2 %v9163_v6  ;;  %1596 = vmatpush.bf16.msra.mxu3 %v9165_v15  ;;  %v6423_v6 = vld [vmem:[#allocation5 + $0x168] sm:$0xf0]  ;;  %v6685_v15 = vld [vmem:[#allocation5 + $0x350] sm:$0xf]  ;;  %13153 = vst [vmem:[#allocation73_spill] sm:$0xff] %v9223_v40 }
  0x6b   :  { %1609 = vmatpush.bf16.msrb.mxu0 %v9176_v35  ;;  %v9197_v27 = vor.u32 %v7906_v4, %v6423_v6  ;;  %1578 = vmatmul.bf16.vlgmr.msra.gmra.mxu1 %v13142_v7  ;;  %v9207_v6 = vor.u32 %v7975_v5, %v6685_v15  ;;  %v6397_v4 = vld [vmem:[#allocation5 + $0x110] sm:$0xf]  ;;  %v6583_v13 = vld [vmem:[#allocation5 + $0x2a8] sm:$0xf0]  ;;  %v8243_v51 = vld [vmem:[#allocation8 + $0x3d4] sm:$0xf] }
  0x6c   :  { %1622 = vmatpush.bf16.msrb.mxu1 %v9178_v39  ;;  %1565 = vmatmul.bf16.vlgmr.msra.gmra.mxu0 %v13142_v7  ;;  %v9217_v15 = vor.u32 %v7903_v14, %v6397_v4  ;;  %v6333_v4 = vld [vmem:[#allocation5 + $0x90] sm:$0xf]  ;;  %v9237_v3 = vor.u32 %v7946_v32, %v6583_v13  ;;  %v7938_v58 = vld [vmem:[#allocation5 + $0x24c] sm:$0xf]  ;;  %v7221_v39 = vld [vmem:[#allocation8 + $0x3a0] sm:$0xf0] }
  0x6d   :  { %13145 = vst [vmem:[#allocation65_spill] sm:$0xff] %v9197_v27  ;;  %v7887_v14 = vld [vmem:[#allocation5 + $0xac] sm:$0xf0]  ;;  %v6551_v44 = vld [vmem:[#allocation5 + $0x268] sm:$0xf0] }
  0x6e   :  { %1584 = vmatpush.bf16.msra.mxu2 %v9181_v47  ;;  %1597 = vmatpush.bf16.msra.mxu3 %v9183_v60  ;;  %13148 = vst [vmem:[#allocation68_spill] sm:$0xff] %v9207_v6  ;;  %v9213_v60 = vor.u32 %v7962_v26, %v6647_v46  ;;  %v6653_v47 = vld [vmem:[#allocation5 + $0x310] sm:$0xf]  ;;  %v9225_v26 = vor.u32 %v7954_v50, %v6615_v31  ;;  %v7930_v28 = vld [vmem:[#allocation5 + $0x20c] sm:$0xf] }
  0x6f   :  { %1610 = vmatpush.bf16.msrb.mxu0 %v9191_v19  ;;  %13151 = vst [vmem:[#allocation71_spill] sm:$0xff] %v9217_v15  ;;  %v9219_v5 = vor.u32 %v7967_v18, %v6653_v47  ;;  %v7959_v46 = vld [vmem:[#allocation5 + $0x2ec] sm:$0xf0]  ;;  %v9229_v18 = vor.u32 %v7895_v23, %v6365_v62  ;;  %v9241_v62 = vor.u32 %v7887_v14, %v6333_v4  ;;  %v7923_v4 = vld [vmem:[#allocation5 + $0x1d4] sm:$0xf] }
  0x70   :  { %1623 = vmatpush.bf16.msrb.mxu1 %v9193_v0  ;;  %13150 = vst [vmem:[#allocation70_spill] sm:$0xff] %v9213_v60  ;;  %v9231_v47 = vor.u32 %v7959_v46, %v6621_v55  ;;  %v6589_v31 = vld [vmem:[#allocation5 + $0x290] sm:$0xf]  ;;  %v9249_v13 = vor.u32 %v7938_v58, %v6551_v44  ;;  %v6495_v14 = vld [vmem:[#allocation5 + $0x1f0] sm:$0xf0] }
  0x71   :  { %13152 = vst [vmem:[#allocation72_spill] sm:$0xff] %v9219_v5  ;;  %v7951_v53 = vld [vmem:[#allocation5 + $0x2ac] sm:$0xf0]  ;;  %v8197_v0 = vld [vmem:[#allocation8 + $0x25c] sm:$0xf0] }
  0x72   :  { %1585 = vmatpush.bf16.msra.mxu2 %v9197_v27  ;;  %1598 = vmatpush.bf16.msra.mxu3 %v9199_v33  ;;  %13154 = vst [vmem:[#allocation74_spill] sm:$0xff] %v9225_v26  ;;  %v7882_v33 = vld [vmem:[#allocation5 + $0x8c] sm:$0xf]  ;;  %v9243_v23 = vor.u32 %v7951_v53, %v6589_v31  ;;  %v6301_v55 = vld [vmem:[#allocation5 + $0x50] sm:$0xf] }
  0x73   :  { %1611 = vmatpush.bf16.msrb.mxu0 %v9205_v1  ;;  %v6327_v27 = vld [vmem:[#allocation5 + $0xa8] sm:$0xf0]  ;;  %13155 = vst [vmem:[#allocation75_spill] sm:$0xff] %v9229_v18  ;;  %v7879_v46 = vld [vmem:[#allocation5 + $0x6c] sm:$0xf0] }
  0x74   :  { %1624 = vmatpush.bf16.msrb.mxu1 %v9207_v6  ;;  %13156 = vst [vmem:[#allocation76_spill] sm:$0xff] %v9231_v47  ;;  %v9235_v50 = vor.u32 %v7882_v33, %v6327_v27  ;;  %v6557_v27 = vld [vmem:[#allocation5 + $0x250] sm:$0xf]  ;;  %v7987_v31 = vld [vmem:[#allocation5 + $0x3d4] sm:$0xf] }
  0x75   :  { %13158 = vst [vmem:[#allocation78_spill] sm:$0xff] %v9237_v3  ;;  %v7943_v33 = vld [vmem:[#allocation5 + $0x26c] sm:$0xf0]  ;;  %v6751_v53 = vld [vmem:[#allocation5 + $0x3f0] sm:$0xf0] }
  0x76   :  { %1586 = vmatpush.bf16.msra.mxu2 %v9211_v22  ;;  %1599 = vmatpush.bf16.msra.mxu3 %v9213_v60  ;;  %13157 = vst [vmem:[#allocation77_spill] sm:$0xff] %v9235_v50  ;;  %v7874_v60 = vld [vmem:[#allocation5 + $0x4c] sm:$0xf]  ;;  %v6535_v6 = vld [vmem:[#allocation5 + $0x238] sm:$0xf0] }
  0x77   :  { %1612 = vmatpush.bf16.msrb.mxu0 %v9217_v15  ;;  %v6295_v22 = vld [vmem:[#allocation5 + $0x68] sm:$0xf0]  ;;  %13159 = vst [vmem:[#allocation79_spill] sm:$0xff] %v9241_v62  ;;  %v7915_v15 = vld [vmem:[#allocation5 + $0x194] sm:$0xf] }
  0x78   :  { %1625 = vmatpush.bf16.msrb.mxu1 %v9219_v5  ;;  %13160 = vst [vmem:[#allocation80_spill] sm:$0xff] %v9243_v23  ;;  %v9247_v32 = vor.u32 %v7874_v60, %v6295_v22  ;;  %v6269_v60 = vld [vmem:[#allocation5 + $0x10] sm:$0xf]  ;;  %v9263_v5 = vor.u32 %v7923_v4, %v6495_v14  ;;  %v8182_v19 = vld [vmem:[#allocation8 + $0x1e4] sm:$0xf0] }
  0x79   :  { %13162 = vst [vmem:[#allocation82_spill] sm:$0xff] %v9249_v13  ;;  %v7871_v22 = vld [vmem:[#allocation5 + $0x2c] sm:$0xf0]  ;;  %v8178_v35 = vld [vmem:[#allocation8 + $0x1cc] sm:$0xf] }
  0x7a   :  { %1587 = vmatpush.bf16.msra.mxu2 %v9223_v40  ;;  %1600 = vmatpush.bf16.msra.mxu3 %v9225_v26  ;;  %13161 = vst [vmem:[#allocation81_spill] sm:$0xff] %v9247_v32  ;;  %v7866_v26 = vld [vmem:[#allocation5 + $0xc] sm:$0xf]  ;;  %v8183_v54 = vld [vmem:[#allocation8 + $0x1ec] sm:$0xf0] }
  0x7b   :  { %1613 = vmatpush.bf16.msrb.mxu0 %v9229_v18  ;;  %v6263_v40 = vld [vmem:[#allocation5 + $0x28] sm:$0xf0]  ;;  %v6525_v18 = vld [vmem:[#allocation5 + $0x210] sm:$0xf]  ;;  %13167 = vst [vmem:[#allocation87_spill] sm:$0xff] %v9263_v5 }
  0x7c   :  { %1626 = vmatpush.bf16.msrb.mxu1 %v9231_v47  ;;  %v6519_v47 = vld [vmem:[#allocation5 + $0x228] sm:$0xf0]  ;;  %v9259_v44 = vor.u32 %v7866_v26, %v6263_v40  ;;  %v6463_v40 = vld [vmem:[#allocation5 + $0x1b0] sm:$0xf0]  ;;  %v8184_v30 = vld [vmem:[#allocation8 + $0x1f4] sm:$0xf0] }
  0x7d   :  { %v9261_v58 = vor.u32 %v7930_v28, %v6519_v47  ;;  %v7979_v28 = vld [vmem:[#allocation5 + $0x394] sm:$0xf]  ;;  %v9271_v47 = vor.u32 %v7871_v22, %v6269_v60  ;;  %v8242_v24 = vld [vmem:[#allocation8 + $0x3cc] sm:$0xf] }
  0x7e   :  { %1588 = vmatpush.bf16.msra.mxu2 %v9235_v50  ;;  %1601 = vmatpush.bf16.msra.mxu3 %v9237_v3  ;;  %v9253_v50 = vor.u32 %v7879_v46, %v6301_v55  ;;  %v9255_v3 = vor.u32 %v7943_v33, %v6557_v27  ;;  %13165 = vst [vmem:[#allocation85_spill] sm:$0xff] %v9259_v44  ;;  %v6501_v55 = vld [vmem:[#allocation5 + $0x1d8] sm:$0xf]  ;;  %v6719_v26 = vld [vmem:[#allocation5 + $0x3b0] sm:$0xf0] }
  0x7f   :  { %1614 = vmatpush.bf16.msrb.mxu0 %v9241_v62  ;;  %13166 = vst [vmem:[#allocation86_spill] sm:$0xff] %v9261_v58  ;;  %v9265_v62 = vor.u32 %v7987_v31, %v6751_v53  ;;  %v7928_v46 = vld [vmem:[#allocation5 + $0x1f4] sm:$0xf0]  ;;  %v7907_v60 = vld [vmem:[#allocation5 + $0x154] sm:$0xf] }
  0x80   :  { %1627 = vmatpush.bf16.msrb.mxu1 %v9243_v23  ;;  %13163 = vst [vmem:[#allocation83_spill] sm:$0xff] %v9253_v50  ;;  %v7935_v23 = vld [vmem:[#allocation5 + $0x22c] sm:$0xf0]  ;;  %v6757_v27 = vld [vmem:[#allocation5 + $0x3d8] sm:$0xf]  ;;  %v9277_v14 = vor.u32 %v7928_v46, %v6501_v55 }
  0x81   :  { %13164 = vst [vmem:[#allocation84_spill] sm:$0xff] %v9255_v3  ;;  %v7992_v33 = vld [vmem:[#allocation5 + $0x3f4] sm:$0xf0]  ;;  %v9273_v4 = vor.u32 %v7935_v23, %v6525_v18  ;;  %v6431_v18 = vld [vmem:[#allocation5 + $0x170] sm:$0xf0] }
  0x82   :  { %1589 = vmatpush.bf16.msra.mxu2 %v9247_v32  ;;  %1602 = vmatpush.bf16.msra.mxu3 %v9249_v13  ;;  %13168 = vst [vmem:[#allocation88_spill] sm:$0xff] %v9265_v62  ;;  %v9279_v31 = vor.u32 %v7992_v33, %v6757_v27  ;;  %v6469_v53 = vld [vmem:[#allocation5 + $0x198] sm:$0xf]  ;;  %v9281_v32 = vor.u32 %v7915_v15, %v6463_v40  ;;  %v7971_v23 = vld [vmem:[#allocation5 + $0x354] sm:$0xf] }
  0x83   :  { %1615 = vmatpush.bf16.msrb.mxu0 %v9253_v50  ;;  %13169 = vst [vmem:[#allocation89_spill] sm:$0xff] %v9271_v47  ;;  %v7920_v13 = vld [vmem:[#allocation5 + $0x1b4] sm:$0xf0]  ;;  %v6687_v22 = vld [vmem:[#allocation5 + $0x370] sm:$0xf0]  ;;  %v9297_v33 = vor.u32 %v7907_v60, %v6431_v18 }
  0x84   :  { %1628 = vmatpush.bf16.msrb.mxu1 %v9255_v3  ;;  %13170 = vst [vmem:[#allocation90_spill] sm:$0xff] %v9273_v4  ;;  %v9283_v3 = vor.u32 %v7979_v28, %v6719_v26  ;;  %v9291_v15 = vor.u32 %v7920_v13, %v6469_v53  ;;  %v6437_v46 = vld [vmem:[#allocation5 + $0x158] sm:$0xf]  ;;  %v9299_v40 = vor.u32 %v7971_v23, %v6687_v22  ;;  %v6399_v13 = vld [vmem:[#allocation5 + $0x130] sm:$0xf0] }
  0x85   :  { %13171 = vst [vmem:[#allocation91_spill] sm:$0xff] %v9277_v14  ;;  %v7912_v27 = vld [vmem:[#allocation5 + $0x174] sm:$0xf0]  ;;  %v7980_v50 = vld [vmem:[#allocation5 + $0x39c] sm:$0xf] }
  0x86   :  { %1590 = vmatpush.bf16.msra.mxu2 %v9259_v44  ;;  %1603 = vmatpush.bf16.msra.mxu3 %v9261_v58  ;;  %13172 = vst [vmem:[#allocation92_spill] sm:$0xff] %v9279_v31  ;;  %v6725_v44 = vld [vmem:[#allocation5 + $0x398] sm:$0xf]  ;;  %v9305_v53 = vor.u32 %v7912_v27, %v6437_v46  ;;  %v8170_v17 = vld [vmem:[#allocation8 + $0x18c] sm:$0xf] }
  0x87   :  { %13173 = vst [vmem:[#allocation93_spill] sm:$0xff] %v9281_v32  ;;  %v7984_v58 = vld [vmem:[#allocation5 + $0x3b4] sm:$0xf0]  ;;  %1616 = vmatpush.bf16.msrb.mxu0 %v9271_v47  ;;  %v8234_v9 = vld [vmem:[#allocation8 + $0x38c] sm:$0xf] }
  0x88   :  { %13174 = vst [vmem:[#allocation94_spill] sm:$0xff] %v9283_v3  ;;  %1629 = vmatpush.bf16.msrb.mxu1 %v9273_v4  ;;  %v9293_v55 = vor.u32 %v7984_v58, %v6725_v44  ;;  %v6693_v28 = vld [vmem:[#allocation5 + $0x358] sm:$0xf]  ;;  %v7963_v44 = vld [vmem:[#allocation5 + $0x314] sm:$0xf] }
  0x89   :  { %1591 = vmatmul.bf16.vlgmr.msra.gmra.mxu2 %v13142_v7  ;;  %1604 = vmatmul.bf16.vlgmr.msra.gmra.mxu3 %v13142_v7  ;;  %13175 = vst [vmem:[#allocation95_spill] sm:$0xff] %v9291_v15  ;;  %v7976_v26 = vld [vmem:[#allocation5 + $0x374] sm:$0xf0]  ;;  %v6655_v58 = vld [vmem:[#allocation5 + $0x330] sm:$0xf0] }
  0x8a   :  { %1635 = vmatpush.bf16.msrb.mxu2 %v9263_v5  ;;  %1648 = vmatpush.bf16.msrb.mxu3 %v9265_v62  ;;  %13176 = vst [vmem:[#allocation96_spill] sm:$0xff] %v9293_v55  ;;  %v7899_v62 = vld [vmem:[#allocation5 + $0x114] sm:$0xf]  ;;  %v9307_v60 = vor.u32 %v7976_v26, %v6693_v28  ;;  %v6405_v18 = vld [vmem:[#allocation5 + $0x118] sm:$0xf] }
  0x8b   :  { %1661 = vmatpush.bf16.msra.mxu0 %v9277_v14  ;;  %13177 = vst [vmem:[#allocation97_spill] sm:$0xff] %v9297_v33  ;;  %1630 = vmatmul.bf16.vlgmr.msrb.gmra.mxu1 %v13142_v7  ;;  %v7904_v23 = vld [vmem:[#allocation5 + $0x134] sm:$0xf0]  ;;  %v9311_v22 = vor.u32 %v7899_v62, %v6399_v13  ;;  %v7955_v4 = vld [vmem:[#allocation5 + $0x2d4] sm:$0xf] }
  0x8c   :  { %1674 = vmatpush.bf16.msra.mxu1 %v9279_v31  ;;  %13178 = vst [vmem:[#allocation98_spill] sm:$0xff] %v9299_v40  ;;  %1617 = vmatmul.bf16.vlgmr.msrb.gmra.mxu0 %v13142_v7  ;;  %v7968_v5 = vld [vmem:[#allocation5 + $0x334] sm:$0xf0]  ;;  %v7891_v31 = vld [vmem:[#allocation5 + $0xd4] sm:$0xf]  ;;  %v9317_v46 = vor.u32 %v7904_v23, %v6405_v18 }
  0x8d   :  { %13179 = vst [vmem:[#allocation99_spill] sm:$0xff] %v9305_v53  ;;  %v6373_v28 = vld [vmem:[#allocation5 + $0xd8] sm:$0xf]  ;;  %v6981_v11 = vld [vmem:[#allocation8 + $0x1b0] sm:$0xf0] }
  0x8e   :  { %1636 = vmatpush.bf16.msrb.mxu2 %v9281_v32  ;;  %1649 = vmatpush.bf16.msrb.mxu3 %v9283_v3  ;;  %13180 = vst [vmem:[#allocation100_spill] sm:$0xff] %v9307_v60  ;;  %v9313_v3 = vor.u32 %v7963_v44, %v6655_v58  ;;  %v6661_v32 = vld [vmem:[#allocation5 + $0x318] sm:$0xf] }
  0x8f   :  { %1662 = vmatpush.bf16.msra.mxu0 %v9291_v15  ;;  %13181 = vst [vmem:[#allocation101_spill] sm:$0xff] %v9311_v22  ;;  %v6367_v15 = vld [vmem:[#allocation5 + $0xf0] sm:$0xf0]  ;;  %v9319_v27 = vor.u32 %v7968_v5, %v6661_v32  ;;  %v7896_v26 = vld [vmem:[#allocation5 + $0xf4] sm:$0xf0] }
  0x90   :  { %1675 = vmatpush.bf16.msra.mxu1 %v9293_v55  ;;  %13182 = vst [vmem:[#allocation102_spill] sm:$0xff] %v9313_v3  ;;  %v6623_v55 = vld [vmem:[#allocation5 + $0x2f0] sm:$0xf0]  ;;  %v9323_v62 = vor.u32 %v7891_v31, %v6367_v15  ;;  %v6629_v44 = vld [vmem:[#allocation5 + $0x2d8] sm:$0xf]  ;;  %v9329_v5 = vor.u32 %v7896_v26, %v6373_v28 }
  0x91   :  { %13183 = vst [vmem:[#allocation103_spill] sm:$0xff] %v9317_v46  ;;  %v9325_v13 = vor.u32 %v7955_v4, %v6623_v55  ;;  %v7960_v58 = vld [vmem:[#allocation5 + $0x2f4] sm:$0xf0] }
  0x92   :  { %1637 = vmatpush.bf16.msrb.mxu2 %v9297_v33  ;;  %1650 = vmatpush.bf16.msrb.mxu3 %v9299_v40  ;;  %13184 = vst [vmem:[#allocation104_spill] sm:$0xff] %v9319_v27  ;;  %v7883_v40 = vld [vmem:[#allocation5 + $0x94] sm:$0xf]  ;;  %v9331_v32 = vor.u32 %v7960_v58, %v6629_v44  ;;  %v6341_v18 = vld [vmem:[#allocation5 + $0x98] sm:$0xf] }
  0x93   :  { %1663 = vmatpush.bf16.msra.mxu0 %v9305_v53  ;;  %13185 = vst [vmem:[#allocation105_spill] sm:$0xff] %v9323_v62  ;;  %v6335_v33 = vld [vmem:[#allocation5 + $0xb0] sm:$0xf0]  ;;  %v7888_v23 = vld [vmem:[#allocation5 + $0xb4] sm:$0xf0] }
  0x94   :  { %1676 = vmatpush.bf16.msra.mxu1 %v9307_v60  ;;  %13186 = vst [vmem:[#allocation106_spill] sm:$0xff] %v9325_v13  ;;  %v7947_v53 = vld [vmem:[#allocation5 + $0x294] sm:$0xf]  ;;  %v9335_v4 = vor.u32 %v7883_v40, %v6335_v33  ;;  %v6597_v15 = vld [vmem:[#allocation5 + $0x298] sm:$0xf]  ;;  %v9341_v28 = vor.u32 %v7888_v23, %v6341_v18 }
  0x95   :  { %v6591_v60 = vld [vmem:[#allocation5 + $0x2b0] sm:$0xf0]  ;;  %13187 = vst [vmem:[#allocation107_spill] sm:$0xff] %v9329_v5  ;;  %v7952_v55 = vld [vmem:[#allocation5 + $0x2b4] sm:$0xf0] }
  0x96   :  { %1638 = vmatpush.bf16.msrb.mxu2 %v9311_v22  ;;  %1651 = vmatpush.bf16.msrb.mxu3 %v9313_v3  ;;  %13188 = vst [vmem:[#allocation108_spill] sm:$0xff] %v9331_v32  ;;  %v9337_v31 = vor.u32 %v7947_v53, %v6591_v60  ;;  %v7875_v3 = vld [vmem:[#allocation5 + $0x54] sm:$0xf]  ;;  %v9343_v26 = vor.u32 %v7952_v55, %v6597_v15  ;;  %v6309_v44 = vld [vmem:[#allocation5 + $0x58] sm:$0xf] }
  0x97   :  { %1664 = vmatpush.bf16.msra.mxu0 %v9317_v46  ;;  %13189 = vst [vmem:[#allocation109_spill] sm:$0xff] %v9335_v4  ;;  %v6303_v22 = vld [vmem:[#allocation5 + $0x70] sm:$0xf0]  ;;  %v7880_v58 = vld [vmem:[#allocation5 + $0x74] sm:$0xf0] }
  0x98   :  { %1677 = vmatpush.bf16.msra.mxu1 %v9319_v27  ;;  %13190 = vst [vmem:[#allocation110_spill] sm:$0xff] %v9337_v31  ;;  %v7939_v46 = vld [vmem:[#allocation5 + $0x254] sm:$0xf]  ;;  %v6565_v33 = vld [vmem:[#allocation5 + $0x258] sm:$0xf]  ;;  %v9347_v40 = vor.u32 %v7875_v3, %v6303_v22 }
  0x99   :  { %v6559_v27 = vld [vmem:[#allocation5 + $0x270] sm:$0xf0]  ;;  %13191 = vst [vmem:[#allocation111_spill] sm:$0xff] %v9341_v28  ;;  %v7944_v60 = vld [vmem:[#allocation5 + $0x274] sm:$0xf0] }
  0x9a   :  { %1639 = vmatpush.bf16.msrb.mxu2 %v9323_v62  ;;  %1652 = vmatpush.bf16.msrb.mxu3 %v9325_v13  ;;  %13192 = vst [vmem:[#allocation112_spill] sm:$0xff] %v9343_v26  ;;  %v9349_v53 = vor.u32 %v7939_v46, %v6559_v27  ;;  %v7867_v13 = vld [vmem:[#allocation5 + $0x14] sm:$0xf]  ;;  %v7924_v18 = vld [vmem:[#allocation5 + $0x1dc] sm:$0xf] }
  0x9b   :  { %1665 = vmatpush.bf16.msra.mxu0 %v9329_v5  ;;  %13193 = vst [vmem:[#allocation113_spill] sm:$0xff] %v9347_v40  ;;  %v6271_v62 = vld [vmem:[#allocation5 + $0x30] sm:$0xf0]  ;;  %v6503_v23 = vld [vmem:[#allocation5 + $0x1f8] sm:$0xf0] }
  0x9c   :  { %1678 = vmatpush.bf16.msra.mxu1 %v9331_v32  ;;  %13194 = vst [vmem:[#allocation114_spill] sm:$0xff] %v9349_v53  ;;  %v7931_v5 = vld [vmem:[#allocation5 + $0x214] sm:$0xf]  ;;  %v7988_v15 = vld [vmem:[#allocation5 + $0x3dc] sm:$0xf]  ;;  %v9359_v3 = vor.u32 %v7867_v13, %v6271_v62  ;;  %v9363_v47 = vor.u32 %v7924_v18, %v6503_v23 }
  0x9d   :  { %v6527_v32 = vld [vmem:[#allocation5 + $0x230] sm:$0xf0]  ;;  %v6759_v55 = vld [vmem:[#allocation5 + $0x3f8] sm:$0xf0]  ;;  %v6277_v46 = vld [vmem:[#allocation5 + $0x18] sm:$0xf] }
  0x9e   :  { %1640 = vmatpush.bf16.msrb.mxu2 %v9335_v4  ;;  %1653 = vmatpush.bf16.msrb.mxu3 %v9337_v31  ;;  %v9353_v4 = vor.u32 %v7880_v58, %v6309_v44  ;;  %v9355_v31 = vor.u32 %v7944_v60, %v6565_v33  ;;  %13197 = vst [vmem:[#allocation117_spill] sm:$0xff] %v9359_v3  ;;  %v7872_v27 = vld [vmem:[#allocation5 + $0x34] sm:$0xf0]  ;;  %v6995_v44 = vld [vmem:[#allocation8 + $0x1c0] sm:$0xf] }
  0x9f   :  { %1666 = vmatpush.bf16.msra.mxu0 %v9341_v28  ;;  %v9361_v22 = vor.u32 %v7931_v5, %v6527_v32  ;;  %v6533_v14 = vld [vmem:[#allocation5 + $0x218] sm:$0xf]  ;;  %13199 = vst [vmem:[#allocation119_spill] sm:$0xff] %v9363_v47  ;;  %v9365_v28 = vor.u32 %v7988_v15, %v6759_v55  ;;  %v8181_v58 = vld [vmem:[#allocation8 + $0x1dc] sm:$0xf0]  ;;  %v9371_v32 = vor.u32 %v7872_v27, %v6277_v46 }
  0xa0   :  { %1679 = vmatpush.bf16.msra.mxu1 %v9343_v26  ;;  %13195 = vst [vmem:[#allocation115_spill] sm:$0xff] %v9353_v4  ;;  %v7936_v26 = vld [vmem:[#allocation5 + $0x234] sm:$0xf0]  ;;  %v7916_v33 = vld [vmem:[#allocation5 + $0x19c] sm:$0xf]  ;;  %v9377_v23 = vor.u32 %v8181_v58, %v6995_v44 }
  0xa1   :  { %13196 = vst [vmem:[#allocation116_spill] sm:$0xff] %v9355_v31  ;;  %v6471_v60 = vld [vmem:[#allocation5 + $0x1b8] sm:$0xf0]  ;;  %v7251_v13 = vld [vmem:[#allocation8 + $0x3c0] sm:$0xf]  ;;  %v9373_v18 = vor.u32 %v7936_v26, %v6533_v14 }
  0xa2   :  { %1641 = vmatpush.bf16.msrb.mxu2 %v9347_v40  ;;  %1654 = vmatpush.bf16.msrb.mxu3 %v9349_v53  ;;  %13198 = vst [vmem:[#allocation118_spill] sm:$0xff] %v9361_v22  ;;  %v6727_v62 = vld [vmem:[#allocation5 + $0x3b8] sm:$0xf0]  ;;  %v8245_v5 = vld [vmem:[#allocation8 + $0x3dc] sm:$0xf0]  ;;  %v9379_v15 = vor.u32 %v7916_v33, %v6471_v60 }
  0xa3   :  { %13200 = vst [vmem:[#allocation120_spill] sm:$0xff] %v9365_v28  ;;  %1667 = vmatpush.bf16.msra.mxu0 %v9353_v4  ;;  %v6963_v55 = vld [vmem:[#allocation8 + $0x180] sm:$0xf]  ;;  %v9381_v40 = vor.u32 %v7980_v50, %v6727_v62  ;;  %v7972_v4 = vld [vmem:[#allocation5 + $0x35c] sm:$0xf] }
  0xa4   :  { %1680 = vmatpush.bf16.msra.mxu1 %v9355_v31  ;;  %13201 = vst [vmem:[#allocation121_spill] sm:$0xff] %v9371_v32  ;;  %v8173_v53 = vld [vmem:[#allocation8 + $0x19c] sm:$0xf0]  ;;  %v7908_v31 = vld [vmem:[#allocation5 + $0x15c] sm:$0xf] }
  0xa5   :  { %13202 = vst [vmem:[#allocation122_spill] sm:$0xff] %v9373_v18  ;;  %v6695_v14 = vld [vmem:[#allocation5 + $0x378] sm:$0xf0]  ;;  %v7219_v26 = vld [vmem:[#allocation8 + $0x380] sm:$0xf]  ;;  %v9391_v50 = vor.u32 %v8173_v53, %v6963_v55 }
  0xa6   :  { %1642 = vmatpush.bf16.msrb.mxu2 %v9359_v3  ;;  %1655 = vmatpush.bf16.msrb.mxu3 %v9361_v22  ;;  %13203 = vst [vmem:[#allocation123_spill] sm:$0xff] %v9377_v23  ;;  %v6439_v3 = vld [vmem:[#allocation5 + $0x178] sm:$0xf0]  ;;  %v9383_v22 = vor.u32 %v8245_v5, %v7251_v13  ;;  %v8237_v46 = vld [vmem:[#allocation8 + $0x39c] sm:$0xf0]  ;;  %v9396_v33 = vor.u32 %v7972_v4, %v6695_v14 }
  0xa7   :  { %13204 = vst [vmem:[#allocation124_spill] sm:$0xff] %v9379_v15  ;;  %1668 = vmatpush.bf16.msra.mxu0 %v9371_v32  ;;  %v9393_v27 = vor.u32 %v7908_v31, %v6439_v3  ;;  %v6931_v44 = vld [vmem:[#allocation8 + $0x140] sm:$0xf]  ;;  %v7900_v60 = vld [vmem:[#allocation5 + $0x11c] sm:$0xf]  ;;  %v9399_v5 = vor.u32 %v8237_v46, %v7219_v26 }
  0xa8   :  { %13205 = vst [vmem:[#allocation125_spill] sm:$0xff] %v9381_v40  ;;  %1681 = vmatpush.bf16.msra.mxu1 %v9373_v18  ;;  %v8165_v58 = vld [vmem:[#allocation8 + $0x15c] sm:$0xf0]  ;;  %v6407_v62 = vld [vmem:[#allocation5 + $0x138] sm:$0xf0] }
  0xa9   :  { %13206 = vst [vmem:[#allocation126_spill] sm:$0xff] %v9383_v22  ;;  %1643 = vmatmul.bf16.vlgmr.msrb.gmra.mxu2 %v13142_v7  ;;  %1656 = vmatmul.bf16.vlgmr.msrb.gmra.mxu3 %v13142_v7  ;;  %v7964_v13 = vld [vmem:[#allocation5 + $0x31c] sm:$0xf]  ;;  %v7187_v31 = vld [vmem:[#allocation8 + $0x340] sm:$0xf]  ;;  %v9405_v4 = vor.u32 %v8165_v58, %v6931_v44  ;;  %v9407_v55 = vor.u32 %v7900_v60, %v6407_v62 }
  0xaa   :  { %1687 = vmatpush.bf16.msra.mxu2 %v9363_v47  ;;  %1700 = vmatpush.bf16.msra.mxu3 %v9365_v28  ;;  %13207 = vst [vmem:[#allocation127_spill] sm:$0xff] %v9391_v50  ;;  %v6663_v53 = vld [vmem:[#allocation5 + $0x338] sm:$0xf0]  ;;  %v8229_v3 = vld [vmem:[#allocation8 + $0x35c] sm:$0xf0] }
  0xab   :  { %2489 = vmatpush.bf16.msrb.mxu0 %v9377_v23  ;;  %13208 = vst [vmem:[#allocation128_spill] sm:$0xff] %v9393_v27  ;;  %1682 = vmatmul.bf16.vlgmr.msra.gmra.mxu1 %v13142_v7  ;;  %v6899_v14 = vld [vmem:[#allocation8 + $0x100] sm:$0xf]  ;;  %v9410_v26 = vor.u32 %v7964_v13, %v6663_v53  ;;  %v7892_v46 = vld [vmem:[#allocation5 + $0xdc] sm:$0xf]  ;;  %v9413_v47 = vor.u32 %v8229_v3, %v7187_v31  ;;  %v9421_v13 = vpop.f32.mrf.mxu0 }
  0xac   :  { %13209 = vst [vmem:[#allocation129_spill] sm:$0xff] %v9396_v33  ;;  %2502 = vmatpush.bf16.msrb.mxu1 %v9383_v22  ;;  %1669 = vmatmul.bf16.vlgmr.msra.gmra.mxu0 %v13142_v7  ;;  %v6375_v28 = vld [vmem:[#allocation5 + $0xf8] sm:$0xf0]  ;;  %v7155_v22 = vld [vmem:[#allocation8 + $0x300] sm:$0xf] }
  0xad   :  { %13210 = vst [vmem:[#allocation130_spill] sm:$0xff] %v9399_v5  ;;  %v9419_v58 = vor.u32 %v7892_v46, %v6375_v28  ;;  %v6867_v60 = vld [vmem:[#allocation8 + $0xc0] sm:$0xf]  ;;  %v7884_v31 = vld [vmem:[#allocation5 + $0x9c] sm:$0xf] }
  0xae   :  { %1688 = vmatpush.bf16.msra.mxu2 %v9379_v15  ;;  %1701 = vmatpush.bf16.msra.mxu3 %v9381_v40  ;;  %13211 = vst [vmem:[#allocation131_spill] sm:$0xff] %v9405_v4  ;;  %v8157_v40 = vld [vmem:[#allocation8 + $0x11c] sm:$0xf0]  ;;  %v7956_v15 = vld [vmem:[#allocation5 + $0x2dc] sm:$0xf] }
  0xaf   :  { %2490 = vmatpush.bf16.msrb.mxu0 %v9391_v50  ;;  %13212 = vst [vmem:[#allocation132_spill] sm:$0xff] %v9407_v55  ;;  %v6631_v50 = vld [vmem:[#allocation5 + $0x2f8] sm:$0xf0]  ;;  %v9417_v44 = vor.u32 %v8157_v40, %v6899_v14  ;;  %v8149_v62 = vld [vmem:[#allocation8 + $0xdc] sm:$0xf0] }
  0xb0   :  { %13213 = vst [vmem:[#allocation133_spill] sm:$0xff] %v9410_v26  ;;  %2503 = vmatpush.bf16.msrb.mxu1 %v9399_v5  ;;  %v9424_v53 = vor.u32 %v7956_v15, %v6631_v50  ;;  %v6343_v3 = vld [vmem:[#allocation5 + $0xb8] sm:$0xf0]  ;;  %v9426_v5 = vpop.f32.mrf.mxu1  ;;  %v7123_v28 = vld [vmem:[#allocation8 + $0x2c0] sm:$0xf]  ;;  %v9433_v46 = vor.u32 %v8149_v62, %v6867_v60 }
  0xb1   :  { %13214 = vst [vmem:[#allocation134_spill] sm:$0xff] %v9413_v47  ;;  %v6599_v40 = vld [vmem:[#allocation5 + $0x2b8] sm:$0xf0]  ;;  %v8213_v14 = vld [vmem:[#allocation8 + $0x2dc] sm:$0xf0]  ;;  %v9435_v15 = vor.u32 %v7884_v31, %v6343_v3 }
  0xb2   :  { %1689 = vmatpush.bf16.msra.mxu2 %v9393_v27  ;;  %1702 = vmatpush.bf16.msra.mxu3 %v9396_v33  ;;  %v8221_v27 = vld [vmem:[#allocation8 + $0x31c] sm:$0xf0]  ;;  %13215 = vst [vmem:[#allocation135_spill] sm:$0xff] %v9417_v44  ;;  %v7948_v33 = vld [vmem:[#allocation5 + $0x29c] sm:$0xf] }
  0xb3   :  { %2491 = vmatpush.bf16.msrb.mxu0 %v9405_v4  ;;  %13216 = vst [vmem:[#allocation136_spill] sm:$0xff] %v9419_v58  ;;  %v6835_v50 = vld [vmem:[#allocation8 + $0x80] sm:$0xf]  ;;  %v9438_v4 = vpop.f32.mrf.mxu2  ;;  %v7940_v18 = vld [vmem:[#allocation5 + $0x25c] sm:$0xf]  ;;  %v819_v32 = vpop.f32.mrf.mxu0 }
  0xb4   :  { %13217 = vst [vmem:[#allocation137_spill] sm:$0xff] %v9424_v53  ;;  %2504 = vmatpush.bf16.msrb.mxu1 %v9413_v47  ;;  %v9440_v47 = vor.u32 %v7948_v33, %v6599_v40  ;;  %v6567_v60 = vld [vmem:[#allocation5 + $0x278] sm:$0xf0]  ;;  %v7091_v62 = vld [vmem:[#allocation8 + $0x280] sm:$0xf] }
  0xb5   :  { %13219 = vst [vmem:[#allocation139_spill] sm:$0xff] %v9433_v46  ;;  %v8205_v31 = vld [vmem:[#allocation8 + $0x29c] sm:$0xf0]  ;;  %v7868_v23 = vld [vmem:[#allocation5 + $0x1c] sm:$0xf] }
  0xb6   :  { %1690 = vmatpush.bf16.msra.mxu2 %v9407_v55  ;;  %1703 = vmatpush.bf16.msra.mxu3 %v9410_v26  ;;  %v9429_v55 = vor.u32 %v8221_v27, %v7155_v22  ;;  %13220 = vst [vmem:[#allocation140_spill] sm:$0xff] %v9435_v15  ;;  %v8141_v26 = vld [vmem:[#allocation8 + $0x9c] sm:$0xf0]  ;;  %v7876_v22 = vld [vmem:[#allocation5 + $0x5c] sm:$0xf] }
  0xb7   :  { %2492 = vmatpush.bf16.msrb.mxu0 %v9417_v44  ;;  %13221 = vst [vmem:[#allocation141_spill] sm:$0xff] %v9440_v47  ;;  %v6311_v27 = vld [vmem:[#allocation5 + $0x78] sm:$0xf0]  ;;  %v9443_v44 = vor.u32 %v8213_v14, %v7123_v28  ;;  %v9449_v3 = vor.u32 %v8141_v26, %v6835_v50  ;;  %v6803_v40 = vld [vmem:[#allocation8 + $0x40] sm:$0xf]  ;;  %v9454_v28 = vor.u32 %v7940_v18, %v6567_v60 }
  0xb8   :  { %13218 = vst [vmem:[#allocation138_spill] sm:$0xff] %v9429_v55  ;;  %2505 = vmatpush.bf16.msrb.mxu1 %v9429_v55  ;;  %v9451_v33 = vor.u32 %v7876_v22, %v6311_v27  ;;  %v6279_v14 = vld [vmem:[#allocation5 + $0x38] sm:$0xf0]  ;;  %v832_v1 = vpop.f32.mrf.mxu1  ;;  %v8177_v26 = vld [vmem:[#allocation8 + $0x1c4] sm:$0xf] }
  0xb9   :  { %13222 = vst [vmem:[#allocation142_spill] sm:$0xff] %v9443_v44  ;;  %v7932_v55 = vld [vmem:[#allocation5 + $0x21c] sm:$0xf]  ;;  %v6997_v50 = vld [vmem:[#allocation8 + $0x1e0] sm:$0xf0]  ;;  %v9463_v18 = vor.u32 %v7868_v23, %v6279_v14 }
  0xba   :  { %1691 = vmatpush.bf16.msra.mxu2 %v9419_v58  ;;  %1704 = vmatpush.bf16.msra.mxu3 %v9424_v53  ;;  %v9445_v58 = vpop.f32.mrf.mxu3  ;;  %13223 = vst [vmem:[#allocation143_spill] sm:$0xff] %v9449_v3  ;;  %v8133_v53 = vld [vmem:[#allocation8 + $0x5c] sm:$0xf0]  ;;  %v8241_v22 = vld [vmem:[#allocation8 + $0x3c4] sm:$0xf] }
  0xbb   :  { %2493 = vmatpush.bf16.msrb.mxu0 %v9433_v46  ;;  %13224 = vst [vmem:[#allocation144_spill] sm:$0xff] %v9451_v33  ;;  %v9457_v46 = vor.u32 %v8205_v31, %v7091_v62  ;;  %v7253_v27 = vld [vmem:[#allocation8 + $0x3e0] sm:$0xf0]  ;;  %v9461_v32 = vor.u32 %v8133_v53, %v6803_v40  ;;  %v6771_v60 = vld [vmem:[#allocation8] sm:$0xf]  ;;  %v767_v1 = vpop.f32.mrf.mxu2  ;;  %v9466_v62 = vor.u32 %v7932_v55, %v6535_v6 }
  0xbc   :  { %13225 = vst [vmem:[#allocation145_spill] sm:$0xff] %v9454_v28  ;;  %2506 = vmatpush.bf16.msrb.mxu1 %v9443_v44  ;;  %v9468_v31 = vor.u32 %v8177_v26, %v6997_v50  ;;  %v7003_v44 = vld [vmem:[#allocation8 + $0x1c8] sm:$0xf]  ;;  %v8169_v53 = vld [vmem:[#allocation8 + $0x184] sm:$0xf] }
  0xbd   :  { %13226 = vst [vmem:[#allocation146_spill] sm:$0xff] %v9457_v46  ;;  %v6965_v40 = vld [vmem:[#allocation8 + $0x1a0] sm:$0xf0]  ;;  %v8189_v1 = vld [vmem:[#allocation8 + $0x21c] sm:$0xf0] }
  0xbe   :  { %1692 = vmatpush.bf16.msra.mxu2 %v9435_v15  ;;  %1705 = vmatpush.bf16.msra.mxu3 %v9440_v47  ;;  %v7059_v15 = vld [vmem:[#allocation8 + $0x240] sm:$0xf]  ;;  %13227 = vst [vmem:[#allocation147_spill] sm:$0xff] %v9461_v32  ;;  %v8233_v23 = vld [vmem:[#allocation8 + $0x384] sm:$0xf]  ;;  %v9483_v50 = vor.u32 %v8169_v53, %v6965_v40 }
  0xbf   :  { %2494 = vmatpush.bf16.msrb.mxu0 %v9449_v3  ;;  %13228 = vst [vmem:[#allocation148_spill] sm:$0xff] %v9463_v18  ;;  %v8125_v47 = vld [vmem:[#allocation8 + $0x1c] sm:$0xf0]  ;;  %v9471_v3 = vor.u32 %v8241_v22, %v7253_v27  ;;  %v9473_v14 = vor.u32 %v8197_v0, %v7059_v15  ;;  %v7259_v55 = vld [vmem:[#allocation8 + $0x3c8] sm:$0xf]  ;;  %v9486_v15 = vor.u32 %v8233_v23, %v7221_v39 }
  0xc0   :  { %13229 = vst [vmem:[#allocation149_spill] sm:$0xff] %v9466_v62  ;;  %2507 = vmatpush.bf16.msrb.mxu1 %v9457_v46  ;;  %v9477_v6 = vor.u32 %v8125_v47, %v6771_v60  ;;  %v8246_v26 = vld [vmem:[#allocation8 + $0x3e4] sm:$0xf0]  ;;  %v8161_v27 = vld [vmem:[#allocation8 + $0x144] sm:$0xf] }
  0xc1   :  { %13230 = vst [vmem:[#allocation150_spill] sm:$0xff] %v9468_v31  ;;  %v6971_v0 = vld [vmem:[#allocation8 + $0x188] sm:$0xf]  ;;  %v8225_v60 = vld [vmem:[#allocation8 + $0x344] sm:$0xf] }
  0xc2   :  { %1693 = vmatpush.bf16.msra.mxu2 %v9451_v33  ;;  %1706 = vmatpush.bf16.msra.mxu3 %v9454_v28  ;;  %13231 = vst [vmem:[#allocation151_spill] sm:$0xff] %v9471_v3  ;;  %v780_v33 = vpop.f32.mrf.mxu3  ;;  %v7027_v28 = vld [vmem:[#allocation8 + $0x200] sm:$0xf]  ;;  %v8174_v22 = vld [vmem:[#allocation8 + $0x1a4] sm:$0xf0] }
  0xc3   :  { %13232 = vst [vmem:[#allocation152_spill] sm:$0xff] %v9473_v14  ;;  %2495 = vmatpush.bf16.msrb.mxu0 %v9461_v32  ;;  %v9481_v33 = vor.u32 %v8182_v19, %v7003_v44  ;;  %v9489_v47 = vor.u32 %v8189_v1, %v7027_v28  ;;  %v9492_v19 = vor.u32 %v8246_v26, %v7259_v55  ;;  %v7227_v44 = vld [vmem:[#allocation8 + $0x388] sm:$0xf]  ;;  %v9503_v23 = vpop.f32.mrf.mxu2  ;;  %v8153_v26 = vld [vmem:[#allocation8 + $0x104] sm:$0xf] }
  0xc4   :  { %13233 = vst [vmem:[#allocation153_spill] sm:$0xff] %v9477_v6  ;;  %2508 = vmatpush.bf16.msrb.mxu1 %v9473_v14  ;;  %v8238_v39 = vld [vmem:[#allocation8 + $0x3a4] sm:$0xf0]  ;;  %v9498_v53 = vor.u32 %v8174_v22, %v6971_v0  ;;  %v6837_v14 = vld [vmem:[#allocation8 + $0xa0] sm:$0xf0] }
  0xc5   :  { %13234 = vst [vmem:[#allocation154_spill] sm:$0xff] %v9481_v33  ;;  %v6939_v40 = vld [vmem:[#allocation8 + $0x148] sm:$0xf]  ;;  %v8201_v32 = vld [vmem:[#allocation8 + $0x284] sm:$0xf] }
  0xc6   :  { %1694 = vmatpush.bf16.msra.mxu2 %v9463_v18  ;;  %1707 = vmatpush.bf16.msra.mxu3 %v9466_v62  ;;  %13235 = vst [vmem:[#allocation155_spill] sm:$0xff] %v9483_v50  ;;  %v6933_v18 = vld [vmem:[#allocation8 + $0x160] sm:$0xf0]  ;;  %v8166_v55 = vld [vmem:[#allocation8 + $0x164] sm:$0xf0] }
  0xc7   :  { %13236 = vst [vmem:[#allocation156_spill] sm:$0xff] %v9486_v15  ;;  %v7189_v62 = vld [vmem:[#allocation8 + $0x360] sm:$0xf0]  ;;  %2496 = vmatpush.bf16.msrb.mxu0 %v9477_v6  ;;  %v9500_v28 = vor.u32 %v8161_v27, %v6933_v18  ;;  %v9511_v18 = vor.u32 %v8238_v39, %v7227_v44  ;;  %v7195_v0 = vld [vmem:[#allocation8 + $0x348] sm:$0xf] }
  0xc8   :  { %13237 = vst [vmem:[#allocation157_spill] sm:$0xff] %v9489_v47  ;;  %v9505_v1 = vor.u32 %v8225_v60, %v7189_v62  ;;  %2509 = vmatpush.bf16.msrb.mxu1 %v9489_v47  ;;  %v8230_v22 = vld [vmem:[#allocation8 + $0x364] sm:$0xf0]  ;;  %v9516_v62 = vor.u32 %v8166_v55, %v6939_v40  ;;  %v8145_v44 = vld [vmem:[#allocation8 + $0xc4] sm:$0xf] }
  0xc9   :  { %1695 = vmatmul.bf16.vlgmr.msra.gmra.mxu2 %v13142_v7  ;;  %13238 = vst [vmem:[#allocation158_spill] sm:$0xff] %v9492_v19  ;;  %1708 = vmatmul.bf16.vlgmr.msra.gmra.mxu3 %v13142_v7  ;;  %v6907_v60 = vld [vmem:[#allocation8 + $0x108] sm:$0xf]  ;;  %v6869_v39 = vld [vmem:[#allocation8 + $0xe0] sm:$0xf0] }
  0xca   :  { %2515 = vmatpush.bf16.msrb.mxu2 %v9468_v31  ;;  %2528 = vmatpush.bf16.msrb.mxu3 %v9471_v3  ;;  %13239 = vst [vmem:[#allocation159_spill] sm:$0xff] %v9498_v53  ;;  %v6901_v3 = vld [vmem:[#allocation8 + $0x120] sm:$0xf0]  ;;  %v9508_v31 = vpop.f32.mrf.mxu3  ;;  %v7163_v40 = vld [vmem:[#allocation8 + $0x308] sm:$0xf] }
  0xcb   :  { %2541 = vmatpush.bf16.msra.mxu0 %v9481_v33  ;;  %13240 = vst [vmem:[#allocation160_spill] sm:$0xff] %v9500_v28  ;;  %v8217_v33 = vld [vmem:[#allocation8 + $0x304] sm:$0xf]  ;;  %v9518_v27 = vor.u32 %v8153_v26, %v6901_v3  ;;  %2510 = vmatmul.bf16.vlgmr.msrb.gmra.mxu1 %v13142_v7  ;;  %v8222_v55 = vld [vmem:[#allocation8 + $0x324] sm:$0xf0]  ;;  %v9529_v3 = vpop.f32.mrf.mxu0 }
  0xcc   :  { %13241 = vst [vmem:[#allocation161_spill] sm:$0xff] %v9505_v1  ;;  %2554 = vmatpush.bf16.msra.mxu1 %v9492_v19  ;;  %2497 = vmatmul.bf16.vlgmr.msrb.gmra.mxu0 %v13142_v7  ;;  %v8158_v19 = vld [vmem:[#allocation8 + $0x124] sm:$0xf0]  ;;  %v8209_v47 = vld [vmem:[#allocation8 + $0x2c4] sm:$0xf] }
  0xcd   :  { %13242 = vst [vmem:[#allocation162_spill] sm:$0xff] %v9511_v18  ;;  %v7125_v6 = vld [vmem:[#allocation8 + $0x2e0] sm:$0xf0]  ;;  %v6875_v26 = vld [vmem:[#allocation8 + $0xc8] sm:$0xf] }
  0xce   :  { %2516 = vmatpush.bf16.msrb.mxu2 %v9483_v50  ;;  %2529 = vmatpush.bf16.msrb.mxu3 %v9486_v15  ;;  %v7157_v50 = vld [vmem:[#allocation8 + $0x320] sm:$0xf0]  ;;  %13243 = vst [vmem:[#allocation163_spill] sm:$0xff] %v9516_v62 }
  0xcf   :  { %2542 = vmatpush.bf16.msra.mxu0 %v9498_v53  ;;  %13244 = vst [vmem:[#allocation164_spill] sm:$0xff] %v9518_v27  ;;  %v9521_v15 = vor.u32 %v8217_v33, %v7157_v50  ;;  %v9525_v53 = vor.u32 %v8230_v22, %v7195_v0  ;;  %v9531_v33 = vor.u32 %v8158_v19, %v6907_v60  ;;  %v8150_v22 = vld [vmem:[#allocation8 + $0xe4] sm:$0xf0] }
  0xd0   :  { %2555 = vmatpush.bf16.msra.mxu1 %v9511_v18  ;;  %v9533_v50 = vor.u32 %v8145_v44, %v6869_v39  ;;  %v9538_v0 = vor.u32 %v8209_v47, %v7125_v6  ;;  %v8137_v18 = vld [vmem:[#allocation8 + $0x84] sm:$0xf]  ;;  %v9541_v19 = vor.u32 %v8222_v55, %v7163_v40  ;;  %v7131_v60 = vld [vmem:[#allocation8 + $0x2c8] sm:$0xf]  ;;  %v9545_v39 = vor.u32 %v8150_v22, %v6875_v26 }
  0xd1   :  { %13245 = vst [vmem:[#allocation165_spill] sm:$0xff] %v9521_v15  ;;  %v8214_v44 = vld [vmem:[#allocation8 + $0x2e4] sm:$0xf0]  ;;  %v9547_v6 = vor.u32 %v8137_v18, %v6837_v14  ;;  %v8193_v40 = vld [vmem:[#allocation8 + $0x244] sm:$0xf] }
  0xd2   :  { %2517 = vmatpush.bf16.msrb.mxu2 %v9500_v28  ;;  %2530 = vmatpush.bf16.msrb.mxu3 %v9505_v1  ;;  %13246 = vst [vmem:[#allocation166_spill] sm:$0xff] %v9525_v53  ;;  %v9536_v1 = vpop.f32.mrf.mxu1  ;;  %v793_v28 = vpop.f32.mrf.mxu2  ;;  %v6843_v47 = vld [vmem:[#allocation8 + $0x88] sm:$0xf]  ;;  %v7061_v55 = vld [vmem:[#allocation8 + $0x260] sm:$0xf0]  ;;  %v9553_v46 = vor.u32 %v8214_v44, %v7131_v60 }
  0xd3   :  { %2543 = vmatpush.bf16.msra.mxu0 %v9516_v62  ;;  %13247 = vst [vmem:[#allocation167_spill] sm:$0xff] %v9531_v33  ;;  %v806_v62 = vpop.f32.mrf.mxu3  ;;  %v8121_v26 = vld [vmem:[#allocation8 + $0x4] sm:$0xf]  ;;  %v1516_v22 = vpop.f32.mrf.mxu0 }
  0xd4   :  { %13248 = vst [vmem:[#allocation168_spill] sm:$0xff] %v9533_v50  ;;  %2556 = vmatpush.bf16.msra.mxu1 %v9525_v53  ;;  %v8142_v62 = vld [vmem:[#allocation8 + $0xa4] sm:$0xf0]  ;;  %v6805_v53 = vld [vmem:[#allocation8 + $0x60] sm:$0xf0] }
  0xd5   :  { %13249 = vst [vmem:[#allocation169_spill] sm:$0xff] %v9538_v0  ;;  %v9557_v14 = vor.u32 %v8142_v62, %v6843_v47  ;;  %v6773_v60 = vld [vmem:[#allocation8 + $0x20] sm:$0xf0]  ;;  %v7067_v62 = vld [vmem:[#allocation8 + $0x248] sm:$0xf] }
  0xd6   :  { %2518 = vmatpush.bf16.msrb.mxu2 %v9518_v27  ;;  %2531 = vmatpush.bf16.msrb.mxu3 %v9521_v15  ;;  %v7093_v27 = vld [vmem:[#allocation8 + $0x2a0] sm:$0xf0]  ;;  %13250 = vst [vmem:[#allocation170_spill] sm:$0xff] %v9541_v19  ;;  %v8198_v22 = vld [vmem:[#allocation8 + $0x264] sm:$0xf0] }
  0xd7   :  { %2544 = vmatpush.bf16.msra.mxu0 %v9531_v33  ;;  %13251 = vst [vmem:[#allocation171_spill] sm:$0xff] %v9545_v39  ;;  %v9550_v28 = vor.u32 %v8201_v32, %v7093_v27  ;;  %v8129_v15 = vld [vmem:[#allocation8 + $0x44] sm:$0xf]  ;;  %v7099_v33 = vld [vmem:[#allocation8 + $0x288] sm:$0xf] }
  0xd8   :  { %13252 = vst [vmem:[#allocation172_spill] sm:$0xff] %v9547_v6  ;;  %2557 = vmatpush.bf16.msra.mxu1 %v9541_v19  ;;  %v9559_v18 = vor.u32 %v8129_v15, %v6805_v53  ;;  %v6811_v32 = vld [vmem:[#allocation8 + $0x48] sm:$0xf]  ;;  %v8185_v44 = vld [vmem:[#allocation8 + $0x204] sm:$0xf] }
  0xd9   :  { %13253 = vst [vmem:[#allocation173_spill] sm:$0xff] %v9550_v28  ;;  %v8134_v27 = vld [vmem:[#allocation8 + $0x64] sm:$0xf0]  ;;  %v7029_v19 = vld [vmem:[#allocation8 + $0x220] sm:$0xf0] }
  0xda   :  { %2519 = vmatpush.bf16.msrb.mxu2 %v9533_v50  ;;  %2532 = vmatpush.bf16.msrb.mxu3 %v9538_v0  ;;  %13254 = vst [vmem:[#allocation174_spill] sm:$0xff] %v9553_v46  ;;  %v8206_v50 = vld [vmem:[#allocation8 + $0x2a4] sm:$0xf0]  ;;  %v9562_v0 = vor.u32 %v8193_v40, %v7061_v55  ;;  %v1529_v34 = vpop.f32.mrf.mxu1  ;;  %v7261_v53 = vld [vmem:[#allocation8 + $0x3e8] sm:$0xf0]  ;;  %v9573_v40 = vor.u32 %v8134_v27, %v6811_v32 }
  0xdb   :  { %2545 = vmatpush.bf16.msra.mxu0 %v9545_v39  ;;  %13255 = vst [vmem:[#allocation175_spill] sm:$0xff] %v9557_v14  ;;  %v7005_v39 = vld [vmem:[#allocation8 + $0x1e8] sm:$0xf0]  ;;  %v9567_v15 = vor.u32 %v8206_v50, %v7099_v33  ;;  %v9569_v47 = vpop.f32.mrf.mxu3  ;;  %v9575_v34 = vor.u32 %v8121_v26, %v6773_v60  ;;  %v6779_v55 = vld [vmem:[#allocation8 + $0x8] sm:$0xf]  ;;  %v9582_v45 = vor.u32 %v8242_v24, %v7261_v53 }
  0xdc   :  { %13256 = vst [vmem:[#allocation176_spill] sm:$0xff] %v9559_v18  ;;  %2558 = vmatpush.bf16.msra.mxu1 %v9553_v46  ;;  %v9580_v33 = vor.u32 %v8178_v35, %v7005_v39  ;;  %v8126_v50 = vld [vmem:[#allocation8 + $0x24] sm:$0xf0]  ;;  %v7011_v46 = vld [vmem:[#allocation8 + $0x1d0] sm:$0xf]  ;;  %v9585_v32 = vor.u32 %v8198_v22, %v7067_v62 }
  0xdd   :  { %13257 = vst [vmem:[#allocation177_spill] sm:$0xff] %v9562_v0  ;;  %v7229_v27 = vld [vmem:[#allocation8 + $0x3a8] sm:$0xf0]  ;;  %v7035_v26 = vld [vmem:[#allocation8 + $0x208] sm:$0xf]  ;;  %v9589_v35 = vor.u32 %v8126_v50, %v6779_v55  ;;  %v9593_v24 = vor.u32 %v8183_v54, %v7011_v46 }
  0xde   :  { %2520 = vmatpush.bf16.msrb.mxu2 %v9547_v6  ;;  %2533 = vmatpush.bf16.msrb.mxu3 %v9550_v28  ;;  %v9564_v6 = vpop.f32.mrf.mxu2  ;;  %13258 = vst [vmem:[#allocation178_spill] sm:$0xff] %v9567_v15  ;;  %v9578_v28 = vor.u32 %v8185_v44, %v7029_v19  ;;  %v8190_v60 = vld [vmem:[#allocation8 + $0x224] sm:$0xf0]  ;;  %v7267_v19 = vld [vmem:[#allocation8 + $0x3d0] sm:$0xf]  ;;  %v9598_v62 = vor.u32 %v8234_v9, %v7229_v27 }
  0xdf   :  { %2546 = vmatpush.bf16.msra.mxu0 %v9557_v14  ;;  %13259 = vst [vmem:[#allocation179_spill] sm:$0xff] %v9573_v40  ;;  %v6973_v14 = vld [vmem:[#allocation8 + $0x1a8] sm:$0xf0]  ;;  %v8247_v39 = vld [vmem:[#allocation8 + $0x3ec] sm:$0xf0]  ;;  %v9601_v50 = vor.u32 %v8190_v60, %v7035_v26 }
  0xe0   :  { %13260 = vst [vmem:[#allocation180_spill] sm:$0xff] %v9575_v34  ;;  %2559 = vmatpush.bf16.msra.mxu1 %v9567_v15  ;;  %v9595_v44 = vor.u32 %v8170_v17, %v6973_v14  ;;  %v6979_v53 = vld [vmem:[#allocation8 + $0x190] sm:$0xf]  ;;  %v9604_v17 = vor.u32 %v8247_v39, %v7267_v19  ;;  %v8154_v60 = vld [vmem:[#allocation8 + $0x10c] sm:$0xf] }
  0xe1   :  { %13261 = vst [vmem:[#allocation181_spill] sm:$0xff] %v9578_v28  ;;  %v8175_v22 = vld [vmem:[#allocation8 + $0x1ac] sm:$0xf0]  ;;  %v6909_v19 = vld [vmem:[#allocation8 + $0x128] sm:$0xf0] }
  0xe2   :  { %2521 = vmatpush.bf16.msrb.mxu2 %v9559_v18  ;;  %2534 = vmatpush.bf16.msrb.mxu3 %v9562_v0  ;;  %13262 = vst [vmem:[#allocation182_spill] sm:$0xff] %v9580_v33  ;;  %v8162_v0 = vld [vmem:[#allocation8 + $0x14c] sm:$0xf]  ;;  %v7235_v9 = vld [vmem:[#allocation8 + $0x390] sm:$0xf]  ;;  %v9610_v46 = vor.u32 %v8175_v22, %v6979_v53 }
  0xe3   :  { %13263 = vst [vmem:[#allocation183_spill] sm:$0xff] %v9582_v45  ;;  %2547 = vmatpush.bf16.msra.mxu0 %v9573_v40  ;;  %v7197_v18 = vld [vmem:[#allocation8 + $0x368] sm:$0xf0]  ;;  %v8239_v54 = vld [vmem:[#allocation8 + $0x3ac] sm:$0xf0] }
  0xe4   :  { %13264 = vst [vmem:[#allocation184_spill] sm:$0xff] %v9585_v32  ;;  %2560 = vmatpush.bf16.msra.mxu1 %v9585_v32  ;;  %v6947_v27 = vld [vmem:[#allocation8 + $0x150] sm:$0xf]  ;;  %v8218_v39 = vld [vmem:[#allocation8 + $0x30c] sm:$0xf] }
  0xe5   :  { %13265 = vst [vmem:[#allocation185_spill] sm:$0xff] %v9589_v35  ;;  %v8167_v26 = vld [vmem:[#allocation8 + $0x16c] sm:$0xf0]  ;;  %v8194_v32 = vld [vmem:[#allocation8 + $0x24c] sm:$0xf] }
  0xe6   :  { %2522 = vmatpush.bf16.msrb.mxu2 %v9575_v34  ;;  %2535 = vmatpush.bf16.msrb.mxu3 %v9578_v28  ;;  %13266 = vst [vmem:[#allocation186_spill] sm:$0xff] %v9593_v24  ;;  %v6941_v34 = vld [vmem:[#allocation8 + $0x168] sm:$0xf0]  ;;  %v845_v55 = vpop.f32.mrf.mxu2  ;;  %v6915_v53 = vld [vmem:[#allocation8 + $0x110] sm:$0xf] }
  0xe7   :  { %13267 = vst [vmem:[#allocation187_spill] sm:$0xff] %v9595_v44  ;;  %v8226_v28 = vld [vmem:[#allocation8 + $0x34c] sm:$0xf]  ;;  %2548 = vmatpush.bf16.msra.mxu0 %v9589_v35  ;;  %v9612_v14 = vor.u32 %v8162_v0, %v6941_v34  ;;  %v7203_v0 = vld [vmem:[#allocation8 + $0x350] sm:$0xf] }
  0xe8   :  { %13268 = vst [vmem:[#allocation188_spill] sm:$0xff] %v9598_v62  ;;  %2561 = vmatpush.bf16.msra.mxu1 %v9601_v50  ;;  %v7165_v55 = vld [vmem:[#allocation8 + $0x328] sm:$0xf0]  ;;  %v8231_v34 = vld [vmem:[#allocation8 + $0x36c] sm:$0xf0] }
  0xe9   :  { %13269 = vst [vmem:[#allocation189_spill] sm:$0xff] %v9601_v50  ;;  %2523 = vmatmul.bf16.vlgmr.msrb.gmra.mxu2 %v13142_v7  ;;  %2536 = vmatmul.bf16.vlgmr.msrb.gmra.mxu3 %v13142_v7  ;;  %v9629_v22 = vor.u32 %v8218_v39, %v7165_v55  ;;  %v6883_v39 = vld [vmem:[#allocation8 + $0xd0] sm:$0xf]  ;;  %v9642_v55 = vpop.f32.mrf.mxu0  ;;  %v8202_v50 = vld [vmem:[#allocation8 + $0x28c] sm:$0xf] }
  0xea   :  { %2567 = vmatpush.bf16.msra.mxu2 %v9580_v33  ;;  %2580 = vmatpush.bf16.msra.mxu3 %v9582_v45  ;;  %v858_v33 = vpop.f32.mrf.mxu3  ;;  %13270 = vst [vmem:[#allocation190_spill] sm:$0xff] %v9604_v17  ;;  %v9619_v45 = vor.u32 %v8239_v54, %v7235_v9  ;;  %v8146_v9 = vld [vmem:[#allocation8 + $0xcc] sm:$0xf] }
  0xeb   :  { %2593 = vmatpush.bf16.msrb.mxu0 %v9593_v24  ;;  %13271 = vst [vmem:[#allocation191_spill] sm:$0xff] %v9610_v46  ;;  %v9615_v33 = vor.u32 %v8226_v28, %v7197_v18  ;;  %v9624_v28 = vor.u32 %v8167_v26, %v6947_v27  ;;  %v9626_v18 = vor.u32 %v8154_v60, %v6909_v19  ;;  %v6877_v54 = vld [vmem:[#allocation8 + $0xe8] sm:$0xf0]  ;;  %v7171_v27 = vld [vmem:[#allocation8 + $0x310] sm:$0xf] }
  0xec   :  { %13272 = vst [vmem:[#allocation192_spill] sm:$0xff] %v9612_v14  ;;  %2606 = vmatpush.bf16.msrb.mxu1 %v9604_v17  ;;  %2549 = vmatmul.bf16.vlgmr.msra.gmra.mxu0 %v13142_v7  ;;  %v7133_v17 = vld [vmem:[#allocation8 + $0x2e8] sm:$0xf0]  ;;  %v8223_v26 = vld [vmem:[#allocation8 + $0x32c] sm:$0xf0]  ;;  %v9639_v19 = vor.u32 %v8146_v9, %v6877_v54 }
  0xed   :  { %13273 = vst [vmem:[#allocation193_spill] sm:$0xff] %v9615_v33  ;;  %2562 = vmatmul.bf16.vlgmr.msra.gmra.mxu1 %v13142_v7  ;;  %v7139_v9 = vld [vmem:[#allocation8 + $0x2d0] sm:$0xf]  ;;  %v6813_v35 = vld [vmem:[#allocation8 + $0x68] sm:$0xf0] }
  0xee   :  { %2568 = vmatpush.bf16.msra.mxu2 %v9595_v44  ;;  %2581 = vmatpush.bf16.msra.mxu3 %v9598_v62  ;;  %13274 = vst [vmem:[#allocation194_spill] sm:$0xff] %v9619_v45  ;;  %v8159_v62 = vld [vmem:[#allocation8 + $0x12c] sm:$0xf0]  ;;  %v8210_v44 = vld [vmem:[#allocation8 + $0x2cc] sm:$0xf] }
  0xef   :  { %2594 = vmatpush.bf16.msrb.mxu0 %v9610_v46  ;;  %13275 = vst [vmem:[#allocation195_spill] sm:$0xff] %v9624_v28  ;;  %v9633_v46 = vor.u32 %v8231_v34, %v7203_v0  ;;  %v9637_v60 = vor.u32 %v8159_v62, %v6915_v53  ;;  %v8151_v0 = vld [vmem:[#allocation8 + $0xec] sm:$0xf0]  ;;  %v8138_v34 = vld [vmem:[#allocation8 + $0x8c] sm:$0xf]  ;;  %v9649_v62 = vor.u32 %v8223_v26, %v7171_v27  ;;  %v1540_v53 = vpop.f32.mrf.mxu2 }
  0xf0   :  { %13276 = vst [vmem:[#allocation196_spill] sm:$0xff] %v9626_v18  ;;  %2607 = vmatpush.bf16.msrb.mxu1 %v9619_v45  ;;  %v6845_v45 = vld [vmem:[#allocation8 + $0xa8] sm:$0xf0]  ;;  %v8215_v54 = vld [vmem:[#allocation8 + $0x2ec] sm:$0xf0] }
  0xf1   :  { %13277 = vst [vmem:[#allocation197_spill] sm:$0xff] %v9629_v22  ;;  %v8143_v27 = vld [vmem:[#allocation8 + $0xac] sm:$0xf0]  ;;  %v8130_v26 = vld [vmem:[#allocation8 + $0x4c] sm:$0xf] }
  0xf2   :  { %2569 = vmatpush.bf16.msra.mxu2 %v9612_v14  ;;  %2582 = vmatpush.bf16.msra.mxu3 %v9615_v33  ;;  %13278 = vst [vmem:[#allocation198_spill] sm:$0xff] %v9633_v46  ;;  %v9644_v33 = vpop.f32.mrf.mxu1  ;;  %v9646_v14 = vor.u32 %v8210_v44, %v7133_v17  ;;  %v9655_v44 = vor.u32 %v8138_v34, %v6845_v45  ;;  %v6851_v17 = vld [vmem:[#allocation8 + $0x90] sm:$0xf]  ;;  %v7069_v40 = vld [vmem:[#allocation8 + $0x268] sm:$0xf0]  ;;  %v9668_v45 = vld [vmem:[%s12328_s6] sm:$0xff] }
  0xf3   :  { %2595 = vmatpush.bf16.msrb.mxu0 %v9624_v28  ;;  %13279 = vst [vmem:[#allocation199_spill] sm:$0xff] %v9637_v60  ;;  %v7101_v28 = vld [vmem:[#allocation8 + $0x2a8] sm:$0xf0]  ;;  %v8135_v34 = vld [vmem:[#allocation8 + $0x6c] sm:$0xf0] }
  0xf4   :  { %13280 = vst [vmem:[#allocation200_spill] sm:$0xff] %v9639_v19  ;;  %2608 = vmatpush.bf16.msrb.mxu1 %v9633_v46  ;;  %v9660_v46 = vor.u32 %v8202_v50, %v7101_v28  ;;  %v9672_v50 = vor.u32 %v8143_v27, %v6851_v17  ;;  %v9674_v28 = vor.u32 %v8130_v26, %v6813_v35  ;;  %v7269_v35 = vld [vmem:[#allocation8 + $0x3f0] sm:$0xf0]  ;;  %v7075_v26 = vld [vmem:[#allocation8 + $0x250] sm:$0xf] }
  0xf5   :  { %13281 = vst [vmem:[#allocation201_spill] sm:$0xff] %v9646_v14  ;;  %v9694_v29 = vor.u32 %v8243_v51, %v7269_v35  ;;  %v7275_v51 = vld [vmem:[#allocation8 + $0x3d8] sm:$0xf] }
  0xf6   :  { %2570 = vmatpush.bf16.msra.mxu2 %v9626_v18  ;;  %2583 = vmatpush.bf16.msra.mxu3 %v9629_v22  ;;  %13282 = vst [vmem:[#allocation202_spill] sm:$0xff] %v9649_v62  ;;  %v1553_v22 = vpop.f32.mrf.mxu3  ;;  %v9653_v18 = vor.u32 %v8151_v0, %v6883_v39  ;;  %v7107_v39 = vld [vmem:[#allocation8 + $0x290] sm:$0xf]  ;;  %v6987_v35 = vld [vmem:[#allocation8 + $0x198] sm:$0xf] }
  0xf7   :  { %2596 = vmatpush.bf16.msrb.mxu0 %v9637_v60  ;;  %13284 = vst [vmem:[#allocation204_spill] sm:$0xff] %v9655_v44  ;;  %v9658_v24 = vadd.f32 %v1553_v22, %v1540_v53  ;;  %v8207_v0 = vld [vmem:[#allocation8 + $0x2ac] sm:$0xf0]  ;;  %v8122_v53 = vld [vmem:[#allocation8 + $0xc] sm:$0xf]  ;;  %v1568_v60 = vpop.f32.mrf.mxu0  ;;  %v1542_v27 = vpop.f32.mrf.mxu2 }
  0xf8   :  { %13283 = vst [vmem:[#allocation203_spill] sm:$0xff] %v9653_v18  ;;  %2609 = vmatpush.bf16.msrb.mxu1 %v9649_v62  ;;  %v6819_v22 = vld [vmem:[#allocation8 + $0x50] sm:$0xf]  ;;  %v7037_v62 = vld [vmem:[#allocation8 + $0x228] sm:$0xf0]  ;;  %v9680_v17 = vor.u32 %v8207_v0, %v7107_v39 }
  0xf9   :  { %13285 = vst [vmem:[#allocation205_spill] sm:$0xff] %v9660_v46  ;;  %v8127_v27 = vld [vmem:[#allocation8 + $0x2c] sm:$0xf0] }
  0xfa   :  { %2571 = vmatpush.bf16.msra.mxu2 %v9639_v19  ;;  %2584 = vmatpush.bf16.msra.mxu3 %v9646_v14  ;;  %v9663_v19 = vor.u32 %v8215_v54, %v7139_v9  ;;  %13287 = vst [vmem:[#allocation207_spill] sm:$0xff] %v9672_v50  ;;  %v9677_v9 = vor.u32 %v8194_v32, %v7069_v40  ;;  %v6781_v54 = vld [vmem:[#allocation8 + $0x28] sm:$0xf0]  ;;  %v1581_v15 = vpop.f32.mrf.mxu1  ;;  %v6787_v32 = vld [vmem:[#allocation8 + $0x10] sm:$0xf] }
  0xfb   :  { %2597 = vmatpush.bf16.msrb.mxu0 %v9653_v18  ;;  %13288 = vst [vmem:[#allocation208_spill] sm:$0xff] %v9674_v28  ;;  %v8186_v14 = vld [vmem:[#allocation8 + $0x20c] sm:$0xf]  ;;  %v7013_v18 = vld [vmem:[#allocation8 + $0x1f0] sm:$0xf0]  ;;  %v9685_v40 = vor.u32 %v8135_v34, %v6819_v22  ;;  %v9687_v15 = vor.u32 %v8122_v53, %v6781_v54  ;;  %v1528_v34 = vadd.f32 %v9536_v1, %v9529_v3 }
  0xfc   :  { %13286 = vst [vmem:[#allocation206_spill] sm:$0xff] %v9663_v19  ;;  %2610 = vmatpush.bf16.msrb.mxu1 %v9663_v19  ;;  %v9690_v39 = vor.u32 %v8186_v14, %v7037_v62  ;;  %v9692_v0 = vor.u32 %v8179_v52, %v7013_v18  ;;  %v7019_v19 = vld [vmem:[#allocation8 + $0x1d8] sm:$0xf]  ;;  %v7237_v53 = vld [vmem:[#allocation8 + $0x3b0] sm:$0xf0]  ;;  %v9703_v52 = vor.u32 %v8127_v27, %v6787_v32 }
  0xfd   :  { %13289 = vst [vmem:[#allocation209_spill] sm:$0xff] %v9677_v9  ;;  %v7043_v14 = vld [vmem:[#allocation8 + $0x210] sm:$0xf]  ;;  %v8248_v18 = vld [vmem:[#allocation8 + $0x3f4] sm:$0xf0]  ;;  %v9711_v1 = vor.u32 %v8184_v30, %v7019_v19  ;;  %v1580_v30 = vadd.f32 %v9644_v33, %v9642_v55 }
  0xfe   :  { %2572 = vmatpush.bf16.msra.mxu2 %v9655_v44  ;;  %2585 = vmatpush.bf16.msra.mxu3 %v9660_v46  ;;  %13290 = vst [vmem:[#allocation210_spill] sm:$0xff] %v9680_v17  ;;  %v8199_v44 = vld [vmem:[#allocation8 + $0x26c] sm:$0xf0]  ;;  %v576_v46 = vperm.slane %v9668_v45, 0  ;;  %v1555_v60 = vpop.f32.mrf.mxu3  ;;  %v8176_v32 = vld [vmem:[#allocation8 + $0x1b4] sm:$0xf0] }
  0xff   :  { %2598 = vmatpush.bf16.msrb.mxu0 %v9672_v50  ;;  %13291 = vst [vmem:[#allocation211_spill] sm:$0xff] %v9685_v40  ;;  %v8171_v50 = vld [vmem:[#allocation8 + $0x194] sm:$0xf]  ;;  %v9697_v22 = vor.u32 %v8199_v44, %v7075_v26  ;;  %v8191_v62 = vld [vmem:[#allocation8 + $0x22c] sm:$0xf0]  ;;  %v578_v44 = vperm.slane %v9668_v45, 2 }
 0x100   :  { %13292 = vst [vmem:[#allocation212_spill] sm:$0xff] %v9687_v15  ;;  %2611 = vmatpush.bf16.msrb.mxu1 %v9680_v17  ;;  %v9706_v54 = vadd.f32 %v9438_v4, %v576_v46  ;;  %v9713_v3 = vor.u32 %v8171_v50, %v6981_v11  ;;  %v8163_v60 = vld [vmem:[#allocation8 + $0x154] sm:$0xf]  ;;  %v9719_v4 = vor.u32 %v8191_v62, %v7043_v14  ;;  %v7243_v19 = vld [vmem:[#allocation8 + $0x398] sm:$0xf] }
 0x101   :  { %13293 = vst [vmem:[#allocation213_spill] sm:$0xff] %v9690_v39  ;;  %v6949_v27 = vld [vmem:[#allocation8 + $0x170] sm:$0xf0]  ;;  %v9723_v11 = vor.u32 %v8248_v18, %v7275_v51  ;;  %v8240_v50 = vld [vmem:[#allocation8 + $0x3b4] sm:$0xf0]  ;;  %v9736_v14 = vadd.f32 %v9503_v23, %v578_v44 }
 0x102   :  { %2573 = vmatpush.bf16.msra.mxu2 %v9674_v28  ;;  %2586 = vmatpush.bf16.msra.mxu3 %v9677_v9  ;;  %13294 = vst [vmem:[#allocation214_spill] sm:$0xff] %v9692_v0  ;;  %v8235_v28 = vld [vmem:[#allocation8 + $0x394] sm:$0xf]  ;;  %v1713_v46 = vadd.f32 %v1528_v34, %v9706_v54  ;;  %v9733_v34 = vor.u32 %v8163_v60, %v6949_v27  ;;  %v8168_v55 = vld [vmem:[#allocation8 + $0x174] sm:$0xf0] }
 0x103   :  { %13295 = vst [vmem:[#allocation215_spill] sm:$0xff] %v9694_v29  ;;  %2599 = vmatpush.bf16.msrb.mxu0 %v9685_v40  ;;  %v9716_v26 = vor.u32 %v8235_v28, %v7237_v53  ;;  %v7205_v9 = vld [vmem:[#allocation8 + $0x370] sm:$0xf0]  ;;  %v9731_v28 = vor.u32 %v8176_v32, %v6987_v35  ;;  %v6955_v53 = vld [vmem:[#allocation8 + $0x158] sm:$0xf]  ;;  %v9743_v35 = vor.u32 %v8240_v50, %v7243_v19 }
 0x104   :  { %13296 = vst [vmem:[#allocation216_spill] sm:$0xff] %v9697_v22  ;;  %2612 = vmatpush.bf16.msrb.mxu1 %v9697_v22  ;;  %v8155_v62 = vld [vmem:[#allocation8 + $0x114] sm:$0xf]  ;;  %v6763_v18 = vmul.f32 -1.442695, %v1713_v46  ;;  %v1715_v23 = vadd.f32 %v1580_v30, %v9736_v14 }
 0x105   :  { %13297 = vst [vmem:[#allocation217_spill] sm:$0xff] %v9703_v52  ;;  %v6917_v51 = vld [vmem:[#allocation8 + $0x130] sm:$0xf0]  ;;  %v7211_v44 = vld [vmem:[#allocation8 + $0x358] sm:$0xf] }
 0x106   :  { %2574 = vmatpush.bf16.msra.mxu2 %v9687_v15  ;;  %13298 = vst [vmem:[#allocation218_spill] sm:$0xff] %v9706_v54  ;;  %2587 = vmatpush.bf16.msra.mxu3 %v9690_v39  ;;  %v8227_v39 = vld [vmem:[#allocation8 + $0x354] sm:$0xf]  ;;  %v8232_v32 = vld [vmem:[#allocation8 + $0x374] sm:$0xf0]  ;;  %8281 = vpow2.f32 %v6763_v18 }
 0x107   :  { %13299 = vst [vmem:[#allocation219_spill] sm:$0xff] %v9711_v1  ;;  %2600 = vmatpush.bf16.msrb.mxu0 %v9703_v52  ;;  %v9739_v33 = vor.u32 %v8227_v39, %v7205_v9  ;;  %v9749_v9 = vor.u32 %v8168_v55, %v6955_v53  ;;  %v9751_v39 = vor.u32 %v8155_v62, %v6917_v51  ;;  %v6923_v60 = vld [vmem:[#allocation8 + $0x118] sm:$0xf]  ;;  %v8147_v19 = vld [vmem:[#allocation8 + $0xd4] sm:$0xf] }
 0x108   :  { %13300 = vst [vmem:[#allocation220_spill] sm:$0xff] %v9713_v3  ;;  %2613 = vmatpush.bf16.msrb.mxu1 %v9719_v4  ;;  %v8160_v46 = vld [vmem:[#allocation8 + $0x134] sm:$0xf0]  ;;  %v6885_v50 = vld [vmem:[#allocation8 + $0xf0] sm:$0xf0] }
 0x109   :  { %13301 = vst [vmem:[#allocation221_spill] sm:$0xff] %v9716_v26  ;;  %2575 = vmatmul.bf16.vlgmr.msra.gmra.mxu2 %v13142_v7  ;;  %2588 = vmatmul.bf16.vlgmr.msra.gmra.mxu3 %v13142_v7  ;;  %v8211_v30 = vld [vmem:[#allocation8 + $0x2d4] sm:$0xf]  ;;  %v6765_v53 = vmul.f32 -1.442695, %v1715_v23  ;;  %v9771_v23 = vpop.f32.mrf.mxu1 }
 0x10a   :  { %2619 = vmatpush.bf16.msrb.mxu2 %v9692_v0  ;;  %2632 = vmatpush.bf16.msrb.mxu3 %v9694_v29  ;;  %13302 = vst [vmem:[#allocation222_spill] sm:$0xff] %v9719_v4  ;;  %v8219_v29 = vld [vmem:[#allocation8 + $0x314] sm:$0xf]  ;;  %v7179_v55 = vld [vmem:[#allocation8 + $0x318] sm:$0xf] }
 0x10b   :  { %13303 = vst [vmem:[#allocation223_spill] sm:$0xff] %v9723_v11  ;;  %2645 = vmatpush.bf16.msra.mxu0 %v9711_v1  ;;  %2614 = vmatmul.bf16.vlgmr.msrb.gmra.mxu1 %v13142_v7  ;;  %v8224_v62 = vld [vmem:[#allocation8 + $0x334] sm:$0xf0]  ;;  %v8139_v0 = vld [vmem:[#allocation8 + $0x94] sm:$0xf]  ;;  %8283 = vpow2.f32 %v6765_v53 }
 0x10c   :  { %13304 = vst [vmem:[#allocation224_spill] sm:$0xff] %v9731_v28  ;;  %2658 = vmatpush.bf16.msra.mxu1 %v9723_v11  ;;  %2601 = vmatmul.bf16.vlgmr.msrb.gmra.mxu0 %v13142_v7  ;;  %v6891_v51 = vld [vmem:[#allocation8 + $0xd8] sm:$0xf]  ;;  %v8203_v15 = vld [vmem:[#allocation8 + $0x294] sm:$0xf] }
 0x10d   :  { %13305 = vst [vmem:[#allocation225_spill] sm:$0xff] %v9733_v34  ;;  %v6859_v54 = vld [vmem:[#allocation8 + $0x98] sm:$0xf]  ;;  %v8180_v11 = vld [vmem:[#allocation8 + $0x1dc] sm:$0xf] }
 0x10e   :  { %2620 = vmatpush.bf16.msrb.mxu2 %v9713_v3  ;;  %13306 = vst [vmem:[#allocation226_spill] sm:$0xff] %v9736_v14  ;;  %2633 = vmatpush.bf16.msrb.mxu3 %v9716_v26  ;;  %v7173_v3 = vld [vmem:[#allocation8 + $0x330] sm:$0xf0]  ;;  %v8144_v53 = vld [vmem:[#allocation8 + $0xb4] sm:$0xf0] }
 0x10f   :  { %13307 = vst [vmem:[#allocation227_spill] sm:$0xff] %v9739_v33  ;;  %2646 = vmatpush.bf16.msra.mxu0 %v9731_v28  ;;  %v9754_v27 = vor.u32 %v8219_v29, %v7173_v3  ;;  %v7141_v26 = vld [vmem:[#allocation8 + $0x2f0] sm:$0xf0]  ;;  %v9762_v29 = vor.u32 %v8160_v46, %v6923_v60  ;;  %v9764_v3 = vor.u32 %v8147_v19, %v6885_v50  ;;  %v7147_v46 = vld [vmem:[#allocation8 + $0x2d8] sm:$0xf]  ;;  %v8282_v50 = vpop.eup %8281 }
 0x110   :  { %13308 = vst [vmem:[#allocation228_spill] sm:$0xff] %v9743_v35  ;;  %2659 = vmatpush.bf16.msra.mxu1 %v9743_v35  ;;  %v9767_v18 = vor.u32 %v8211_v30, %v7141_v26  ;;  %v7109_v14 = vld [vmem:[#allocation8 + $0x2b0] sm:$0xf0]  ;;  %v9774_v60 = vor.u32 %v8224_v62, %v7179_v55  ;;  %v8216_v19 = vld [vmem:[#allocation8 + $0x2f4] sm:$0xf0]  ;;  %v9778_v26 = vpop.f32.mrf.mxu2  ;;  %v9780_v30 = vpop.f32.mrf.mxu3  ;;  %v9792_v35 = vadd.f32 1.0, %v8282_v50 }
 0x111   :  { %13309 = vst [vmem:[#allocation229_spill] sm:$0xff] %v9749_v9  ;;  %v9787_v55 = vor.u32 %v8203_v15, %v7109_v14  ;;  %v8131_v62 = vld [vmem:[#allocation8 + $0x54] sm:$0xf]  ;;  %v6827_v14 = vld [vmem:[#allocation8 + $0x58] sm:$0xf]  ;;  %v8284_v28 = vpop.eup %8283 }
 0x112   :  { %2621 = vmatpush.bf16.msrb.mxu2 %v9733_v34  ;;  %13310 = vst [vmem:[#allocation230_spill] sm:$0xff] %v9751_v39  ;;  %2634 = vmatpush.bf16.msrb.mxu3 %v9739_v33  ;;  %v9758_v34 = vor.u32 %v8232_v32, %v7211_v44  ;;  %v8152_v33 = vld [vmem:[#allocation8 + $0xf4] sm:$0xf0]  ;;  %v6853_v44 = vld [vmem:[#allocation8 + $0xb0] sm:$0xf0]  ;;  %v9769_v32 = vpop.f32.mrf.mxu0  ;;  %v9806_v52 = vadd.f32 1.0, %v8284_v28  ;;  %8285 = vrcp.f32 %v9792_v35  ;;  %vm1734_vm2 = vweird.f32 %v9792_v35 }
 0x113   :  { %13311 = vst [vmem:[#allocation231_spill] sm:$0xff] %v9754_v27  ;;  %2647 = vmatpush.bf16.msra.mxu0 %v9749_v9  ;;  %v8195_v9 = vld [vmem:[#allocation8 + $0x254] sm:$0xf]  ;;  %v7021_v1 = vld [vmem:[#allocation8 + $0x1f8] sm:$0xf0] }
 0x114   :  { %13312 = vst [vmem:[#allocation232_spill] sm:$0xff] %v9758_v34  ;;  %2660 = vmatpush.bf16.msra.mxu1 %v9758_v34  ;;  %v6821_v34 = vld [vmem:[#allocation8 + $0x70] sm:$0xf0]  ;;  %v7507_v28 = vld [vmem:[#allocation7 + $0x1c0] sm:$0xf]  ;;  %8287 = vrcp.f32 %v9806_v52  ;;  %vm1772_vm5 = vweird.f32 %v9806_v52 }
 0x115   :  { %13313 = vst [vmem:[#allocation233_spill] sm:$0xff] %v9762_v29  ;;  %v9798_v15 = vor.u32 %v8131_v62, %v6821_v34  ;;  %v8187_v50 = vld [vmem:[#allocation8 + $0x214] sm:$0xf]  ;;  %v7277_v34 = vld [vmem:[#allocation8 + $0x3f8] sm:$0xf0] }
 0x116   :  { %2622 = vmatpush.bf16.msrb.mxu2 %v9751_v39  ;;  %13314 = vst [vmem:[#allocation234_spill] sm:$0xff] %v9764_v3  ;;  %2635 = vmatpush.bf16.msrb.mxu3 %v9754_v27  ;;  %v9782_v27 = vor.u32 %v8152_v33, %v6891_v51  ;;  %v9784_v39 = vor.u32 %v8139_v0, %v6853_v44  ;;  %v7115_v33 = vld [vmem:[#allocation8 + $0x298] sm:$0xf]  ;;  %v8053_v22 = vld [vmem:[#allocation7 + $0x1dc] sm:$0xf0] }
 0x117   :  { %13315 = vst [vmem:[#allocation235_spill] sm:$0xff] %v9767_v18  ;;  %2648 = vmatpush.bf16.msra.mxu0 %v9762_v29  ;;  %v7077_v29 = vld [vmem:[#allocation8 + $0x270] sm:$0xf0]  ;;  %v8208_v51 = vld [vmem:[#allocation8 + $0x2b4] sm:$0xf0]  ;;  %v9796_v0 = vor.u32 %v8144_v53, %v6859_v54 }
 0x118   :  { %13316 = vst [vmem:[#allocation236_spill] sm:$0xff] %v9774_v60  ;;  %2661 = vmatpush.bf16.msra.mxu1 %v9774_v60  ;;  %v8136_v44 = vld [vmem:[#allocation8 + $0x74] sm:$0xf0]  ;;  %v7045_v60 = vld [vmem:[#allocation8 + $0x230] sm:$0xf0]  ;;  %v9804_v54 = vor.u32 %v8208_v51, %v7115_v33  ;;  %v9817_v51 = vor.u32 %v8180_v11, %v7021_v1 }
 0x119   :  { %13317 = vst [vmem:[#allocation237_spill] sm:$0xff] %v9782_v27  ;;  %v7083_v53 = vld [vmem:[#allocation8 + $0x258] sm:$0xf]  ;;  %v9815_v33 = vor.u32 %v8187_v50, %v7045_v60  ;;  %v7763_v11 = vld [vmem:[#allocation7 + $0x3c0] sm:$0xf]  ;;  %v9831_v50 = vor.u32 %v8053_v22, %v7507_v28 }
 0x11a   :  { %2623 = vmatpush.bf16.msrb.mxu2 %v9764_v3  ;;  %13318 = vst [vmem:[#allocation238_spill] sm:$0xff] %v9784_v39  ;;  %2636 = vmatpush.bf16.msrb.mxu3 %v9767_v18  ;;  %v9790_v3 = vor.u32 %v8216_v19, %v7147_v46  ;;  %v8123_v18 = vld [vmem:[#allocation8 + $0x14] sm:$0xf]  ;;  %v9801_v46 = vor.u32 %v8195_v9, %v7077_v29  ;;  %v1620_v4 = vpop.f32.mrf.mxu0  ;;  %v8200_v62 = vld [vmem:[#allocation8 + $0x274] sm:$0xf0] }
 0x11b   :  { %13319 = vst [vmem:[#allocation239_spill] sm:$0xff] %v9787_v55  ;;  %2649 = vmatpush.bf16.msra.mxu0 %v9782_v27  ;;  %v6789_v19 = vld [vmem:[#allocation8 + $0x30] sm:$0xf0]  ;;  %v8244_v27 = vld [vmem:[#allocation8 + $0x3dc] sm:$0xf]  ;;  %v9810_v9 = vor.u32 %v8136_v44, %v6827_v14  ;;  %v1594_v4 = vpop.f32.mrf.mxu2 }
 0x11c   :  { %13320 = vst [vmem:[#allocation240_spill] sm:$0xff] %v9790_v3  ;;  %2662 = vmatpush.bf16.msra.mxu1 %v9790_v3  ;;  %v9812_v29 = vor.u32 %v8123_v18, %v6789_v19  ;;  %v8128_v3 = vld [vmem:[#allocation8 + $0x34] sm:$0xf0]  ;;  %v9819_v40 = vor.u32 %v8244_v27, %v7277_v34  ;;  %v8236_v14 = vld [vmem:[#allocation8 + $0x39c] sm:$0xf]  ;;  %v9822_v18 = vor.u32 %v8200_v62, %v7083_v53 }
 0x11d   :  { %13321 = vst [vmem:[#allocation241_spill] sm:$0xff] %v9796_v0  ;;  %v7245_v44 = vld [vmem:[#allocation8 + $0x3b8] sm:$0xf0]  ;;  %v7051_v19 = vld [vmem:[#allocation8 + $0x218] sm:$0xf] }
 0x11e   :  { %2624 = vmatpush.bf16.msrb.mxu2 %v9784_v39  ;;  %13322 = vst [vmem:[#allocation242_spill] sm:$0xff] %v9798_v15  ;;  %2637 = vmatpush.bf16.msrb.mxu3 %v9787_v55  ;;  %v1633_v39 = vpop.f32.mrf.mxu1  ;;  %v6795_v55 = vld [vmem:[#allocation8 + $0x18] sm:$0xf]  ;;  %v8117_v27 = vld [vmem:[#allocation7 + $0x3dc] sm:$0xf0]  ;;  %v9836_v62 = vor.u32 %v8236_v14, %v7245_v44  ;;  %v9848_v14 = vpop.eup %8285 }
 0x11f   :  { %13323 = vst [vmem:[#allocation243_spill] sm:$0xff] %v9801_v46  ;;  %2650 = vmatpush.bf16.msra.mxu0 %v9796_v0  ;;  %v1607_v39 = vpop.f32.mrf.mxu3  ;;  %v8172_v0 = vld [vmem:[#allocation8 + $0x19c] sm:$0xf]  ;;  %v8192_v60 = vld [vmem:[#allocation8 + $0x234] sm:$0xf0]  ;;  %v9827_v1 = vor.u32 %v8128_v3, %v6795_v55  ;;  %v9843_v22 = vor.u32 %v8117_v27, %v7763_v11  ;;  %vm1735_vm1 = vweird.f32 %v9848_v14 }
 0x120   :  { %13324 = vst [vmem:[#allocation244_spill] sm:$0xff] %v9804_v54  ;;  %2663 = vmatpush.bf16.msra.mxu1 %v9804_v54  ;;  %v7475_v53 = vld [vmem:[#allocation7 + $0x180] sm:$0xf]  ;;  %v8164_v39 = vld [vmem:[#allocation8 + $0x15c] sm:$0xf]  ;;  %v9839_v3 = vor.u32 %v8192_v60, %v7051_v19  ;;  %vm9950_vm3 = vmor %vm1734_vm2, %vm1735_vm1 }
 0x121   :  { %13325 = vst [vmem:[#allocation245_spill] sm:$0xff] %v9810_v9  ;;  %v8045_v4 = vld [vmem:[#allocation7 + $0x19c] sm:$0xf0]  ;;  %v8228_v55 = vld [vmem:[#allocation8 + $0x35c] sm:$0xf] }
 0x122   :  { %2625 = vmatpush.bf16.msrb.mxu2 %v9798_v15  ;;  %13326 = vst [vmem:[#allocation246_spill] sm:$0xff] %v9812_v29  ;;  %2638 = vmatpush.bf16.msrb.mxu3 %v9801_v46  ;;  %v6989_v15 = vld [vmem:[#allocation8 + $0x1b8] sm:$0xf0]  ;;  %v8109_v28 = vld [vmem:[#allocation7 + $0x39c] sm:$0xf0]  ;;  %v9852_v44 = vor.u32 %v8045_v4, %v7475_v53  ;;  %v1740_v4 = vand.u32 2147483648, %v9792_v35 }
 0x123   :  { %13327 = vst [vmem:[#allocation247_spill] sm:$0xff] %v9815_v33  ;;  %2651 = vmatpush.bf16.msra.mxu0 %v9810_v9  ;;  %v9833_v34 = vor.u32 %v8172_v0, %v6989_v15  ;;  %v6957_v46 = vld [vmem:[#allocation8 + $0x178] sm:$0xf0]  ;;  %v577_v0 = vperm.slane %v9668_v45, 1  ;;  %v7731_v15 = vld [vmem:[#allocation7 + $0x380] sm:$0xf] }
 0x124   :  { %13328 = vst [vmem:[#allocation248_spill] sm:$0xff] %v9817_v51  ;;  %2664 = vmatpush.bf16.msra.mxu1 %v9822_v18  ;;  %v9854_v19 = vor.u32 %v8164_v39, %v6957_v46  ;;  %v7443_v60 = vld [vmem:[#allocation7 + $0x140] sm:$0xf]  ;;  %v9862_v53 = vor.u32 %v8109_v28, %v7731_v15  ;;  %v1606_v15 = vadd.f32 %v9780_v30, %v9778_v26  ;;  %v6893_v9 = vld [vmem:[#allocation8 + $0xf8] sm:$0xf0] }
 0x125   :  { %13329 = vst [vmem:[#allocation249_spill] sm:$0xff] %v9819_v40  ;;  %v8037_v27 = vld [vmem:[#allocation7 + $0x15c] sm:$0xf0]  ;;  %v9866_v46 = vadd.f32 %v9445_v58, %v577_v0  ;;  %v7117_v17 = vld [vmem:[#allocation8 + $0x2b8] sm:$0xf0] }
 0x126   :  { %13330 = vst [vmem:[#allocation250_spill] sm:$0xff] %v9822_v18  ;;  %2626 = vmatpush.bf16.msrb.mxu2 %v9812_v29  ;;  %2639 = vmatpush.bf16.msrb.mxu3 %v9815_v33  ;;  %v7213_v33 = vld [vmem:[#allocation8 + $0x378] sm:$0xf0]  ;;  %v579_v29 = vperm.slane %v9668_v45, 3  ;;  %v7699_v39 = vld [vmem:[#allocation7 + $0x340] sm:$0xf]  ;;  %v9880_v58 = vor.u32 %v8037_v27, %v7443_v60 }
 0x127   :  { %13331 = vst [vmem:[#allocation251_spill] sm:$0xff] %v9827_v1  ;;  %2652 = vmatpush.bf16.msra.mxu0 %v9827_v1  ;;  %v9857_v11 = vor.u32 %v8228_v55, %v7213_v33  ;;  %v8220_v1 = vld [vmem:[#allocation8 + $0x31c] sm:$0xf]  ;;  %v9870_v33 = vmul.f32 %v9848_v14, %v9792_v35  ;;  %v8101_v55 = vld [vmem:[#allocation7 + $0x35c] sm:$0xf0]  ;;  %v1714_v30 = vadd.f32 %v9658_v24, %v9866_v46 }
 0x128   :  { %13332 = vst [vmem:[#allocation252_spill] sm:$0xff] %v9831_v50  ;;  %2665 = vmatpush.bf16.msra.mxu1 %v9839_v3  ;;  %v7411_v28 = vld [vmem:[#allocation7 + $0x100] sm:$0xf]  ;;  %v8148_v18 = vld [vmem:[#allocation8 + $0xdc] sm:$0xf]  ;;  %v9889_v26 = vadd.f32 %v9508_v31, %v579_v29  ;;  %v9895_v27 = vor.u32 %v8101_v55, %v7699_v39 }
 0x129   :  { %13333 = vst [vmem:[#allocation253_spill] sm:$0xff] %v9833_v34  ;;  %2627 = vmatmul.bf16.vlgmr.msrb.gmra.mxu2 %v13142_v7  ;;  %2640 = vmatmul.bf16.vlgmr.msrb.gmra.mxu3 %v13142_v7  ;;  %v7667_v31 = vld [vmem:[#allocation7 + $0x300] sm:$0xf]  ;;  %v9908_v39 = vor.u32 %v8148_v18, %v6893_v9  ;;  %v6764_v54 = vmul.f32 -1.442695, %v1714_v30 }
 0x12a   :  { %2671 = vmatpush.bf16.msra.mxu2 %v9817_v51  ;;  %2684 = vmatpush.bf16.msra.mxu3 %v9819_v40  ;;  %13334 = vst [vmem:[#allocation254_spill] sm:$0xff] %v9836_v62  ;;  %v8156_v40 = vld [vmem:[#allocation8 + $0x11c] sm:$0xf]  ;;  %v8093_v29 = vld [vmem:[#allocation7 + $0x31c] sm:$0xf0]  ;;  %v1716_v24 = vadd.f32 %v1606_v15, %v9889_v26 }
 0x12b   :  { %13335 = vst [vmem:[#allocation255_spill] sm:$0xff] %v9839_v3  ;;  %3337 = vmatpush.bf16.msrb.mxu0 %v9831_v50  ;;  %v6925_v51 = vld [vmem:[#allocation8 + $0x138] sm:$0xf0]  ;;  %v8029_v3 = vld [vmem:[#allocation7 + $0x11c] sm:$0xf0]  ;;  %2666 = vmatmul.bf16.vlgmr.msra.gmra.mxu1 %v13142_v7  ;;  %v9914_v15 = vor.u32 %v8093_v29, %v7667_v31  ;;  %8289 = vpow2.f32 %v6764_v54 }
 0x12c   :  { %13336 = vst [vmem:[#allocation256_spill] sm:$0xff] %v9843_v22  ;;  %v7181_v50 = vld [vmem:[#allocation8 + $0x338] sm:$0xf0]  ;;  %3350 = vmatpush.bf16.msrb.mxu1 %v9843_v22  ;;  %2653 = vmatmul.bf16.vlgmr.msra.gmra.mxu0 %v13142_v7  ;;  %v9882_v0 = vor.u32 %v8156_v40, %v6925_v51  ;;  %v9906_v60 = vor.u32 %v8029_v3, %v7411_v28  ;;  %v7379_v55 = vld [vmem:[#allocation7 + $0xc0] sm:$0xf] }
 0x12d   :  { %13337 = vst [vmem:[#allocation257_spill] sm:$0xff] %v9852_v44  ;;  %v9885_v22 = vor.u32 %v8220_v1, %v7181_v50  ;;  %v8212_v40 = vld [vmem:[#allocation8 + $0x2dc] sm:$0xf]  ;;  %v582_v1 = vperm.slane %v9668_v45, 6  ;;  %v1632_v28 = vadd.f32 %v9771_v23, %v9769_v32  ;;  %v6766_v30 = vmul.f32 -1.442695, %v1716_v24  ;;  %v9933_v32 = vpop.f32.mrf.mxu2  ;;  %v9935_v23 = vpop.f32.mrf.mxu3 }
 0x12e   :  { %2672 = vmatpush.bf16.msra.mxu2 %v9833_v34  ;;  %13338 = vst [vmem:[#allocation258_spill] sm:$0xff] %v9854_v19  ;;  %2685 = vmatpush.bf16.msra.mxu3 %v9836_v62  ;;  %v9873_v62 = vpop.eup %8287  ;;  %v580_v34 = vperm.slane %v9668_v45, 4  ;;  %v7149_v51 = vld [vmem:[#allocation8 + $0x2f8] sm:$0xf0]  ;;  %v8013_v24 = vld [vmem:[#allocation7 + $0x9c] sm:$0xf0] }
 0x12f   :  { %13339 = vst [vmem:[#allocation259_spill] sm:$0xff] %v9857_v11  ;;  %3338 = vmatpush.bf16.msrb.mxu0 %v9852_v44  ;;  %v1768_v50 = vmul.f32 %v9873_v62, %v9806_v52  ;;  %v6861_v44 = vld [vmem:[#allocation8 + $0xb8] sm:$0xf0]  ;;  %v9917_v3 = vadd.f32 %v9564_v6, %v582_v1  ;;  %v7347_v1 = vld [vmem:[#allocation7 + $0x80] sm:$0xf]  ;;  %8291 = vpow2.f32 %v6766_v30  ;;  %vm1773_vm4 = vweird.f32 %v9873_v62 }
 0x130   :  { %13340 = vst [vmem:[#allocation260_spill] sm:$0xff] %v9862_v53  ;;  %3351 = vmatpush.bf16.msrb.mxu1 %v9862_v53  ;;  %v8140_v53 = vld [vmem:[#allocation8 + $0x9c] sm:$0xf]  ;;  %v7315_v18 = vld [vmem:[#allocation7 + $0x40] sm:$0xf]  ;;  %v9956_v54 = vor.u32 %v8013_v24, %v7347_v1  ;;  %vm9974_vm6 = vmor %vm1772_vm5, %vm1773_vm4 }
 0x131   :  { %13341 = vst [vmem:[#allocation261_spill] sm:$0xff] %v9866_v46  ;;  %v9911_v46 = vor.u32 %v8212_v40, %v7149_v51  ;;  %v1769_v9 = vsub.f32 1.0, %v1768_v50  ;;  %v1670_v40 = vpop.f32.mrf.mxu0  ;;  %v1683_v51 = vpop.f32.mrf.mxu1  ;;  %v9926_v6 = vor.u32 %v8140_v53, %v6861_v44  ;;  %v9929_v50 = vadd.f32 %v9421_v13, %v580_v34  ;;  %v8196_v34 = vld [vmem:[#allocation8 + $0x25c] sm:$0xf] }
 0x132   :  { %2673 = vmatpush.bf16.msra.mxu2 %v9854_v19  ;;  %13342 = vst [vmem:[#allocation262_spill] sm:$0xff] %v9880_v58  ;;  %2686 = vmatpush.bf16.msra.mxu3 %v9857_v11  ;;  %v9900_v11 = vor.u32 1.1754944e-38, %v1740_v4  ;;  %v1731_v19 = vsub.f32 1.0, %v9870_v33  ;;  %v8021_v4 = vld [vmem:[#allocation7 + $0xdc] sm:$0xf0] }
 0x133   :  { %13343 = vst [vmem:[#allocation263_spill] sm:$0xff] %v9882_v0  ;;  %3339 = vmatpush.bf16.msrb.mxu0 %v9880_v58  ;;  %v8204_v33 = vld [vmem:[#allocation8 + $0x29c] sm:$0xf]  ;;  %v9924_v31 = vor.u32 %v8021_v4, %v7379_v55 }
 0x134   :  { %13344 = vst [vmem:[#allocation264_spill] sm:$0xff] %v9885_v22  ;;  %3352 = vmatpush.bf16.msrb.mxu1 %v9895_v27  ;;  %v9937_v29 = vor.u32 %v8204_v33, %v7117_v17  ;;  %v6829_v55 = vld [vmem:[#allocation8 + $0x78] sm:$0xf0]  ;;  %v1717_v17 = vadd.f32 %v1632_v28, %v9929_v50  ;;  %v1732_v33 = vmul.f32 %v9848_v14, %v1731_v19  ;;  %v8005_v19 = vld [vmem:[#allocation7 + $0x5c] sm:$0xf0] }
 0x135   :  { %13345 = vst [vmem:[#allocation265_spill] sm:$0xff] %v9889_v26  ;;  %v8085_v26 = vld [vmem:[#allocation7 + $0x2dc] sm:$0xf0]  ;;  %v7085_v53 = vld [vmem:[#allocation8 + $0x278] sm:$0xf0] }
 0x136   :  { %13346 = vst [vmem:[#allocation266_spill] sm:$0xff] %v9895_v27  ;;  %2674 = vmatpush.bf16.msra.mxu2 %v9882_v0  ;;  %2687 = vmatpush.bf16.msra.mxu3 %v9885_v22  ;;  %v7635_v22 = vld [vmem:[#allocation7 + $0x2c0] sm:$0xf]  ;;  %v1684_v0 = vadd.f32 %v1683_v51, %v1670_v40  ;;  %v8132_v40 = vld [vmem:[#allocation8 + $0x5c] sm:$0xf]  ;;  %v1770_v51 = vmul.f32 %v9873_v62, %v1769_v9  ;;  %v1659_v27 = vpop.f32.mrf.mxu3 }
 0x137   :  { %13347 = vst [vmem:[#allocation267_spill] sm:$0xff] %v9906_v60  ;;  %3340 = vmatpush.bf16.msrb.mxu0 %v9906_v60  ;;  %v9943_v4 = vor.u32 %v8085_v26, %v7635_v22  ;;  %v9958_v22 = vor.u32 %v8132_v40, %v6829_v55  ;;  %v8124_v26 = vld [vmem:[#allocation8 + $0x1c] sm:$0xf]  ;;  %v9962_v9 = vor.u32 %v8196_v34, %v7085_v53  ;;  %v7765_v40 = vld [vmem:[#allocation7 + $0x3e0] sm:$0xf0]  ;;  %v13370_v27 = vand.u32 2147483648, %v9806_v52 }
 0x138   :  { %13348 = vst [vmem:[#allocation268_spill] sm:$0xff] %v9908_v39  ;;  %v1719_v13 = vadd.f32 %v1684_v0, %v9917_v3  ;;  %3353 = vmatpush.bf16.msrb.mxu1 %v9914_v15  ;;  %v6797_v28 = vld [vmem:[#allocation8 + $0x38] sm:$0xf0]  ;;  %v9969_v24 = vadd.f32 %v9848_v14, %v1732_v33  ;;  %v7571_v55 = vld [vmem:[#allocation7 + $0x240] sm:$0xf] }
 0x139   :  { %13349 = vst [vmem:[#allocation269_spill] sm:$0xff] %v9911_v46  ;;  %v7053_v30 = vld [vmem:[#allocation8 + $0x238] sm:$0xf0]  ;;  %v8069_v34 = vld [vmem:[#allocation7 + $0x25c] sm:$0xf0]  ;;  %v1672_v53 = vpop.f32.mrf.mxu0 }
 0x13a   :  { %13350 = vst [vmem:[#allocation270_spill] sm:$0xff] %v9914_v15  ;;  %2675 = vmatpush.bf16.msra.mxu2 %v9908_v39  ;;  %2688 = vmatpush.bf16.msra.mxu3 %v9911_v46  ;;  %v7603_v46 = vld [vmem:[#allocation7 + $0x280] sm:$0xf]  ;;  %v6767_v44 = vmul.f32 -1.442695, %v1719_v13  ;;  %v8290_v53 = vpop.eup %8289 }
 0x13b   :  { %13351 = vst [vmem:[#allocation271_spill] sm:$0xff] %v9917_v3  ;;  %v8077_v39 = vld [vmem:[#allocation7 + $0x29c] sm:$0xf0]  ;;  %3341 = vmatpush.bf16.msrb.mxu0 %v9924_v31  ;;  %v8049_v13 = vld [vmem:[#allocation7 + $0x1c4] sm:$0xf] }
 0x13c   :  { %13352 = vst [vmem:[#allocation272_spill] sm:$0xff] %v9924_v31  ;;  %8293 = vpow2.f32 %v6767_v44  ;;  %v7509_v3 = vld [vmem:[#allocation7 + $0x1e0] sm:$0xf0]  ;;  %3354 = vmatpush.bf16.msrb.mxu1 %v9943_v4  ;;  %v9965_v1 = vor.u32 %v8077_v39, %v7603_v46  ;;  %v9980_v46 = vor.u32 %v8005_v19, %v7315_v18  ;;  %v9982_v39 = vor.u32 %v8124_v26, %v6797_v28  ;;  %v7283_v33 = vld [vmem:[#allocation7] sm:$0xf] }
 0x13d   :  { %13353 = vst [vmem:[#allocation273_spill] sm:$0xff] %v9926_v6  ;;  %v8113_v31 = vld [vmem:[#allocation7 + $0x3c4] sm:$0xf]  ;;  %8295 = vtanh.f32 %v1717_v17  ;;  %v7515_v15 = vld [vmem:[#allocation7 + $0x1c8] sm:$0xf]  ;;  %v1646_v17 = vpop.f32.mrf.mxu2  ;;  %v9992_v28 = vor.u32 %v8069_v34, %v7571_v55 }
 0x13e   :  { %13354 = vst [vmem:[#allocation274_spill] sm:$0xff] %v9929_v50  ;;  %2676 = vmatpush.bf16.msra.mxu2 %v9926_v6  ;;  %2689 = vmatpush.bf16.msra.mxu3 %v9937_v29  ;;  %v8188_v50 = vld [vmem:[#allocation8 + $0x21c] sm:$0xf]  ;;  %v1771_v6 = vadd.f32 %v9873_v62, %v1770_v51  ;;  %v9987_v51 = vor.u32 %v8049_v13, %v7509_v3  ;;  %v8054_v60 = vld [vmem:[#allocation7 + $0x1e4] sm:$0xf0] }
 0x13f   :  { %13355 = vst [vmem:[#allocation275_spill] sm:$0xff] %v9937_v29  ;;  %v1685_v29 = vpop.f32.mrf.mxu1  ;;  %3342 = vmatpush.bf16.msrb.mxu0 %v9956_v54  ;;  %v9989_v58 = vor.u32 %v8113_v31, %v7765_v40  ;;  %v8041_v18 = vld [vmem:[#allocation7 + $0x184] sm:$0xf]  ;;  %v1737_v3 = vsel %vm9950_vm3, %v9848_v14, %v9969_v24  ;;  %v8061_v13 = vld [vmem:[#allocation7 + $0x21c] sm:$0xf0]  ;;  %v1779_v31 = vor.u32 1.1754944e-38, %v13370_v27 }
 0x140   :  { %13356 = vst [vmem:[#allocation276_spill] sm:$0xff] %v9943_v4  ;;  %v9985_v29 = vor.u32 %v8188_v50, %v7053_v30  ;;  %v7997_v4 = vld [vmem:[#allocation7 + $0x1c] sm:$0xf0]  ;;  %v7477_v19 = vld [vmem:[#allocation7 + $0x1a0] sm:$0xf0]  ;;  %3355 = vmatpush.bf16.msrb.mxu1 %v9965_v1  ;;  %v10000_v40 = vadd.f32 1.0, %v8290_v53  ;;  %v10015_v53 = vor.u32 %v8054_v60, %v7515_v15 }
 0x141   :  { %13359 = vst [vmem:[#allocation277_spill] sm:$0xff] %v9956_v54  ;;  %v8292_v54 = vpop.eup %8291  ;;  %v8105_v26 = vld [vmem:[#allocation7 + $0x384] sm:$0xf]  ;;  %v7539_v30 = vld [vmem:[#allocation7 + $0x200] sm:$0xf]  ;;  %v10007_v55 = vor.u32 %v7997_v4, %v7283_v33  ;;  %v10017_v44 = vor.u32 %v8041_v18, %v7477_v19 }
 0x142   :  { %13360 = vst [vmem:[#allocation278_spill] sm:$0xff] %v9958_v22  ;;  %2677 = vmatpush.bf16.msra.mxu2 %v9958_v22  ;;  %2690 = vmatpush.bf16.msra.mxu3 %v9962_v9  ;;  %v7733_v50 = vld [vmem:[#allocation7 + $0x3a0] sm:$0xf0]  ;;  %v8294_v17 = vpop.eup %8293  ;;  %v7771_v14 = vld [vmem:[#allocation7 + $0x3c8] sm:$0xf]  ;;  %v10009_v24 = vadd.f32 1.0, %v8292_v54  ;;  %vm1749_vm1 = vweird.f32 %v10000_v40 }
 0x143   :  { %13361 = vst [vmem:[#allocation279_spill] sm:$0xff] %v9962_v9  ;;  %v1775_v9 = vsel %vm9974_vm6, %v9873_v62, %v1771_v6  ;;  %3343 = vmatpush.bf16.msrb.mxu0 %v9980_v46  ;;  %v8118_v0 = vld [vmem:[#allocation7 + $0x3e4] sm:$0xf0]  ;;  %v10011_v34 = vadd.f32 1.0, %v8294_v17  ;;  %v8296_v6 = vpop.eup %8295  ;;  %v10020_v4 = vor.u32 %v8105_v26, %v7733_v50  ;;  %v8033_v27 = vld [vmem:[#allocation7 + $0x144] sm:$0xf]  ;;  %v10023_v17 = vor.u32 %v8061_v13, %v7539_v30 }
 0x144   :  { %13362 = vst [vmem:[#allocation280_spill] sm:$0xff] %v9965_v1  ;;  %v7483_v62 = vld [vmem:[#allocation7 + $0x188] sm:$0xf]  ;;  %v7445_v54 = vld [vmem:[#allocation7 + $0x160] sm:$0xf0]  ;;  %3356 = vmatpush.bf16.msrb.mxu1 %v9992_v28  ;;  %v10031_v19 = vor.u32 %v8118_v0, %v7771_v14  ;;  %vm1787_vm15 = vweird.f32 %v10009_v24 }
 0x145   :  { %13365 = vst [vmem:[#allocation281_spill] sm:$0xff] %v9982_v39  ;;  %v8046_v33 = vld [vmem:[#allocation7 + $0x1a4] sm:$0xf0]  ;;  %v13377_v60 = vand.u32 2147483647, %v9806_v52  ;;  %8297 = vrcp.f32 %v10011_v34  ;;  %v10041_v13 = vor.u32 %v8033_v27, %v7445_v54  ;;  %vm1812_vm10 = vweird.f32 %v10011_v34 }
 0x146   :  { %13366 = vst [vmem:[#allocation282_spill] sm:$0xff] %v9985_v29  ;;  %2678 = vmatpush.bf16.msra.mxu2 %v9982_v39  ;;  %2691 = vmatpush.bf16.msra.mxu3 %v9985_v29  ;;  %v13376_v29 = vand.u32 2147483647, %v9792_v35  ;;  %v8097_v15 = vld [vmem:[#allocation7 + $0x344] sm:$0xf]  ;;  %8299 = vrcp.f32 %v10000_v40  ;;  %v10039_v30 = vor.u32 %v8046_v33, %v7483_v62 }
 0x147   :  { %13367 = vst [vmem:[#allocation283_spill] sm:$0xff] %v9987_v51  ;;  %vm1777_vm8 = vcmp.eq.f32.partialorder %v13377_v60, 8.507059e+37  ;;  %v7701_v18 = vld [vmem:[#allocation7 + $0x360] sm:$0xf0]  ;;  %3344 = vmatpush.bf16.msrb.mxu0 %v10007_v55  ;;  %v7739_v35 = vld [vmem:[#allocation7 + $0x388] sm:$0xf]  ;;  %8301 = vrcp.f32 %v10009_v24 }
 0x148   :  { %13368 = vst [vmem:[#allocation284_spill] sm:$0xff] %v9989_v58  ;;  %vm1739_vm7 = vcmp.eq.f32.partialorder %v13376_v29, 8.507059e+37  ;;  %v1780_v50 = vsel %vm1777_vm8, %v1779_v31, %v1775_v9  ;;  %v8110_v29 = vld [vmem:[#allocation7 + $0x3a4] sm:$0xf0]  ;;  %v7413_v31 = vld [vmem:[#allocation7 + $0x120] sm:$0xf0]  ;;  %3357 = vmatpush.bf16.msrb.mxu1 %v10023_v17 }
 0x149   :  { %13369 = vst [vmem:[#allocation285_spill] sm:$0xff] %v9992_v28  ;;  %2679 = vmatmul.bf16.vlgmr.msra.gmra.mxu2 %v13142_v7  ;;  %v1742_v26 = vsel %vm1739_vm7, %v9900_v11, %v1737_v3  ;;  %2692 = vmatmul.bf16.vlgmr.msra.gmra.mxu3 %v13142_v7  ;;  %v7451_v14 = vld [vmem:[#allocation7 + $0x148] sm:$0xf]  ;;  %v10045_v11 = vor.u32 %v8097_v15, %v7701_v18  ;;  %v8025_v3 = vld [vmem:[#allocation7 + $0x104] sm:$0xf]  ;;  %v1837_v0 = vmul.f32 0.0, %v1780_v50 }
 0x14a   :  { %13371 = vst [vmem:[#allocation286_spill] sm:$0xff] %v10007_v55  ;;  %3363 = vmatpush.bf16.msrb.mxu2 %v9987_v51  ;;  %3376 = vmatpush.bf16.msrb.mxu3 %v9989_v58  ;;  %v1839_v52 = vmul.f32 %v8296_v6, %v1742_v26  ;;  %v8038_v9 = vld [vmem:[#allocation7 + $0x164] sm:$0xf0]  ;;  %v8089_v6 = vld [vmem:[#allocation7 + $0x304] sm:$0xf]  ;;  %v10049_v62 = vor.u32 %v8110_v29, %v7739_v35 }
 0x14b   :  { %13372 = vst [vmem:[#allocation287_spill] sm:$0xff] %v10015_v53  ;;  %3389 = vmatpush.bf16.msra.mxu0 %v10015_v53  ;;  %v7669_v60 = vld [vmem:[#allocation7 + $0x320] sm:$0xf0]  ;;  %v7707_v33 = vld [vmem:[#allocation7 + $0x348] sm:$0xf]  ;;  %v10051_v54 = vpop.eup %8297  ;;  %v10057_v15 = vor.u32 %v8038_v9, %v7451_v14  ;;  %v10059_v18 = vor.u32 %v8025_v3, %v7413_v31 }
 0x14c   :  { %13373 = vst [vmem:[#allocation288_spill] sm:$0xff] %v10017_v44  ;;  %3402 = vmatpush.bf16.msra.mxu1 %v10031_v19  ;;  %v8102_v27 = vld [vmem:[#allocation7 + $0x364] sm:$0xf0]  ;;  %v10053_v26 = vadd.f32 %v1839_v52, %v1837_v0  ;;  %v1808_v7 = vmul.f32 %v10051_v54, %v10011_v34  ;;  %v10064_v35 = vor.u32 %v8089_v6, %v7669_v60  ;;  %v7381_v52 = vld [vmem:[#allocation7 + $0xe0] sm:$0xf0]  ;;  %v10066_v0 = vpop.eup %8299  ;;  %v1818_v6 = vand.u32 2147483648, %v10011_v34 }
 0x14d   :  { %13374 = vst [vmem:[#allocation289_spill] sm:$0xff] %v10020_v4  ;;  %v7419_v50 = vld [vmem:[#allocation7 + $0x108] sm:$0xf]  ;;  %v8081_v58 = vld [vmem:[#allocation7 + $0x2c4] sm:$0xf]  ;;  %v10069_v14 = vor.u32 %v8102_v27, %v7707_v33  ;;  %v10071_v9 = vpop.eup %8301  ;;  %vm1813_vm9 = vweird.f32 %v10051_v54  ;;  %vm1750_vm14 = vweird.f32 %v10066_v0 }
 0x14e   :  { %13375 = vst [vmem:[#allocation290_spill] sm:$0xff] %v10023_v17  ;;  %3364 = vmatpush.bf16.msrb.mxu2 %v10017_v44  ;;  %3377 = vmatpush.bf16.msrb.mxu3 %v10020_v4  ;;  %v8030_v29 = vld [vmem:[#allocation7 + $0x124] sm:$0xf0]  ;;  %v8017_v4 = vld [vmem:[#allocation7 + $0xc4] sm:$0xf]  ;;  %v1809_v3 = vsub.f32 1.0, %v1808_v7  ;;  %8303 = vtanh.f32 %v10053_v26  ;;  %vm10103_vm11 = vmor %vm1812_vm10, %vm1813_vm9  ;;  %v1709_v17 = vpop.f32.mrf.mxu3  ;;  %vm1788_vm13 = vweird.f32 %v10071_v9 }
 0x14f   :  { %13378 = vst [vmem:[#allocation291_spill] sm:$0xff] %v10031_v19  ;;  %3390 = vmatpush.bf16.msra.mxu0 %v10039_v30  ;;  %v7637_v44 = vld [vmem:[#allocation7 + $0x2e0] sm:$0xf0]  ;;  %v7675_v31 = vld [vmem:[#allocation7 + $0x308] sm:$0xf]  ;;  %v10077_v60 = vor.u32 %v8030_v29, %v7419_v50  ;;  %v10089_v50 = vmul.f32 %v10066_v0, %v10000_v40  ;;  %vm10182_vm0 = vmor %vm1787_vm15, %vm1788_vm13 }
 0x150   :  { %13379 = vst [vmem:[#allocation292_spill] sm:$0xff] %v10039_v30  ;;  %3403 = vmatpush.bf16.msra.mxu1 %v10049_v62  ;;  %v7387_v51 = vld [vmem:[#allocation7 + $0xc8] sm:$0xf]  ;;  %v1810_v27 = vmul.f32 %v10051_v54, %v1809_v3  ;;  %v1816_v7 = vand.u32 2147483647, %v10011_v34  ;;  %v10085_v39 = vor.u32 %v8081_v58, %v7637_v44  ;;  %v581_v34 = vperm.slane %v9668_v45, 5  ;;  %vm10202_vm2 = vmor %vm1749_vm1, %vm1750_vm14 }
 0x151   :  { %13380 = vst [vmem:[#allocation293_spill] sm:$0xff] %v10041_v13  ;;  %v8022_v33 = vld [vmem:[#allocation7 + $0xe4] sm:$0xf0]  ;;  %v8009_v22 = vld [vmem:[#allocation7 + $0x84] sm:$0xf] }
 0x152   :  { %13381 = vst [vmem:[#allocation294_spill] sm:$0xff] %v10045_v11  ;;  %3365 = vmatpush.bf16.msrb.mxu2 %v10041_v13  ;;  %3378 = vmatpush.bf16.msrb.mxu3 %v10045_v11  ;;  %v8094_v13 = vld [vmem:[#allocation7 + $0x324] sm:$0xf0]  ;;  %v10079_v11 = vor.u32 %v8017_v4, %v7381_v52  ;;  %v10093_v4 = vmul.f32 %v10071_v9, %v10009_v24  ;;  %v8073_v29 = vld [vmem:[#allocation7 + $0x284] sm:$0xf]  ;;  %vm1817_vm12 = vcmp.eq.f32.partialorder %v1816_v7, 8.507059e+37 }
 0x153   :  { %13382 = vst [vmem:[#allocation295_spill] sm:$0xff] %v10049_v62  ;;  %3391 = vmatpush.bf16.msra.mxu0 %v10057_v15  ;;  %v7605_v52 = vld [vmem:[#allocation7 + $0x2a0] sm:$0xf0]  ;;  %v10096_v3 = vor.u32 %v8094_v13, %v7675_v31  ;;  %v1811_v58 = vadd.f32 %v10051_v54, %v1810_v27  ;;  %v7643_v44 = vld [vmem:[#allocation7 + $0x2c8] sm:$0xf]  ;;  %v1819_v62 = vor.u32 1.1754944e-38, %v1818_v6  ;;  %v10109_v13 = vor.u32 %v8022_v33, %v7387_v51  ;;  %v1696_v6 = vpop.f32.mrf.mxu2 }
 0x154   :  { %13383 = vst [vmem:[#allocation296_spill] sm:$0xff] %v10053_v26  ;;  %3404 = vmatpush.bf16.msra.mxu1 %v10069_v14  ;;  %v7355_v27 = vld [vmem:[#allocation7 + $0x88] sm:$0xf]  ;;  %v10118_v19 = vor.u32 %v8073_v29, %v7605_v52  ;;  %v8304_v51 = vpop.eup %8303  ;;  %v7573_v53 = vld [vmem:[#allocation7 + $0x260] sm:$0xf0]  ;;  %v1658_v29 = vadd.f32 %v9935_v23, %v9933_v32  ;;  %v1710_v52 = vadd.f32 %v1709_v17, %v1696_v6 }
 0x155   :  { %13384 = vst [vmem:[#allocation297_spill] sm:$0xff] %v10057_v15  ;;  %v7349_v15 = vld [vmem:[#allocation7 + $0xa0] sm:$0xf0]  ;;  %v1815_v30 = vsel %vm10103_vm11, %v10051_v54, %v1811_v58  ;;  %v7323_v58 = vld [vmem:[#allocation7 + $0x48] sm:$0xf] }
 0x156   :  { %13385 = vst [vmem:[#allocation298_spill] sm:$0xff] %v10059_v18  ;;  %3366 = vmatpush.bf16.msrb.mxu2 %v10059_v18  ;;  %3379 = vmatpush.bf16.msrb.mxu3 %v10064_v35  ;;  %v8086_v18 = vld [vmem:[#allocation7 + $0x2e4] sm:$0xf0]  ;;  %v10111_v31 = vor.u32 %v8009_v22, %v7349_v15  ;;  %v1746_v22 = vsub.f32 1.0, %v10089_v50  ;;  %v1784_v15 = vsub.f32 1.0, %v10093_v4  ;;  %v1820_v33 = vsel %vm1817_vm12, %v1819_v62, %v1815_v30 }
 0x157   :  { %13386 = vst [vmem:[#allocation299_spill] sm:$0xff] %v10064_v35  ;;  %v583_v35 = vperm.slane %v9668_v45, 7  ;;  %3392 = vmatpush.bf16.msra.mxu0 %v10077_v60  ;;  %v8065_v45 = vld [vmem:[#allocation7 + $0x244] sm:$0xf]  ;;  %v10123_v54 = vor.u32 %v8086_v18, %v7643_v44  ;;  %v1845_v7 = vmul.f32 %v8304_v51, %v1820_v33  ;;  %v7611_v50 = vld [vmem:[#allocation7 + $0x288] sm:$0xf] }
 0x158   :  { %13387 = vst [vmem:[#allocation300_spill] sm:$0xff] %v10069_v14  ;;  %v8014_v14 = vld [vmem:[#allocation7 + $0xa4] sm:$0xf0]  ;;  %3405 = vmatpush.bf16.msra.mxu1 %v10096_v3  ;;  %v7993_v4 = vld [vmem:[#allocation7 + $0x4] sm:$0xf]  ;;  %v10143_v23 = vor.u32 %v8065_v45, %v7573_v53  ;;  %v1747_v45 = vmul.f32 %v10066_v0, %v1746_v22 }
 0x159   :  { %13388 = vst [vmem:[#allocation301_spill] sm:$0xff] %v10077_v60  ;;  %v8001_v60 = vld [vmem:[#allocation7 + $0x44] sm:$0xf]  ;;  %v10126_v26 = vadd.f32 %v9569_v47, %v583_v35  ;;  %v10132_v30 = vor.u32 %v8014_v14, %v7355_v27  ;;  %v8006_v18 = vld [vmem:[#allocation7 + $0x64] sm:$0xf0]  ;;  %v10137_v35 = vadd.f32 %v9426_v5, %v581_v34  ;;  %v10139_v44 = vpack.c.bf16 %v1845_v7, %v1845_v7 }
 0x15a   :  { %13389 = vst [vmem:[#allocation302_spill] sm:$0xff] %v10079_v11  ;;  %3367 = vmatpush.bf16.msrb.mxu2 %v10079_v11  ;;  %3380 = vmatpush.bf16.msrb.mxu3 %v10085_v39  ;;  %v7317_v11 = vld [vmem:[#allocation7 + $0x60] sm:$0xf0]  ;;  %v8050_v14 = vld [vmem:[#allocation7 + $0x1cc] sm:$0xf]  ;;  %v1785_v5 = vmul.f32 %v10071_v9, %v1784_v15 }
 0x15b   :  { %13390 = vst [vmem:[#allocation303_spill] sm:$0xff] %v10085_v39  ;;  %v8078_v39 = vld [vmem:[#allocation7 + $0x2a4] sm:$0xf0]  ;;  %3393 = vmatpush.bf16.msra.mxu0 %v10109_v13  ;;  %v10134_v62 = vor.u32 %v8001_v60, %v7317_v11  ;;  %v7285_v47 = vld [vmem:[#allocation7 + $0x20] sm:$0xf0]  ;;  %v1720_v32 = vadd.f32 %v1710_v52, %v10126_v26  ;;  %v1718_v34 = vadd.f32 %v1658_v29, %v10137_v35  ;;  %v1698_v29 = vpop.f32.mrf.mxu2 }
 0x15c   :  { %13391 = vst [vmem:[#allocation304_spill] sm:$0xff] %v10096_v3  ;;  %v8057_v17 = vld [vmem:[#allocation7 + $0x204] sm:$0xf]  ;;  %v7517_v27 = vld [vmem:[#allocation7 + $0x1e8] sm:$0xf0]  ;;  %3406 = vmatpush.bf16.msra.mxu1 %v10123_v54  ;;  %v10146_v51 = vor.u32 %v8078_v39, %v7611_v50  ;;  %3345 = vmatmul.bf16.vlgmr.msrb.gmra.mxu0 %v10139_v44  ;;  %v10157_v39 = vor.u32 %v7993_v4, %v7285_v47 }
 0x15d   :  { %13394 = vst [vmem:[#allocation305_spill] sm:$0xff] %v10109_v13  ;;  %v7541_v6 = vld [vmem:[#allocation7 + $0x220] sm:$0xf0]  ;;  %v8114_v11 = vld [vmem:[#allocation7 + $0x3cc] sm:$0xf] }
 0x15e   :  { %13395 = vst [vmem:[#allocation306_spill] sm:$0xff] %v10111_v31  ;;  %3368 = vmatpush.bf16.msrb.mxu2 %v10111_v31  ;;  %3381 = vmatpush.bf16.msrb.mxu3 %v10118_v19  ;;  %v7773_v60 = vld [vmem:[#allocation7 + $0x3e8] sm:$0xf0]  ;;  %v6768_v33 = vmul.f32 -1.442695, %v1720_v32  ;;  %v10160_v50 = vor.u32 %v8057_v17, %v7541_v6  ;;  %v10162_v32 = vor.u32 %v8050_v14, %v7517_v27  ;;  %v1711_v31 = vpop.f32.mrf.mxu3 }
 0x15f   :  { %13396 = vst [vmem:[#allocation307_spill] sm:$0xff] %v10118_v19  ;;  %v7579_v7 = vld [vmem:[#allocation7 + $0x248] sm:$0xf]  ;;  %v1753_v52 = vand.u32 2147483647, %v10000_v40  ;;  %3394 = vmatpush.bf16.msra.mxu0 %v10132_v30  ;;  %v10155_v19 = vor.u32 %v8006_v18, %v7323_v58  ;;  %v1786_v17 = vadd.f32 %v10071_v9, %v1785_v5  ;;  %v1793_v31 = vand.u32 2147483648, %v10009_v24 }
 0x160   :  { %13397 = vst [vmem:[#allocation308_spill] sm:$0xff] %v10123_v54  ;;  %v8070_v53 = vld [vmem:[#allocation7 + $0x264] sm:$0xf0]  ;;  %8305 = vpow2.f32 %v6768_v33  ;;  %v8042_v58 = vld [vmem:[#allocation7 + $0x18c] sm:$0xf]  ;;  %3407 = vmatpush.bf16.msra.mxu1 %v10146_v51  ;;  %v1755_v33 = vand.u32 2147483648, %v10000_v40 }
 0x161   :  { %13398 = vst [vmem:[#allocation309_spill] sm:$0xff] %v10126_v26  ;;  %v7291_v15 = vld [vmem:[#allocation7 + $0x8] sm:$0xf]  ;;  %v8055_v26 = vld [vmem:[#allocation7 + $0x1ec] sm:$0xf0]  ;;  %v10168_v47 = vor.u32 %v8070_v53, %v7579_v7  ;;  %8307 = vtanh.f32 %v1718_v34  ;;  %v1790_v40 = vsel %vm10182_vm0, %v10071_v9, %v1786_v17  ;;  %vm10213_vm3 = vcmp.eq.f32.partialorder %v1753_v52, 8.507059e+37  ;;  %v10222_v9 = vpop.f32.mrf.mxu1 }
 0x162   :  { %13399 = vst [vmem:[#allocation310_spill] sm:$0xff] %v10132_v30  ;;  %3369 = vmatpush.bf16.msrb.mxu2 %v10134_v62  ;;  %3382 = vmatpush.bf16.msrb.mxu3 %v10143_v23  ;;  %v7998_v22 = vld [vmem:[#allocation7 + $0x24] sm:$0xf0]  ;;  %v7485_v18 = vld [vmem:[#allocation7 + $0x1a8] sm:$0xf0]  ;;  %v1756_v5 = vor.u32 1.1754944e-38, %v1755_v33 }
 0x163   :  { %13400 = vst [vmem:[#allocation311_spill] sm:$0xff] %v10134_v62  ;;  %v10165_v62 = vor.u32 %v8114_v11, %v7773_v60  ;;  %v8106_v4 = vld [vmem:[#allocation7 + $0x38c] sm:$0xf]  ;;  %v7547_v14 = vld [vmem:[#allocation7 + $0x208] sm:$0xf]  ;;  %v1748_v11 = vadd.f32 %v10066_v0, %v1747_v45  ;;  %3395 = vmatpush.bf16.msra.mxu0 %v10155_v19  ;;  %v10177_v60 = vor.u32 %v7998_v22, %v7291_v15 }
 0x164   :  { %13401 = vst [vmem:[#allocation312_spill] sm:$0xff] %v10137_v35  ;;  %v7523_v35 = vld [vmem:[#allocation7 + $0x1d0] sm:$0xf]  ;;  %v7741_v6 = vld [vmem:[#allocation7 + $0x3a8] sm:$0xf0]  ;;  %v10191_v53 = vor.u32 %v8042_v58, %v7485_v18  ;;  %3408 = vmatpush.bf16.msra.mxu1 %v10168_v47  ;;  %v1794_v18 = vor.u32 1.1754944e-38, %v1793_v31 }
 0x165   :  { %13402 = vst [vmem:[#allocation313_spill] sm:$0xff] %v10143_v23  ;;  %v8062_v27 = vld [vmem:[#allocation7 + $0x224] sm:$0xf0]  ;;  %v1791_v34 = vand.u32 2147483647, %v10009_v24  ;;  %v10189_v7 = vor.u32 %v8055_v26, %v7523_v35  ;;  %v10195_v15 = vor.u32 %v8106_v4, %v7741_v6  ;;  %v1752_v4 = vsel %vm10202_vm2, %v10066_v0, %v1748_v11 }
 0x166   :  { %13403 = vst [vmem:[#allocation314_spill] sm:$0xff] %v10146_v51  ;;  %3370 = vmatpush.bf16.msrb.mxu2 %v10157_v39  ;;  %3383 = vmatpush.bf16.msrb.mxu3 %v10160_v50  ;;  %v7491_v45 = vld [vmem:[#allocation7 + $0x190] sm:$0xf]  ;;  %v8034_v22 = vld [vmem:[#allocation7 + $0x14c] sm:$0xf]  ;;  %v10198_v24 = vor.u32 %v8062_v27, %v7547_v14  ;;  %v10220_v27 = vpop.f32.mrf.mxu0 }
 0x167   :  { %13404 = vst [vmem:[#allocation315_spill] sm:$0xff] %v10155_v19  ;;  %v8047_v29 = vld [vmem:[#allocation7 + $0x1ac] sm:$0xf0]  ;;  %v7453_v23 = vld [vmem:[#allocation7 + $0x168] sm:$0xf0]  ;;  %3396 = vmatpush.bf16.msra.mxu0 %v10177_v60  ;;  %vm1792_vm4 = vcmp.eq.f32.partialorder %v1791_v34, 8.507059e+37  ;;  %v1757_v34 = vsel %vm10213_vm3, %v1756_v5, %v1752_v4 }
 0x168   :  { %13405 = vst [vmem:[#allocation316_spill] sm:$0xff] %v10157_v39  ;;  %v8098_v35 = vld [vmem:[#allocation7 + $0x34c] sm:$0xf]  ;;  %v10226_v0 = vor.u32 %v8047_v29, %v7491_v45  ;;  %v10228_v52 = vor.u32 %v8034_v22, %v7453_v23  ;;  %v7459_v31 = vld [vmem:[#allocation7 + $0x150] sm:$0xf]  ;;  %3409 = vmatpush.bf16.msra.mxu1 %v10198_v24 }
 0x169   :  { %13406 = vst [vmem:[#allocation317_spill] sm:$0xff] %v10160_v50  ;;  %v8306_v50 = vpop.eup %8305  ;;  %3371 = vmatmul.bf16.vlgmr.msrb.gmra.mxu2 %v10139_v44  ;;  %v7709_v58 = vld [vmem:[#allocation7 + $0x368] sm:$0xf0]  ;;  %v8039_v26 = vld [vmem:[#allocation7 + $0x16c] sm:$0xf0] }
 0x16a   :  { %13407 = vst [vmem:[#allocation318_spill] sm:$0xff] %v10162_v32  ;;  %3415 = vmatpush.bf16.msra.mxu2 %v10162_v32  ;;  %3428 = vmatpush.bf16.msra.mxu3 %v10165_v62  ;;  %v10217_v14 = vadd.f32 1.0, %v8306_v50  ;;  %v8308_v17 = vpop.eup %8307  ;;  %v1795_v50 = vsel %vm1792_vm4, %v1794_v18, %v1790_v40  ;;  %v10232_v11 = vor.u32 %v8098_v35, %v7709_v58  ;;  %v7421_v33 = vld [vmem:[#allocation7 + $0x128] sm:$0xf0]  ;;  %v7427_v58 = vld [vmem:[#allocation7 + $0x110] sm:$0xf] }
 0x16b   :  { %13408 = vst [vmem:[#allocation319_spill] sm:$0xff] %v10165_v62  ;;  %3441 = vmatpush.bf16.msrb.mxu0 %v10189_v7  ;;  %v8026_v62 = vld [vmem:[#allocation7 + $0x10c] sm:$0xf]  ;;  %v1840_v23 = vmul.f32 %v8308_v17, %v1757_v34  ;;  %v1838_v22 = vmul.f32 0.0, %v1795_v50  ;;  %v10239_v40 = vor.u32 %v8039_v26, %v7459_v31  ;;  %v2513_v31 = vpop.f32.mrf.mxu1 }
 0x16c   :  { %13409 = vst [vmem:[#allocation320_spill] sm:$0xff] %v10168_v47  ;;  %8309 = vrcp.f32 %v10217_v14  ;;  %v8090_v45 = vld [vmem:[#allocation7 + $0x30c] sm:$0xf]  ;;  %v10241_v35 = vor.u32 %v8026_v62, %v7421_v33  ;;  %3397 = vmatmul.bf16.vlgmr.msra.gmra.mxu0 %v10139_v44  ;;  %v1833_v32 = vand.u32 2147483648, %v10217_v14  ;;  %vm1827_vm6 = vweird.f32 %v10217_v14  ;;  %v2537_v39 = vpop.f32.mrf.mxu3 }
 0x16d   :  { %13410 = vst [vmem:[#allocation321_spill] sm:$0xff] %v10177_v60  ;;  %v7677_v29 = vld [vmem:[#allocation7 + $0x328] sm:$0xf0]  ;;  %v10247_v34 = vadd.f32 %v1840_v23, %v1838_v22  ;;  %v8000_v60 = vld [vmem:[#allocation7 + $0x34] sm:$0xf0] }
 0x16e   :  { %13413 = vst [vmem:[#allocation322_spill] sm:$0xff] %v10189_v7  ;;  %3416 = vmatpush.bf16.msra.mxu2 %v10191_v53  ;;  %3429 = vmatpush.bf16.msra.mxu3 %v10195_v15  ;;  %v10244_v18 = vor.u32 %v8090_v45, %v7677_v29  ;;  %v8018_v6 = vld [vmem:[#allocation7 + $0xcc] sm:$0xf]  ;;  %v7395_v45 = vld [vmem:[#allocation7 + $0xd0] sm:$0xf] }
 0x16f   :  { %13414 = vst [vmem:[#allocation323_spill] sm:$0xff] %v10191_v53  ;;  %3442 = vmatpush.bf16.msrb.mxu0 %v10226_v0  ;;  %v7389_v4 = vld [vmem:[#allocation7 + $0xe8] sm:$0xf0]  ;;  %v8023_v29 = vld [vmem:[#allocation7 + $0xec] sm:$0xf0]  ;;  %8311 = vtanh.f32 %v10247_v34 }
 0x170   :  { %13415 = vst [vmem:[#allocation324_spill] sm:$0xff] %v10195_v15  ;;  %v8031_v15 = vld [vmem:[#allocation7 + $0x12c] sm:$0xf0]  ;;  %v8082_v17 = vld [vmem:[#allocation7 + $0x2cc] sm:$0xf]  ;;  %v10254_v33 = vor.u32 %v8018_v6, %v7389_v4 }
 0x171   :  { %13416 = vst [vmem:[#allocation325_spill] sm:$0xff] %v10198_v24  ;;  %v7645_v5 = vld [vmem:[#allocation7 + $0x2e8] sm:$0xf0]  ;;  %v10252_v26 = vor.u32 %v8031_v15, %v7427_v58  ;;  %v1831_v58 = vand.u32 2147483647, %v10217_v14 }
 0x172   :  { %13421 = vst [vmem:[#allocation326_spill] sm:$0xff] %v10226_v0  ;;  %3417 = vmatpush.bf16.msra.mxu2 %v10228_v52  ;;  %3430 = vmatpush.bf16.msra.mxu3 %v10232_v11  ;;  %v8310_v50 = vpop.eup %8309  ;;  %v8010_v23 = vld [vmem:[#allocation7 + $0x8c] sm:$0xf]  ;;  %v7363_v4 = vld [vmem:[#allocation7 + $0x90] sm:$0xf] }
 0x173   :  { %13422 = vst [vmem:[#allocation327_spill] sm:$0xff] %v10228_v52  ;;  %v2500_v52 = vpop.f32.mrf.mxu0  ;;  %v1823_v62 = vmul.f32 %v8310_v50, %v10217_v14  ;;  %3443 = vmatpush.bf16.msrb.mxu0 %v10239_v40  ;;  %v7357_v22 = vld [vmem:[#allocation7 + $0xa8] sm:$0xf0]  ;;  %vm1828_vm5 = vweird.f32 %v8310_v50  ;;  %vm1832_vm8 = vcmp.eq.f32.partialorder %v1831_v58, 8.507059e+37  ;;  %v7331_v14 = vld [vmem:[#allocation7 + $0x50] sm:$0xf] }
 0x174   :  { %13423 = vst [vmem:[#allocation328_spill] sm:$0xff] %v10232_v11  ;;  %v10257_v11 = vor.u32 %v8082_v17, %v7645_v5  ;;  %v8074_v31 = vld [vmem:[#allocation7 + $0x28c] sm:$0xf]  ;;  %v10266_v6 = vor.u32 %v8010_v23, %v7357_v22  ;;  %v8015_v5 = vld [vmem:[#allocation7 + $0xac] sm:$0xf0]  ;;  %vm1829_vm7 = vmor %vm1827_vm6, %vm1828_vm5 }
 0x175   :  { %13424 = vst [vmem:[#allocation329_spill] sm:$0xff] %v10239_v40  ;;  %v1824_v52 = vsub.f32 1.0, %v1823_v62  ;;  %v7613_v53 = vld [vmem:[#allocation7 + $0x2a8] sm:$0xf0]  ;;  %v7779_v23 = vld [vmem:[#allocation7 + $0x3d0] sm:$0xf]  ;;  %v8312_v40 = vpop.eup %8311 }
 0x176   :  { %13425 = vst [vmem:[#allocation330_spill] sm:$0xff] %v10241_v35  ;;  %3418 = vmatpush.bf16.msra.mxu2 %v10241_v35  ;;  %3431 = vmatpush.bf16.msra.mxu3 %v10244_v18  ;;  %v10261_v35 = vor.u32 %v8023_v29, %v7395_v45  ;;  %v10269_v17 = vor.u32 %v8074_v31, %v7613_v53  ;;  %v8002_v62 = vld [vmem:[#allocation7 + $0x4c] sm:$0xf]  ;;  %v2524_v45 = vpop.f32.mrf.mxu2  ;;  %v8119_v22 = vld [vmem:[#allocation7 + $0x3ec] sm:$0xf0] }
 0x177   :  { %13426 = vst [vmem:[#allocation331_spill] sm:$0xff] %v10244_v18  ;;  %v1825_v15 = vmul.f32 %v8310_v50, %v1824_v52  ;;  %3444 = vmatpush.bf16.msrb.mxu0 %v10252_v26  ;;  %v7325_v18 = vld [vmem:[#allocation7 + $0x68] sm:$0xf0]  ;;  %v10277_v53 = vor.u32 %v8015_v5, %v7363_v4  ;;  %v7525_v24 = vld [vmem:[#allocation7 + $0x1f0] sm:$0xf0] }
 0x178   :  { %13427 = vst [vmem:[#allocation332_spill] sm:$0xff] %v10247_v34  ;;  %v8066_v52 = vld [vmem:[#allocation7 + $0x24c] sm:$0xf]  ;;  %v10279_v31 = vor.u32 %v8002_v62, %v7325_v18  ;;  %v8115_v4 = vld [vmem:[#allocation7 + $0x3d4] sm:$0xf] }
 0x179   :  { %13428 = vst [vmem:[#allocation333_spill] sm:$0xff] %v10252_v26  ;;  %v1826_v29 = vadd.f32 %v8310_v50, %v1825_v15  ;;  %v7581_v34 = vld [vmem:[#allocation7 + $0x268] sm:$0xf0]  ;;  %v10273_v26 = vadd.f32 %v2537_v39, %v2524_v45  ;;  %v8007_v15 = vld [vmem:[#allocation7 + $0x6c] sm:$0xf0] }
 0x17a   :  { %13429 = vst [vmem:[#allocation334_spill] sm:$0xff] %v10254_v33  ;;  %3419 = vmatpush.bf16.msra.mxu2 %v10254_v33  ;;  %3432 = vmatpush.bf16.msra.mxu3 %v10257_v11  ;;  %v1834_v33 = vor.u32 1.1754944e-38, %v1833_v32  ;;  %v10282_v32 = vor.u32 %v8066_v52, %v7581_v34  ;;  %v7994_v39 = vld [vmem:[#allocation7 + $0xc] sm:$0xf]  ;;  %v7781_v18 = vld [vmem:[#allocation7 + $0x3f0] sm:$0xf0] }
 0x17b   :  { %13430 = vst [vmem:[#allocation335_spill] sm:$0xff] %v10257_v11  ;;  %v1830_v11 = vsel %vm1829_vm7, %v8310_v50, %v1826_v29  ;;  %3445 = vmatpush.bf16.msrb.mxu0 %v10261_v35  ;;  %v7293_v45 = vld [vmem:[#allocation7 + $0x28] sm:$0xf0]  ;;  %v8111_v62 = vld [vmem:[#allocation7 + $0x3ac] sm:$0xf0] }
 0x17c   :  { %13431 = vst [vmem:[#allocation336_spill] sm:$0xff] %v10261_v35  ;;  %v1835_v0 = vsel %vm1832_vm8, %v1834_v33, %v1830_v11  ;;  %v8058_v50 = vld [vmem:[#allocation7 + $0x20c] sm:$0xf]  ;;  %v8051_v35 = vld [vmem:[#allocation7 + $0x1d4] sm:$0xf]  ;;  %v10290_v11 = vor.u32 %v8007_v15, %v7331_v14  ;;  %v10292_v34 = vor.u32 %v7994_v39, %v7293_v45  ;;  %v10301_v14 = vor.u32 %v8115_v4, %v7781_v18 }
 0x17d   :  { %13432 = vst [vmem:[#allocation337_spill] sm:$0xff] %v10266_v6  ;;  %v1846_v58 = vmul.f32 %v8312_v40, %v1835_v0  ;;  %v7549_v29 = vld [vmem:[#allocation7 + $0x228] sm:$0xf0]  ;;  %v7747_v33 = vld [vmem:[#allocation7 + $0x390] sm:$0xf]  ;;  %v10297_v40 = vor.u32 %v8051_v35, %v7525_v24 }
 0x17e   :  { %13433 = vst [vmem:[#allocation338_spill] sm:$0xff] %v10269_v17  ;;  %3420 = vmatpush.bf16.msra.mxu2 %v10266_v6  ;;  %3433 = vmatpush.bf16.msra.mxu3 %v10269_v17  ;;  %v10284_v6 = vor.u32 %v8119_v22, %v7779_v23  ;;  %v10295_v0 = vor.u32 %v8058_v50, %v7549_v29  ;;  %v7299_v52 = vld [vmem:[#allocation7 + $0x10] sm:$0xf]  ;;  %v7531_v22 = vld [vmem:[#allocation7 + $0x1d8] sm:$0xf]  ;;  %v2539_v17 = vpop.f32.mrf.mxu3 }
 0x17f   :  { %13434 = vst [vmem:[#allocation339_spill] sm:$0xff] %v10277_v53  ;;  %v10286_v5 = vpack.c.bf16 %v1846_v58, %v1846_v58  ;;  %3446 = vmatpush.bf16.msrb.mxu0 %v10277_v53  ;;  %v7999_v23 = vld [vmem:[#allocation7 + $0x2c] sm:$0xf0]  ;;  %v2526_v58 = vpop.f32.mrf.mxu2  ;;  %v8056_v15 = vld [vmem:[#allocation7 + $0x1f4] sm:$0xf0]  ;;  %v10304_v50 = vor.u32 %v8111_v62, %v7747_v33 }
 0x180   :  { %13435 = vst [vmem:[#allocation340_spill] sm:$0xff] %v10279_v31  ;;  %v8043_v39 = vld [vmem:[#allocation7 + $0x194] sm:$0xf]  ;;  %v10308_v29 = vor.u32 %v7999_v23, %v7299_v52  ;;  %v7715_v58 = vld [vmem:[#allocation7 + $0x350] sm:$0xf]  ;;  %v10312_v4 = vor.u32 %v8056_v15, %v7531_v22 }
 0x181   :  { %13436 = vst [vmem:[#allocation341_spill] sm:$0xff] %v10282_v32  ;;  %3358 = vmatmul.bf16.vlgmr.msrb.gmra.mxu1 %v10286_v5  ;;  %3384 = vmatmul.bf16.vlgmr.msrb.gmra.mxu3 %v10286_v5  ;;  %v7493_v45 = vld [vmem:[#allocation7 + $0x1b0] sm:$0xf0]  ;;  %v7499_v18 = vld [vmem:[#allocation7 + $0x198] sm:$0xf] }
 0x182   :  { %13437 = vst [vmem:[#allocation342_spill] sm:$0xff] %v10284_v6  ;;  %3421 = vmatpush.bf16.msra.mxu2 %v10279_v31  ;;  %3434 = vmatpush.bf16.msra.mxu3 %v10282_v32  ;;  %v8107_v24 = vld [vmem:[#allocation7 + $0x394] sm:$0xf]  ;;  %v8103_v32 = vld [vmem:[#allocation7 + $0x36c] sm:$0xf0]  ;;  %v10314_v17 = vor.u32 %v8043_v39, %v7493_v45  ;;  %v10324_v39 = vpop.f32.mrf.mxu0 }
 0x183   :  { %13438 = vst [vmem:[#allocation343_spill] sm:$0xff] %v10290_v11  ;;  %3454 = vmatpush.bf16.msrb.mxu1 %v10284_v6  ;;  %v7749_v35 = vld [vmem:[#allocation7 + $0x3b0] sm:$0xf0]  ;;  %3447 = vmatpush.bf16.msrb.mxu0 %v10290_v11  ;;  %v8048_v62 = vld [vmem:[#allocation7 + $0x1b4] sm:$0xf0]  ;;  %v10321_v52 = vor.u32 %v8103_v32, %v7715_v58 }
 0x184   :  { %13439 = vst [vmem:[#allocation344_spill] sm:$0xff] %v10292_v34  ;;  %v10317_v33 = vor.u32 %v8107_v24, %v7749_v35  ;;  %v8035_v6 = vld [vmem:[#allocation7 + $0x154] sm:$0xf]  ;;  %v7683_v22 = vld [vmem:[#allocation7 + $0x310] sm:$0xf]  ;;  %v10328_v45 = vor.u32 %v8048_v62, %v7499_v18 }
 0x185   :  { %13440 = vst [vmem:[#allocation345_spill] sm:$0xff] %v10295_v0  ;;  %v8099_v23 = vld [vmem:[#allocation7 + $0x354] sm:$0xf]  ;;  %v8095_v15 = vld [vmem:[#allocation7 + $0x32c] sm:$0xf0] }
 0x186   :  { %13441 = vst [vmem:[#allocation346_spill] sm:$0xff] %v10297_v40  ;;  %3422 = vmatpush.bf16.msra.mxu2 %v10292_v34  ;;  %3435 = vmatpush.bf16.msra.mxu3 %v10295_v0  ;;  %v7461_v34 = vld [vmem:[#allocation7 + $0x170] sm:$0xf0]  ;;  %v7467_v35 = vld [vmem:[#allocation7 + $0x158] sm:$0xf]  ;;  %v10339_v31 = vor.u32 %v8095_v15, %v7683_v22 }
 0x187   :  { %13442 = vst [vmem:[#allocation347_spill] sm:$0xff] %v10301_v14  ;;  %3455 = vmatpush.bf16.msrb.mxu1 %v10304_v50  ;;  %v7717_v0 = vld [vmem:[#allocation7 + $0x370] sm:$0xf0]  ;;  %3448 = vmatpush.bf16.msrb.mxu0 %v10308_v29  ;;  %v10330_v24 = vor.u32 %v8035_v6, %v7461_v34  ;;  %v8040_v58 = vld [vmem:[#allocation7 + $0x174] sm:$0xf0] }
 0x188   :  { %13443 = vst [vmem:[#allocation348_spill] sm:$0xff] %v10304_v50  ;;  %v10335_v32 = vor.u32 %v8099_v23, %v7717_v0  ;;  %v8027_v50 = vld [vmem:[#allocation7 + $0x114] sm:$0xf]  ;;  %v7651_v18 = vld [vmem:[#allocation7 + $0x2d0] sm:$0xf] }
 0x189   :  { %13444 = vst [vmem:[#allocation349_spill] sm:$0xff] %v10308_v29  ;;  %3423 = vmatmul.bf16.vlgmr.msra.gmra.mxu2 %v10139_v44  ;;  %v8087_v62 = vld [vmem:[#allocation7 + $0x2ec] sm:$0xf0]  ;;  %v8091_v6 = vld [vmem:[#allocation7 + $0x314] sm:$0xf] }
 0x18a   :  { %3467 = vmatpush.bf16.msrb.mxu2 %v10297_v40  ;;  %13445 = vst [vmem:[#allocation350_spill] sm:$0xff] %v10312_v4  ;;  %3480 = vmatpush.bf16.msrb.mxu3 %v10301_v14  ;;  %v10332_v14 = vpop.f32.mrf.mxu1  ;;  %v7429_v40 = vld [vmem:[#allocation7 + $0x130] sm:$0xf0]  ;;  %v7435_v23 = vld [vmem:[#allocation7 + $0x118] sm:$0xf]  ;;  %v10349_v22 = vor.u32 %v8087_v62, %v7651_v18 }
 0x18b   :  { %13446 = vst [vmem:[#allocation351_spill] sm:$0xff] %v10314_v17  ;;  %3493 = vmatpush.bf16.msra.mxu0 %v10312_v4  ;;  %3456 = vmatpush.bf16.msrb.mxu1 %v10321_v52  ;;  %v7685_v34 = vld [vmem:[#allocation7 + $0x330] sm:$0xf0]  ;;  %v10345_v0 = vor.u32 %v8027_v50, %v7429_v40  ;;  %v7619_v29 = vld [vmem:[#allocation7 + $0x290] sm:$0xf] }
 0x18c   :  { %13447 = vst [vmem:[#allocation352_spill] sm:$0xff] %v10317_v33  ;;  %3449 = vmatmul.bf16.vlgmr.msrb.gmra.mxu0 %v10139_v44  ;;  %v7397_v4 = vld [vmem:[#allocation7 + $0xf0] sm:$0xf0]  ;;  %v10351_v15 = vor.u32 %v8091_v6, %v7685_v34  ;;  %v8024_v18 = vld [vmem:[#allocation7 + $0xf4] sm:$0xf0] }
 0x18d   :  { %13448 = vst [vmem:[#allocation353_spill] sm:$0xff] %v10321_v52  ;;  %v8032_v52 = vld [vmem:[#allocation7 + $0x134] sm:$0xf0]  ;;  %v8083_v11 = vld [vmem:[#allocation7 + $0x2d4] sm:$0xf] }
 0x18e   :  { %3468 = vmatpush.bf16.msrb.mxu2 %v10314_v17  ;;  %13449 = vst [vmem:[#allocation354_spill] sm:$0xff] %v10328_v45  ;;  %3481 = vmatpush.bf16.msrb.mxu3 %v10317_v33  ;;  %v10343_v33 = vor.u32 %v8040_v58, %v7467_v35  ;;  %v8019_v17 = vld [vmem:[#allocation7 + $0xd4] sm:$0xf]  ;;  %v2552_v35 = vpop.f32.mrf.mxu0  ;;  %v10355_v40 = vor.u32 %v8032_v52, %v7435_v23  ;;  %v7403_v58 = vld [vmem:[#allocation7 + $0xd8] sm:$0xf] }
 0x18f   :  { %13450 = vst [vmem:[#allocation355_spill] sm:$0xff] %v10330_v24  ;;  %3494 = vmatpush.bf16.msra.mxu0 %v10328_v45  ;;  %3457 = vmatpush.bf16.msrb.mxu1 %v10339_v31  ;;  %v8079_v45 = vld [vmem:[#allocation7 + $0x2ac] sm:$0xf0]  ;;  %v10357_v50 = vor.u32 %v8019_v17, %v7397_v4  ;;  %v8011_v62 = vld [vmem:[#allocation7 + $0x94] sm:$0xf] }
 0x190   :  { %13451 = vst [vmem:[#allocation356_spill] sm:$0xff] %v10335_v32  ;;  %v7365_v6 = vld [vmem:[#allocation7 + $0xb0] sm:$0xf0]  ;;  %v10363_v34 = vor.u32 %v8079_v45, %v7619_v29  ;;  %v7587_v52 = vld [vmem:[#allocation7 + $0x250] sm:$0xf]  ;;  %v2576_v29 = vpop.f32.mrf.mxu2 }
 0x191   :  { %13452 = vst [vmem:[#allocation357_spill] sm:$0xff] %v10339_v31  ;;  %3410 = vmatmul.bf16.vlgmr.msra.gmra.mxu1 %v10286_v5  ;;  %3436 = vmatmul.bf16.vlgmr.msra.gmra.mxu3 %v10286_v5  ;;  %v8071_v4 = vld [vmem:[#allocation7 + $0x26c] sm:$0xf0]  ;;  %v8075_v17 = vld [vmem:[#allocation7 + $0x294] sm:$0xf]  ;;  %v10371_v31 = vor.u32 %v8011_v62, %v7365_v6 }
 0x192   :  { %3469 = vmatpush.bf16.msrb.mxu2 %v10330_v24  ;;  %13453 = vst [vmem:[#allocation358_spill] sm:$0xff] %v10343_v33  ;;  %3482 = vmatpush.bf16.msrb.mxu3 %v10335_v32  ;;  %v7653_v24 = vld [vmem:[#allocation7 + $0x2f0] sm:$0xf0]  ;;  %v2565_v32 = vpop.f32.mrf.mxu1 }
 0x193   :  { %13454 = vst [vmem:[#allocation359_spill] sm:$0xff] %v10345_v0  ;;  %3495 = vmatpush.bf16.msra.mxu0 %v10343_v33  ;;  %3458 = vmatpush.bf16.msrb.mxu1 %v10349_v22  ;;  %v10365_v35 = vor.u32 %v8083_v11, %v7653_v24  ;;  %v7621_v23 = vld [vmem:[#allocation7 + $0x2b0] sm:$0xf0]  ;;  %v10369_v32 = vor.u32 %v8024_v18, %v7403_v58  ;;  %v7555_v24 = vld [vmem:[#allocation7 + $0x210] sm:$0xf] }
 0x194   :  { %13455 = vst [vmem:[#allocation360_spill] sm:$0xff] %v10349_v22  ;;  %v8016_v22 = vld [vmem:[#allocation7 + $0xb4] sm:$0xf0]  ;;  %v8003_v33 = vld [vmem:[#allocation7 + $0x54] sm:$0xf]  ;;  %v10375_v11 = vor.u32 %v8071_v4, %v7587_v52  ;;  %v10377_v45 = vor.u32 %v8075_v17, %v7621_v23 }
 0x195   :  { %13456 = vst [vmem:[#allocation361_spill] sm:$0xff] %v10351_v15  ;;  %v8067_v58 = vld [vmem:[#allocation7 + $0x254] sm:$0xf]  ;;  %v8120_v52 = vld [vmem:[#allocation7 + $0x3f4] sm:$0xf0] }
 0x196   :  { %3470 = vmatpush.bf16.msrb.mxu2 %v10345_v0  ;;  %13457 = vst [vmem:[#allocation362_spill] sm:$0xff] %v10355_v40  ;;  %3483 = vmatpush.bf16.msrb.mxu3 %v10351_v15  ;;  %v7371_v0 = vld [vmem:[#allocation7 + $0x98] sm:$0xf]  ;;  %v7333_v15 = vld [vmem:[#allocation7 + $0x70] sm:$0xf0] }
 0x197   :  { %13458 = vst [vmem:[#allocation363_spill] sm:$0xff] %v10357_v50  ;;  %3496 = vmatpush.bf16.msra.mxu0 %v10355_v40  ;;  %3459 = vmatpush.bf16.msrb.mxu1 %v10363_v34  ;;  %v2589_v40 = vpop.f32.mrf.mxu3  ;;  %v7589_v18 = vld [vmem:[#allocation7 + $0x270] sm:$0xf0]  ;;  %v10383_v6 = vor.u32 %v8016_v22, %v7371_v0  ;;  %v7339_v4 = vld [vmem:[#allocation7 + $0x58] sm:$0xf] }
 0x198   :  { %13459 = vst [vmem:[#allocation364_spill] sm:$0xff] %v10363_v34  ;;  %v10379_v62 = vadd.f32 %v2589_v40, %v2576_v29  ;;  %v10385_v34 = vor.u32 %v8003_v33, %v7333_v15  ;;  %v8008_v17 = vld [vmem:[#allocation7 + $0x74] sm:$0xf0]  ;;  %v7995_v23 = vld [vmem:[#allocation7 + $0x14] sm:$0xf]  ;;  %v10391_v29 = vor.u32 %v8067_v58, %v7589_v18 }
 0x199   :  { %13460 = vst [vmem:[#allocation365_spill] sm:$0xff] %v10365_v35  ;;  %v7301_v53 = vld [vmem:[#allocation7 + $0x30] sm:$0xf0]  ;;  %v7755_v15 = vld [vmem:[#allocation7 + $0x398] sm:$0xf]  ;;  %v10397_v7 = vor.u32 %v8008_v17, %v7339_v4  ;;  %v10407_v17 = vpop.f32.mrf.mxu0 }
 0x19a   :  { %3471 = vmatpush.bf16.msrb.mxu2 %v10357_v50  ;;  %13461 = vst [vmem:[#allocation366_spill] sm:$0xff] %v10369_v32  ;;  %3484 = vmatpush.bf16.msrb.mxu3 %v10365_v35  ;;  %v8063_v50 = vld [vmem:[#allocation7 + $0x22c] sm:$0xf0]  ;;  %v7787_v35 = vld [vmem:[#allocation7 + $0x3d8] sm:$0xf] }
 0x19b   :  { %13462 = vst [vmem:[#allocation367_spill] sm:$0xff] %v10371_v31  ;;  %3497 = vmatpush.bf16.msra.mxu0 %v10369_v32  ;;  %3460 = vmatpush.bf16.msrb.mxu1 %v10375_v11  ;;  %v10389_v40 = vor.u32 %v8063_v50, %v7555_v24  ;;  %v8052_v32 = vld [vmem:[#allocation7 + $0x1dc] sm:$0xf]  ;;  %v10393_v0 = vor.u32 %v8120_v52, %v7787_v35  ;;  %v8059_v33 = vld [vmem:[#allocation7 + $0x214] sm:$0xf]  ;;  %v2578_v35 = vpop.f32.mrf.mxu2 }
 0x19c   :  { %13463 = vst [vmem:[#allocation368_spill] sm:$0xff] %v10375_v11  ;;  %v7557_v22 = vld [vmem:[#allocation7 + $0x230] sm:$0xf0]  ;;  %v10399_v11 = vor.u32 %v7995_v23, %v7301_v53  ;;  %v8116_v50 = vld [vmem:[#allocation7 + $0x3dc] sm:$0xf] }
 0x19d   :  { %13464 = vst [vmem:[#allocation369_spill] sm:$0xff] %v10377_v45  ;;  %v7789_v24 = vld [vmem:[#allocation7 + $0x3f8] sm:$0xf0]  ;;  %v7307_v18 = vld [vmem:[#allocation7 + $0x18] sm:$0xf]  ;;  %v10405_v52 = vor.u32 %v8059_v33, %v7557_v22 }
 0x19e   :  { %3472 = vmatpush.bf16.msrb.mxu2 %v10371_v31  ;;  %13465 = vst [vmem:[#allocation370_spill] sm:$0xff] %v10383_v6  ;;  %3485 = vmatpush.bf16.msrb.mxu3 %v10377_v45  ;;  %v7533_v31 = vld [vmem:[#allocation7 + $0x1f8] sm:$0xf0]  ;;  %v8112_v45 = vld [vmem:[#allocation7 + $0x3b4] sm:$0xf0]  ;;  %v10416_v23 = vor.u32 %v8000_v60, %v7307_v18 }
 0x19f   :  { %13466 = vst [vmem:[#allocation371_spill] sm:$0xff] %v10385_v34  ;;  %3498 = vmatpush.bf16.msra.mxu0 %v10383_v6  ;;  %v10401_v58 = vor.u32 %v8052_v32, %v7533_v31  ;;  %3461 = vmatpush.bf16.msrb.mxu1 %v10389_v40  ;;  %v8044_v6 = vld [vmem:[#allocation7 + $0x19c] sm:$0xf]  ;;  %v2591_v4 = vpop.f32.mrf.mxu3  ;;  %v10410_v53 = vor.u32 %v8112_v45, %v7755_v15  ;;  %v7723_v32 = vld [vmem:[#allocation7 + $0x358] sm:$0xf] }
 0x1a0   :  { %13467 = vst [vmem:[#allocation372_spill] sm:$0xff] %v10389_v40  ;;  %v10412_v31 = vor.u32 %v8116_v50, %v7789_v24  ;;  %v8104_v33 = vld [vmem:[#allocation7 + $0x374] sm:$0xf0]  ;;  %v8108_v22 = vld [vmem:[#allocation7 + $0x39c] sm:$0xf] }
 0x1a1   :  { %13468 = vst [vmem:[#allocation373_spill] sm:$0xff] %v10391_v29  ;;  %v7757_v35 = vld [vmem:[#allocation7 + $0x3b8] sm:$0xf0]  ;;  %v10425_v50 = vor.u32 %v8104_v33, %v7723_v32  ;;  %v7691_v24 = vld [vmem:[#allocation7 + $0x318] sm:$0xf] }
 0x1a2   :  { %13469 = vst [vmem:[#allocation374_spill] sm:$0xff] %v10393_v0  ;;  %3473 = vmatpush.bf16.msrb.mxu2 %v10385_v34  ;;  %3486 = vmatpush.bf16.msrb.mxu3 %v10391_v29  ;;  %v7501_v34 = vld [vmem:[#allocation7 + $0x1b8] sm:$0xf0]  ;;  %v10427_v60 = vor.u32 %v8108_v22, %v7757_v35  ;;  %v8096_v18 = vld [vmem:[#allocation7 + $0x334] sm:$0xf0]  ;;  %v10431_v29 = vpop.f32.mrf.mxu1  ;;  %v2604_v22 = vpop.f32.mrf.mxu0 }
 0x1a3   :  { %13470 = vst [vmem:[#allocation375_spill] sm:$0xff] %v10397_v7  ;;  %3506 = vmatpush.bf16.msra.mxu1 %v10393_v0  ;;  %3499 = vmatpush.bf16.msra.mxu0 %v10397_v7  ;;  %v10420_v4 = vor.u32 %v8044_v6, %v7501_v34  ;;  %v8036_v45 = vld [vmem:[#allocation7 + $0x15c] sm:$0xf]  ;;  %v10439_v35 = vor.u32 %v8096_v18, %v7691_v24  ;;  %v8088_v0 = vld [vmem:[#allocation7 + $0x2f4] sm:$0xf0] }
 0x1a4   :  { %13471 = vst [vmem:[#allocation376_spill] sm:$0xff] %v10399_v11  ;;  %3462 = vmatmul.bf16.vlgmr.msrb.gmra.mxu1 %v10286_v5  ;;  %v7469_v15 = vld [vmem:[#allocation7 + $0x178] sm:$0xf0] }
 0x1a5   :  { %13472 = vst [vmem:[#allocation377_spill] sm:$0xff] %v10401_v58  ;;  %v8100_v34 = vld [vmem:[#allocation7 + $0x35c] sm:$0xf] }
 0x1a6   :  { %13473 = vst [vmem:[#allocation378_spill] sm:$0xff] %v10405_v52  ;;  %3474 = vmatpush.bf16.msrb.mxu2 %v10399_v11  ;;  %3487 = vmatpush.bf16.msrb.mxu3 %v10405_v52  ;;  %v7725_v6 = vld [vmem:[#allocation7 + $0x378] sm:$0xf0]  ;;  %v10435_v52 = vor.u32 %v8036_v45, %v7469_v15 }
 0x1a7   :  { %13474 = vst [vmem:[#allocation379_spill] sm:$0xff] %v10410_v53  ;;  %3507 = vmatpush.bf16.msra.mxu1 %v10410_v53  ;;  %3500 = vmatpush.bf16.msra.mxu0 %v10416_v23  ;;  %v8028_v32 = vld [vmem:[#allocation7 + $0x11c] sm:$0xf]  ;;  %v7659_v53 = vld [vmem:[#allocation7 + $0x2d8] sm:$0xf] }
 0x1a8   :  { %13475 = vst [vmem:[#allocation380_spill] sm:$0xff] %v10412_v31  ;;  %v7437_v33 = vld [vmem:[#allocation7 + $0x138] sm:$0xf0]  ;;  %v10449_v24 = vor.u32 %v8088_v0, %v7659_v53 }
 0x1a9   :  { %13476 = vst [vmem:[#allocation381_spill] sm:$0xff] %v10416_v23  ;;  %3475 = vmatmul.bf16.vlgmr.msrb.gmra.mxu2 %v10139_v44  ;;  %3488 = vmatmul.bf16.vlgmr.msrb.gmra.mxu3 %v10286_v5  ;;  %v8092_v40 = vld [vmem:[#allocation7 + $0x31c] sm:$0xf]  ;;  %v10445_v45 = vor.u32 %v8028_v32, %v7437_v33 }
 0x1aa   :  { %3519 = vmatpush.bf16.msra.mxu2 %v10401_v58  ;;  %13477 = vst [vmem:[#allocation382_spill] sm:$0xff] %v10420_v4  ;;  %3532 = vmatpush.bf16.msra.mxu3 %v10412_v31  ;;  %v10441_v31 = vor.u32 %v8100_v34, %v7725_v6  ;;  %v7693_v58 = vld [vmem:[#allocation7 + $0x338] sm:$0xf0]  ;;  %v7627_v34 = vld [vmem:[#allocation7 + $0x298] sm:$0xf]  ;;  %v10462_v11 = vpop.f32.mrf.mxu0 }
 0x1ab   :  { %13478 = vst [vmem:[#allocation383_spill] sm:$0xff] %v10425_v50  ;;  %3508 = vmatpush.bf16.msra.mxu1 %v10425_v50  ;;  %3501 = vmatmul.bf16.vlgmr.msra.gmra.mxu0 %v10139_v44  ;;  %v8020_v15 = vld [vmem:[#allocation7 + $0xdc] sm:$0xf]  ;;  %v10451_v18 = vor.u32 %v8092_v40, %v7693_v58  ;;  %v8080_v6 = vld [vmem:[#allocation7 + $0x2b4] sm:$0xf0] }
 0x1ac   :  { %13479 = vst [vmem:[#allocation384_spill] sm:$0xff] %v10427_v60  ;;  %v7405_v22 = vld [vmem:[#allocation7 + $0xf8] sm:$0xf0]  ;;  %v7595_v40 = vld [vmem:[#allocation7 + $0x258] sm:$0xf] }
 0x1ad   :  { %13480 = vst [vmem:[#allocation385_spill] sm:$0xff] %v10435_v52  ;;  %v7661_v50 = vld [vmem:[#allocation7 + $0x2f8] sm:$0xf0]  ;;  %v8072_v58 = vld [vmem:[#allocation7 + $0x274] sm:$0xf0] }
 0x1ae   :  { %3520 = vmatpush.bf16.msra.mxu2 %v10420_v4  ;;  %3533 = vmatpush.bf16.msra.mxu3 %v10427_v60  ;;  %13481 = vst [vmem:[#allocation386_spill] sm:$0xff] %v10439_v35  ;;  %v8084_v60 = vld [vmem:[#allocation7 + $0x2dc] sm:$0xf]  ;;  %v2617_v4 = vpop.f32.mrf.mxu1 }
 0x1af   :  { %13482 = vst [vmem:[#allocation387_spill] sm:$0xff] %v10441_v31  ;;  %3509 = vmatpush.bf16.msra.mxu1 %v10439_v35  ;;  %v8012_v32 = vld [vmem:[#allocation7 + $0x9c] sm:$0xf]  ;;  %v10460_v0 = vor.u32 %v8084_v60, %v7661_v50  ;;  %v7563_v60 = vld [vmem:[#allocation7 + $0x218] sm:$0xf] }
 0x1b0   :  { %13483 = vst [vmem:[#allocation388_spill] sm:$0xff] %v10445_v45  ;;  %v7373_v33 = vld [vmem:[#allocation7 + $0xb8] sm:$0xf0] }
 0x1b1   :  { %13484 = vst [vmem:[#allocation389_spill] sm:$0xff] %v10449_v24  ;;  %v8076_v53 = vld [vmem:[#allocation7 + $0x29c] sm:$0xf]  ;;  %v10465_v4 = vor.u32 %v8012_v32, %v7373_v33 }
 0x1b2   :  { %3521 = vmatpush.bf16.msra.mxu2 %v10435_v52  ;;  %3534 = vmatpush.bf16.msra.mxu3 %v10441_v31  ;;  %13485 = vst [vmem:[#allocation390_spill] sm:$0xff] %v10451_v18  ;;  %v10454_v52 = vor.u32 %v8020_v15, %v7405_v22  ;;  %v10458_v31 = vor.u32 %v8080_v6, %v7627_v34  ;;  %v7629_v35 = vld [vmem:[#allocation7 + $0x2b8] sm:$0xf0]  ;;  %v2641_v6 = vpop.f32.mrf.mxu3 }
 0x1b3   :  { %3510 = vmatpush.bf16.msra.mxu1 %v10449_v24  ;;  %13487 = vst [vmem:[#allocation392_spill] sm:$0xff] %v10460_v0  ;;  %v8004_v15 = vld [vmem:[#allocation7 + $0x5c] sm:$0xf]  ;;  %v10469_v34 = vor.u32 %v8072_v58, %v7595_v40  ;;  %v10471_v50 = vor.u32 %v8076_v53, %v7629_v35 }
 0x1b4   :  { %13486 = vst [vmem:[#allocation391_spill] sm:$0xff] %v10454_v52  ;;  %v7341_v22 = vld [vmem:[#allocation7 + $0x78] sm:$0xf0] }
 0x1b5   :  { %13488 = vst [vmem:[#allocation393_spill] sm:$0xff] %v10471_v50  ;;  %v8068_v24 = vld [vmem:[#allocation7 + $0x25c] sm:$0xf]  ;;  %v10476_v32 = vor.u32 %v8004_v15, %v7341_v22 }
 0x1b6   :  { %3522 = vmatpush.bf16.msra.mxu2 %v10445_v45  ;;  %3535 = vmatpush.bf16.msra.mxu3 %v10451_v18  ;;  %v2628_v45 = vpop.f32.mrf.mxu2  ;;  %v8064_v18 = vld [vmem:[#allocation7 + $0x234] sm:$0xf0]  ;;  %v7597_v23 = vld [vmem:[#allocation7 + $0x278] sm:$0xf0] }
 0x1b7   :  { %3511 = vmatpush.bf16.msra.mxu1 %v10458_v31  ;;  %v10473_v7 = vadd.f32 %v2641_v6, %v2628_v45  ;;  %13489 = vst [vmem:[#allocation394_spill] sm:$0xff] %v10476_v32  ;;  %v7996_v33 = vld [vmem:[#allocation7 + $0x1c] sm:$0xf]  ;;  %v10480_v40 = vor.u32 %v8064_v18, %v7563_v60  ;;  %v10482_v35 = vor.u32 %v8068_v24, %v7597_v23 }
 0x1b8   :  { %v8060_v58 = vld [vmem:[#allocation7 + $0x21c] sm:$0xf] }
 0x1b9   :  { %13490 = vst [vmem:[#allocation395_spill] sm:$0xff] %v10480_v40  ;;  %v7565_v53 = vld [vmem:[#allocation7 + $0x238] sm:$0xf0] }
 0x1ba   :  { %3523 = vmatpush.bf16.msra.mxu2 %v10454_v52  ;;  %3536 = vmatpush.bf16.msra.mxu3 %v10460_v0  ;;  %v7309_v52 = vld [vmem:[#allocation7 + $0x38] sm:$0xf0]  ;;  %13491 = vst [vmem:[#allocation396_spill] sm:$0xff] %v10482_v35  ;;  %v2656_v0 = vpop.f32.mrf.mxu0  ;;  %v10489_v15 = vor.u32 %v8060_v58, %v7565_v53  ;;  %v2643_v22 = vpop.f32.mrf.mxu3  ;;  %v13494_v53 = vld [vmem:[#allocation36_spill] sm:$0xff] }
 0x1bb   :  { %3512 = vmatpush.bf16.msra.mxu1 %v10469_v34  ;;  %v10485_v45 = vor.u32 %v7996_v33, %v7309_v52  ;;  %v10497_v52 = vpop.f32.mrf.mxu1  ;;  %v13495_v22 = vld [vmem:[#allocation39_spill] sm:$0xff] }
 0x1bc   :  { %13493 = vst [vmem:[#allocation398_spill] sm:$0xff] %v10489_v15 }
 0x1bd   :  { %13492 = vst [vmem:[#allocation397_spill] sm:$0xff] %v10485_v45 }
 0x1be   :  { %3524 = vmatpush.bf16.msra.mxu2 %v10465_v4  ;;  %3537 = vmatpush.bf16.msra.mxu3 %v10471_v50  ;;  %v2630_v6 = vpop.f32.mrf.mxu2 }
 0x1bf   :  { %3513 = vmatpush.bf16.msra.mxu1 %v10480_v40 }
 0x1c2   :  { %3525 = vmatpush.bf16.msra.mxu2 %v10476_v32  ;;  %3538 = vmatpush.bf16.msra.mxu3 %v10482_v35 }
 0x1c3   :  { %3514 = vmatmul.bf16.vlgmr.msra.gmra.mxu1 %v10286_v5  ;;  %v2669_v23 = vpop.f32.mrf.mxu1 }
 0x1c4   :  { %v13496_v23 = vld [vmem:[#allocation40_spill] sm:$0xff] }
 0x1c6   :  { %3526 = vmatpush.bf16.msra.mxu2 %v10485_v45  ;;  %3539 = vmatpush.bf16.msra.mxu3 %v10489_v15 }
 0x1c9   :  { %3527 = vmatmul.bf16.vlgmr.msra.gmra.mxu2 %v10139_v44  ;;  %3540 = vmatmul.bf16.vlgmr.msra.gmra.mxu3 %v10286_v5 }
 0x1ca   :  { %3747 = vmatpush.bf16.msrb.mxu2 %v8924_v59  ;;  %3760 = vmatpush.bf16.msrb.mxu3 %v8935_v63 }
 0x1cc   :  { %v2680_v24 = vpop.f32.mrf.mxu2  ;;  %v2693_v18 = vpop.f32.mrf.mxu3 }
 0x1cd   :  { %v10508_v0 = vadd.f32 %v2693_v18, %v2680_v24  ;;  %v13497_v24 = vld [vmem:[#allocation43_spill] sm:$0xff] }
 0x1ce   :  { %3748 = vmatpush.bf16.msrb.mxu2 %v8943_v8  ;;  %3761 = vmatpush.bf16.msrb.mxu3 %v8957_v12 }
 0x1d2   :  { %3749 = vmatpush.bf16.msrb.mxu2 %v8972_v21  ;;  %3762 = vmatpush.bf16.msrb.mxu3 %v8984_v25  ;;  %v13553_v25 = vld [vmem:[#allocation45_spill] sm:$0xff] }
 0x1d4   :  { %v2682_v60 = vpop.f32.mrf.mxu2  ;;  %v2695_v33 = vpop.f32.mrf.mxu3 }
 0x1d5   :  { %v13498_v60 = vld [vmem:[#allocation44_spill] sm:$0xff] }
 0x1d6   :  { %3750 = vmatpush.bf16.msrb.mxu2 %v8999_v36  ;;  %3763 = vmatpush.bf16.msrb.mxu3 %v9002_v37 }
 0x1d9   :  { %v10519_v58 = vpop.f32.mrf.mxu0 }
 0x1da   :  { %3751 = vmatpush.bf16.msrb.mxu2 %v9017_v48  ;;  %3764 = vmatpush.bf16.msrb.mxu3 %v9020_v49  ;;  %v13540_v49 = vld [vmem:[#allocation112_spill] sm:$0xff] }
 0x1de   :  { %3752 = vmatpush.bf16.msrb.mxu2 %v9035_v61  ;;  %3765 = vmatpush.bf16.msrb.mxu3 %v9038_v2  ;;  %v13514_v2 = vld [vmem:[#allocation75_spill] sm:$0xff] }
 0x1e1   :  { %v3348_v6 = vpop.f32.mrf.mxu0 }
 0x1e2   :  { %3753 = vmatpush.bf16.msrb.mxu2 %v9058_v16  ;;  %3766 = vmatpush.bf16.msrb.mxu3 %v9061_v20  ;;  %v13505_v20 = vld [vmem:[#allocation58_spill] sm:$0xff] }
 0x1e6   :  { %3754 = vmatpush.bf16.msrb.mxu2 %v9068_v38  ;;  %3767 = vmatpush.bf16.msrb.mxu3 %v9071_v41  ;;  %v13499_v41 = vld [vmem:[#allocation47_spill] sm:$0xff] }
 0x1e9   :  { %3755 = vmatmul.bf16.vlgmr.msrb.gmra.mxu2 %v10139_v44  ;;  %3768 = vmatmul.bf16.vlgmr.msrb.gmra.mxu3 %v10286_v5 }
 0x1ea   :  { %3799 = vmatpush.bf16.msra.mxu2 %v9073_v42  ;;  %3812 = vmatpush.bf16.msra.mxu3 %v9076_v43  ;;  %v10531_v43 = vpop.f32.mrf.mxu0  ;;  %v558_v42 = vld [vmem:[%s12332_s10 + $0x88] sm:$0xff] }
 0x1ec   :  { %v3372_v18 = vpop.f32.mrf.mxu2 }
 0x1ed   :  { %v3373_v33 = vadd.f32 %v3372_v18, %v10273_v26  ;;  %v13507_v26 = vld [vmem:[#allocation63_spill] sm:$0xff]  ;;  %v13508_v18 = vld [vmem:[#allocation64_spill] sm:$0xff] }
 0x1ee   :  { %3800 = vmatpush.bf16.msra.mxu2 %v9086_v56  ;;  %3813 = vmatpush.bf16.msra.mxu3 %v9090_v57  ;;  %v13500_v57 = vld [vmem:[#allocation48_spill] sm:$0xff] }
 0x1ef   :  { %v553_v56 = vld [vmem:[%s12332_s10 + $0x60] sm:$0xff] }
 0x1f2   :  { %3801 = vmatpush.bf16.msra.mxu2 %v9100_v10  ;;  %3814 = vmatpush.bf16.msra.mxu3 %v13494_v53  ;;  %v13501_v10 = vld [vmem:[#allocation51_spill] sm:$0xff]  ;;  %v13502_v53 = vld [vmem:[#allocation52_spill] sm:$0xff] }
 0x1f4   :  { %v3374_v6 = vpop.f32.mrf.mxu2 }
 0x1f6   :  { %3802 = vmatpush.bf16.msra.mxu2 %v13495_v22  ;;  %3815 = vmatpush.bf16.msra.mxu3 %v13496_v23  ;;  %v3400_v22 = vpop.f32.mrf.mxu0  ;;  %v13503_v23 = vld [vmem:[#allocation57_spill] sm:$0xff] }
 0x1f7   :  { %v556_v22 = vld [vmem:[%s12332_s10 + $0x78] sm:$0xff] }
 0x1f8   :  { %3699 = vmatpush.msrb.mxu0 %v556_v22 }
 0x1fa   :  { %3803 = vmatpush.bf16.msra.mxu2 %v13497_v24  ;;  %3816 = vmatpush.bf16.msra.mxu3 %v13498_v60  ;;  %v13504_v24 = vld [vmem:[#allocation59_spill] sm:$0xff]  ;;  %v13506_v60 = vld [vmem:[#allocation60_spill] sm:$0xff] }
 0x1fe   :  { %3804 = vmatpush.bf16.msra.mxu2 %v13499_v41  ;;  %3817 = vmatpush.bf16.msra.mxu3 %v13500_v57  ;;  %v10545_v6 = vpop.f32.mrf.mxu1  ;;  %v13512_v57 = vld [vmem:[#allocation71_spill] sm:$0xff] }
 0x202   :  { %3805 = vmatpush.bf16.msra.mxu2 %v13501_v10  ;;  %3818 = vmatpush.bf16.msra.mxu3 %v13502_v53  ;;  %v13509_v53 = vld [vmem:[#allocation67_spill] sm:$0xff]  ;;  %v13513_v10 = vld [vmem:[#allocation72_spill] sm:$0xff] }
 0x206   :  { %3806 = vmatpush.bf16.msra.mxu2 %v13503_v23  ;;  %3819 = vmatpush.bf16.msra.mxu3 %v13505_v20  ;;  %v13510_v20 = vld [vmem:[#allocation68_spill] sm:$0xff] }
 0x207   :  { %v554_v23 = vld [vmem:[%s12332_s10 + $0x68] sm:$0xff] }
 0x209   :  { %3807 = vmatmul.bf16.vlgmr.msra.gmra.mxu2 %v10139_v44  ;;  %3820 = vmatmul.bf16.vlgmr.msra.gmra.mxu3 %v10286_v5  ;;  %v10569_v41 = vpop.f32.mrf.mxu0 }
 0x20a   :  { %3851 = vmatpush.bf16.msrb.mxu2 %v13504_v24  ;;  %3864 = vmatpush.bf16.msrb.mxu3 %v13506_v60  ;;  %v10554_v60 = vld [vmem:[%s12331_s9] sm:$0xff] }
 0x20e   :  { %3852 = vmatpush.bf16.msrb.mxu2 %v13507_v26  ;;  %3865 = vmatpush.bf16.msrb.mxu3 %v13508_v18  ;;  %v10558_v26 = vperm.slane %v10554_v60, 1  ;;  %v555_v18 = vld [vmem:[%s12332_s10 + $0x70] sm:$0xff] }
 0x20f   :  { %3700 = vmatpush.msrb.mxu0 %v555_v18  ;;  %v552_v18 = vld [vmem:[%s12332_s10 + $0x58] sm:$0xff] }
 0x210   :  { %13511 = vst [vmem:[#allocation399_spill] sm:$0xff] %v10558_v26 }
 0x211   :  { %3701 = vmatpush.msrb.mxu0 %v554_v23 }
 0x212   :  { %3853 = vmatpush.bf16.msrb.mxu2 %v13509_v53  ;;  %3866 = vmatpush.bf16.msrb.mxu3 %v13510_v20  ;;  %v3385_v53 = vpop.f32.mrf.mxu3  ;;  %v3361_v20 = vpop.f32.mrf.mxu1 }
 0x213   :  { %v3386_v24 = vadd.f32 %v3385_v53, %v3373_v33  ;;  %3702 = vmatpush.msrb.mxu0 %v553_v56  ;;  %v3424_v33 = vpop.f32.mrf.mxu2  ;;  %v551_v20 = vld [vmem:[%s12332_s10 + $0x50] sm:$0xff]  ;;  %v550_v56 = vld [vmem:[%s12332_s10 + $0x48] sm:$0xff] }
 0x215   :  { %v3563_v22 = vadd.f32 %v10558_v26, %v3386_v24  ;;  %3703 = vmatpush.msrb.mxu0 %v552_v18  ;;  %v13516_v24 = vld [vmem:[#allocation79_spill] sm:$0xff] }
 0x216   :  { %3854 = vmatpush.bf16.msrb.mxu2 %v13512_v57  ;;  %3867 = vmatpush.bf16.msrb.mxu3 %v13513_v10  ;;  %v13515_v10 = vld [vmem:[#allocation76_spill] sm:$0xff] }
 0x217   :  { %v7794_v53 = vmul.f32 -1.442695, %v3563_v22  ;;  %3704 = vmatpush.msrb.mxu0 %v551_v20  ;;  %v572_v22 = vld [vmem:[%s12332_s10 + $0xf8] sm:$0xff]  ;;  %v571_v20 = vld [vmem:[%s12332_s10 + $0xf0] sm:$0xff]  ;;  %v13519_v57 = vld [vmem:[#allocation84_spill] sm:$0xff] }
 0x218   :  { %3719 = vmatpush.msrb.mxu1 %v572_v22  ;;  %v570_v22 = vld [vmem:[%s12332_s10 + $0xe8] sm:$0xff] }
 0x219   :  { %8313 = vpow2.f32 %v7794_v53  ;;  %3705 = vmatpush.msrb.mxu0 %v550_v56  ;;  %v3452_v53 = vpop.f32.mrf.mxu0  ;;  %v548_v56 = vld [vmem:[%s12332_s10 + $0x38] sm:$0xff] }
 0x21a   :  { %3855 = vmatpush.bf16.msrb.mxu2 %v13514_v2  ;;  %3868 = vmatpush.bf16.msrb.mxu3 %v13515_v10  ;;  %v3387_v23 = vpop.f32.mrf.mxu3  ;;  %v13517_v2 = vld [vmem:[#allocation80_spill] sm:$0xff]  ;;  %v3411_v18 = vpop.f32.mrf.mxu1  ;;  %v2564_v10 = vadd.f32 %v10332_v14, %v10324_v39  ;;  %v2512_v14 = vadd.f32 %v10222_v9, %v10220_v27  ;;  %v3425_v39 = vadd.f32 %v3424_v33, %v10379_v62  ;;  %v13522_v9 = vld [vmem:[#allocation89_spill] sm:$0xff] }
 0x21b   :  { %v549_v23 = vld [vmem:[%s12332_s10 + $0x40] sm:$0xff]  ;;  %3720 = vmatpush.msrb.mxu1 %v571_v20 }
 0x21c   :  { %3706 = vmatpush.msrb.mxu0 %v549_v23  ;;  %v3399_v53 = vadd.f32 %v10531_v43, %v2564_v10  ;;  %v547_v23 = vld [vmem:[%s12332_s10 + $0x30] sm:$0xff]  ;;  %v569_v43 = vld [vmem:[%s12332_s10 + $0xe0] sm:$0xff]  ;;  %v3347_v62 = vadd.f32 %v10519_v58, %v2512_v14  ;;  %v10636_v58 = vperm.slane %v10554_v60, 0 }
 0x21d   :  { %3721 = vmatpush.msrb.mxu1 %v570_v22  ;;  %v13523_v22 = vld [vmem:[#allocation91_spill] sm:$0xff] }
 0x21e   :  { %3856 = vmatpush.bf16.msrb.mxu2 %v13516_v24  ;;  %3869 = vmatpush.bf16.msrb.mxu3 %v13517_v2  ;;  %v13518_v24 = vld [vmem:[#allocation83_spill] sm:$0xff]  ;;  %v3426_v2 = vpop.f32.mrf.mxu2  ;;  %v3412_v20 = vadd.f32 %v3411_v18, %v3399_v53  ;;  %v13524_v18 = vld [vmem:[#allocation90_spill] sm:$0xff]  ;;  %13525 = vst [vmem:[#allocation402_spill] sm:$0xff] %v10636_v58 }
 0x21f   :  { %v8314_v26 = vpop.eup %8313  ;;  %3707 = vmatpush.msrb.mxu0 %v548_v56  ;;  %v10611_v2 = vperm.slane %v10554_v60, 3  ;;  %v10622_v56 = vperm.slane %v10554_v60, 2  ;;  %3722 = vmatpush.msrb.mxu1 %v569_v43  ;;  %v545_v43 = vld [vmem:[%s12332_s10 + $0x20] sm:$0xff] }
 0x220   :  { %v10619_v10 = vadd.f32 1.0, %v8314_v26  ;;  %v568_v26 = vld [vmem:[%s12332_s10 + $0xd8] sm:$0xff] }
 0x221   :  { %13520 = vst [vmem:[#allocation400_spill] sm:$0xff] %v10611_v2  ;;  %3708 = vmatpush.msrb.mxu0 %v547_v23  ;;  %v3360_v23 = vadd.f32 %v10545_v6, %v3347_v62  ;;  %3723 = vmatpush.msrb.mxu1 %v568_v26  ;;  %v13527_v62 = vld [vmem:[#allocation95_spill] sm:$0xff]  ;;  %v543_v26 = vld [vmem:[%s12332_s10 + $0x10] sm:$0xff] }
 0x222   :  { %3857 = vmatpush.bf16.msrb.mxu2 %v13518_v24  ;;  %3870 = vmatpush.bf16.msrb.mxu3 %v13519_v57  ;;  %13521 = vst [vmem:[#allocation401_spill] sm:$0xff] %v10622_v56  ;;  %v3437_v27 = vpop.f32.mrf.mxu3  ;;  %v546_v57 = vld [vmem:[%s12332_s10 + $0x28] sm:$0xff]  ;;  %v3413_v53 = vpop.f32.mrf.mxu1  ;;  %8315 = vrcp.f32 %v10619_v10  ;;  %vm3598_vm10 = vweird.f32 %v10619_v10 }
 0x223   :  { %v3438_v33 = vadd.f32 %v3437_v27, %v3425_v39  ;;  %3709 = vmatpush.msrb.mxu0 %v546_v57  ;;  %v13526_v39 = vld [vmem:[#allocation92_spill] sm:$0xff]  ;;  %v567_v27 = vld [vmem:[%s12332_s10 + $0xd0] sm:$0xff]  ;;  %v3564_v57 = vadd.f32 %v10622_v56, %v3412_v20 }
 0x224   :  { %v566_v53 = vld [vmem:[%s12332_s10 + $0xc8] sm:$0xff]  ;;  %3724 = vmatpush.msrb.mxu1 %v567_v27  ;;  %v564_v27 = vld [vmem:[%s12332_s10 + $0xb8] sm:$0xff] }
 0x225   :  { %v3565_v14 = vadd.f32 %v10611_v2, %v3438_v33  ;;  %3710 = vmatpush.msrb.mxu0 %v545_v43  ;;  %v544_v33 = vld [vmem:[%s12332_s10 + $0x18] sm:$0xff]  ;;  %v13528_v20 = vld [vmem:[#allocation96_spill] sm:$0xff]  ;;  %v7795_v43 = vmul.f32 -1.442695, %v3564_v57 }
 0x226   :  { %3858 = vmatpush.bf16.msrb.mxu2 %v13522_v9  ;;  %3871 = vmatpush.bf16.msrb.mxu3 %v13524_v18  ;;  %v13529_v18 = vld [vmem:[#allocation99_spill] sm:$0xff] }
 0x227   :  { %v7796_v6 = vmul.f32 -1.442695, %v3565_v14  ;;  %3711 = vmatpush.msrb.mxu0 %v544_v33  ;;  %v565_v14 = vld [vmem:[%s12332_s10 + $0xc0] sm:$0xff]  ;;  %3725 = vmatpush.msrb.mxu1 %v566_v53 }
 0x228   :  { %v541_v53 = vld [vmem:[%s12332_s10] sm:$0xff] }
 0x229   :  { %3859 = vmatmul.bf16.vlgmr.msrb.gmra.mxu2 %v10139_v44  ;;  %3872 = vmatmul.bf16.vlgmr.msrb.gmra.mxu3 %v10286_v5  ;;  %8317 = vpow2.f32 %v7796_v6  ;;  %v10672_v6 = vpop.eup %8315 }
 0x22a   :  { %3903 = vmatpush.bf16.msra.mxu2 %v13523_v22  ;;  %3916 = vmatpush.bf16.msra.mxu3 %v13526_v39  ;;  %v3562_v39 = vadd.f32 %v10636_v58, %v3360_v23  ;;  %v3439_v56 = vpop.f32.mrf.mxu3  ;;  %v542_v23 = vld [vmem:[%s12332_s10 + $0x8] sm:$0xff]  ;;  %v10674_v33 = vpop.f32.mrf.mxu1  ;;  %8319 = vpow2.f32 %v7795_v43  ;;  %v561_v43 = vld [vmem:[%s12332_s10 + $0xa0] sm:$0xff]  ;;  %vm3599_vm9 = vweird.f32 %v10672_v6 }
 0x22b   :  { %3712 = vmatpush.msrb.mxu0 %v543_v26  ;;  %3726 = vmatpush.msrb.mxu1 %v565_v14  ;;  %v13530_v56 = vld [vmem:[#allocation100_spill] sm:$0xff]  ;;  %v563_v26 = vld [vmem:[%s12332_s10 + $0xb0] sm:$0xff]  ;;  %v13531_v14 = vld [vmem:[#allocation103_spill] sm:$0xff] }
 0x22c   :  { %v7793_v57 = vmul.f32 -1.442695, %v3562_v39  ;;  %v13532_v39 = vld [vmem:[#allocation23_spill] sm:$0xff]  ;;  %v3476_v22 = vpop.f32.mrf.mxu2  ;;  %vm10742_vm12 = vmor %vm3598_vm10, %vm3599_vm9 }
 0x22d   :  { %3713 = vmatpush.msrb.mxu0 %v542_v23  ;;  %3727 = vmatpush.msrb.mxu1 %v564_v27  ;;  %v562_v23 = vld [vmem:[%s12332_s10 + $0xa8] sm:$0xff] }
 0x22e   :  { %3904 = vmatpush.bf16.msra.mxu2 %v13527_v62  ;;  %3917 = vmatpush.bf16.msra.mxu3 %v13528_v20  ;;  %v3594_v20 = vmul.f32 %v10672_v6, %v10619_v10  ;;  %8321 = vpow2.f32 %v7793_v57  ;;  %v13535_v62 = vld [vmem:[#allocation29_spill] sm:$0xff] }
 0x22f   :  { %3714 = vmatpush.msrb.mxu0 %v541_v53  ;;  %v8318_v58 = vpop.eup %8317  ;;  %3728 = vmatpush.msrb.mxu1 %v563_v26  ;;  %v10697_v53 = vpop.f32.mrf.mxu0 }
 0x230   :  { %v3595_v27 = vsub.f32 1.0, %v3594_v20  ;;  %v8320_v57 = vpop.eup %8319  ;;  %v559_v20 = vld [vmem:[%s12332_s10 + $0x90] sm:$0xff] }
 0x231   :  { %3773 = vmatpush.bf16.msra.mxu0 %v13532_v39  ;;  %3729 = vmatpush.msrb.mxu1 %v562_v23  ;;  %v3477_v23 = vadd.f32 %v3476_v22, %v10473_v7  ;;  %v10712_v24 = vadd.f32 1.0, %v8320_v57 }
 0x232   :  { %3905 = vmatpush.bf16.msra.mxu2 %v13529_v18  ;;  %3918 = vmatpush.bf16.msra.mxu3 %v13530_v56  ;;  %v10690_v56 = vadd.f32 1.0, %v8318_v58  ;;  %v13533_v18 = vld [vmem:[#allocation104_spill] sm:$0xff]  ;;  %v560_v58 = vld [vmem:[%s12332_s10 + $0x98] sm:$0xff]  ;;  %v3465_v26 = vpop.f32.mrf.mxu1  ;;  %v3489_v2 = vpop.f32.mrf.mxu3 }
 0x233   :  { %3730 = vmatpush.msrb.mxu1 %v561_v43  ;;  %v3596_v26 = vmul.f32 %v10672_v6, %v3595_v27  ;;  %v13538_v43 = vld [vmem:[#allocation111_spill] sm:$0xff]  ;;  %v3490_v7 = vadd.f32 %v3489_v2, %v3477_v23  ;;  %v13542_v23 = vld [vmem:[#allocation37_spill] sm:$0xff]  ;;  %vm3621_vm2 = vweird.f32 %v10712_v24 }
 0x234   :  { %8323 = vrcp.f32 %v10690_v56  ;;  %v8322_v9 = vpop.eup %8321  ;;  %vm3636_vm13 = vweird.f32 %v10690_v56 }
 0x235   :  { %3774 = vmatpush.bf16.msra.mxu0 %v13535_v62  ;;  %3731 = vmatpush.msrb.mxu1 %v560_v58  ;;  %v557_v58 = vld [vmem:[%s12332_s10 + $0x80] sm:$0xff]  ;;  %v10725_v27 = vadd.f32 1.0, %v8322_v9  ;;  %8325 = vrcp.f32 %v10712_v24  ;;  %v3597_v16 = vadd.f32 %v10672_v6, %v3596_v26  ;;  %v3604_v9 = vand.u32 2147483648, %v10619_v10 }
 0x236   :  { %3906 = vmatpush.bf16.msra.mxu2 %v13531_v14  ;;  %3919 = vmatpush.bf16.msra.mxu3 %v13533_v18  ;;  %v13534_v14 = vld [vmem:[#allocation107_spill] sm:$0xff]  ;;  %v13536_v18 = vld [vmem:[#allocation108_spill] sm:$0xff]  ;;  %v3640_v26 = vand.u32 2147483647, %v10690_v56 }
 0x237   :  { %3732 = vmatpush.msrb.mxu1 %v559_v20  ;;  %v3504_v2 = vpop.f32.mrf.mxu0  ;;  %v13541_v20 = vld [vmem:[#allocation115_spill] sm:$0xff]  ;;  %vm3583_vm5 = vweird.f32 %v10725_v27 }
 0x238   :  { %v3478_v2 = vpop.f32.mrf.mxu2  ;;  %vm3641_vm0 = vcmp.eq.f32.partialorder %v3640_v26, 8.507059e+37 }
 0x239   :  { %3733 = vmatpush.msrb.mxu1 %v558_v42 }
 0x23a   :  { %3907 = vmatpush.bf16.msra.mxu2 %v13534_v14  ;;  %3920 = vmatpush.bf16.msra.mxu3 %v13536_v18  ;;  %v10710_v14 = vperm.slane %v10554_v60, 5  ;;  %v13539_v18 = vld [vmem:[#allocation33_spill] sm:$0xff]  ;;  %v8324_v38 = vpop.eup %8323  ;;  %v3491_v37 = vpop.f32.mrf.mxu3 }
 0x23b   :  { %3775 = vmatpush.bf16.msra.mxu0 %v13539_v18  ;;  %v3632_v22 = vmul.f32 %v8324_v38, %v10690_v56  ;;  %3734 = vmatpush.msrb.mxu1 %v557_v58  ;;  %vm3637_vm11 = vweird.f32 %v8324_v38  ;;  %v13547_v58 = vld [vmem:[#allocation121_spill] sm:$0xff]  ;;  %v10755_v37 = vpop.eup %8325 }
 0x23c   :  { %13537 = vst [vmem:[#allocation23_spill] sm:$0xff] %v10710_v14  ;;  %v3567_v57 = vadd.f32 %v10710_v14, %v3490_v7  ;;  %v3602_v7 = vand.u32 2147483647, %v10619_v10  ;;  %v13544_v14 = vld [vmem:[#allocation24_spill] sm:$0xff]  ;;  %v3601_v10 = vsel %vm10742_vm12, %v10672_v6, %v3597_v16  ;;  %vm3638_vm14 = vmor %vm3636_vm13, %vm3637_vm11  ;;  %vm3622_vm1 = vweird.f32 %v10755_v37 }
 0x23d   :  { %3786 = vmatpush.bf16.msra.mxu1 %v13544_v14  ;;  %v13549_v14 = vld [vmem:[#allocation123_spill] sm:$0xff]  ;;  %vm10811_vm3 = vmor %vm3621_vm2, %vm3622_vm1 }
 0x23e   :  { %3908 = vmatpush.bf16.msra.mxu2 %v13538_v43  ;;  %3921 = vmatpush.bf16.msra.mxu3 %v13540_v49  ;;  %v3633_v43 = vsub.f32 1.0, %v3632_v22  ;;  %v3642_v49 = vand.u32 2147483648, %v10690_v56  ;;  %8327 = vtanh.f32 %v3567_v57  ;;  %v13543_v22 = vld [vmem:[#allocation116_spill] sm:$0xff]  ;;  %v13548_v57 = vld [vmem:[#allocation41_spill] sm:$0xff]  ;;  %vm3603_vm15 = vcmp.eq.f32.partialorder %v3602_v7, 8.507059e+37  ;;  %v13550_v56 = vld [vmem:[#allocation122_spill] sm:$0xff] }
 0x23f   :  { %3776 = vmatpush.bf16.msra.mxu0 %v13542_v23  ;;  %8329 = vrcp.f32 %v10725_v27  ;;  %v3617_v7 = vmul.f32 %v10755_v37, %v10712_v24 }
 0x240   :  { %v3634_v42 = vmul.f32 %v8324_v38, %v3633_v43  ;;  %v3643_v2 = vor.u32 1.1754944e-38, %v3642_v49 }
 0x242   :  { %3909 = vmatpush.bf16.msra.mxu2 %v13541_v20  ;;  %3922 = vmatpush.bf16.msra.mxu3 %v13543_v22  ;;  %v3635_v43 = vadd.f32 %v8324_v38, %v3634_v42  ;;  %v3605_v22 = vor.u32 1.1754944e-38, %v3604_v9  ;;  %v13551_v20 = vld [vmem:[#allocation30_spill] sm:$0xff] }
 0x243   :  { %3777 = vmatpush.bf16.msra.mxu0 %v13548_v57  ;;  %3787 = vmatpush.bf16.msra.mxu1 %v13551_v20 }
 0x244   :  { %v3639_v61 = vsel %vm3638_vm14, %v8324_v38, %v3635_v43  ;;  %v8328_v16 = vpop.eup %8327  ;;  %v3606_v6 = vsel %vm3603_vm15, %v3605_v22, %v3601_v10  ;;  %v13554_v38 = vld [vmem:[#allocation127_spill] sm:$0xff]  ;;  %v2668_v22 = vadd.f32 %v10497_v52, %v10462_v11  ;;  %v13557_v10 = vld [vmem:[#allocation130_spill] sm:$0xff]  ;;  %v3515_v52 = vpop.f32.mrf.mxu1 }
 0x245   :  { %v3644_v42 = vsel %vm3641_vm0, %v3643_v2, %v3639_v61  ;;  %v3689_v9 = vmul.f32 %v8328_v16, %v3606_v6  ;;  %v10766_v26 = vpop.eup %8329  ;;  %v13556_v61 = vld [vmem:[#allocation34_spill] sm:$0xff]  ;;  %v2616_v2 = vadd.f32 %v10431_v29, %v10407_v17  ;;  %v13558_v16 = vld [vmem:[#allocation49_spill] sm:$0xff] }
 0x246   :  { %3910 = vmatpush.bf16.msra.mxu2 %v13547_v58  ;;  %3923 = vmatpush.bf16.msra.mxu3 %v13550_v56  ;;  %v13552_v58 = vld [vmem:[#allocation126_spill] sm:$0xff]  ;;  %v3687_v49 = vmul.f32 0.0, %v3644_v42  ;;  %v3579_v6 = vmul.f32 %v10766_v26, %v10725_v27  ;;  %v3618_v42 = vsub.f32 1.0, %v3617_v7  ;;  %v13564_v7 = vld [vmem:[#allocation53_spill] sm:$0xff]  ;;  %vm3584_vm4 = vweird.f32 %v10766_v26 }
 0x247   :  { %3778 = vmatpush.bf16.msra.mxu0 %v13553_v25  ;;  %3788 = vmatpush.bf16.msra.mxu1 %v13556_v61  ;;  %v3451_v11 = vadd.f32 %v10569_v41, %v2616_v2  ;;  %v13562_v29 = vld [vmem:[#allocation134_spill] sm:$0xff]  ;;  %vm10827_vm7 = vmor %vm3583_vm5, %vm3584_vm4 }
 0x248   :  { %v10768_v43 = vadd.f32 %v3689_v9, %v3687_v49  ;;  %v10781_v49 = vperm.slane %v10554_v60, 6  ;;  %v13560_v9 = vld [vmem:[#allocation131_spill] sm:$0xff]  ;;  %v13566_v41 = vld [vmem:[#allocation42_spill] sm:$0xff] }
 0x249   :  { %3911 = vmatmul.bf16.vlgmr.msra.gmra.mxu2 %v10139_v44  ;;  %3924 = vmatmul.bf16.vlgmr.msra.gmra.mxu3 %v10286_v5  ;;  %v3464_v17 = vadd.f32 %v10674_v33, %v3451_v11 }
 0x24a   :  { %4093 = vmatpush.bf16.msrb.mxu2 %v13549_v14  ;;  %4106 = vmatpush.bf16.msrb.mxu3 %v13552_v58  ;;  %13555 = vst [vmem:[#allocation29_spill] sm:$0xff] %v10768_v43  ;;  %v3503_v58 = vadd.f32 %v10697_v53, %v2668_v22  ;;  %v3580_v53 = vsub.f32 1.0, %v3579_v6  ;;  %v3619_v22 = vmul.f32 %v10755_v37, %v3618_v42  ;;  %v13565_v14 = vld [vmem:[#allocation135_spill] sm:$0xff] }
 0x24b   :  { %3779 = vmatpush.bf16.msra.mxu0 %v13558_v16  ;;  %13559 = vst [vmem:[#allocation33_spill] sm:$0xff] %v10781_v49  ;;  %v13568_v6 = vld [vmem:[#allocation139_spill] sm:$0xff] }
 0x24c   :  { %v3516_v56 = vadd.f32 %v3515_v52, %v3503_v58  ;;  %v13567_v58 = vld [vmem:[#allocation138_spill] sm:$0xff]  ;;  %v3581_v33 = vmul.f32 %v10766_v26, %v3580_v53  ;;  %v3620_v11 = vadd.f32 %v10755_v37, %v3619_v22  ;;  %v3517_v42 = vpop.f32.mrf.mxu1  ;;  %v10809_v22 = vperm.slane %v10554_v60, 7 }
 0x24d   :  { %v3541_v42 = vpop.f32.mrf.mxu3 }
 0x24e   :  { %4094 = vmatpush.bf16.msrb.mxu2 %v13554_v38  ;;  %4107 = vmatpush.bf16.msrb.mxu3 %v13557_v10  ;;  %v13561_v10 = vld [vmem:[#allocation38_spill] sm:$0xff]  ;;  %v10789_v38 = vperm.slane %v10554_v60, 4  ;;  %13571 = vst [vmem:[#allocation41_spill] sm:$0xff] %v10809_v22  ;;  %v3589_v60 = vand.u32 2147483648, %v10725_v27 }
 0x24f   :  { %3789 = vmatpush.bf16.msra.mxu1 %v13561_v10  ;;  %3780 = vmatpush.bf16.msra.mxu0 %v13564_v7  ;;  %v13697_v10 = vld [vmem:[#allocation160_spill] sm:$0xff] }
 0x250   :  { %13563 = vst [vmem:[#allocation37_spill] sm:$0xff] %v10789_v38  ;;  %v3566_v52 = vadd.f32 %v10789_v38, %v3464_v17  ;;  %v13570_v17 = vld [vmem:[#allocation142_spill] sm:$0xff]  ;;  %v3582_v38 = vadd.f32 %v10766_v26, %v3581_v33 }
 0x252   :  { %4095 = vmatpush.bf16.msrb.mxu2 %v13560_v9  ;;  %4108 = vmatpush.bf16.msrb.mxu3 %v13562_v29  ;;  %v3568_v9 = vadd.f32 %v10781_v49, %v3516_v56  ;;  %v3627_v56 = vand.u32 2147483648, %v10712_v24  ;;  %v3528_v49 = vpop.f32.mrf.mxu2  ;;  %v13569_v29 = vld [vmem:[#allocation46_spill] sm:$0xff] }
 0x253   :  { %3790 = vmatpush.bf16.msra.mxu1 %v13566_v41  ;;  %v3529_v53 = vadd.f32 %v3528_v49, %v10508_v0  ;;  %v13575_v49 = vld [vmem:[#allocation50_spill] sm:$0xff]  ;;  %v13695_v41 = vld [vmem:[#allocation277_spill] sm:$0xff] }
 0x254   :  { %v7797_v2 = vmul.f32 -1.442695, %v3568_v9  ;;  %v3625_v9 = vand.u32 2147483647, %v10712_v24  ;;  %v3624_v24 = vsel %vm10811_vm3, %v10755_v37, %v3620_v11  ;;  %v3628_v0 = vor.u32 1.1754944e-38, %v3627_v56  ;;  %v13586_v37 = vld [vmem:[#allocation158_spill] sm:$0xff] }
 0x256   :  { %4096 = vmatpush.bf16.msrb.mxu2 %v13565_v14  ;;  %4109 = vmatpush.bf16.msrb.mxu3 %v13567_v58  ;;  %8331 = vpow2.f32 %v7797_v2  ;;  %v13574_v58 = vld [vmem:[#allocation143_spill] sm:$0xff]  ;;  %vm3626_vm6 = vcmp.eq.f32.partialorder %v3625_v9, 8.507059e+37  ;;  %v13576_v14 = vld [vmem:[#allocation146_spill] sm:$0xff] }
 0x257   :  { %3791 = vmatpush.bf16.msra.mxu1 %v13569_v29  ;;  %8333 = vtanh.f32 %v3566_v52  ;;  %v3587_v52 = vand.u32 2147483647, %v10725_v27  ;;  %v3629_v11 = vsel %vm3626_vm6, %v3628_v0, %v3624_v24  ;;  %v3590_v27 = vor.u32 1.1754944e-38, %v3589_v60 }
 0x259   :  { %vm3588_vm8 = vcmp.eq.f32.partialorder %v3587_v52, 8.507059e+37 }
 0x25a   :  { %4097 = vmatpush.bf16.msrb.mxu2 %v13568_v6  ;;  %4110 = vmatpush.bf16.msrb.mxu3 %v13570_v17  ;;  %v3542_v17 = vadd.f32 %v3541_v42, %v3529_v53  ;;  %v3586_v53 = vsel %vm10827_vm7, %v10766_v26, %v3582_v38  ;;  %v13579_v42 = vld [vmem:[#allocation147_spill] sm:$0xff]  ;;  %v3530_v9 = vpop.f32.mrf.mxu2  ;;  %v13583_v38 = vld [vmem:[#allocation154_spill] sm:$0xff] }
 0x25b   :  { %3792 = vmatpush.bf16.msra.mxu1 %v13575_v49  ;;  %v3591_v24 = vsel %vm3588_vm8, %v3590_v27, %v3586_v53  ;;  %v13582_v49 = vld [vmem:[#allocation153_spill] sm:$0xff] }
 0x25c   :  { %v8332_v6 = vpop.eup %8331  ;;  %v3569_v33 = vadd.f32 %v10809_v22, %v3542_v17  ;;  %v13580_v17 = vld [vmem:[#allocation54_spill] sm:$0xff]  ;;  %v13581_v22 = vld [vmem:[#allocation152_spill] sm:$0xff] }
 0x25d   :  { %v3654_v56 = vadd.f32 1.0, %v8332_v6  ;;  %v3543_v6 = vpop.f32.mrf.mxu3 }
 0x25e   :  { %4098 = vmatpush.bf16.msrb.mxu2 %v13574_v58  ;;  %4111 = vmatpush.bf16.msrb.mxu3 %v13576_v14  ;;  %v7798_v2 = vmul.f32 -1.442695, %v3569_v33  ;;  %v8334_v58 = vpop.eup %8333  ;;  %v3686_v14 = vmul.f32 0.0, %v3629_v11  ;;  %v13585_v33 = vld [vmem:[#allocation157_spill] sm:$0xff]  ;;  %v13589_v6 = vld [vmem:[#allocation163_spill] sm:$0xff] }
 0x25f   :  { %8335 = vrcp.f32 %v3654_v56  ;;  %3793 = vmatpush.bf16.msra.mxu1 %v13580_v17  ;;  %v3688_v0 = vmul.f32 %v8334_v58, %v3591_v24  ;;  %v13588_v58 = vld [vmem:[#allocation162_spill] sm:$0xff]  ;;  %v3667_v27 = vand.u32 2147483648, %v3654_v56  ;;  %vm3661_vm10 = vweird.f32 %v3654_v56  ;;  %v13694_v17 = vld [vmem:[#allocation271_spill] sm:$0xff] }
 0x260   :  { %8337 = vpow2.f32 %v7798_v2  ;;  %v13587_v2 = vld [vmem:[#allocation159_spill] sm:$0xff] }
 0x261   :  { %v10839_v26 = vadd.f32 %v3688_v0, %v3686_v14  ;;  %v3665_v14 = vand.u32 2147483647, %v3654_v56 }
 0x262   :  { %4099 = vmatpush.bf16.msrb.mxu2 %v13579_v42  ;;  %4112 = vmatpush.bf16.msrb.mxu3 %v13581_v22 }
 0x263   :  { %13584 = vst [vmem:[#allocation30_spill] sm:$0xff] %v10839_v26  ;;  %8339 = vtanh.f32 %v10839_v26  ;;  %vm3666_vm12 = vcmp.eq.f32.partialorder %v3665_v14, 8.507059e+37 }
 0x265   :  { %v8336_v60 = vpop.eup %8335 }
 0x266   :  { %4100 = vmatpush.bf16.msrb.mxu2 %v13582_v49  ;;  %4113 = vmatpush.bf16.msrb.mxu3 %v13585_v33  ;;  %v8338_v9 = vpop.eup %8337  ;;  %v3657_v52 = vmul.f32 %v8336_v60, %v3654_v56  ;;  %vm3662_vm9 = vweird.f32 %v8336_v60 }
 0x267   :  { %v3655_v11 = vadd.f32 1.0, %v8338_v9  ;;  %vm3663_vm11 = vmor %vm3661_vm10, %vm3662_vm9  ;;  %v3668_v9 = vor.u32 1.1754944e-38, %v3667_v27  ;;  %v13594_v27 = vld [vmem:[#allocation171_spill] sm:$0xff] }
 0x268   :  { %v3658_v53 = vsub.f32 1.0, %v3657_v52  ;;  %v13591_v52 = vld [vmem:[#allocation167_spill] sm:$0xff] }
 0x269   :  { %8341 = vrcp.f32 %v3655_v11  ;;  %v8340_v33 = vpop.eup %8339  ;;  %v3682_v56 = vand.u32 2147483648, %v3655_v11  ;;  %vm3676_vm14 = vweird.f32 %v3655_v11 }
 0x26a   :  { %4145 = vmatpush.bf16.msra.mxu2 %v13583_v38  ;;  %4158 = vmatpush.bf16.msra.mxu3 %v13586_v37  ;;  %v3659_v24 = vmul.f32 %v8336_v60, %v3658_v53  ;;  %v13590_v37 = vld [vmem:[#allocation166_spill] sm:$0xff]  ;;  %8343 = vtanh.f32 %v10768_v43  ;;  %v13693_v43 = vld [vmem:[#allocation145_spill] sm:$0xff] }
 0x26b   :  { %v13592_v53 = vld [vmem:[#allocation170_spill] sm:$0xff] }
 0x26c   :  { %v3660_v0 = vadd.f32 %v8336_v60, %v3659_v24  ;;  %v13593_v24 = vld [vmem:[#allocation55_spill] sm:$0xff]  ;;  %v10856_v14 = vpop.f32.mrf.mxu2 }
 0x26e   :  { %4146 = vmatpush.bf16.msra.mxu2 %v13587_v2  ;;  %4159 = vmatpush.bf16.msra.mxu3 %v13588_v58  ;;  %v3664_v22 = vsel %vm3663_vm11, %v8336_v60, %v3660_v0  ;;  %v13597_v0 = vld [vmem:[#allocation175_spill] sm:$0xff] }
 0x26f   :  { %v8342_v26 = vpop.eup %8341  ;;  %v3669_v2 = vsel %vm3666_vm12, %v3668_v9, %v3664_v22  ;;  %v3680_v22 = vand.u32 2147483647, %v3655_v11  ;;  %v3683_v9 = vor.u32 1.1754944e-38, %v3682_v56  ;;  %v13602_v56 = vld [vmem:[#allocation56_spill] sm:$0xff] }
 0x270   :  { %v3672_v58 = vmul.f32 %v8342_v26, %v3655_v11  ;;  %v3694_v38 = vmul.f32 %v8340_v33, %v3669_v2  ;;  %vm3677_vm13 = vweird.f32 %v8342_v26  ;;  %v13595_v33 = vld [vmem:[#allocation174_spill] sm:$0xff]  ;;  %v10859_v2 = vpop.f32.mrf.mxu3  ;;  %v13600_v11 = vld [vmem:[#allocation179_spill] sm:$0xff] }
 0x271   :  { %vm3678_vm15 = vmor %vm3676_vm14, %vm3677_vm13  ;;  %vm3681_vm0 = vcmp.eq.f32.partialorder %v3680_v22, 8.507059e+37  ;;  %v13603_v22 = vld [vmem:[#allocation69_spill] sm:$0xff]  ;;  %vm3740_vm13 = vcmask 58368  }
 0x272   :  { %4147 = vmatpush.bf16.msra.mxu2 %v13589_v6  ;;  %4160 = vmatpush.bf16.msra.mxu3 %v13590_v37  ;;  %v3673_v49 = vsub.f32 1.0, %v3672_v58  ;;  %v10850_v6 = vpack.c.bf16 %v3694_v38, %v3694_v38  ;;  %v13596_v58 = vld [vmem:[#allocation61_spill] sm:$0xff] }
 0x273   :  { %3715 = vmatmul.f32.vlgmr.msrb.gmra.mxu0 %v3694_v38 }
 0x274   :  { %3825 = vmatpush.bf16.msrb.mxu0 %v13593_v24  ;;  %v3674_v60 = vmul.f32 %v8342_v26, %v3673_v49  ;;  %4101 = vmatmul.bf16.vlgmr.msrb.gmra.mxu2 %v10850_v6  ;;  %v8344_v49 = vpop.eup %8343 }
 0x276   :  { %4148 = vmatpush.bf16.msra.mxu2 %v13591_v52  ;;  %4161 = vmatpush.bf16.msra.mxu3 %v13592_v53  ;;  %v3675_v38 = vadd.f32 %v8342_v26, %v3674_v60  ;;  %v13598_v53 = vld [vmem:[#allocation178_spill] sm:$0xff]  ;;  %v13656_v52 = vld [vmem:[#allocation119_spill] sm:$0xff] }
 0x278   :  { %3826 = vmatpush.bf16.msrb.mxu0 %v13596_v58  ;;  %v3679_v24 = vsel %vm3678_vm15, %v8342_v26, %v3675_v38  ;;  %v3758_v58 = vpop.f32.mrf.mxu2  ;;  %v3771_v26 = vpop.f32.mrf.mxu3  ;;  %v13606_v38 = vld [vmem:[#allocation189_spill] sm:$0xff] }
 0x279   :  { %v3684_v37 = vsel %vm3681_vm0, %v3683_v9, %v3679_v24  ;;  %v13604_v24 = vld [vmem:[#allocation185_spill] sm:$0xff]  ;;  %v13607_v9 = vld [vmem:[#allocation62_spill] sm:$0xff]  ;;  %v13611_v26 = vld [vmem:[#allocation191_spill] sm:$0xff] }
 0x27a   :  { %4149 = vmatpush.bf16.msra.mxu2 %v13594_v27  ;;  %4162 = vmatpush.bf16.msra.mxu3 %v13595_v33  ;;  %v3695_v27 = vmul.f32 %v8344_v49, %v3684_v37  ;;  %v13599_v33 = vld [vmem:[#allocation65_spill] sm:$0xff]  ;;  %v13605_v37 = vld [vmem:[#allocation186_spill] sm:$0xff] }
 0x27b   :  { %3781 = vmatmul.bf16.vlgmr.msra.gmra.mxu0 %v10139_v44  ;;  %v13609_v58 = vld [vmem:[#allocation73_spill] sm:$0xff]  ;;  %v13610_v49 = vld [vmem:[#allocation66_spill] sm:$0xff] }
 0x27c   :  { %3827 = vmatpush.bf16.msrb.mxu0 %v13599_v33  ;;  %3735 = vmatmul.f32.vlgmr.msrb.gmra.mxu1 %v3695_v27  ;;  %v10867_v60 = vpack.c.bf16 %v3695_v27, %v3695_v27  ;;  %v13608_v27 = vld [vmem:[#allocation190_spill] sm:$0xff] }
 0x27d   :  { %3838 = vmatpush.bf16.msrb.mxu1 %v13602_v56  ;;  %v13614_v33 = vld [vmem:[#allocation70_spill] sm:$0xff]  ;;  %v13633_v56 = vld [vmem:[#allocation216_spill] sm:$0xff] }
 0x27e   :  { %4150 = vmatpush.bf16.msra.mxu2 %v13597_v0  ;;  %4163 = vmatpush.bf16.msra.mxu3 %v13598_v53  ;;  %v13601_v0 = vld [vmem:[#allocation184_spill] sm:$0xff]  ;;  %v13619_v53 = vld [vmem:[#allocation199_spill] sm:$0xff] }
 0x27f   :  { %4114 = vmatmul.bf16.vlgmr.msrb.gmra.mxu3 %v10867_v60 }
 0x280   :  { %3828 = vmatpush.bf16.msrb.mxu0 %v13603_v22  ;;  %v13612_v22 = vld [vmem:[#allocation194_spill] sm:$0xff] }
 0x281   :  { %3839 = vmatpush.bf16.msrb.mxu1 %v13607_v9  ;;  %v13616_v9 = vld [vmem:[#allocation198_spill] sm:$0xff] }
 0x282   :  { %4151 = vmatpush.bf16.msra.mxu2 %v13600_v11  ;;  %4164 = vmatpush.bf16.msra.mxu3 %v13601_v0  ;;  %v13613_v0 = vld [vmem:[#allocation77_spill] sm:$0xff] }
 0x283   :  { %v13635_v11 = vld [vmem:[#allocation101_spill] sm:$0xff] }
 0x284   :  { %3829 = vmatpush.bf16.msrb.mxu0 %v13609_v58  ;;  %3794 = vmatmul.bf16.vlgmr.msra.gmra.mxu1 %v10286_v5  ;;  %v13618_v58 = vld [vmem:[#allocation74_spill] sm:$0xff] }
 0x285   :  { %3840 = vmatpush.bf16.msrb.mxu1 %v13610_v49  ;;  %v13621_v49 = vld [vmem:[#allocation85_spill] sm:$0xff] }
 0x286   :  { %4152 = vmatpush.bf16.msra.mxu2 %v13604_v24  ;;  %4165 = vmatpush.bf16.msra.mxu3 %v13606_v38  ;;  %v13615_v38 = vld [vmem:[#allocation195_spill] sm:$0xff]  ;;  %v13634_v24 = vld [vmem:[#allocation88_spill] sm:$0xff] }
 0x288   :  { %3830 = vmatpush.bf16.msrb.mxu0 %v13613_v0  ;;  %v13623_v0 = vld [vmem:[#allocation78_spill] sm:$0xff] }
 0x289   :  { %4153 = vmatmul.bf16.vlgmr.msra.gmra.mxu2 %v10850_v6  ;;  %3841 = vmatpush.bf16.msrb.mxu1 %v13614_v33  ;;  %v13624_v33 = vld [vmem:[#allocation203_spill] sm:$0xff] }
 0x28a   :  { %4197 = vmatpush.bf16.msrb.mxu2 %v13605_v37  ;;  %4210 = vmatpush.bf16.msrb.mxu3 %v13608_v27  ;;  %v13617_v27 = vld [vmem:[#allocation81_spill] sm:$0xff]  ;;  %v13620_v37 = vld [vmem:[#allocation202_spill] sm:$0xff] }
 0x28c   :  { %3831 = vmatpush.bf16.msrb.mxu0 %v13617_v27  ;;  %v13625_v27 = vld [vmem:[#allocation206_spill] sm:$0xff] }
 0x28d   :  { %3842 = vmatpush.bf16.msrb.mxu1 %v13618_v58  ;;  %v13626_v58 = vld [vmem:[#allocation93_spill] sm:$0xff] }
 0x28e   :  { %4198 = vmatpush.bf16.msrb.mxu2 %v13611_v26  ;;  %4211 = vmatpush.bf16.msrb.mxu3 %v13612_v22  ;;  %v13622_v22 = vld [vmem:[#allocation87_spill] sm:$0xff]  ;;  %v13630_v26 = vld [vmem:[#allocation97_spill] sm:$0xff] }
 0x28f   :  { %4166 = vmatmul.bf16.vlgmr.msra.gmra.mxu3 %v10867_v60 }
 0x290   :  { %3832 = vmatpush.bf16.msrb.mxu0 %v13621_v49  ;;  %v13629_v49 = vld [vmem:[#allocation210_spill] sm:$0xff] }
 0x291   :  { %3843 = vmatpush.bf16.msrb.mxu1 %v13623_v0  ;;  %v13632_v0 = vld [vmem:[#allocation211_spill] sm:$0xff] }
 0x292   :  { %4199 = vmatpush.bf16.msrb.mxu2 %v13615_v38  ;;  %4212 = vmatpush.bf16.msrb.mxu3 %v13616_v9  ;;  %v3808_v38 = vpop.f32.mrf.mxu2  ;;  %v3821_v9 = vpop.f32.mrf.mxu3 }
 0x293   :  { %3833 = vmatmul.bf16.vlgmr.msrb.gmra.mxu0 %v10139_v44 }
 0x294   :  { %3877 = vmatpush.bf16.msra.mxu0 %v13622_v22  ;;  %v13631_v22 = vld [vmem:[#allocation86_spill] sm:$0xff] }
 0x296   :  { %4200 = vmatpush.bf16.msrb.mxu2 %v13619_v53  ;;  %4213 = vmatpush.bf16.msrb.mxu3 %v13620_v37  ;;  %v13627_v53 = vld [vmem:[#allocation82_spill] sm:$0xff]  ;;  %v13628_v37 = vld [vmem:[#allocation207_spill] sm:$0xff] }
 0x297   :  { %3844 = vmatpush.bf16.msrb.mxu1 %v13627_v53  ;;  %v13637_v53 = vld [vmem:[#allocation222_spill] sm:$0xff] }
 0x298   :  { %3878 = vmatpush.bf16.msra.mxu0 %v13626_v58  ;;  %v13636_v58 = vld [vmem:[#allocation217_spill] sm:$0xff] }
 0x29a   :  { %4201 = vmatpush.bf16.msrb.mxu2 %v13624_v33  ;;  %4214 = vmatpush.bf16.msrb.mxu3 %v13625_v27  ;;  %v3810_v33 = vpop.f32.mrf.mxu2  ;;  %v3823_v27 = vpop.f32.mrf.mxu3 }
 0x29b   :  { %3845 = vmatpush.bf16.msrb.mxu1 %v13631_v22  ;;  %v13640_v22 = vld [vmem:[#allocation223_spill] sm:$0xff]  ;;  %v13641_v33 = vld [vmem:[#allocation105_spill] sm:$0xff]  ;;  %v13642_v27 = vld [vmem:[#allocation98_spill] sm:$0xff] }
 0x29c   :  { %3879 = vmatpush.bf16.msra.mxu0 %v13630_v26  ;;  %v13639_v26 = vld [vmem:[#allocation219_spill] sm:$0xff] }
 0x29e   :  { %4202 = vmatpush.bf16.msrb.mxu2 %v13628_v37  ;;  %4215 = vmatpush.bf16.msrb.mxu3 %v13629_v49  ;;  %v13638_v49 = vld [vmem:[#allocation94_spill] sm:$0xff]  ;;  %v13654_v37 = vld [vmem:[#allocation117_spill] sm:$0xff] }
 0x29f   :  { %3890 = vmatpush.bf16.msra.mxu1 %v13634_v24  ;;  %v13645_v24 = vld [vmem:[#allocation109_spill] sm:$0xff] }
 0x2a0   :  { %3880 = vmatpush.bf16.msra.mxu0 %v13635_v11  ;;  %3846 = vmatmul.bf16.vlgmr.msrb.gmra.mxu1 %v10286_v5  ;;  %v13643_v11 = vld [vmem:[#allocation224_spill] sm:$0xff] }
 0x2a2   :  { %4203 = vmatpush.bf16.msrb.mxu2 %v13632_v0  ;;  %4216 = vmatpush.bf16.msrb.mxu3 %v13633_v56  ;;  %v13644_v56 = vld [vmem:[#allocation228_spill] sm:$0xff]  ;;  %v13650_v0 = vld [vmem:[#allocation106_spill] sm:$0xff] }
 0x2a3   :  { %3891 = vmatpush.bf16.msra.mxu1 %v13638_v49  ;;  %v13647_v49 = vld [vmem:[#allocation229_spill] sm:$0xff] }
 0x2a4   :  { %3881 = vmatpush.bf16.msra.mxu0 %v13641_v33  ;;  %v3770_v33 = vadd.f32 %v10859_v2, %v10856_v14  ;;  %v13658_v2 = vld [vmem:[#allocation237_spill] sm:$0xff] }
 0x2a6   :  { %4204 = vmatpush.bf16.msrb.mxu2 %v13636_v58  ;;  %4217 = vmatpush.bf16.msrb.mxu3 %v13637_v53  ;;  %v13646_v53 = vld [vmem:[#allocation102_spill] sm:$0xff]  ;;  %v3822_v58 = vadd.f32 %v3821_v9, %v3808_v38  ;;  %v13659_v9 = vld [vmem:[#allocation240_spill] sm:$0xff] }
 0x2a7   :  { %3892 = vmatpush.bf16.msra.mxu1 %v13642_v27  ;;  %v13651_v27 = vld [vmem:[#allocation233_spill] sm:$0xff] }
 0x2a8   :  { %3882 = vmatpush.bf16.msra.mxu0 %v13645_v24 }
 0x2a9   :  { %4205 = vmatmul.bf16.vlgmr.msrb.gmra.mxu2 %v10850_v6  ;;  %4218 = vmatmul.bf16.vlgmr.msrb.gmra.mxu3 %v10867_v60 }
 0x2aa   :  { %4249 = vmatpush.bf16.msra.mxu2 %v13639_v26  ;;  %4262 = vmatpush.bf16.msra.mxu3 %v13640_v22  ;;  %v13648_v26 = vld [vmem:[#allocation232_spill] sm:$0xff]  ;;  %v13649_v22 = vld [vmem:[#allocation113_spill] sm:$0xff] }
 0x2ab   :  { %3893 = vmatpush.bf16.msra.mxu1 %v13646_v53  ;;  %v13655_v53 = vld [vmem:[#allocation226_spill] sm:$0xff] }
 0x2ac   :  { %3883 = vmatpush.bf16.msra.mxu0 %v13649_v22  ;;  %v3860_v14 = vpop.f32.mrf.mxu2  ;;  %v3873_v22 = vpop.f32.mrf.mxu3 }
 0x2ae   :  { %4250 = vmatpush.bf16.msra.mxu2 %v13643_v11  ;;  %4263 = vmatpush.bf16.msra.mxu3 %v13644_v56  ;;  %v13652_v11 = vld [vmem:[#allocation236_spill] sm:$0xff]  ;;  %v13653_v56 = vld [vmem:[#allocation218_spill] sm:$0xff] }
 0x2af   :  { %3894 = vmatpush.bf16.msra.mxu1 %v13650_v0  ;;  %v3955_v24 = vadd.f32 %v3770_v33, %v13653_v56  ;;  %v13660_v0 = vld [vmem:[#allocation124_spill] sm:$0xff]  ;;  %v13661_v33 = vld [vmem:[#allocation114_spill] sm:$0xff] }
 0x2b0   :  { %3884 = vmatpush.bf16.msra.mxu0 %v13654_v37  ;;  %v13662_v37 = vld [vmem:[#allocation241_spill] sm:$0xff]  ;;  %v13669_v56 = vld [vmem:[#allocation132_spill] sm:$0xff] }
 0x2b1   :  { %v7800_v38 = vmul.f32 -1.442695, %v3955_v24  ;;  %v13666_v24 = vld [vmem:[#allocation245_spill] sm:$0xff] }
 0x2b2   :  { %4251 = vmatpush.bf16.msra.mxu2 %v13647_v49  ;;  %4264 = vmatpush.bf16.msra.mxu3 %v13648_v26  ;;  %v3957_v49 = vadd.f32 %v3822_v58, %v13655_v53  ;;  %v13657_v26 = vld [vmem:[#allocation110_spill] sm:$0xff]  ;;  %v13663_v58 = vld [vmem:[#allocation244_spill] sm:$0xff] }
 0x2b3   :  { %3895 = vmatpush.bf16.msra.mxu1 %v13657_v26  ;;  %3885 = vmatmul.bf16.vlgmr.msra.gmra.mxu0 %v10139_v44  ;;  %8345 = vpow2.f32 %v7800_v38  ;;  %v13665_v26 = vld [vmem:[#allocation118_spill] sm:$0xff] }
 0x2b4   :  { %3929 = vmatpush.bf16.msrb.mxu0 %v13656_v52  ;;  %v13664_v52 = vld [vmem:[#allocation128_spill] sm:$0xff]  ;;  %v3862_v53 = vpop.f32.mrf.mxu2 }
 0x2b5   :  { %v13673_v53 = vld [vmem:[#allocation252_spill] sm:$0xff] }
 0x2b6   :  { %4252 = vmatpush.bf16.msra.mxu2 %v13651_v27  ;;  %4265 = vmatpush.bf16.msra.mxu3 %v13652_v11  ;;  %v7802_v11 = vmul.f32 -1.442695, %v3957_v49  ;;  %v13668_v49 = vld [vmem:[#allocation250_spill] sm:$0xff]  ;;  %v13692_v27 = vld [vmem:[#allocation155_spill] sm:$0xff] }
 0x2b7   :  { %3896 = vmatpush.bf16.msra.mxu1 %v13661_v33 }
 0x2b8   :  { %3930 = vmatpush.bf16.msrb.mxu0 %v13660_v0  ;;  %8347 = vpow2.f32 %v7802_v11  ;;  %v3875_v0 = vpop.f32.mrf.mxu3  ;;  %v13671_v11 = vld [vmem:[#allocation125_spill] sm:$0xff] }
 0x2b9   :  { %v8346_v38 = vpop.eup %8345 }
 0x2ba   :  { %4253 = vmatpush.bf16.msra.mxu2 %v13658_v2  ;;  %4266 = vmatpush.bf16.msra.mxu3 %v13659_v9  ;;  %v13667_v9 = vld [vmem:[#allocation120_spill] sm:$0xff] }
 0x2bb   :  { %3897 = vmatpush.bf16.msra.mxu1 %v13665_v26  ;;  %v10954_v26 = vadd.f32 1.0, %v8346_v38  ;;  %v13679_v38 = vld [vmem:[#allocation260_spill] sm:$0xff] }
 0x2bc   :  { %3931 = vmatpush.bf16.msrb.mxu0 %v13664_v52  ;;  %v13672_v52 = vld [vmem:[#allocation255_spill] sm:$0xff]  ;;  %v13691_v2 = vld [vmem:[#allocation276_spill] sm:$0xff] }
 0x2bd   :  { %8349 = vrcp.f32 %v10954_v26  ;;  %vm3976_vm3 = vweird.f32 %v10954_v26 }
 0x2be   :  { %4254 = vmatpush.bf16.msra.mxu2 %v13662_v37  ;;  %4267 = vmatpush.bf16.msra.mxu3 %v13663_v58  ;;  %v8348_v33 = vpop.eup %8347  ;;  %v13670_v58 = vld [vmem:[#allocation251_spill] sm:$0xff]  ;;  %v13688_v37 = vld [vmem:[#allocation150_spill] sm:$0xff] }
 0x2bf   :  { %3942 = vmatpush.bf16.msrb.mxu1 %v13667_v9  ;;  %v13674_v9 = vld [vmem:[#allocation136_spill] sm:$0xff]  ;;  %v10958_v0 = vadd.f32 1.0, %v8348_v33  ;;  %v13681_v33 = vld [vmem:[#allocation262_spill] sm:$0xff] }
 0x2c0   :  { %3932 = vmatpush.bf16.msrb.mxu0 %v13669_v56  ;;  %3898 = vmatmul.bf16.vlgmr.msra.gmra.mxu1 %v10286_v5  ;;  %v13676_v56 = vld [vmem:[#allocation129_spill] sm:$0xff] }
 0x2c1   :  { %8351 = vrcp.f32 %v10958_v0  ;;  %vm4014_vm4 = vweird.f32 %v10958_v0 }
 0x2c2   :  { %4255 = vmatpush.bf16.msra.mxu2 %v13666_v24  ;;  %4268 = vmatpush.bf16.msra.mxu3 %v13668_v49  ;;  %v13675_v49 = vld [vmem:[#allocation256_spill] sm:$0xff]  ;;  %v13685_v24 = vld [vmem:[#allocation267_spill] sm:$0xff] }
 0x2c3   :  { %3943 = vmatpush.bf16.msrb.mxu1 %v13671_v11  ;;  %v13683_v11 = vld [vmem:[#allocation266_spill] sm:$0xff] }
 0x2c4   :  { %3933 = vmatpush.bf16.msrb.mxu0 %v13674_v9  ;;  %v13680_v9 = vld [vmem:[#allocation133_spill] sm:$0xff] }
 0x2c6   :  { %4256 = vmatpush.bf16.msra.mxu2 %v13670_v58  ;;  %4269 = vmatpush.bf16.msra.mxu3 %v13672_v52  ;;  %v13677_v58 = vld [vmem:[#allocation257_spill] sm:$0xff]  ;;  %v13678_v52 = vld [vmem:[#allocation140_spill] sm:$0xff] }
 0x2c7   :  { %3944 = vmatpush.bf16.msrb.mxu1 %v13676_v56  ;;  %v13684_v56 = vld [vmem:[#allocation137_spill] sm:$0xff] }
 0x2c8   :  { %3934 = vmatpush.bf16.msrb.mxu0 %v13678_v52  ;;  %v13686_v52 = vld [vmem:[#allocation148_spill] sm:$0xff] }
 0x2c9   :  { %4257 = vmatmul.bf16.vlgmr.msra.gmra.mxu2 %v10850_v6  ;;  %4270 = vmatmul.bf16.vlgmr.msra.gmra.mxu3 %v10867_v60 }
 0x2ca   :  { %4301 = vmatpush.bf16.msrb.mxu2 %v13673_v53  ;;  %4314 = vmatpush.bf16.msrb.mxu3 %v13675_v49  ;;  %v13682_v49 = vld [vmem:[#allocation144_spill] sm:$0xff]  ;;  %v10972_v53 = vpop.eup %8349 }
 0x2cb   :  { %3945 = vmatpush.bf16.msrb.mxu1 %v13680_v9  ;;  %v3972_v9 = vmul.f32 %v10972_v53, %v10954_v26  ;;  %vm3977_vm1 = vweird.f32 %v10972_v53 }
 0x2cc   :  { %3935 = vmatpush.bf16.msrb.mxu0 %v13682_v49  ;;  %vm11014_vm5 = vmor %vm3976_vm3, %vm3977_vm1 }
 0x2ce   :  { %4302 = vmatpush.bf16.msrb.mxu2 %v13677_v58  ;;  %4315 = vmatpush.bf16.msrb.mxu3 %v13679_v38  ;;  %v10975_v58 = vpop.eup %8351  ;;  %v13687_v38 = vld [vmem:[#allocation270_spill] sm:$0xff] }
 0x2cf   :  { %3946 = vmatpush.bf16.msrb.mxu1 %v13684_v56  ;;  %v4010_v49 = vmul.f32 %v10975_v58, %v10958_v0  ;;  %v13690_v56 = vld [vmem:[#allocation272_spill] sm:$0xff]  ;;  %vm4015_vm2 = vweird.f32 %v10975_v58 }
 0x2d0   :  { %3936 = vmatpush.bf16.msrb.mxu0 %v13686_v52  ;;  %v3874_v52 = vadd.f32 %v3873_v22, %v3860_v14  ;;  %vm11024_vm6 = vmor %vm4014_vm4, %vm4015_vm2 }
 0x2d1   :  { %v4011_v42 = vsub.f32 1.0, %v4010_v49  ;;  %v13699_v49 = vld [vmem:[#allocation151_spill] sm:$0xff] }
 0x2d2   :  { %4303 = vmatpush.bf16.msrb.mxu2 %v13681_v33  ;;  %4316 = vmatpush.bf16.msrb.mxu3 %v13683_v11  ;;  %v13689_v11 = vld [vmem:[#allocation141_spill] sm:$0xff]  ;;  %v3912_v33 = vpop.f32.mrf.mxu2 }
 0x2d3   :  { %3947 = vmatpush.bf16.msrb.mxu1 %v13689_v11  ;;  %3937 = vmatmul.bf16.vlgmr.msrb.gmra.mxu0 %v10139_v44  ;;  %v13696_v44 = vld [vmem:[#allocation274_spill] sm:$0xff]  ;;  %v4012_v22 = vmul.f32 %v10975_v58, %v4011_v42 }
 0x2d4   :  { %4119 = vmatpush.bf16.msra.mxu0 %v13688_v37  ;;  %v3973_v37 = vsub.f32 1.0, %v3972_v9  ;;  %v3959_v11 = vadd.f32 %v3874_v52, %v13696_v44 }
 0x2d5   :  { %v4013_v52 = vadd.f32 %v10975_v58, %v4012_v22  ;;  %v4018_v22 = vand.u32 2147483647, %v10958_v0 }
 0x2d6   :  { %4304 = vmatpush.bf16.msrb.mxu2 %v13685_v24  ;;  %4317 = vmatpush.bf16.msrb.mxu3 %v13687_v38  ;;  %v3925_v24 = vpop.f32.mrf.mxu3  ;;  %v3974_v14 = vmul.f32 %v10972_v53, %v3973_v37  ;;  %v3982_v37 = vand.u32 2147483648, %v10954_v26 }
 0x2d7   :  { %v3926_v38 = vadd.f32 %v3925_v24, %v3912_v33  ;;  %3948 = vmatpush.bf16.msrb.mxu1 %v13693_v43  ;;  %v13698_v24 = vld [vmem:[#allocation149_spill] sm:$0xff]  ;;  %v13701_v33 = vld [vmem:[#allocation156_spill] sm:$0xff]  ;;  %vm4019_vm8 = vcmp.eq.f32.partialorder %v4018_v22, 8.507059e+37 }
 0x2d8   :  { %4120 = vmatpush.bf16.msra.mxu0 %v13692_v27  ;;  %v3975_v42 = vadd.f32 %v10972_v53, %v3974_v14  ;;  %v13704_v14 = vld [vmem:[#allocation287_spill] sm:$0xff]  ;;  %v13712_v27 = vld [vmem:[#allocation172_spill] sm:$0xff] }
 0x2d9   :  { %v3961_v29 = vadd.f32 %v3926_v38, %v13694_v17 }
 0x2da   :  { %4305 = vmatpush.bf16.msrb.mxu2 %v13690_v56  ;;  %4318 = vmatpush.bf16.msrb.mxu3 %v13691_v2  ;;  %v3914_v9 = vpop.f32.mrf.mxu2 }
 0x2db   :  { %v7804_v56 = vmul.f32 -1.442695, %v3961_v29  ;;  %3949 = vmatpush.bf16.msrb.mxu1 %v13698_v24  ;;  %v13700_v29 = vld [vmem:[#allocation164_spill] sm:$0xff]  ;;  %v13705_v9 = vld [vmem:[#allocation290_spill] sm:$0xff] }
 0x2dc   :  { %4121 = vmatpush.bf16.msra.mxu0 %v13697_v10 }
 0x2dd   :  { %8353 = vpow2.f32 %v7804_v56  ;;  %v4020_v56 = vand.u32 2147483648, %v10958_v0  ;;  %v4017_v0 = vsel %vm11024_vm6, %v10975_v58, %v4013_v52  ;;  %v13715_v58 = vld [vmem:[#allocation296_spill] sm:$0xff] }
 0x2de   :  { %4306 = vmatpush.bf16.msrb.mxu2 %v13695_v41  ;;  %4319 = vmatpush.bf16.msrb.mxu3 %v9965_v1  ;;  %v3927_v38 = vpop.f32.mrf.mxu3  ;;  %8355 = vtanh.f32 %v3959_v11  ;;  %v3980_v11 = vand.u32 2147483647, %v10954_v26  ;;  %v3979_v26 = vsel %vm11014_vm5, %v10972_v53, %v3975_v42  ;;  %v3983_v1 = vor.u32 1.1754944e-38, %v3982_v37  ;;  %v13713_v53 = vld [vmem:[#allocation295_spill] sm:$0xff]  ;;  %v13717_v37 = vld [vmem:[#allocation176_spill] sm:$0xff] }
 0x2df   :  { %4132 = vmatpush.bf16.msra.mxu1 %v13699_v49 }
 0x2e0   :  { %4122 = vmatpush.bf16.msra.mxu0 %v13700_v29  ;;  %3950 = vmatmul.bf16.vlgmr.msrb.gmra.mxu1 %v10286_v5  ;;  %vm3981_vm7 = vcmp.eq.f32.partialorder %v3980_v11, 8.507059e+37  ;;  %v13714_v29 = vld [vmem:[#allocation165_spill] sm:$0xff]  ;;  %v13718_v5 = vld [vmem:[#allocation300_spill] sm:$0xff] }
 0x2e2   :  { %4307 = vmatpush.bf16.msrb.mxu2 %v9980_v46  ;;  %4320 = vmatpush.bf16.msrb.mxu3 %v9992_v28  ;;  %v13708_v28 = vld [vmem:[#allocation168_spill] sm:$0xff] }
 0x2e3   :  { %4133 = vmatpush.bf16.msra.mxu1 %v13701_v33  ;;  %v8354_v38 = vpop.eup %8353  ;;  %v13709_v33 = vld [vmem:[#allocation291_spill] sm:$0xff] }
 0x2e4   :  { %4123 = vmatpush.bf16.msra.mxu0 %v13708_v28  ;;  %v8356_v10 = vpop.eup %8355  ;;  %v13711_v28 = vld [vmem:[#allocation292_spill] sm:$0xff] }
 0x2e6   :  { %4308 = vmatpush.bf16.msrb.mxu2 %v10007_v55  ;;  %4321 = vmatpush.bf16.msrb.mxu3 %v13705_v9  ;;  %v4047_v9 = vadd.f32 1.0, %v8354_v38  ;;  %v13710_v55 = vld [vmem:[#allocation161_spill] sm:$0xff] }
 0x2e7   :  { %4134 = vmatpush.bf16.msra.mxu1 %v13710_v55  ;;  %v13721_v38 = vld [vmem:[#allocation301_spill] sm:$0xff] }
 0x2e8   :  { %8357 = vrcp.f32 %v4047_v9  ;;  %4124 = vmatpush.bf16.msra.mxu0 %v13712_v27  ;;  %vm4054_vm10 = vweird.f32 %v4047_v9 }
 0x2ea   :  { %4353 = vmatpush.bf16.msra.mxu2 %v13704_v14  ;;  %4366 = vmatpush.bf16.msra.mxu3 %v13709_v33  ;;  %v4021_v14 = vor.u32 1.1754944e-38, %v4020_v56  ;;  %v3984_v33 = vsel %vm3981_vm7, %v3983_v1, %v3979_v26  ;;  %v13716_v56 = vld [vmem:[#allocation297_spill] sm:$0xff] }
 0x2eb   :  { %v4081_v42 = vmul.f32 %v8356_v10, %v3984_v33  ;;  %4135 = vmatpush.bf16.msra.mxu1 %v13714_v29  ;;  %v13722_v10 = vld [vmem:[#allocation180_spill] sm:$0xff]  ;;  %v13723_v33 = vld [vmem:[#allocation182_spill] sm:$0xff] }
 0x2ec   :  { %v4022_v49 = vsel %vm4019_vm8, %v4021_v14, %v4017_v0  ;;  %4125 = vmatpush.bf16.msra.mxu0 %v13717_v37  ;;  %v13720_v14 = vld [vmem:[#allocation169_spill] sm:$0xff] }
 0x2ed   :  { %v4079_v52 = vmul.f32 %v4022_v49, %v13715_v58  ;;  %v4060_v49 = vand.u32 2147483648, %v4047_v9  ;;  %v4058_v58 = vand.u32 2147483647, %v4047_v9 }
 0x2ee   :  { %4354 = vmatpush.bf16.msra.mxu2 %v13711_v28  ;;  %4367 = vmatpush.bf16.msra.mxu3 %v13713_v53  ;;  %v8358_v11 = vpop.eup %8357  ;;  %v13804_v53 = vld [vmem:[#allocation299_spill] sm:$0xff] }
 0x2ef   :  { %v11045_v22 = vadd.f32 %v4081_v42, %v4079_v52  ;;  %v4050_v1 = vmul.f32 %v8358_v11, %v4047_v9  ;;  %4136 = vmatpush.bf16.msra.mxu1 %v13720_v14  ;;  %vm4055_vm9 = vweird.f32 %v8358_v11  ;;  %v13724_v42 = vld [vmem:[#allocation173_spill] sm:$0xff]  ;;  %vm4059_vm12 = vcmp.eq.f32.partialorder %v4058_v58, 8.507059e+37  ;;  %v13732_v58 = vld [vmem:[#allocation188_spill] sm:$0xff]  ;;  %v13780_v14 = vld [vmem:[#allocation263_spill] sm:$0xff] }
 0x2f0   :  { %4126 = vmatpush.bf16.msra.mxu0 %v13722_v10  ;;  %vm4056_vm11 = vmor %vm4054_vm10, %vm4055_vm9  ;;  %v13725_v10 = vld [vmem:[#allocation187_spill] sm:$0xff]  ;;  %v3716_v9 = vpop.f32.mrf.mxu0 }
 0x2f1   :  { %13719 = vst [vmem:[#allocation45_spill] sm:$0xff] %v11045_v22  ;;  %v4051_v26 = vsub.f32 1.0, %v4050_v1  ;;  %8359 = vtanh.f32 %v11045_v22  ;;  %v4061_v1 = vor.u32 1.1754944e-38, %v4060_v49  ;;  %v13731_v49 = vld [vmem:[#allocation321_spill] sm:$0xff]  ;;  %v13808_v28 = vld [vmem:[#allocation303_spill] sm:$0xff] }
 0x2f2   :  { %4355 = vmatpush.bf16.msra.mxu2 %v13716_v56  ;;  %4368 = vmatpush.bf16.msra.mxu3 %v13718_v5  ;;  %v13727_v5 = vld [vmem:[#allocation192_spill] sm:$0xff]  ;;  %v13805_v22 = vld [vmem:[#allocation309_spill] sm:$0xff]  ;;  %v13806_v56 = vld [vmem:[#allocation311_spill] sm:$0xff] }
 0x2f3   :  { %v4052_v0 = vmul.f32 %v8358_v11, %v4051_v26  ;;  %4137 = vmatpush.bf16.msra.mxu1 %v13724_v42  ;;  %4127 = vmatmul.bf16.vlgmr.msra.gmra.mxu0 %v10850_v6 }
 0x2f4   :  { %4171 = vmatpush.bf16.msrb.mxu0 %v13723_v33  ;;  %v13726_v33 = vld [vmem:[#allocation177_spill] sm:$0xff] }
 0x2f5   :  { %v4053_v52 = vadd.f32 %v8358_v11, %v4052_v0 }
 0x2f6   :  { %4356 = vmatpush.bf16.msra.mxu2 %v13721_v38  ;;  %4369 = vmatpush.bf16.msra.mxu3 %v10096_v3 }
 0x2f7   :  { %v4057_v3 = vsel %vm4056_vm11, %v8358_v11, %v4053_v52  ;;  %4138 = vmatpush.bf16.msra.mxu1 %v13726_v33  ;;  %v8360_v26 = vpop.eup %8359  ;;  %v13729_v11 = vld [vmem:[#allocation183_spill] sm:$0xff]  ;;  %v13734_v52 = vld [vmem:[#allocation325_spill] sm:$0xff] }
 0x2f8   :  { %4172 = vmatpush.bf16.msrb.mxu0 %v13725_v10  ;;  %v4062_v37 = vsel %vm4059_vm12, %v4061_v1, %v4057_v3  ;;  %v13730_v3 = vld [vmem:[#allocation196_spill] sm:$0xff]  ;;  %v13764_v33 = vld [vmem:[#allocation231_spill] sm:$0xff] }
 0x2f9   :  { %v4087_v42 = vmul.f32 %v8360_v26, %v4062_v37  ;;  %v8280_v37 = vld [vmem:[#allocation10] ss:$0 sm:$0xff]  ;;  %v13735_v1 = vld [vmem:[#allocation200_spill] sm:$0xff]  ;;  %v3782_v26 = vpop.f32.mrf.mxu0 }
 0x2fa   :  { %4357 = vmatpush.bf16.msra.mxu2 %v10109_v13  ;;  %4370 = vmatpush.bf16.msra.mxu3 %v10123_v54  ;;  %v13728_v54 = vld [vmem:[#allocation181_spill] sm:$0xff]  ;;  %v13779_v13 = vld [vmem:[#allocation375_spill] sm:$0xff] }
 0x2fb   :  { %v11062_v0 = vpack.c.bf16 %v4087_v42, %v4087_v42  ;;  %4139 = vmatpush.bf16.msra.mxu1 %v13728_v54  ;;  %v13733_v42 = vld [vmem:[#allocation322_spill] sm:$0xff]  ;;  %v13738_v54 = vld [vmem:[#allocation204_spill] sm:$0xff] }
 0x2fc   :  { %4173 = vmatpush.bf16.msrb.mxu0 %v13727_v5  ;;  %v11076_v5 = vpop.f32.mrf.mxu2 }
 0x2fd   :  { %4309 = vmatmul.bf16.vlgmr.msrb.gmra.mxu2 %v11062_v0 }
 0x2fe   :  { %4358 = vmatpush.bf16.msra.mxu2 %v10132_v30  ;;  %4371 = vmatpush.bf16.msra.mxu3 %v10146_v51  ;;  %v3717_v51 = vadd.f32 %v8280_v37, %v3716_v9  ;;  %v13769_v30 = vld [vmem:[#allocation362_spill] sm:$0xff] }
 0x2ff   :  { %4184 = vmatpush.bf16.msrb.mxu1 %v13729_v11  ;;  %v13737_v11 = vld [vmem:[#allocation326_spill] sm:$0xff] }
 0x300   :  { %4174 = vmatpush.bf16.msrb.mxu0 %v13730_v3  ;;  %4140 = vmatmul.bf16.vlgmr.msra.gmra.mxu1 %v10867_v60  ;;  %v3736_v3 = vpop.f32.mrf.mxu1 }
 0x301   :  { %v3737_v10 = vadd.f32 %v3736_v3, %v3717_v51  ;;  %v13745_v3 = vld [vmem:[#allocation333_spill] sm:$0xff] }
 0x302   :  { %4359 = vmatpush.bf16.msra.mxu2 %v10155_v19  ;;  %4372 = vmatpush.bf16.msra.mxu3 %v10168_v47  ;;  %v13736_v47 = vld [vmem:[#allocation193_spill] sm:$0xff]  ;;  %v11085_v37 = vpop.f32.mrf.mxu3 }
 0x303   :  { %4185 = vmatpush.bf16.msrb.mxu1 %v13732_v58  ;;  %8361 = vtanh.f32 %v3737_v10  ;;  %v13739_v58 = vld [vmem:[#allocation197_spill] sm:$0xff]  ;;  %v13744_v10 = vld [vmem:[#allocation212_spill] sm:$0xff] }
 0x304   :  { %4175 = vmatpush.bf16.msrb.mxu0 %v13735_v1  ;;  %v3784_v1 = vpop.f32.mrf.mxu0  ;;  %v13742_v19 = vld [vmem:[#allocation201_spill] sm:$0xff] }
 0x305   :  { %v13747_v1 = vld [vmem:[#allocation205_spill] sm:$0xff] }
 0x306   :  { %4360 = vmatpush.bf16.msra.mxu2 %v13731_v49  ;;  %4373 = vmatpush.bf16.msra.mxu3 %v13734_v52  ;;  %v13741_v52 = vld [vmem:[#allocation208_spill] sm:$0xff]  ;;  %v4104_v49 = vpop.f32.mrf.mxu2 }
 0x307   :  { %4186 = vmatpush.bf16.msrb.mxu1 %v13736_v47  ;;  %v13746_v49 = vld [vmem:[#allocation214_spill] sm:$0xff] }
 0x308   :  { %4176 = vmatpush.bf16.msrb.mxu0 %v13738_v54  ;;  %v3795_v9 = vpop.f32.mrf.mxu1 }
 0x309   :  { %v11087_v47 = vpop.eup %8361  ;;  %v11090_v51 = vadd.f32 %v3795_v9, %v3782_v26  ;;  %v13749_v9 = vld [vmem:[#allocation220_spill] sm:$0xff] }
 0x30a   :  { %4405 = vmatpush.bf16.msrb.mxu2 %v13733_v42  ;;  %v13740_v42 = vld [vmem:[#allocation329_spill] sm:$0xff]  ;;  %13743 = vst [vmem:[#allocation34_spill] sm:$0xff] %v11087_v47 }
 0x30b   :  { %4187 = vmatpush.bf16.msrb.mxu1 %v13739_v58  ;;  %3741 = vst.msk [vmem:[%s12334_s12] sm:$0x3] %vm3740_vm13, %v11087_v47  ;;  %v4117_v47 = vpop.f32.mrf.mxu3  ;;  %v13751_v58 = vld [vmem:[#allocation339_spill] sm:$0xff] }
 0x30c   :  { %4177 = vmatpush.bf16.msrb.mxu0 %v13741_v52  ;;  %v13748_v52 = vld [vmem:[#allocation336_spill] sm:$0xff]  ;;  %v13758_v47 = vld [vmem:[#allocation349_spill] sm:$0xff] }
 0x30d   :  { %4361 = vmatmul.bf16.vlgmr.msra.gmra.mxu2 %v11062_v0 }
 0x30e   :  { %4406 = vmatpush.bf16.msrb.mxu2 %v13737_v11  ;;  %v11103_v26 = vpop.f32.mrf.mxu2  ;;  %v13756_v11 = vld [vmem:[#allocation230_spill] sm:$0xff] }
 0x30f   :  { %4188 = vmatpush.bf16.msrb.mxu1 %v13742_v19  ;;  %v13750_v19 = vld [vmem:[#allocation209_spill] sm:$0xff] }
 0x310   :  { %4178 = vmatpush.bf16.msrb.mxu0 %v13744_v10  ;;  %v3797_v54 = vpop.f32.mrf.mxu1  ;;  %v13752_v10 = vld [vmem:[#allocation225_spill] sm:$0xff] }
 0x311   :  { %v13757_v54 = vld [vmem:[#allocation221_spill] sm:$0xff] }
 0x312   :  { %4407 = vmatpush.bf16.msrb.mxu2 %v13740_v42  ;;  %v13755_v42 = vld [vmem:[#allocation343_spill] sm:$0xff] }
 0x313   :  { %4189 = vmatpush.bf16.msrb.mxu1 %v13747_v1  ;;  %4179 = vmatmul.bf16.vlgmr.msrb.gmra.mxu0 %v10850_v6  ;;  %v3834_v1 = vpop.f32.mrf.mxu0 }
 0x314   :  { %4223 = vmatpush.bf16.msra.mxu0 %v13746_v49  ;;  %v13754_v49 = vld [vmem:[#allocation215_spill] sm:$0xff] }
 0x316   :  { %4408 = vmatpush.bf16.msrb.mxu2 %v13745_v3  ;;  %v13753_v3 = vld [vmem:[#allocation213_spill] sm:$0xff] }
 0x317   :  { %4190 = vmatpush.bf16.msrb.mxu1 %v13750_v19  ;;  %v13759_v19 = vld [vmem:[#allocation234_spill] sm:$0xff] }
 0x318   :  { %4224 = vmatpush.bf16.msra.mxu0 %v13749_v9  ;;  %v11114_v9 = vpop.f32.mrf.mxu3 }
 0x31a   :  { %4409 = vmatpush.bf16.msrb.mxu2 %v13748_v52  ;;  %v4156_v52 = vpop.f32.mrf.mxu2 }
 0x31b   :  { %4191 = vmatpush.bf16.msrb.mxu1 %v13753_v3  ;;  %v3836_v3 = vpop.f32.mrf.mxu0  ;;  %v13762_v52 = vld [vmem:[#allocation238_spill] sm:$0xff] }
 0x31c   :  { %4225 = vmatpush.bf16.msra.mxu0 %v13752_v10  ;;  %v13760_v10 = vld [vmem:[#allocation350_spill] sm:$0xff] }
 0x31e   :  { %4410 = vmatpush.bf16.msrb.mxu2 %v13751_v58  ;;  %4192 = vmatmul.bf16.vlgmr.msrb.gmra.mxu1 %v10867_v60 }
 0x31f   :  { %4236 = vmatpush.bf16.msra.mxu1 %v13754_v49  ;;  %v13761_v49 = vld [vmem:[#allocation227_spill] sm:$0xff] }
 0x320   :  { %4226 = vmatpush.bf16.msra.mxu0 %v13756_v11  ;;  %v13763_v11 = vld [vmem:[#allocation354_spill] sm:$0xff]  ;;  %v4169_v58 = vpop.f32.mrf.mxu3 }
 0x322   :  { %4411 = vmatpush.bf16.msrb.mxu2 %v13755_v42  ;;  %v3847_v42 = vpop.f32.mrf.mxu1 }
 0x323   :  { %4237 = vmatpush.bf16.msra.mxu1 %v13757_v54  ;;  %v13765_v54 = vld [vmem:[#allocation242_spill] sm:$0xff] }
 0x324   :  { %4227 = vmatpush.bf16.msra.mxu0 %v13759_v19  ;;  %v13767_v19 = vld [vmem:[#allocation235_spill] sm:$0xff] }
 0x326   :  { %4412 = vmatpush.bf16.msrb.mxu2 %v13758_v47  ;;  %v13766_v47 = vld [vmem:[#allocation358_spill] sm:$0xff] }
 0x327   :  { %4238 = vmatpush.bf16.msra.mxu1 %v13761_v49  ;;  %v13770_v49 = vld [vmem:[#allocation248_spill] sm:$0xff] }
 0x328   :  { %4228 = vmatpush.bf16.msra.mxu0 %v13762_v52  ;;  %v13771_v52 = vld [vmem:[#allocation239_spill] sm:$0xff] }
 0x329   :  { %4413 = vmatmul.bf16.vlgmr.msrb.gmra.mxu2 %v11062_v0 }
 0x32a   :  { %4457 = vmatpush.bf16.msra.mxu2 %v13760_v10  ;;  %v13768_v10 = vld [vmem:[#allocation246_spill] sm:$0xff]  ;;  %v3849_v3 = vpop.f32.mrf.mxu1 }
 0x32b   :  { %4239 = vmatpush.bf16.msra.mxu1 %v13764_v33  ;;  %v13772_v33 = vld [vmem:[#allocation366_spill] sm:$0xff] }
 0x32c   :  { %4229 = vmatpush.bf16.msra.mxu0 %v13765_v54  ;;  %v11133_v58 = vpop.f32.mrf.mxu2  ;;  %v11136_v54 = vpop.f32.mrf.mxu3 }
 0x32e   :  { %4458 = vmatpush.bf16.msra.mxu2 %v13763_v11 }
 0x32f   :  { %4240 = vmatpush.bf16.msra.mxu1 %v13767_v19  ;;  %v13774_v19 = vld [vmem:[#allocation243_spill] sm:$0xff] }
 0x330   :  { %4230 = vmatpush.bf16.msra.mxu0 %v13768_v10  ;;  %v13775_v10 = vld [vmem:[#allocation370_spill] sm:$0xff]  ;;  %v11144_v11 = vpop.f32.mrf.mxu0 }
 0x332   :  { %4459 = vmatpush.bf16.msra.mxu2 %v13766_v47  ;;  %v13773_v47 = vld [vmem:[#allocation253_spill] sm:$0xff] }
 0x333   :  { %4241 = vmatpush.bf16.msra.mxu1 %v13771_v52  ;;  %4231 = vmatmul.bf16.vlgmr.msra.gmra.mxu0 %v10850_v6  ;;  %v13778_v52 = vld [vmem:[#allocation249_spill] sm:$0xff] }
 0x334   :  { %4275 = vmatpush.bf16.msrb.mxu0 %v13770_v49  ;;  %v13777_v49 = vld [vmem:[#allocation247_spill] sm:$0xff]  ;;  %v4208_v3 = vpop.f32.mrf.mxu2 }
 0x335   :  { %v8479_v3 = vld [vmem:[%s12332_s10 + $0x78] sm:$0xff] }
 0x336   :  { %4460 = vmatpush.bf16.msra.mxu2 %v13769_v30  ;;  %v13776_v30 = vld [vmem:[#allocation258_spill] sm:$0xff] }
 0x337   :  { %4242 = vmatpush.bf16.msra.mxu1 %v13774_v19  ;;  %v13781_v19 = vld [vmem:[#allocation254_spill] sm:$0xff] }
 0x338   :  { %4276 = vmatpush.bf16.msrb.mxu0 %v13773_v47  ;;  %v3848_v47 = vadd.f32 %v3847_v42, %v3834_v1  ;;  %v3888_v42 = vpop.f32.mrf.mxu0  ;;  %v8480_v1 = vld [vmem:[%s12332_s10 + $0x70] sm:$0xff] }
 0x339   :  { %v8482_v42 = vld [vmem:[%s12332_s10 + $0x60] sm:$0xff] }
 0x33a   :  { %4461 = vmatpush.bf16.msra.mxu2 %v13772_v33  ;;  %v4221_v33 = vpop.f32.mrf.mxu3 }
 0x33b   :  { %4243 = vmatpush.bf16.msra.mxu1 %v13777_v49  ;;  %v13785_v33 = vld [vmem:[#allocation265_spill] sm:$0xff] }
 0x33c   :  { %4277 = vmatpush.bf16.msrb.mxu0 %v13776_v30  ;;  %v13783_v30 = vld [vmem:[#allocation268_spill] sm:$0xff] }
 0x33e   :  { %4462 = vmatpush.bf16.msra.mxu2 %v13775_v10  ;;  %4244 = vmatmul.bf16.vlgmr.msra.gmra.mxu1 %v10867_v60  ;;  %v13782_v10 = vld [vmem:[#allocation381_spill] sm:$0xff] }
 0x33f   :  { %4288 = vmatpush.bf16.msrb.mxu1 %v13778_v52  ;;  %v13784_v52 = vld [vmem:[#allocation261_spill] sm:$0xff] }
 0x340   :  { %4278 = vmatpush.bf16.msrb.mxu0 %v13780_v14  ;;  %v3956_v49 = vadd.f32 %v11090_v51, %v13784_v52  ;;  %v13786_v14 = vld [vmem:[#allocation259_spill] sm:$0xff]  ;;  %v8481_v51 = vld [vmem:[%s12332_s10 + $0x68] sm:$0xff] }
 0x341   :  { %v13796_v52 = vld [vmem:[#allocation293_spill] sm:$0xff] }
 0x342   :  { %4463 = vmatpush.bf16.msra.mxu2 %v13779_v13  ;;  %v3958_v13 = vadd.f32 %v3848_v47, %v13785_v33  ;;  %v13789_v33 = vld [vmem:[#allocation278_spill] sm:$0xff] }
 0x343   :  { %4289 = vmatpush.bf16.msrb.mxu1 %v13781_v19  ;;  %v7801_v19 = vmul.f32 -1.442695, %v3956_v49  ;;  %v8483_v49 = vld [vmem:[%s12332_s10 + $0x58] sm:$0xff] }
 0x344   :  { %4279 = vmatpush.bf16.msrb.mxu0 %v13783_v30  ;;  %v13787_v30 = vld [vmem:[#allocation273_spill] sm:$0xff]  ;;  %v7803_v47 = vmul.f32 -1.442695, %v3958_v13 }
 0x345   :  { %8363 = vpow2.f32 %v7801_v19  ;;  %v8484_v13 = vld [vmem:[%s12332_s10 + $0x50] sm:$0xff]  ;;  %v8485_v19 = vld [vmem:[%s12332_s10 + $0x48] sm:$0xff] }
 0x346   :  { %4464 = vmatpush.bf16.msra.mxu2 %v13782_v10  ;;  %v11164_v10 = vpop.f32.mrf.mxu1  ;;  %8365 = vpow2.f32 %v7803_v47 }
 0x347   :  { %4290 = vmatpush.bf16.msrb.mxu1 %v13786_v14 }
 0x348   :  { %4280 = vmatpush.bf16.msrb.mxu0 %v13787_v30  ;;  %v13792_v30 = vld [vmem:[#allocation283_spill] sm:$0xff] }
 0x349   :  { %4465 = vmatmul.bf16.vlgmr.msra.gmra.mxu2 %v11062_v0 }
 0x34a   :  { %4643 = vmatpush.msrb.mxu2 %v8479_v3  ;;  %v13788_v3 = vld [vmem:[#allocation264_spill] sm:$0xff] }
 0x34b   :  { %4291 = vmatpush.bf16.msrb.mxu1 %v13788_v3  ;;  %v8364_v47 = vpop.eup %8363  ;;  %v13799_v3 = vld [vmem:[#allocation298_spill] sm:$0xff] }
 0x34c   :  { %4644 = vmatpush.msrb.mxu2 %v8480_v1  ;;  %4281 = vmatpush.bf16.msrb.mxu0 %v13789_v33  ;;  %v13790_v1 = vld [vmem:[#allocation269_spill] sm:$0xff]  ;;  %v13793_v33 = vld [vmem:[#allocation275_spill] sm:$0xff] }
 0x34e   :  { %4645 = vmatpush.msrb.mxu2 %v8481_v51  ;;  %v13791_v51 = vld [vmem:[#allocation281_spill] sm:$0xff] }
 0x34f   :  { %4292 = vmatpush.bf16.msrb.mxu1 %v13790_v1 }
 0x350   :  { %4646 = vmatpush.msrb.mxu2 %v8482_v42  ;;  %4282 = vmatpush.bf16.msrb.mxu0 %v13791_v51  ;;  %v3901_v42 = vpop.f32.mrf.mxu1  ;;  %v11191_v51 = vpop.f32.mrf.mxu2 }
 0x351   :  { %v13794_v42 = vld [vmem:[#allocation288_spill] sm:$0xff] }
 0x352   :  { %4647 = vmatpush.msrb.mxu2 %v8483_v49  ;;  %v8486_v49 = vld [vmem:[%s12332_s10 + $0x40] sm:$0xff] }
 0x353   :  { %4293 = vmatpush.bf16.msrb.mxu1 %v13793_v33  ;;  %4283 = vmatmul.bf16.vlgmr.msrb.gmra.mxu0 %v10850_v6  ;;  %v11199_v33 = vadd.f32 1.0, %v8364_v47  ;;  %v13795_v6 = vld [vmem:[#allocation279_spill] sm:$0xff]  ;;  %v13797_v47 = vld [vmem:[#allocation282_spill] sm:$0xff] }
 0x354   :  { %4648 = vmatpush.msrb.mxu2 %v8484_v13  ;;  %4327 = vmatpush.bf16.msra.mxu0 %v13792_v30  ;;  %v8366_v13 = vpop.eup %8365  ;;  %v11193_v30 = vpop.f32.mrf.mxu3 }
 0x355   :  { %v11202_v1 = vadd.f32 1.0, %v8366_v13  ;;  %8367 = vrcp.f32 %v11199_v33  ;;  %v13798_v13 = vld [vmem:[#allocation284_spill] sm:$0xff]  ;;  %vm3991_vm0 = vweird.f32 %v11199_v33 }
 0x356   :  { %4649 = vmatpush.msrb.mxu2 %v8485_v19  ;;  %v8487_v19 = vld [vmem:[%s12332_s10 + $0x38] sm:$0xff] }
 0x357   :  { %4294 = vmatpush.bf16.msrb.mxu1 %v13795_v6  ;;  %8369 = vrcp.f32 %v11202_v1  ;;  %vm4029_vm1 = vweird.f32 %v11202_v1 }
 0x358   :  { %4650 = vmatpush.msrb.mxu2 %v8486_v49  ;;  %4328 = vmatpush.bf16.msra.mxu0 %v13794_v42  ;;  %v8488_v49 = vld [vmem:[%s12332_s10 + $0x30] sm:$0xff]  ;;  %v8489_v42 = vld [vmem:[%s12332_s10 + $0x28] sm:$0xff] }
 0x35a   :  { %4651 = vmatpush.msrb.mxu2 %v8487_v19  ;;  %v8490_v19 = vld [vmem:[%s12332_s10 + $0x20] sm:$0xff] }
 0x35b   :  { %4295 = vmatpush.bf16.msrb.mxu1 %v13797_v47  ;;  %v13800_v47 = vld [vmem:[#allocation289_spill] sm:$0xff] }
 0x35c   :  { %4652 = vmatpush.msrb.mxu2 %v8488_v49  ;;  %4329 = vmatpush.bf16.msra.mxu0 %v13796_v52  ;;  %v3938_v49 = vpop.f32.mrf.mxu0  ;;  %v4260_v52 = vpop.f32.mrf.mxu2 }
 0x35d   :  { %v4273_v6 = vpop.f32.mrf.mxu3  ;;  %v3951_v27 = vpop.f32.mrf.mxu1 }
 0x35e   :  { %4653 = vmatpush.msrb.mxu2 %v8489_v42  ;;  %4296 = vmatmul.bf16.vlgmr.msrb.gmra.mxu1 %v10867_v60  ;;  %v8491_v42 = vld [vmem:[%s12332_s10 + $0x18] sm:$0xff]  ;;  %v8493_v60 = vld [vmem:[%s12332_s10 + $0x8] sm:$0xff] }
 0x35f   :  { %4340 = vmatpush.bf16.msra.mxu1 %v13798_v13  ;;  %v11224_v13 = vpop.eup %8367  ;;  %v13801_v6 = vld [vmem:[#allocation302_spill] sm:$0xff] }
 0x360   :  { %4654 = vmatpush.msrb.mxu2 %v8490_v19  ;;  %4330 = vmatpush.bf16.msra.mxu0 %v13799_v3  ;;  %v8492_v19 = vld [vmem:[%s12332_s10 + $0x10] sm:$0xff]  ;;  %v11229_v52 = vpop.eup %8369  ;;  %vm3992_vm14 = vweird.f32 %v11224_v13 }
 0x361   :  { %v13802_v3 = vld [vmem:[#allocation294_spill] sm:$0xff]  ;;  %vm4030_vm15 = vweird.f32 %v11229_v52  ;;  %vm11269_vm2 = vmor %vm3991_vm0, %vm3992_vm14 }
 0x362   :  { %4655 = vmatpush.msrb.mxu2 %v8491_v42  ;;  %v3987_v42 = vmul.f32 %v11224_v13, %v11199_v33  ;;  %vm4031_vm3 = vmor %vm4029_vm1, %vm4030_vm15 }
 0x363   :  { %4341 = vmatpush.bf16.msra.mxu1 %v13800_v47  ;;  %v4025_v47 = vmul.f32 %v11229_v52, %v11202_v1 }
 0x364   :  { %4656 = vmatpush.msrb.mxu2 %v8492_v19  ;;  %4331 = vmatpush.bf16.msra.mxu0 %v13801_v6  ;;  %v3940_v14 = vpop.f32.mrf.mxu0  ;;  %v8494_v19 = vld [vmem:[%s12332_s10] sm:$0xff]  ;;  %v13803_v6 = vld [vmem:[#allocation306_spill] sm:$0xff]  ;;  %v3988_v38 = vsub.f32 1.0, %v3987_v42 }
 0x365   :  { %v4026_v29 = vsub.f32 1.0, %v4025_v47  ;;  %v13814_v42 = vld [vmem:[#allocation323_spill] sm:$0xff] }
 0x366   :  { %4657 = vmatpush.msrb.mxu2 %v8493_v60  ;;  %v3900_v60 = vadd.f32 %v11164_v10, %v11144_v11  ;;  %v3989_v11 = vmul.f32 %v11224_v13, %v3988_v38  ;;  %v13810_v10 = vld [vmem:[#allocation318_spill] sm:$0xff]  ;;  %v4035_v38 = vand.u32 2147483648, %v11202_v1 }
 0x367   :  { %4342 = vmatpush.bf16.msra.mxu1 %v13802_v3  ;;  %v3952_v3 = vadd.f32 %v3951_v27, %v3938_v49  ;;  %v13809_v27 = vld [vmem:[#allocation316_spill] sm:$0xff]  ;;  %v3995_v49 = vand.u32 2147483647, %v11199_v33 }
 0x368   :  { %4658 = vmatpush.msrb.mxu2 %v8494_v19  ;;  %4332 = vmatpush.bf16.msra.mxu0 %v13803_v6  ;;  %v13807_v19 = vld [vmem:[#allocation312_spill] sm:$0xff]  ;;  %v3990_v47 = vadd.f32 %v11224_v13, %v3989_v11 }
 0x369   :  { %v3962_v14 = vadd.f32 %v3952_v3, %v13805_v22  ;;  %v3960_v55 = vadd.f32 %v3900_v60, %v13807_v19  ;;  %v3953_v3 = vpop.f32.mrf.mxu1  ;;  %vm3996_vm4 = vcmp.eq.f32.partialorder %v3995_v49, 8.507059e+37 }
 0x36a   :  { %4716 = vmatpush.bf16.msra.mxu2 %v13532_v39  ;;  %v4027_v39 = vmul.f32 %v11229_v52, %v4026_v29 }
 0x36b   :  { %4343 = vmatpush.bf16.msra.mxu1 %v13804_v53  ;;  %v7805_v6 = vmul.f32 -1.442695, %v3962_v14  ;;  %v13815_v14 = vld [vmem:[#allocation313_spill] sm:$0xff] }
 0x36c   :  { %4333 = vmatpush.bf16.msra.mxu0 %v13806_v56  ;;  %v4028_v29 = vadd.f32 %v11229_v52, %v4027_v39 }
 0x36d   :  { %8371 = vpow2.f32 %v7805_v6  ;;  %v4033_v6 = vand.u32 2147483647, %v11202_v1 }
 0x36e   :  { %4717 = vmatpush.bf16.msra.mxu2 %v13535_v62  ;;  %8373 = vtanh.f32 %v3960_v55  ;;  %v13811_v62 = vld [vmem:[#allocation307_spill] sm:$0xff]  ;;  %v4032_v39 = vsel %vm4031_vm3, %v11229_v52, %v4028_v29  ;;  %v13819_v52 = vld [vmem:[#allocation332_spill] sm:$0xff]  ;;  %v13820_v29 = vld [vmem:[#allocation330_spill] sm:$0xff] }
 0x36f   :  { %4344 = vmatpush.bf16.msra.mxu1 %v13808_v28  ;;  %vm4034_vm5 = vcmp.eq.f32.partialorder %v4033_v6, 8.507059e+37  ;;  %v13818_v55 = vld [vmem:[#allocation319_spill] sm:$0xff] }
 0x370   :  { %4334 = vmatpush.bf16.msra.mxu0 %v13809_v27 }
 0x372   :  { %4718 = vmatpush.bf16.msra.mxu2 %v13539_v18  ;;  %v3997_v18 = vand.u32 2147483648, %v11199_v33  ;;  %v13816_v33 = vld [vmem:[#allocation327_spill] sm:$0xff] }
 0x373   :  { %4345 = vmatpush.bf16.msra.mxu1 %v13811_v62  ;;  %4335 = vmatmul.bf16.vlgmr.msra.gmra.mxu0 %v11062_v0  ;;  %v8372_v60 = vpop.eup %8371 }
 0x374   :  { %4379 = vmatpush.bf16.msrb.mxu0 %v13810_v10  ;;  %v4048_v11 = vadd.f32 1.0, %v8372_v60  ;;  %v8374_v3 = vpop.eup %8373  ;;  %v4036_v10 = vor.u32 1.1754944e-38, %v4035_v38  ;;  %v3998_v27 = vor.u32 1.1754944e-38, %v3997_v18  ;;  %v13821_v18 = vld [vmem:[#allocation324_spill] sm:$0xff] }
 0x375   :  { %v13823_v60 = vld [vmem:[#allocation328_spill] sm:$0xff] }
 0x376   :  { %4719 = vmatpush.bf16.msra.mxu2 %v13542_v23  ;;  %v3994_v23 = vsel %vm11269_vm2, %v11224_v13, %v3990_v47  ;;  %8375 = vrcp.f32 %v4048_v11  ;;  %v4128_v13 = vpop.f32.mrf.mxu0  ;;  %v4075_v6 = vand.u32 2147483648, %v4048_v11  ;;  %vm4069_vm7 = vweird.f32 %v4048_v11 }
 0x377   :  { %4346 = vmatpush.bf16.msra.mxu1 %v13815_v14  ;;  %v3999_v1 = vsel %vm3996_vm4, %v3998_v27, %v3994_v23  ;;  %v13817_v14 = vld [vmem:[#allocation317_spill] sm:$0xff]  ;;  %v13822_v27 = vld [vmem:[#allocation334_spill] sm:$0xff] }
 0x378   :  { %4380 = vmatpush.bf16.msrb.mxu0 %v13814_v42  ;;  %v4037_v42 = vsel %vm4034_vm5, %v4036_v10, %v4032_v39  ;;  %v4082_v19 = vmul.f32 %v8374_v3, %v3999_v1 }
 0x379   :  { %v4080_v47 = vmul.f32 %v4037_v42, %v13819_v52  ;;  %v4073_v42 = vand.u32 2147483647, %v4048_v11  ;;  %v13825_v52 = vld [vmem:[#allocation331_spill] sm:$0xff] }
 0x37a   :  { %4720 = vmatpush.bf16.msra.mxu2 %v13548_v57 }
 0x37b   :  { %4347 = vmatpush.bf16.msra.mxu1 %v13817_v14  ;;  %v11288_v38 = vadd.f32 %v4082_v19, %v4080_v47  ;;  %v13824_v19 = vld [vmem:[#allocation337_spill] sm:$0xff]  ;;  %vm4074_vm9 = vcmp.eq.f32.partialorder %v4073_v42, 8.507059e+37  ;;  %v13831_v42 = vld [vmem:[#allocation338_spill] sm:$0xff] }
 0x37c   :  { %4381 = vmatpush.bf16.msrb.mxu0 %v13816_v33  ;;  %v8376_v57 = vpop.eup %8375 }
 0x37d   :  { %v4065_v49 = vmul.f32 %v8376_v57, %v4048_v11  ;;  %8377 = vtanh.f32 %v11288_v38  ;;  %vm4070_vm6 = vweird.f32 %v8376_v57  ;;  %v4141_v3 = vpop.f32.mrf.mxu1  ;;  %v13828_v11 = vld [vmem:[#allocation344_spill] sm:$0xff] }
 0x37e   :  { %4721 = vmatpush.bf16.msra.mxu2 %v13553_v25  ;;  %v4130_v23 = vpop.f32.mrf.mxu0  ;;  %vm4071_vm8 = vmor %vm4069_vm7, %vm4070_vm6  ;;  %v11297_v1 = vadd.f32 %v4141_v3, %v4128_v13 }
 0x37f   :  { %4392 = vmatpush.bf16.msrb.mxu1 %v13818_v55  ;;  %v4066_v10 = vsub.f32 1.0, %v4065_v49 }
 0x380   :  { %4382 = vmatpush.bf16.msrb.mxu0 %v13820_v29 }
 0x381   :  { %v4067_v25 = vmul.f32 %v8376_v57, %v4066_v10 }
 0x382   :  { %4722 = vmatpush.bf16.msra.mxu2 %v13558_v16  ;;  %v4076_v16 = vor.u32 1.1754944e-38, %v4075_v6  ;;  %v13829_v6 = vld [vmem:[#allocation346_spill] sm:$0xff] }
 0x383   :  { %4393 = vmatpush.bf16.msrb.mxu1 %v13821_v18  ;;  %v4068_v39 = vadd.f32 %v8376_v57, %v4067_v25  ;;  %v8378_v49 = vpop.eup %8377 }
 0x384   :  { %4383 = vmatpush.bf16.msrb.mxu0 %v13822_v27  ;;  %v13826_v27 = vld [vmem:[#allocation340_spill] sm:$0xff] }
 0x385   :  { %v4072_v47 = vsel %vm4071_vm8, %v8376_v57, %v4068_v39  ;;  %v4143_v13 = vpop.f32.mrf.mxu1  ;;  %v13830_v57 = vld [vmem:[#allocation342_spill] sm:$0xff]  ;;  %v13832_v39 = vld [vmem:[#allocation351_spill] sm:$0xff] }
 0x386   :  { %4723 = vmatpush.bf16.msra.mxu2 %v13564_v7  ;;  %v4077_v10 = vsel %vm4074_vm9, %v4076_v16, %v4072_v47  ;;  %v13827_v7 = vld [vmem:[#allocation335_spill] sm:$0xff]  ;;  %v13833_v16 = vld [vmem:[#allocation348_spill] sm:$0xff]  ;;  %v13834_v47 = vld [vmem:[#allocation341_spill] sm:$0xff] }
 0x387   :  { %4394 = vmatpush.bf16.msrb.mxu1 %v13823_v60  ;;  %v4088_v23 = vmul.f32 %v8378_v49, %v4077_v10  ;;  %v11301_v60 = vpop.f32.mrf.mxu2  ;;  %v13835_v49 = vld [vmem:[#allocation355_spill] sm:$0xff]  ;;  %v13836_v10 = vld [vmem:[#allocation353_spill] sm:$0xff] }
 0x388   :  { %4384 = vmatpush.bf16.msrb.mxu0 %v13824_v19 }
 0x389   :  { %v11304_v25 = vpack.c.bf16 %v4088_v23, %v4088_v23  ;;  %v13837_v23 = vld [vmem:[#allocation345_spill] sm:$0xff] }
 0x38b   :  { %4395 = vmatpush.bf16.msrb.mxu1 %v13825_v52  ;;  %4322 = vmatmul.bf16.vlgmr.msrb.gmra.mxu3 %v11304_v25 }
 0x38c   :  { %4385 = vmatpush.bf16.msrb.mxu0 %v13826_v27  ;;  %4348 = vmatmul.bf16.vlgmr.msra.gmra.mxu1 %v11304_v25  ;;  %v13849_v27 = vld [vmem:[#allocation368_spill] sm:$0xff] }
 0x38d   :  { %4418 = vmatpush.bf16.msrb.mxu3 %v13830_v57  ;;  %v13839_v57 = vld [vmem:[#allocation359_spill] sm:$0xff] }
 0x38f   :  { %4396 = vmatpush.bf16.msrb.mxu1 %v13827_v7  ;;  %v4312_v3 = vpop.f32.mrf.mxu2  ;;  %v13850_v7 = vld [vmem:[#allocation365_spill] sm:$0xff] }
 0x390   :  { %4386 = vmatpush.bf16.msrb.mxu0 %v13828_v11  ;;  %v4180_v13 = vpop.f32.mrf.mxu0  ;;  %v13841_v3 = vld [vmem:[#allocation352_spill] sm:$0xff] }
 0x391   :  { %4419 = vmatpush.bf16.msrb.mxu3 %v13833_v16  ;;  %v13844_v16 = vld [vmem:[#allocation356_spill] sm:$0xff] }
 0x393   :  { %4387 = vmatmul.bf16.vlgmr.msrb.gmra.mxu0 %v11062_v0  ;;  %4397 = vmatpush.bf16.msrb.mxu1 %v13831_v42  ;;  %v13840_v42 = vld [vmem:[#allocation357_spill] sm:$0xff] }
 0x394   :  { %4431 = vmatpush.bf16.msra.mxu0 %v13829_v6  ;;  %v13838_v6 = vld [vmem:[#allocation347_spill] sm:$0xff] }
 0x395   :  { %4420 = vmatpush.bf16.msrb.mxu3 %v13836_v10 }
 0x397   :  { %4398 = vmatpush.bf16.msrb.mxu1 %v13834_v47  ;;  %v11321_v11 = vpop.f32.mrf.mxu2 }
 0x398   :  { %4432 = vmatpush.bf16.msra.mxu0 %v13832_v39  ;;  %v13842_v39 = vld [vmem:[#allocation363_spill] sm:$0xff]  ;;  %v4182_v10 = vpop.f32.mrf.mxu0 }
 0x399   :  { %4421 = vmatpush.bf16.msrb.mxu3 %v13840_v42  ;;  %v13852_v10 = vld [vmem:[#allocation377_spill] sm:$0xff] }
 0x39b   :  { %4399 = vmatpush.bf16.msrb.mxu1 %v13837_v23  ;;  %4374 = vmatmul.bf16.vlgmr.msra.gmra.mxu3 %v11304_v25  ;;  %v13846_v23 = vld [vmem:[#allocation364_spill] sm:$0xff]  ;;  %v4193_v47 = vpop.f32.mrf.mxu1 }
 0x39c   :  { %4433 = vmatpush.bf16.msra.mxu0 %v13835_v49  ;;  %v13843_v49 = vld [vmem:[#allocation360_spill] sm:$0xff]  ;;  %v11332_v42 = vadd.f32 %v4193_v47, %v4180_v13  ;;  %v13855_v47 = vld [vmem:[#allocation369_spill] sm:$0xff] }
 0x39d   :  { %4422 = vmatpush.bf16.msrb.mxu3 %v13843_v49  ;;  %v13851_v49 = vld [vmem:[#allocation376_spill] sm:$0xff] }
 0x39e   :  { %4400 = vmatmul.bf16.vlgmr.msrb.gmra.mxu1 %v11304_v25 }
 0x39f   :  { %4444 = vmatpush.bf16.msra.mxu1 %v13838_v6  ;;  %v13845_v6 = vld [vmem:[#allocation367_spill] sm:$0xff] }
 0x3a0   :  { %4434 = vmatpush.bf16.msra.mxu0 %v13839_v57  ;;  %v4364_v57 = vpop.f32.mrf.mxu2 }
 0x3a1   :  { %4423 = vmatpush.bf16.msrb.mxu3 %v13846_v23  ;;  %v13863_v23 = vld [vmem:[#allocation388_spill] sm:$0xff] }
 0x3a3   :  { %4445 = vmatpush.bf16.msra.mxu1 %v13841_v3  ;;  %v13847_v3 = vld [vmem:[#allocation361_spill] sm:$0xff]  ;;  %v4195_v57 = vpop.f32.mrf.mxu1 }
 0x3a4   :  { %4435 = vmatpush.bf16.msra.mxu0 %v13842_v39  ;;  %v13848_v39 = vld [vmem:[#allocation371_spill] sm:$0xff]  ;;  %v13861_v57 = vld [vmem:[#allocation378_spill] sm:$0xff] }
 0x3a5   :  { %4424 = vmatpush.bf16.msrb.mxu3 %v13849_v27  ;;  %v13857_v27 = vld [vmem:[#allocation379_spill] sm:$0xff] }
 0x3a7   :  { %4446 = vmatpush.bf16.msra.mxu1 %v13844_v16  ;;  %v13853_v16 = vld [vmem:[#allocation372_spill] sm:$0xff] }
 0x3a8   :  { %4436 = vmatpush.bf16.msra.mxu0 %v13845_v6  ;;  %v13854_v6 = vld [vmem:[#allocation374_spill] sm:$0xff] }
 0x3a9   :  { %4425 = vmatpush.bf16.msrb.mxu3 %v13853_v16  ;;  %v13860_v16 = vld [vmem:[#allocation383_spill] sm:$0xff] }
 0x3ab   :  { %4447 = vmatpush.bf16.msra.mxu1 %v13847_v3  ;;  %v13864_v3 = vld [vmem:[#allocation386_spill] sm:$0xff] }
 0x3ac   :  { %4437 = vmatpush.bf16.msra.mxu0 %v13848_v39  ;;  %4426 = vmatmul.bf16.vlgmr.msrb.gmra.mxu3 %v11304_v25  ;;  %v11345_v13 = vpop.f32.mrf.mxu2  ;;  %v13856_v39 = vld [vmem:[#allocation382_spill] sm:$0xff] }
 0x3ad   :  { %4470 = vmatpush.bf16.msra.mxu3 %v13854_v6 }
 0x3af   :  { %4448 = vmatpush.bf16.msra.mxu1 %v13850_v7  ;;  %v13862_v7 = vld [vmem:[#allocation380_spill] sm:$0xff] }
 0x3b0   :  { %4438 = vmatpush.bf16.msra.mxu0 %v13851_v49  ;;  %v13858_v49 = vld [vmem:[#allocation373_spill] sm:$0xff]  ;;  %v4232_v6 = vpop.f32.mrf.mxu0 }
 0x3b1   :  { %4471 = vmatpush.bf16.msra.mxu3 %v13857_v27  ;;  %v13866_v27 = vld [vmem:[#allocation391_spill] sm:$0xff] }
 0x3b3   :  { %4439 = vmatmul.bf16.vlgmr.msra.gmra.mxu0 %v11062_v0  ;;  %4449 = vmatpush.bf16.msra.mxu1 %v13855_v47 }
 0x3b4   :  { %4483 = vmatpush.bf16.msrb.mxu0 %v13852_v10  ;;  %v13859_v10 = vld [vmem:[#allocation385_spill] sm:$0xff]  ;;  %v4416_v47 = vpop.f32.mrf.mxu2 }
 0x3b5   :  { %4472 = vmatpush.bf16.msra.mxu3 %v13860_v16  ;;  %v13868_v16 = vld [vmem:[#allocation387_spill] sm:$0xff] }
 0x3b7   :  { %4450 = vmatpush.bf16.msra.mxu1 %v13858_v49  ;;  %v13867_v49 = vld [vmem:[#allocation389_spill] sm:$0xff] }
 0x3b8   :  { %4484 = vmatpush.bf16.msrb.mxu0 %v13856_v39  ;;  %v13865_v39 = vld [vmem:[#allocation384_spill] sm:$0xff] }
 0x3b9   :  { %4473 = vmatpush.bf16.msra.mxu3 %v13864_v3  ;;  %v13870_v3 = vld [vmem:[#allocation392_spill] sm:$0xff] }
 0x3bb   :  { %4451 = vmatpush.bf16.msra.mxu1 %v13861_v57  ;;  %v4245_v47 = vpop.f32.mrf.mxu1 }
 0x3bc   :  { %4485 = vmatpush.bf16.msrb.mxu0 %v13859_v10  ;;  %v4234_v10 = vpop.f32.mrf.mxu0 }
 0x3bd   :  { %4474 = vmatpush.bf16.msra.mxu3 %v13867_v49 }
 0x3be   :  { %4452 = vmatmul.bf16.vlgmr.msra.gmra.mxu1 %v11304_v25 }
 0x3bf   :  { %4496 = vmatpush.bf16.msrb.mxu1 %v13862_v7  ;;  %v11363_v7 = vadd.f32 %v4245_v47, %v4232_v6  ;;  %v8495_v6 = vld [vmem:[%s12332_s10 + $0xf8] sm:$0xff] }
 0x3c0   :  { %4486 = vmatpush.bf16.msrb.mxu0 %v13863_v23  ;;  %v13869_v23 = vld [vmem:[#allocation390_spill] sm:$0xff] }
 0x3c1   :  { %4475 = vmatpush.bf16.msra.mxu3 %v10458_v31 }
 0x3c3   :  { %4497 = vmatpush.bf16.msrb.mxu1 %v13865_v39  ;;  %v4247_v10 = vpop.f32.mrf.mxu1 }
 0x3c4   :  { %4487 = vmatpush.bf16.msrb.mxu0 %v13866_v27  ;;  %v8497_v10 = vld [vmem:[%s12332_s10 + $0xe8] sm:$0xff] }
 0x3c5   :  { %4476 = vmatpush.bf16.msra.mxu3 %v10469_v34 }
 0x3c7   :  { %4498 = vmatpush.bf16.msrb.mxu1 %v13868_v16 }
 0x3c8   :  { %4488 = vmatpush.bf16.msrb.mxu0 %v10465_v4 }
 0x3c9   :  { %4477 = vmatpush.bf16.msra.mxu3 %v10480_v40 }
 0x3cb   :  { %4499 = vmatpush.bf16.msrb.mxu1 %v13869_v23 }
 0x3cc   :  { %4489 = vmatpush.bf16.msrb.mxu0 %v10476_v32  ;;  %4478 = vmatmul.bf16.vlgmr.msra.gmra.mxu3 %v11304_v25  ;;  %v11378_v47 = vpop.f32.mrf.mxu2  ;;  %v13914_v32 = vld [vmem:[#allocation76_spill] sm:$0xff] }
 0x3cd   :  { %4663 = vmatpush.msrb.mxu3 %v8495_v6  ;;  %v8498_v6 = vld [vmem:[%s12332_s10 + $0xe0] sm:$0xff] }
 0x3cf   :  { %4500 = vmatpush.bf16.msrb.mxu1 %v13870_v3 }
 0x3d0   :  { %4490 = vmatpush.bf16.msrb.mxu0 %v10485_v45 }
 0x3d3   :  { %4491 = vmatmul.bf16.vlgmr.msrb.gmra.mxu0 %v11062_v0  ;;  %4501 = vmatpush.bf16.msrb.mxu1 %v10471_v50  ;;  %v13910_v50 = vld [vmem:[#allocation68_spill] sm:$0xff] }
 0x3d4   :  { %4690 = vmatpush.bf16.msra.mxu0 %v8924_v59  ;;  %v8496_v59 = vld [vmem:[%s12332_s10 + $0xf0] sm:$0xff] }
 0x3d5   :  { %4664 = vmatpush.msrb.mxu3 %v8496_v59  ;;  %v4284_v59 = vpop.f32.mrf.mxu0 }
 0x3d7   :  { %4502 = vmatpush.bf16.msrb.mxu1 %v10482_v35  ;;  %4665 = vmatpush.msrb.mxu3 %v8497_v10  ;;  %v4468_v35 = vpop.f32.mrf.mxu2  ;;  %v8501_v10 = vld [vmem:[%s12332_s10 + $0xc8] sm:$0xff] }
 0x3d8   :  { %4691 = vmatpush.bf16.msra.mxu0 %v8943_v8  ;;  %v8499_v8 = vld [vmem:[%s12332_s10 + $0xd8] sm:$0xff] }
 0x3d9   :  { %4666 = vmatpush.msrb.mxu3 %v8498_v6  ;;  %v13871_v6 = vld [vmem:[#allocation16_spill] sm:$0xff] }
 0x3db   :  { %4503 = vmatpush.bf16.msrb.mxu1 %v10489_v15  ;;  %4667 = vmatpush.msrb.mxu3 %v8499_v8  ;;  %v13872_v8 = vld [vmem:[#allocation19_spill] sm:$0xff] }
 0x3dc   :  { %4692 = vmatpush.bf16.msra.mxu0 %v8972_v21  ;;  %v8500_v21 = vld [vmem:[%s12332_s10 + $0xd0] sm:$0xff]  ;;  %v13885_v15 = vld [vmem:[#allocation39_spill] sm:$0xff] }
 0x3dd   :  { %4668 = vmatpush.msrb.mxu3 %v8500_v21  ;;  %v4286_v35 = vpop.f32.mrf.mxu0 }
 0x3de   :  { %4504 = vmatmul.bf16.vlgmr.msrb.gmra.mxu1 %v11304_v25  ;;  %v8506_v35 = vld [vmem:[%s12332_s10 + $0xa0] sm:$0xff] }
 0x3df   :  { %4703 = vmatpush.bf16.msra.mxu1 %v8935_v63  ;;  %4669 = vmatpush.msrb.mxu3 %v8501_v10  ;;  %v8502_v63 = vld [vmem:[%s12332_s10 + $0xc0] sm:$0xff]  ;;  %v8505_v10 = vld [vmem:[%s12332_s10 + $0xa8] sm:$0xff] }
 0x3e0   :  { %4693 = vmatpush.bf16.msra.mxu0 %v8999_v36  ;;  %v8503_v36 = vld [vmem:[%s12332_s10 + $0xb8] sm:$0xff] }
 0x3e1   :  { %4670 = vmatpush.msrb.mxu3 %v8502_v63  ;;  %v13873_v63 = vld [vmem:[#allocation17_spill] sm:$0xff] }
 0x3e3   :  { %4704 = vmatpush.bf16.msra.mxu1 %v8957_v12  ;;  %4671 = vmatpush.msrb.mxu3 %v8503_v36  ;;  %v8504_v12 = vld [vmem:[%s12332_s10 + $0xb0] sm:$0xff] }
 0x3e4   :  { %4694 = vmatpush.bf16.msra.mxu0 %v9017_v48  ;;  %v4297_v48 = vpop.f32.mrf.mxu1  ;;  %v13874_v36 = vld [vmem:[#allocation21_spill] sm:$0xff] }
 0x3e5   :  { %4672 = vmatpush.msrb.mxu3 %v8504_v12  ;;  %v11418_v21 = vadd.f32 %v4297_v48, %v4284_v59  ;;  %v13875_v59 = vld [vmem:[#allocation18_spill] sm:$0xff]  ;;  %v13877_v48 = vld [vmem:[#allocation27_spill] sm:$0xff] }
 0x3e6   :  { %v8508_v12 = vld [vmem:[%s12332_s10 + $0x90] sm:$0xff] }
 0x3e7   :  { %4705 = vmatpush.bf16.msra.mxu1 %v13871_v6  ;;  %4673 = vmatpush.msrb.mxu3 %v8505_v10  ;;  %v8507_v6 = vld [vmem:[%s12332_s10 + $0x98] sm:$0xff] }
 0x3e8   :  { %4695 = vmatpush.bf16.msra.mxu0 %v13872_v8  ;;  %v13876_v8 = vld [vmem:[#allocation25_spill] sm:$0xff] }
 0x3e9   :  { %4674 = vmatpush.msrb.mxu3 %v8506_v35  ;;  %v8510_v35 = vld [vmem:[%s12332_s10 + $0x80] sm:$0xff] }
 0x3eb   :  { %4706 = vmatpush.bf16.msra.mxu1 %v13873_v63  ;;  %4675 = vmatpush.msrb.mxu3 %v8507_v6  ;;  %v8509_v63 = vld [vmem:[%s12332_s10 + $0x88] sm:$0xff]  ;;  %v13879_v6 = vld [vmem:[#allocation31_spill] sm:$0xff] }
 0x3ec   :  { %4696 = vmatpush.bf16.msra.mxu0 %v13874_v36  ;;  %v4299_v10 = vpop.f32.mrf.mxu1  ;;  %v13878_v36 = vld [vmem:[#allocation20_spill] sm:$0xff] }
 0x3ed   :  { %4676 = vmatpush.msrb.mxu3 %v8508_v12  ;;  %v13882_v12 = vld [vmem:[#allocation35_spill] sm:$0xff] }
 0x3ef   :  { %4707 = vmatpush.bf16.msra.mxu1 %v13875_v59  ;;  %4677 = vmatpush.msrb.mxu3 %v8509_v63  ;;  %v13880_v59 = vld [vmem:[#allocation24_spill] sm:$0xff] }
 0x3f0   :  { %4697 = vmatpush.bf16.msra.mxu0 %v13876_v8  ;;  %v13881_v8 = vld [vmem:[#allocation22_spill] sm:$0xff]  ;;  %v4336_v10 = vpop.f32.mrf.mxu0  ;;  %v13884_v63 = vld [vmem:[#allocation28_spill] sm:$0xff] }
 0x3f1   :  { %4678 = vmatpush.msrb.mxu3 %v8510_v35  ;;  %v13886_v35 = vld [vmem:[#allocation32_spill] sm:$0xff] }
 0x3f3   :  { %4698 = vmatmul.bf16.vlgmr.msra.gmra.mxu0 %v11062_v0  ;;  %4708 = vmatpush.bf16.msra.mxu1 %v13878_v36  ;;  %v4337_v36 = vadd.f32 %v4336_v10, %v11297_v1  ;;  %v13892_v1 = vld [vmem:[#allocation40_spill] sm:$0xff] }
 0x3f4   :  { %4742 = vmatpush.bf16.msrb.mxu0 %v13877_v48  ;;  %4729 = vmatpush.bf16.msra.mxu3 %v13880_v59  ;;  %v13883_v48 = vld [vmem:[#allocation26_spill] sm:$0xff]  ;;  %v13895_v10 = vld [vmem:[#allocation44_spill] sm:$0xff] }
 0x3f5   :  { %v13888_v59 = vld [vmem:[#allocation38_spill] sm:$0xff] }
 0x3f7   :  { %4709 = vmatpush.bf16.msra.mxu1 %v13881_v8  ;;  %v13889_v8 = vld [vmem:[#allocation36_spill] sm:$0xff] }
 0x3f8   :  { %4743 = vmatpush.bf16.msrb.mxu0 %v13879_v6  ;;  %4730 = vmatpush.bf16.msra.mxu3 %v13551_v20  ;;  %v13887_v6 = vld [vmem:[#allocation43_spill] sm:$0xff]  ;;  %v4338_v20 = vpop.f32.mrf.mxu0 }
 0x3f9   :  { %v13900_v20 = vld [vmem:[#allocation54_spill] sm:$0xff] }
 0x3fb   :  { %4710 = vmatpush.bf16.msra.mxu1 %v13883_v48  ;;  %v13891_v48 = vld [vmem:[#allocation42_spill] sm:$0xff] }
 0x3fc   :  { %4744 = vmatpush.bf16.msrb.mxu0 %v13882_v12  ;;  %4731 = vmatpush.bf16.msra.mxu3 %v13556_v61  ;;  %v13890_v12 = vld [vmem:[#allocation47_spill] sm:$0xff]  ;;  %v13894_v61 = vld [vmem:[#allocation46_spill] sm:$0xff] }
 0x3fe   :  { %4711 = vmatmul.bf16.vlgmr.msra.gmra.mxu1 %v11304_v25 }
 0x3ff   :  { %4755 = vmatpush.bf16.msrb.mxu1 %v13884_v63  ;;  %v13896_v63 = vld [vmem:[#allocation57_spill] sm:$0xff] }
 0x400   :  { %4745 = vmatpush.bf16.msrb.mxu0 %v13885_v15  ;;  %4732 = vmatpush.bf16.msra.mxu3 %v13888_v59  ;;  %v13893_v15 = vld [vmem:[#allocation51_spill] sm:$0xff]  ;;  %v13899_v59 = vld [vmem:[#allocation48_spill] sm:$0xff] }
 0x403   :  { %4756 = vmatpush.bf16.msrb.mxu1 %v13886_v35  ;;  %v13897_v35 = vld [vmem:[#allocation50_spill] sm:$0xff] }
 0x404   :  { %4746 = vmatpush.bf16.msrb.mxu0 %v13887_v6  ;;  %4733 = vmatpush.bf16.msra.mxu3 %v13891_v48  ;;  %v13898_v6 = vld [vmem:[#allocation59_spill] sm:$0xff] }
 0x405   :  { %v13903_v48 = vld [vmem:[#allocation67_spill] sm:$0xff] }
 0x407   :  { %4757 = vmatpush.bf16.msrb.mxu1 %v13889_v8  ;;  %v13901_v8 = vld [vmem:[#allocation63_spill] sm:$0xff] }
 0x408   :  { %4747 = vmatpush.bf16.msrb.mxu0 %v13890_v12  ;;  %4734 = vmatpush.bf16.msra.mxu3 %v13894_v61  ;;  %v13902_v12 = vld [vmem:[#allocation52_spill] sm:$0xff] }
 0x40b   :  { %4758 = vmatpush.bf16.msrb.mxu1 %v13892_v1  ;;  %v4349_v1 = vpop.f32.mrf.mxu1 }
 0x40c   :  { %4748 = vmatpush.bf16.msrb.mxu0 %v13893_v15  ;;  %4735 = vmatpush.bf16.msra.mxu3 %v13897_v35  ;;  %v13904_v15 = vld [vmem:[#allocation58_spill] sm:$0xff]  ;;  %v4350_v61 = vadd.f32 %v4349_v1, %v4337_v36  ;;  %v13906_v35 = vld [vmem:[#allocation71_spill] sm:$0xff]  ;;  %v13912_v1 = vld [vmem:[#allocation72_spill] sm:$0xff] }
 0x40d   :  { %v13911_v36 = vld [vmem:[#allocation79_spill] sm:$0xff] }
 0x40f   :  { %4759 = vmatpush.bf16.msrb.mxu1 %v13895_v10 }
 0x410   :  { %4749 = vmatpush.bf16.msrb.mxu0 %v13896_v63  ;;  %4736 = vmatpush.bf16.msra.mxu3 %v13900_v20  ;;  %v4388_v10 = vpop.f32.mrf.mxu0  ;;  %v13905_v63 = vld [vmem:[#allocation60_spill] sm:$0xff]  ;;  %v4323_v20 = vpop.f32.mrf.mxu3 }
 0x413   :  { %4750 = vmatmul.bf16.vlgmr.msrb.gmra.mxu0 %v11062_v0  ;;  %4760 = vmatpush.bf16.msrb.mxu1 %v13899_v59  ;;  %v13908_v59 = vld [vmem:[#allocation64_spill] sm:$0xff] }
 0x414   :  { %4794 = vmatpush.bf16.msra.mxu0 %v13898_v6  ;;  %v13907_v6 = vld [vmem:[#allocation399_spill] sm:$0xff] }
 0x415   :  { %v4510_v45 = vadd.f32 %v4350_v61, %v13907_v6  ;;  %v4389_v61 = vadd.f32 %v4388_v10, %v11332_v42  ;;  %v13919_v42 = vld [vmem:[#allocation95_spill] sm:$0xff] }
 0x417   :  { %4761 = vmatpush.bf16.msrb.mxu1 %v13902_v12  ;;  %v7807_v12 = vmul.f32 -1.442695, %v4510_v45  ;;  %v13915_v45 = vld [vmem:[#allocation89_spill] sm:$0xff] }
 0x418   :  { %4795 = vmatpush.bf16.msra.mxu0 %v13901_v8  ;;  %v13909_v8 = vld [vmem:[#allocation75_spill] sm:$0xff]  ;;  %v4390_v40 = vpop.f32.mrf.mxu0 }
 0x419   :  { %8379 = vpow2.f32 %v7807_v12  ;;  %v13916_v40 = vld [vmem:[#allocation400_spill] sm:$0xff] }
 0x41b   :  { %4762 = vmatpush.bf16.msrb.mxu1 %v13904_v15  ;;  %v4325_v15 = vpop.f32.mrf.mxu3 }
 0x41c   :  { %4796 = vmatpush.bf16.msra.mxu0 %v13903_v48  ;;  %v4351_v48 = vpop.f32.mrf.mxu1 }
 0x41e   :  { %4763 = vmatmul.bf16.vlgmr.msrb.gmra.mxu1 %v11304_v25 }
 0x41f   :  { %4807 = vmatpush.bf16.msra.mxu1 %v13905_v63  ;;  %v13913_v63 = vld [vmem:[#allocation83_spill] sm:$0xff] }
 0x420   :  { %4797 = vmatpush.bf16.msra.mxu0 %v13906_v35 }
 0x423   :  { %4808 = vmatpush.bf16.msra.mxu1 %v13908_v59  ;;  %v8380_v59 = vpop.eup %8379 }
 0x424   :  { %4798 = vmatpush.bf16.msra.mxu0 %v13909_v8  ;;  %v4401_v35 = vpop.f32.mrf.mxu1  ;;  %v11491_v48 = vadd.f32 1.0, %v8380_v59 }
 0x425   :  { %v4402_v6 = vadd.f32 %v4401_v35, %v4389_v61  ;;  %v4116_v61 = vadd.f32 %v11085_v37, %v11076_v5  ;;  %v13926_v37 = vld [vmem:[#allocation96_spill] sm:$0xff] }
 0x426   :  { %vm4545_vm15 = vweird.f32 %v11491_v48 }
 0x427   :  { %4809 = vmatpush.bf16.msra.mxu1 %v13910_v50  ;;  %v4512_v8 = vadd.f32 %v4402_v6, %v13916_v40  ;;  %v13917_v50 = vld [vmem:[#allocation91_spill] sm:$0xff]  ;;  %v13920_v6 = vld [vmem:[#allocation84_spill] sm:$0xff] }
 0x428   :  { %4799 = vmatpush.bf16.msra.mxu0 %v13911_v36  ;;  %v13918_v36 = vld [vmem:[#allocation80_spill] sm:$0xff]  ;;  %v13932_v40 = vld [vmem:[#allocation115_spill] sm:$0xff] }
 0x429   :  { %v7809_v12 = vmul.f32 -1.442695, %v4512_v8 }
 0x42b   :  { %4810 = vmatpush.bf16.msra.mxu1 %v13912_v1  ;;  %v4375_v1 = vpop.f32.mrf.mxu3  ;;  %8381 = vpow2.f32 %v7809_v12 }
 0x42c   :  { %4800 = vmatpush.bf16.msra.mxu0 %v13913_v63  ;;  %8383 = vrcp.f32 %v11491_v48  ;;  %v4403_v10 = vpop.f32.mrf.mxu1  ;;  %v13921_v63 = vld [vmem:[#allocation99_spill] sm:$0xff] }
 0x42f   :  { %4811 = vmatpush.bf16.msra.mxu1 %v13914_v32  ;;  %v4168_v32 = vadd.f32 %v11114_v9, %v11103_v26  ;;  %v4311_v26 = vadd.f32 %v11301_v60, %v4116_v61  ;;  %v13928_v60 = vld [vmem:[#allocation402_spill] sm:$0xff] }
 0x430   :  { %4801 = vmatpush.bf16.msra.mxu0 %v13915_v45  ;;  %v13922_v45 = vld [vmem:[#allocation90_spill] sm:$0xff]  ;;  %v4440_v12 = vpop.f32.mrf.mxu0 }
 0x431   :  { %v4363_v15 = vadd.f32 %v11321_v11, %v4168_v32  ;;  %v8382_v59 = vpop.eup %8381  ;;  %v4324_v11 = vadd.f32 %v4323_v20, %v4311_v26  ;;  %v13925_v32 = vld [vmem:[#allocation401_spill] sm:$0xff] }
 0x432   :  { %v4562_v9 = vadd.f32 1.0, %v8382_v59 }
 0x433   :  { %4802 = vmatmul.bf16.vlgmr.msra.gmra.mxu0 %v11062_v0  ;;  %4812 = vmatpush.bf16.msra.mxu1 %v13918_v36  ;;  %v4376_v35 = vadd.f32 %v4375_v1, %v4363_v15  ;;  %v4377_v8 = vpop.f32.mrf.mxu3  ;;  %v13923_v36 = vld [vmem:[#allocation92_spill] sm:$0xff]  ;;  %v13927_v1 = vld [vmem:[#allocation107_spill] sm:$0xff] }
 0x434   :  { %4846 = vmatpush.bf16.msrb.mxu0 %v13917_v50  ;;  %v11505_v50 = vpop.eup %8383  ;;  %8385 = vrcp.f32 %v4562_v9  ;;  %v13930_v8 = vld [vmem:[#allocation111_spill] sm:$0xff]  ;;  %vm4583_vm12 = vweird.f32 %v4562_v9 }
 0x435   :  { %v4511_v10 = vadd.f32 %v4376_v35, %v13925_v32  ;;  %v4541_v5 = vmul.f32 %v11505_v50, %v11491_v48  ;;  %vm4546_vm11 = vweird.f32 %v11505_v50 }
 0x436   :  { %vm4547_vm0 = vmor %vm4545_vm15, %vm4546_vm11 }
 0x437   :  { %4813 = vmatpush.bf16.msra.mxu1 %v13920_v6  ;;  %v4509_v6 = vadd.f32 %v4324_v11, %v13928_v60  ;;  %v7808_v15 = vmul.f32 -1.442695, %v4511_v10  ;;  %v13931_v10 = vld [vmem:[#allocation104_spill] sm:$0xff] }
 0x438   :  { %4847 = vmatpush.bf16.msrb.mxu0 %v13919_v42  ;;  %v13924_v42 = vld [vmem:[#allocation103_spill] sm:$0xff]  ;;  %v4442_v20 = vpop.f32.mrf.mxu0 }
 0x439   :  { %v7806_v26 = vmul.f32 -1.442695, %v4509_v6  ;;  %8387 = vpow2.f32 %v7808_v15  ;;  %v4589_v20 = vand.u32 2147483648, %v4562_v9  ;;  %v4587_v6 = vand.u32 2147483647, %v4562_v9 }
 0x43a   :  { %v8386_v59 = vpop.eup %8385 }
 0x43b   :  { %4814 = vmatpush.bf16.msra.mxu1 %v13922_v45  ;;  %v11517_v61 = vpop.f32.mrf.mxu3  ;;  %v13929_v45 = vld [vmem:[#allocation100_spill] sm:$0xff]  ;;  %v4579_v35 = vmul.f32 %v8386_v59, %v4562_v9  ;;  %vm4584_vm10 = vweird.f32 %v8386_v59  ;;  %8389 = vpow2.f32 %v7806_v26  ;;  %v4549_v26 = vand.u32 2147483647, %v11491_v48 }
 0x43c   :  { %4848 = vmatpush.bf16.msrb.mxu0 %v13921_v63  ;;  %v4542_v63 = vsub.f32 1.0, %v4541_v5  ;;  %vm11528_vm14 = vmor %vm4583_vm12, %vm4584_vm10  ;;  %v4590_v9 = vor.u32 1.1754944e-38, %v4589_v20  ;;  %vm4588_vm1 = vcmp.eq.f32.partialorder %v4587_v6, 8.507059e+37  ;;  %v13942_v6 = vld [vmem:[#allocation116_spill] sm:$0xff] }
 0x43d   :  { %vm4550_vm2 = vcmp.eq.f32.partialorder %v4549_v26, 8.507059e+37  ;;  %v13944_v26 = vld [vmem:[#allocation122_spill] sm:$0xff] }
 0x43e   :  { %4815 = vmatmul.bf16.vlgmr.msra.gmra.mxu1 %v11304_v25 }
 0x43f   :  { %4859 = vmatpush.bf16.msrb.mxu1 %v13923_v36  ;;  %v4441_v36 = vadd.f32 %v4440_v12, %v11363_v7 }
 0x440   :  { %4849 = vmatpush.bf16.msrb.mxu0 %v13924_v42  ;;  %v4580_v42 = vsub.f32 1.0, %v4579_v35 }
 0x442   :  { %v4581_v5 = vmul.f32 %v8386_v59, %v4580_v42  ;;  %v13937_v42 = vld [vmem:[#allocation121_spill] sm:$0xff] }
 0x443   :  { %4860 = vmatpush.bf16.msrb.mxu1 %v13926_v37  ;;  %v4453_v37 = vpop.f32.mrf.mxu1  ;;  %v4429_v15 = vpop.f32.mrf.mxu3 }
 0x444   :  { %4850 = vmatpush.bf16.msrb.mxu0 %v13927_v1  ;;  %v4543_v1 = vmul.f32 %v11505_v50, %v4542_v63  ;;  %v4454_v11 = vadd.f32 %v4453_v37, %v4441_v36  ;;  %v4582_v12 = vadd.f32 %v8386_v59, %v4581_v5  ;;  %v8388_v63 = vpop.eup %8387  ;;  %v13938_v37 = vld [vmem:[#allocation123_spill] sm:$0xff] }
 0x445   :  { %v13940_v15 = vld [vmem:[#allocation127_spill] sm:$0xff] }
 0x446   :  { %v4544_v7 = vadd.f32 %v11505_v50, %v4543_v1  ;;  %v4586_v36 = vsel %vm11528_vm14, %v8386_v59, %v4582_v12  ;;  %v11542_v1 = vadd.f32 1.0, %v8388_v63  ;;  %v13939_v59 = vld [vmem:[#allocation112_spill] sm:$0xff]  ;;  %v13941_v63 = vld [vmem:[#allocation29_spill] sm:$0xff] }
 0x447   :  { %4861 = vmatpush.bf16.msrb.mxu1 %v13929_v45  ;;  %v13933_v45 = vld [vmem:[#allocation23_spill] sm:$0xff] }
 0x448   :  { %4851 = vmatpush.bf16.msrb.mxu0 %v13930_v8  ;;  %v4514_v32 = vadd.f32 %v4454_v11, %v13933_v45  ;;  %v4551_v8 = vand.u32 2147483648, %v11491_v48  ;;  %v4591_v48 = vsel %vm4588_vm1, %v4590_v9, %v4586_v36  ;;  %v13945_v9 = vld [vmem:[#allocation126_spill] sm:$0xff]  ;;  %vm4568_vm4 = vweird.f32 %v11542_v1 }
 0x44a   :  { %8391 = vtanh.f32 %v4514_v32  ;;  %v4548_v32 = vsel %vm4547_vm0, %v11505_v50, %v4544_v7  ;;  %v4552_v5 = vor.u32 1.1754944e-38, %v4551_v8  ;;  %v4634_v50 = vmul.f32 %v4591_v48, %v13941_v63 }
 0x44b   :  { %4862 = vmatpush.bf16.msrb.mxu1 %v13931_v10  ;;  %v4455_v11 = vpop.f32.mrf.mxu1  ;;  %v8390_v10 = vpop.eup %8389  ;;  %8393 = vrcp.f32 %v11542_v1  ;;  %v4220_v48 = vadd.f32 %v11136_v54, %v11133_v58  ;;  %v13951_v58 = vld [vmem:[#allocation33_spill] sm:$0xff] }
 0x44c   :  { %4852 = vmatpush.bf16.msrb.mxu0 %v13932_v40  ;;  %v13936_v40 = vld [vmem:[#allocation108_spill] sm:$0xff]  ;;  %v4553_v12 = vsel %vm4550_vm2, %v4552_v5, %v4548_v32  ;;  %v11548_v35 = vadd.f32 1.0, %v8390_v10  ;;  %v4272_v10 = vadd.f32 %v11193_v30, %v11191_v51  ;;  %v13947_v5 = vld [vmem:[#allocation130_spill] sm:$0xff]  ;;  %v13950_v51 = vld [vmem:[#allocation143_spill] sm:$0xff] }
 0x44e   :  { %8395 = vrcp.f32 %v11548_v35  ;;  %vm4530_vm7 = vweird.f32 %v11548_v35 }
 0x44f   :  { %4863 = vmatpush.bf16.msrb.mxu1 %v13936_v40  ;;  %v13943_v40 = vld [vmem:[#allocation131_spill] sm:$0xff] }
 0x450   :  { %4853 = vmatpush.bf16.msrb.mxu0 %v13937_v42  ;;  %v8392_v20 = vpop.eup %8391  ;;  %v4492_v42 = vpop.f32.mrf.mxu0 }
 0x451   :  { %v4636_v7 = vmul.f32 %v8392_v20, %v4553_v12  ;;  %v8394_v36 = vpop.eup %8393  ;;  %v4467_v20 = vadd.f32 %v11378_v47, %v4272_v10  ;;  %v4415_v12 = vadd.f32 %v11345_v13, %v4220_v48  ;;  %v4493_v54 = vadd.f32 %v4492_v42, %v11418_v21 }
 0x452   :  { %v4564_v32 = vmul.f32 %v8394_v36, %v11542_v1  ;;  %vm4569_vm3 = vweird.f32 %v8394_v36 }
 0x453   :  { %4854 = vmatmul.bf16.vlgmr.msrb.gmra.mxu0 %v11062_v0  ;;  %4864 = vmatpush.bf16.msrb.mxu1 %v13939_v59  ;;  %v11553_v8 = vadd.f32 %v4636_v7, %v4634_v50  ;;  %v13948_v59 = vld [vmem:[#allocation139_spill] sm:$0xff]  ;;  %v4479_v50 = vpop.f32.mrf.mxu3  ;;  %v4428_v30 = vadd.f32 %v11517_v61, %v4415_v12  ;;  %vm11589_vm5 = vmor %vm4568_vm4, %vm4569_vm3 }
 0x454   :  { %5036 = vmatpush.bf16.msra.mxu0 %v13938_v37  ;;  %v13946_v37 = vld [vmem:[#allocation135_spill] sm:$0xff]  ;;  %v11562_v11 = vpop.eup %8395  ;;  %v4565_v63 = vsub.f32 1.0, %v4564_v32  ;;  %v4480_v7 = vadd.f32 %v4479_v50, %v4467_v20  ;;  %v13953_v32 = vld [vmem:[#allocation37_spill] sm:$0xff]  ;;  %v13956_v50 = vld [vmem:[#allocation142_spill] sm:$0xff] }
 0x455   :  { %v4513_v48 = vadd.f32 %v4428_v30, %v13953_v32  ;;  %v13955_v20 = vld [vmem:[#allocation41_spill] sm:$0xff]  ;;  %v13960_v30 = vld [vmem:[#allocation154_spill] sm:$0xff]  ;;  %vm4531_vm6 = vweird.f32 %v11562_v11 }
 0x456   :  { %vm4532_vm9 = vmor %vm4530_vm7, %vm4531_vm6 }
 0x457   :  { %4865 = vmatpush.bf16.msrb.mxu1 %v13942_v6 }
 0x458   :  { %5037 = vmatpush.bf16.msra.mxu0 %v13940_v15  ;;  %v4526_v15 = vmul.f32 %v11562_v11, %v11548_v35  ;;  %v4494_v6 = vpop.f32.mrf.mxu0 }
 0x459   :  { %v13957_v6 = vld [vmem:[#allocation153_spill] sm:$0xff] }
 0x45a   :  { %v4527_v47 = vsub.f32 1.0, %v4526_v15  ;;  %v4574_v15 = vand.u32 2147483648, %v11542_v1 }
 0x45b   :  { %4866 = vmatpush.bf16.msrb.mxu1 %v13944_v26  ;;  %v4515_v26 = vadd.f32 %v4480_v7, %v13951_v58  ;;  %v4505_v13 = vpop.f32.mrf.mxu1  ;;  %v4481_v42 = vpop.f32.mrf.mxu3  ;;  %v4572_v7 = vand.u32 2147483647, %v11542_v1 }
 0x45c   :  { %5038 = vmatpush.bf16.msra.mxu0 %v13943_v40  ;;  %v13949_v40 = vld [vmem:[#allocation134_spill] sm:$0xff]  ;;  %v4506_v10 = vadd.f32 %v4505_v13, %v4493_v54  ;;  %v4528_v12 = vmul.f32 %v11562_v11, %v4527_v47  ;;  %v4575_v1 = vor.u32 1.1754944e-38, %v4574_v15 }
 0x45d   :  { %v13961_v13 = vld [vmem:[#allocation146_spill] sm:$0xff]  ;;  %vm4573_vm8 = vcmp.eq.f32.partialorder %v4572_v7, 8.507059e+37 }
 0x45e   :  { %4867 = vmatmul.bf16.vlgmr.msrb.gmra.mxu1 %v11304_v25  ;;  %v4516_v61 = vadd.f32 %v4506_v10, %v13955_v20  ;;  %v13964_v42 = vld [vmem:[#allocation30_spill] sm:$0xff] }
 0x45f   :  { %5049 = vmatpush.bf16.msra.mxu1 %v13945_v9  ;;  %v4566_v9 = vmul.f32 %v8394_v36, %v4565_v63 }
 0x460   :  { %5039 = vmatpush.bf16.msra.mxu0 %v13946_v37  ;;  %v7810_v37 = vmul.f32 -1.442695, %v4515_v26  ;;  %v7811_v63 = vmul.f32 -1.442695, %v4516_v61 }
 0x461   :  { %v4567_v21 = vadd.f32 %v8394_v36, %v4566_v9  ;;  %v4536_v9 = vand.u32 2147483648, %v11548_v35 }
 0x462   :  { %8397 = vpow2.f32 %v7810_v37  ;;  %v4534_v37 = vand.u32 2147483647, %v11548_v35  ;;  %v13965_v35 = vld [vmem:[#allocation163_spill] sm:$0xff] }
 0x463   :  { %5050 = vmatpush.bf16.msra.mxu1 %v13947_v5  ;;  %v13952_v5 = vld [vmem:[#allocation138_spill] sm:$0xff]  ;;  %8399 = vtanh.f32 %v4513_v48  ;;  %v4571_v54 = vsel %vm11589_vm5, %v8394_v36, %v4567_v21  ;;  %v4507_v26 = vpop.f32.mrf.mxu1  ;;  %v13962_v48 = vld [vmem:[#allocation159_spill] sm:$0xff]  ;;  %v13963_v21 = vld [vmem:[#allocation152_spill] sm:$0xff] }
 0x464   :  { %5040 = vmatpush.bf16.msra.mxu0 %v13948_v59  ;;  %v13954_v59 = vld [vmem:[#allocation147_spill] sm:$0xff]  ;;  %8401 = vpow2.f32 %v7811_v63  ;;  %vm4535_vm10 = vcmp.eq.f32.partialorder %v4534_v37, 8.507059e+37 }
 0x465   :  { %v13968_v26 = vld [vmem:[#allocation167_spill] sm:$0xff] }
 0x467   :  { %5051 = vmatpush.bf16.msra.mxu1 %v13949_v40 }
 0x468   :  { %5041 = vmatpush.bf16.msra.mxu0 %v13950_v51  ;;  %v4529_v51 = vadd.f32 %v11562_v11, %v4528_v12  ;;  %v8398_v47 = vpop.eup %8397  ;;  %v4537_v12 = vor.u32 1.1754944e-38, %v4536_v9  ;;  %v13969_v9 = vld [vmem:[#allocation162_spill] sm:$0xff] }
 0x469   :  { %v4601_v10 = vadd.f32 1.0, %v8398_v47 }
 0x46a   :  { %v4533_v36 = vsel %vm4532_vm9, %v11562_v11, %v4529_v51  ;;  %v13967_v51 = vld [vmem:[#allocation158_spill] sm:$0xff] }
 0x46b   :  { %5052 = vmatpush.bf16.msra.mxu1 %v13952_v5  ;;  %v4576_v5 = vsel %vm4573_vm8, %v4575_v1, %v4571_v54  ;;  %8403 = vrcp.f32 %v4601_v10  ;;  %v4614_v37 = vand.u32 2147483648, %v4601_v10  ;;  %vm4608_vm12 = vweird.f32 %v4601_v10 }
 0x46c   :  { %5042 = vmatpush.bf16.msra.mxu0 %v13954_v59  ;;  %v8400_v59 = vpop.eup %8399  ;;  %v4633_v15 = vmul.f32 %v4576_v5, %v13964_v42  ;;  %v13971_v42 = vld [vmem:[#allocation166_spill] sm:$0xff] }
 0x46d   :  { %v8402_v61 = vpop.eup %8401 }
 0x46e   :  { %v4602_v63 = vadd.f32 1.0, %v8402_v61 }
 0x46f   :  { %5053 = vmatpush.bf16.msra.mxu1 %v13956_v50  ;;  %v4538_v50 = vsel %vm4535_vm10, %v4537_v12, %v4533_v36 }
 0x470   :  { %5043 = vmatpush.bf16.msra.mxu0 %v13957_v6  ;;  %v4635_v7 = vmul.f32 %v8400_v59, %v4538_v50  ;;  %8405 = vrcp.f32 %v4602_v63  ;;  %v13966_v6 = vld [vmem:[#allocation157_spill] sm:$0xff]  ;;  %v11610_v11 = vpop.f32.mrf.mxu0  ;;  %v13970_v59 = vld [vmem:[#allocation171_spill] sm:$0xff]  ;;  %v4629_v12 = vand.u32 2147483648, %v4602_v63  ;;  %vm4623_vm1 = vweird.f32 %v4602_v63 }
 0x471   :  { %v8404_v40 = vpop.eup %8403 }
 0x472   :  { %v4604_v54 = vmul.f32 %v8404_v40, %v4601_v10  ;;  %vm4609_vm11 = vweird.f32 %v8404_v40 }
 0x473   :  { %5054 = vmatpush.bf16.msra.mxu1 %v13961_v13  ;;  %v4612_v13 = vand.u32 2147483647, %v4601_v10  ;;  %vm4610_vm14 = vmor %vm4608_vm12, %vm4609_vm11 }
 0x474   :  { %5088 = vmatpush.bf16.msrb.mxu0 %v13960_v30  ;;  %v11608_v30 = vadd.f32 %v4635_v7, %v4633_v15  ;;  %v4605_v47 = vsub.f32 1.0, %v4604_v54  ;;  %v4615_v15 = vor.u32 1.1754944e-38, %v4614_v37 }
 0x475   :  { %vm4613_vm15 = vcmp.eq.f32.partialorder %v4612_v13, 8.507059e+37 }
 0x476   :  { %v8406_v1 = vpop.eup %8405  ;;  %8407 = vtanh.f32 %v11608_v30  ;;  %v4606_v5 = vmul.f32 %v8404_v40, %v4605_v47 }
 0x477   :  { %5055 = vmatpush.bf16.msra.mxu1 %v13963_v21  ;;  %8409 = vtanh.f32 %v11553_v8  ;;  %vm4624_vm0 = vweird.f32 %v8406_v1 }
 0x478   :  { %5089 = vmatpush.bf16.msrb.mxu0 %v13962_v48  ;;  %v4619_v48 = vmul.f32 %v8406_v1, %v4602_v63  ;;  %v4607_v61 = vadd.f32 %v8404_v40, %v4606_v5  ;;  %v4701_v21 = vpop.f32.mrf.mxu0  ;;  %vm4625_vm2 = vmor %vm4623_vm1, %vm4624_vm0  ;;  %v4630_v5 = vor.u32 1.1754944e-38, %v4629_v12 }
 0x479   :  { %v13977_v21 = vld [vmem:[#allocation185_spill] sm:$0xff] }
 0x47a   :  { %v4620_v36 = vsub.f32 1.0, %v4619_v48  ;;  %v4611_v7 = vsel %vm4610_vm14, %v8404_v40, %v4607_v61  ;;  %v13974_v48 = vld [vmem:[#allocation179_spill] sm:$0xff]  ;;  %v13976_v61 = vld [vmem:[#allocation174_spill] sm:$0xff] }
 0x47b   :  { %5056 = vmatpush.bf16.msra.mxu1 %v13966_v6  ;;  %v4627_v6 = vand.u32 2147483647, %v4602_v63  ;;  %v4616_v54 = vsel %vm4613_vm15, %v4615_v15, %v4611_v7  ;;  %v13979_v15 = vld [vmem:[#allocation56_spill] sm:$0xff]  ;;  %v13982_v7 = vld [vmem:[#allocation65_spill] sm:$0xff] }
 0x47c   :  { %5090 = vmatpush.bf16.msrb.mxu0 %v13965_v35  ;;  %v4621_v50 = vmul.f32 %v8406_v1, %v4620_v36  ;;  %v13972_v35 = vld [vmem:[#allocation175_spill] sm:$0xff] }
 0x47d   :  { %vm4628_vm3 = vcmp.eq.f32.partialorder %v4627_v6, 8.507059e+37  ;;  %v13983_v6 = vld [vmem:[#allocation62_spill] sm:$0xff] }
 0x47e   :  { %v4622_v47 = vadd.f32 %v8406_v1, %v4621_v50 }
 0x47f   :  { %5101 = vmatpush.bf16.msrb.mxu1 %v13967_v51  ;;  %v8408_v51 = vpop.eup %8407 }
 0x480   :  { %5091 = vmatpush.bf16.msrb.mxu0 %v13968_v26  ;;  %v11620_v26 = vpop.f32.mrf.mxu1  ;;  %v4641_v10 = vmul.f32 %v8408_v51, %v4616_v54  ;;  %v4626_v37 = vsel %vm4625_vm2, %v8406_v1, %v4622_v47  ;;  %v8410_v40 = vpop.eup %8409  ;;  %v13980_v1 = vld [vmem:[#allocation186_spill] sm:$0xff]  ;;  %v13984_v51 = vld [vmem:[#allocation191_spill] sm:$0xff]  ;;  %v13985_v54 = vld [vmem:[#allocation184_spill] sm:$0xff] }
 0x481   :  { %v4631_v36 = vsel %vm4628_vm3, %v4630_v5, %v4626_v37  ;;  %v13987_v47 = vld [vmem:[#allocation66_spill] sm:$0xff]  ;;  %v13989_v5 = vld [vmem:[#allocation189_spill] sm:$0xff] }
 0x482   :  { %4659 = vmatmul.f32.vlgmr.msrb.gmra.mxu2 %v4641_v10  ;;  %v11624_v13 = vpack.c.bf16 %v4641_v10, %v4641_v10  ;;  %v4642_v63 = vmul.f32 %v8410_v40, %v4631_v36  ;;  %v13986_v10 = vld [vmem:[#allocation69_spill] sm:$0xff]  ;;  %v13990_v37 = vld [vmem:[#allocation190_spill] sm:$0xff]  ;;  %v13993_v36 = vld [vmem:[#allocation199_spill] sm:$0xff] }
 0x483   :  { %5102 = vmatpush.bf16.msrb.mxu1 %v13969_v9  ;;  %v13973_v9 = vld [vmem:[#allocation170_spill] sm:$0xff]  ;;  %v13991_v40 = vld [vmem:[#allocation73_spill] sm:$0xff] }
 0x484   :  { %5092 = vmatpush.bf16.msrb.mxu0 %v13970_v59  ;;  %v13975_v59 = vld [vmem:[#allocation55_spill] sm:$0xff]  ;;  %4679 = vmatmul.f32.vlgmr.msrb.gmra.mxu3 %v4642_v63  ;;  %v11630_v12 = vpack.c.bf16 %v4642_v63, %v4642_v63  ;;  %v13994_v63 = vld [vmem:[#allocation194_spill] sm:$0xff] }
 0x485   :  { %4768 = vmatpush.bf16.msrb.mxu2 %v13975_v59  ;;  %5044 = vmatmul.bf16.vlgmr.msra.gmra.mxu0 %v11624_v13  ;;  %v13992_v59 = vld [vmem:[#allocation70_spill] sm:$0xff] }
 0x486   :  { %4781 = vmatpush.bf16.msrb.mxu3 %v13979_v15  ;;  %5057 = vmatmul.bf16.vlgmr.msra.gmra.mxu1 %v11630_v12 }
 0x487   :  { %5103 = vmatpush.bf16.msrb.mxu1 %v13971_v42  ;;  %v13978_v42 = vld [vmem:[#allocation61_spill] sm:$0xff] }
 0x488   :  { %5093 = vmatpush.bf16.msrb.mxu0 %v13972_v35  ;;  %v4714_v50 = vpop.f32.mrf.mxu1  ;;  %v13981_v35 = vld [vmem:[#allocation178_spill] sm:$0xff] }
 0x489   :  { %4769 = vmatpush.bf16.msrb.mxu2 %v13978_v42  ;;  %v13997_v42 = vld [vmem:[#allocation203_spill] sm:$0xff]  ;;  %v13999_v50 = vld [vmem:[#allocation81_spill] sm:$0xff] }
 0x48a   :  { %4724 = vmatmul.bf16.vlgmr.msra.gmra.mxu2 %v11062_v0  ;;  %4782 = vmatpush.bf16.msrb.mxu3 %v13983_v6 }
 0x48b   :  { %5104 = vmatpush.bf16.msrb.mxu1 %v13973_v9  ;;  %v13988_v9 = vld [vmem:[#allocation195_spill] sm:$0xff] }
 0x48c   :  { %5094 = vmatpush.bf16.msrb.mxu0 %v13974_v48  ;;  %4737 = vmatmul.bf16.vlgmr.msra.gmra.mxu3 %v11304_v25 }
 0x48d   :  { %4770 = vmatpush.bf16.msrb.mxu2 %v13982_v7  ;;  %v14001_v7 = vld [vmem:[#allocation207_spill] sm:$0xff] }
 0x48e   :  { %4783 = vmatpush.bf16.msrb.mxu3 %v13987_v47  ;;  %v14005_v47 = vld [vmem:[#allocation211_spill] sm:$0xff] }
 0x48f   :  { %5105 = vmatpush.bf16.msrb.mxu1 %v13976_v61  ;;  %v13995_v61 = vld [vmem:[#allocation77_spill] sm:$0xff] }
 0x490   :  { %5095 = vmatpush.bf16.msrb.mxu0 %v13977_v21  ;;  %v4751_v48 = vpop.f32.mrf.mxu0  ;;  %v13996_v21 = vld [vmem:[#allocation74_spill] sm:$0xff] }
 0x491   :  { %4771 = vmatpush.bf16.msrb.mxu2 %v13986_v10  ;;  %v14004_v10 = vld [vmem:[#allocation82_spill] sm:$0xff] }
 0x492   :  { %4784 = vmatpush.bf16.msrb.mxu3 %v13992_v59  ;;  %v14010_v59 = vld [vmem:[#allocation93_spill] sm:$0xff] }
 0x493   :  { %5106 = vmatpush.bf16.msrb.mxu1 %v13981_v35  ;;  %v14000_v35 = vld [vmem:[#allocation78_spill] sm:$0xff] }
 0x494   :  { %5140 = vmatpush.bf16.msra.mxu0 %v13980_v1  ;;  %v13998_v1 = vld [vmem:[#allocation198_spill] sm:$0xff] }
 0x495   :  { %4772 = vmatpush.bf16.msrb.mxu2 %v13991_v40  ;;  %5096 = vmatmul.bf16.vlgmr.msrb.gmra.mxu0 %v11624_v13  ;;  %v14009_v40 = vld [vmem:[#allocation217_spill] sm:$0xff] }
 0x496   :  { %4785 = vmatpush.bf16.msrb.mxu3 %v13996_v21  ;;  %v14013_v21 = vld [vmem:[#allocation210_spill] sm:$0xff] }
 0x497   :  { %5107 = vmatpush.bf16.msrb.mxu1 %v13985_v54  ;;  %v14003_v54 = vld [vmem:[#allocation85_spill] sm:$0xff] }
 0x498   :  { %5141 = vmatpush.bf16.msra.mxu0 %v13984_v51  ;;  %v4753_v15 = vpop.f32.mrf.mxu0  ;;  %v14002_v51 = vld [vmem:[#allocation202_spill] sm:$0xff] }
 0x499   :  { %4773 = vmatpush.bf16.msrb.mxu2 %v13995_v61  ;;  %v14015_v15 = vld [vmem:[#allocation94_spill] sm:$0xff] }
 0x49a   :  { %4786 = vmatpush.bf16.msrb.mxu3 %v14000_v35  ;;  %v14018_v35 = vld [vmem:[#allocation101_spill] sm:$0xff] }
 0x49b   :  { %5108 = vmatpush.bf16.msrb.mxu1 %v13989_v5  ;;  %v4764_v6 = vpop.f32.mrf.mxu1  ;;  %v14007_v5 = vld [vmem:[#allocation206_spill] sm:$0xff] }
 0x49c   :  { %5142 = vmatpush.bf16.msra.mxu0 %v13988_v9  ;;  %v14006_v9 = vld [vmem:[#allocation87_spill] sm:$0xff] }
 0x49d   :  { %4774 = vmatpush.bf16.msrb.mxu2 %v13999_v50  ;;  %v14017_v50 = vld [vmem:[#allocation216_spill] sm:$0xff] }
 0x49e   :  { %5109 = vmatmul.bf16.vlgmr.msrb.gmra.mxu1 %v11630_v12  ;;  %4787 = vmatpush.bf16.msrb.mxu3 %v14004_v10 }
 0x49f   :  { %5153 = vmatpush.bf16.msra.mxu1 %v13990_v37  ;;  %v14008_v37 = vld [vmem:[#allocation86_spill] sm:$0xff] }
 0x4a0   :  { %5143 = vmatpush.bf16.msra.mxu0 %v13993_v36  ;;  %v14011_v36 = vld [vmem:[#allocation88_spill] sm:$0xff] }
 0x4a1   :  { %4775 = vmatpush.bf16.msrb.mxu2 %v14003_v54  ;;  %v14021_v54 = vld [vmem:[#allocation222_spill] sm:$0xff] }
 0x4a2   :  { %4788 = vmatpush.bf16.msrb.mxu3 %v14008_v37  ;;  %v14025_v37 = vld [vmem:[#allocation233_spill] sm:$0xff] }
 0x4a3   :  { %5154 = vmatpush.bf16.msra.mxu1 %v13994_v63  ;;  %v14012_v63 = vld [vmem:[#allocation219_spill] sm:$0xff]  ;;  %v4766_v61 = vpop.f32.mrf.mxu1 }
 0x4a4   :  { %5144 = vmatpush.bf16.msra.mxu0 %v13997_v42  ;;  %4776 = vmatmul.bf16.vlgmr.msrb.gmra.mxu2 %v11062_v0  ;;  %v14014_v42 = vld [vmem:[#allocation97_spill] sm:$0xff]  ;;  %v14028_v61 = vld [vmem:[#allocation106_spill] sm:$0xff] }
 0x4a5   :  { %4820 = vmatpush.bf16.msra.mxu2 %v14006_v9  ;;  %4789 = vmatmul.bf16.vlgmr.msrb.gmra.mxu3 %v11304_v25  ;;  %v14023_v9 = vld [vmem:[#allocation105_spill] sm:$0xff] }
 0x4a6   :  { %4833 = vmatpush.bf16.msra.mxu3 %v14011_v36  ;;  %v14026_v36 = vld [vmem:[#allocation228_spill] sm:$0xff] }
 0x4a7   :  { %5155 = vmatpush.bf16.msra.mxu1 %v13998_v1  ;;  %v14016_v1 = vld [vmem:[#allocation224_spill] sm:$0xff] }
 0x4a8   :  { %5145 = vmatpush.bf16.msra.mxu0 %v14001_v7  ;;  %v14019_v7 = vld [vmem:[#allocation98_spill] sm:$0xff] }
 0x4a9   :  { %4821 = vmatpush.bf16.msra.mxu2 %v14010_v59  ;;  %v4765_v59 = vadd.f32 %v4764_v6, %v4751_v48 }
 0x4aa   :  { %4834 = vmatpush.bf16.msra.mxu3 %v14015_v15 }
 0x4ab   :  { %5156 = vmatpush.bf16.msra.mxu1 %v14002_v51  ;;  %v14020_v51 = vld [vmem:[#allocation229_spill] sm:$0xff] }
 0x4ac   :  { %5146 = vmatpush.bf16.msra.mxu0 %v14005_v47  ;;  %v14022_v47 = vld [vmem:[#allocation223_spill] sm:$0xff] }
 0x4ad   :  { %4822 = vmatpush.bf16.msra.mxu2 %v14014_v42  ;;  %v14030_v42 = vld [vmem:[#allocation218_spill] sm:$0xff] }
 0x4ae   :  { %4835 = vmatpush.bf16.msra.mxu3 %v14019_v7  ;;  %v14032_v7 = vld [vmem:[#allocation232_spill] sm:$0xff] }
 0x4af   :  { %5157 = vmatpush.bf16.msra.mxu1 %v14007_v5  ;;  %v14024_v5 = vld [vmem:[#allocation102_spill] sm:$0xff] }
 0x4b0   :  { %5147 = vmatpush.bf16.msra.mxu0 %v14009_v40  ;;  %v11684_v10 = vpop.f32.mrf.mxu0  ;;  %v4713_v40 = vadd.f32 %v11620_v26, %v11610_v11  ;;  %v14034_v11 = vld [vmem:[#allocation110_spill] sm:$0xff]  ;;  %v14035_v26 = vld [vmem:[#allocation241_spill] sm:$0xff] }
 0x4b1   :  { %4823 = vmatpush.bf16.msra.mxu2 %v14018_v35 }
 0x4b2   :  { %4836 = vmatpush.bf16.msra.mxu3 %v14024_v5  ;;  %v4898_v15 = vadd.f32 %v4713_v40, %v14030_v42  ;;  %v14038_v5 = vld [vmem:[#allocation114_spill] sm:$0xff]  ;;  %v14040_v40 = vld [vmem:[#allocation119_spill] sm:$0xff] }
 0x4b3   :  { %5158 = vmatpush.bf16.msra.mxu1 %v14013_v21  ;;  %5148 = vmatmul.bf16.vlgmr.msra.gmra.mxu0 %v11624_v13  ;;  %v14029_v21 = vld [vmem:[#allocation237_spill] sm:$0xff] }
 0x4b4   :  { %5192 = vmatpush.bf16.msrb.mxu0 %v14012_v63  ;;  %v14027_v63 = vld [vmem:[#allocation109_spill] sm:$0xff]  ;;  %v7814_v48 = vmul.f32 -1.442695, %v4898_v15  ;;  %v14046_v15 = vld [vmem:[#allocation252_spill] sm:$0xff] }
 0x4b5   :  { %4824 = vmatpush.bf16.msra.mxu2 %v14023_v9  ;;  %v14037_v9 = vld [vmem:[#allocation117_spill] sm:$0xff] }
 0x4b6   :  { %4837 = vmatpush.bf16.msra.mxu3 %v14028_v61  ;;  %8411 = vpow2.f32 %v7814_v48  ;;  %v14044_v61 = vld [vmem:[#allocation124_spill] sm:$0xff]  ;;  %v14051_v48 = vld [vmem:[#allocation250_spill] sm:$0xff] }
 0x4b7   :  { %5159 = vmatpush.bf16.msra.mxu1 %v14017_v50 }
 0x4b8   :  { %5193 = vmatpush.bf16.msrb.mxu0 %v14016_v1  ;;  %v14031_v1 = vld [vmem:[#allocation226_spill] sm:$0xff]  ;;  %v4805_v35 = vpop.f32.mrf.mxu0 }
 0x4b9   :  { %4825 = vmatpush.bf16.msra.mxu2 %v14027_v63  ;;  %v4900_v50 = vadd.f32 %v4765_v59, %v14031_v1  ;;  %v14041_v59 = vld [vmem:[#allocation240_spill] sm:$0xff]  ;;  %v14043_v63 = vld [vmem:[#allocation251_spill] sm:$0xff] }
 0x4ba   :  { %4838 = vmatpush.bf16.msra.mxu3 %v14034_v11  ;;  %v14047_v1 = vld [vmem:[#allocation244_spill] sm:$0xff] }
 0x4bb   :  { %5160 = vmatpush.bf16.msra.mxu1 %v14021_v54  ;;  %v4816_v6 = vpop.f32.mrf.mxu1  ;;  %v7816_v54 = vmul.f32 -1.442695, %v4900_v50 }
 0x4bc   :  { %5194 = vmatpush.bf16.msrb.mxu0 %v14020_v51  ;;  %v14033_v51 = vld [vmem:[#allocation113_spill] sm:$0xff]  ;;  %v8412_v50 = vpop.eup %8411 }
 0x4bd   :  { %4826 = vmatpush.bf16.msra.mxu2 %v14033_v51  ;;  %8413 = vpow2.f32 %v7816_v54  ;;  %v14049_v51 = vld [vmem:[#allocation125_spill] sm:$0xff]  ;;  %v11720_v11 = vadd.f32 1.0, %v8412_v50 }
 0x4be   :  { %5161 = vmatmul.bf16.vlgmr.msra.gmra.mxu1 %v11630_v12  ;;  %4839 = vmatpush.bf16.msra.mxu3 %v14038_v5  ;;  %v14054_v5 = vld [vmem:[#allocation262_spill] sm:$0xff]  ;;  %v14062_v50 = vld [vmem:[#allocation137_spill] sm:$0xff] }
 0x4bf   :  { %5205 = vmatpush.bf16.msrb.mxu1 %v14022_v47  ;;  %v14036_v47 = vld [vmem:[#allocation236_spill] sm:$0xff]  ;;  %8415 = vrcp.f32 %v11720_v11  ;;  %vm4919_vm6 = vweird.f32 %v11720_v11 }
 0x4c0   :  { %5195 = vmatpush.bf16.msrb.mxu0 %v14025_v37  ;;  %v14039_v37 = vld [vmem:[#allocation245_spill] sm:$0xff] }
 0x4c1   :  { %4827 = vmatpush.bf16.msra.mxu2 %v14037_v9  ;;  %v14053_v9 = vld [vmem:[#allocation129_spill] sm:$0xff] }
 0x4c3   :  { %5206 = vmatpush.bf16.msrb.mxu1 %v14026_v36  ;;  %v14042_v36 = vld [vmem:[#allocation118_spill] sm:$0xff]  ;;  %v4818_v42 = vpop.f32.mrf.mxu1  ;;  %v8414_v35 = vpop.eup %8413 }
 0x4c4   :  { %5196 = vmatpush.bf16.msrb.mxu0 %v14029_v21  ;;  %4828 = vmatmul.bf16.vlgmr.msra.gmra.mxu2 %v11062_v0  ;;  %v14045_v21 = vld [vmem:[#allocation120_spill] sm:$0xff]  ;;  %v11724_v54 = vadd.f32 1.0, %v8414_v35 }
 0x4c5   :  { %4872 = vmatpush.bf16.msrb.mxu2 %v14040_v40  ;;  %4840 = vmatpush.bf16.msra.mxu3 %v14042_v36  ;;  %v14057_v36 = vld [vmem:[#allocation136_spill] sm:$0xff]  ;;  %v11738_v42 = vpop.eup %8415 }
 0x4c6   :  { %8417 = vrcp.f32 %v11724_v54  ;;  %v14063_v35 = vld [vmem:[#allocation272_spill] sm:$0xff]  ;;  %vm4920_vm4 = vweird.f32 %v11738_v42  ;;  %vm4957_vm7 = vweird.f32 %v11724_v54 }
 0x4c7   :  { %5207 = vmatpush.bf16.msrb.mxu1 %v14032_v7  ;;  %v14048_v7 = vld [vmem:[#allocation128_spill] sm:$0xff]  ;;  %vm11780_vm8 = vmor %vm4919_vm6, %vm4920_vm4 }
 0x4c8   :  { %5197 = vmatpush.bf16.msrb.mxu0 %v14035_v26  ;;  %4841 = vmatmul.bf16.vlgmr.msra.gmra.mxu3 %v11304_v25  ;;  %v14050_v26 = vld [vmem:[#allocation257_spill] sm:$0xff] }
 0x4c9   :  { %4873 = vmatpush.bf16.msrb.mxu2 %v14044_v61  ;;  %4885 = vmatpush.bf16.msrb.mxu3 %v14045_v21  ;;  %v14059_v61 = vld [vmem:[#allocation267_spill] sm:$0xff]  ;;  %v14060_v21 = vld [vmem:[#allocation260_spill] sm:$0xff] }
 0x4cb   :  { %5208 = vmatpush.bf16.msrb.mxu1 %v14036_v47  ;;  %v14052_v47 = vld [vmem:[#allocation132_spill] sm:$0xff] }
 0x4cc   :  { %5198 = vmatpush.bf16.msrb.mxu0 %v14039_v37  ;;  %v14055_v37 = vld [vmem:[#allocation255_spill] sm:$0xff] }
 0x4cd   :  { %4874 = vmatpush.bf16.msrb.mxu2 %v14048_v7  ;;  %4886 = vmatpush.bf16.msrb.mxu3 %v14049_v51  ;;  %v14064_v51 = vld [vmem:[#allocation266_spill] sm:$0xff] }
 0x4cf   :  { %5209 = vmatpush.bf16.msrb.mxu1 %v14041_v59  ;;  %v14056_v59 = vld [vmem:[#allocation256_spill] sm:$0xff] }
 0x4d0   :  { %5199 = vmatpush.bf16.msrb.mxu0 %v14043_v63  ;;  %v4855_v40 = vpop.f32.mrf.mxu0  ;;  %v14058_v63 = vld [vmem:[#allocation133_spill] sm:$0xff] }
 0x4d1   :  { %4875 = vmatpush.bf16.msrb.mxu2 %v14052_v47  ;;  %4887 = vmatpush.bf16.msrb.mxu3 %v14053_v9  ;;  %v14065_v47 = vld [vmem:[#allocation144_spill] sm:$0xff]  ;;  %v14066_v9 = vld [vmem:[#allocation141_spill] sm:$0xff] }
 0x4d3   :  { %5210 = vmatpush.bf16.msrb.mxu1 %v14047_v1  ;;  %5200 = vmatmul.bf16.vlgmr.msrb.gmra.mxu0 %v11624_v13  ;;  %v14061_v1 = vld [vmem:[#allocation140_spill] sm:$0xff] }
 0x4d4   :  { %5244 = vmatpush.bf16.msra.mxu0 %v14046_v15  ;;  %v11740_v15 = vpop.eup %8417 }
 0x4d5   :  { %4876 = vmatpush.bf16.msrb.mxu2 %v14057_v36  ;;  %4888 = vmatpush.bf16.msrb.mxu3 %v14058_v63  ;;  %v14067_v36 = vld [vmem:[#allocation270_spill] sm:$0xff]  ;;  %vm4958_vm5 = vweird.f32 %v11740_v15 }
 0x4d6   :  { %vm11790_vm9 = vmor %vm4957_vm7, %vm4958_vm5 }
 0x4d7   :  { %5211 = vmatpush.bf16.msrb.mxu1 %v14051_v48  ;;  %v4953_v48 = vmul.f32 %v11740_v15, %v11724_v54 }
 0x4d8   :  { %5245 = vmatpush.bf16.msra.mxu0 %v14050_v26  ;;  %v4857_v7 = vpop.f32.mrf.mxu0  ;;  %v4915_v26 = vmul.f32 %v11738_v42, %v11720_v11 }
 0x4d9   :  { %4877 = vmatpush.bf16.msrb.mxu2 %v14061_v1  ;;  %4889 = vmatpush.bf16.msrb.mxu3 %v14062_v50  ;;  %v14068_v1 = vld [vmem:[#allocation148_spill] sm:$0xff]  ;;  %v14069_v50 = vld [vmem:[#allocation150_spill] sm:$0xff]  ;;  %v4963_v7 = vand.u32 2147483648, %v11724_v54 }
 0x4da   :  { %v4916_v63 = vsub.f32 1.0, %v4915_v26  ;;  %v14093_v26 = vld [vmem:[#allocation172_spill] sm:$0xff] }
 0x4db   :  { %5212 = vmatpush.bf16.msrb.mxu1 %v14055_v37  ;;  %v4817_v37 = vadd.f32 %v4816_v6, %v11684_v10 }
 0x4dc   :  { %5246 = vmatpush.bf16.msra.mxu0 %v14054_v5  ;;  %v4868_v5 = vpop.f32.mrf.mxu1  ;;  %v4917_v6 = vmul.f32 %v11738_v42, %v4916_v63  ;;  %v14082_v63 = vld [vmem:[#allocation292_spill] sm:$0xff] }
 0x4dd   :  { %4878 = vmatpush.bf16.msrb.mxu2 %v14065_v47  ;;  %4890 = vmatpush.bf16.msrb.mxu3 %v14066_v9  ;;  %v4961_v47 = vand.u32 2147483647, %v11724_v54  ;;  %v14077_v9 = vld [vmem:[#allocation160_spill] sm:$0xff] }
 0x4de   :  { %5213 = vmatmul.bf16.vlgmr.msrb.gmra.mxu1 %v11630_v12 }
 0x4df   :  { %5257 = vmatpush.bf16.msra.mxu1 %v14056_v59  ;;  %v4869_v59 = vadd.f32 %v4868_v5, %v4855_v40  ;;  %vm4962_vm11 = vcmp.eq.f32.partialorder %v4961_v47, 8.507059e+37 }
 0x4e0   :  { %5247 = vmatpush.bf16.msra.mxu0 %v14059_v61  ;;  %v4954_v61 = vsub.f32 1.0, %v4953_v48  ;;  %v4923_v48 = vand.u32 2147483647, %v11720_v11 }
 0x4e1   :  { %4879 = vmatpush.bf16.msrb.mxu2 %v14068_v1  ;;  %4891 = vmatpush.bf16.msrb.mxu3 %v13693_v43  ;;  %v14071_v43 = vld [vmem:[#allocation151_spill] sm:$0xff] }
 0x4e2   :  { %v4955_v10 = vmul.f32 %v11740_v15, %v4954_v61  ;;  %vm4924_vm10 = vcmp.eq.f32.partialorder %v4923_v48, 8.507059e+37  ;;  %v14094_v48 = vld [vmem:[#allocation169_spill] sm:$0xff] }
 0x4e3   :  { %5258 = vmatpush.bf16.msra.mxu1 %v14060_v21  ;;  %v4904_v21 = vadd.f32 %v4869_v59, %v13694_v17  ;;  %v14070_v17 = vld [vmem:[#allocation155_spill] sm:$0xff]  ;;  %v14081_v59 = vld [vmem:[#allocation285_spill] sm:$0xff] }
 0x4e4   :  { %5248 = vmatpush.bf16.msra.mxu0 %v14063_v35  ;;  %4880 = vmatmul.bf16.vlgmr.msrb.gmra.mxu2 %v11062_v0  ;;  %v4870_v40 = vpop.f32.mrf.mxu1  ;;  %v4956_v0 = vadd.f32 %v11740_v15, %v4955_v10 }
 0x4e5   :  { %5062 = vmatpush.bf16.msra.mxu2 %v14069_v50  ;;  %v7818_v35 = vmul.f32 -1.442695, %v4904_v21  ;;  %4892 = vmatpush.bf16.msrb.mxu3 %v13698_v24  ;;  %v14074_v24 = vld [vmem:[#allocation287_spill] sm:$0xff]  ;;  %v4964_v21 = vor.u32 1.1754944e-38, %v4963_v7  ;;  %v14083_v50 = vld [vmem:[#allocation164_spill] sm:$0xff] }
 0x4e6   :  { %v14092_v7 = vld [vmem:[#allocation295_spill] sm:$0xff] }
 0x4e7   :  { %5259 = vmatpush.bf16.msra.mxu1 %v14064_v51  ;;  %8419 = vpow2.f32 %v7818_v35  ;;  %v4925_v51 = vand.u32 2147483648, %v11720_v11  ;;  %v4960_v11 = vsel %vm11790_vm9, %v11740_v15, %v4956_v0  ;;  %v14087_v15 = vld [vmem:[#allocation291_spill] sm:$0xff] }
 0x4e8   :  { %5249 = vmatpush.bf16.msra.mxu0 %v13695_v41  ;;  %v4902_v41 = vadd.f32 %v4817_v37, %v13696_v44  ;;  %v4918_v44 = vadd.f32 %v11738_v42, %v4917_v6  ;;  %4893 = vmatmul.bf16.vlgmr.msrb.gmra.mxu3 %v11304_v25  ;;  %v14078_v25 = vld [vmem:[#allocation156_spill] sm:$0xff]  ;;  %v4965_v10 = vsel %vm4962_vm11, %v4964_v21, %v4960_v11  ;;  %v14098_v11 = vld [vmem:[#allocation173_spill] sm:$0xff]  ;;  %v14099_v21 = vld [vmem:[#allocation310_spill] sm:$0xff] }
 0x4e9   :  { %5063 = vmatpush.bf16.msra.mxu2 %v14070_v17  ;;  %5075 = vmatpush.bf16.msra.mxu3 %v14071_v43  ;;  %v4926_v1 = vor.u32 1.1754944e-38, %v4925_v51  ;;  %v14086_v17 = vld [vmem:[#allocation297_spill] sm:$0xff] }
 0x4ea   :  { %8421 = vtanh.f32 %v4902_v41  ;;  %v14084_v41 = vld [vmem:[#allocation161_spill] sm:$0xff] }
 0x4eb   :  { %5260 = vmatpush.bf16.msra.mxu1 %v14067_v36  ;;  %v4922_v36 = vsel %vm11780_vm8, %v11738_v42, %v4918_v44  ;;  %v14085_v42 = vld [vmem:[#allocation290_spill] sm:$0xff]  ;;  %v14088_v43 = vld [vmem:[#allocation45_spill] sm:$0xff] }
 0x4ec   :  { %5250 = vmatpush.bf16.msra.mxu0 %v9980_v46  ;;  %v14072_v46 = vld [vmem:[#allocation286_spill] sm:$0xff]  ;;  %v4927_v35 = vsel %vm4924_vm10, %v4926_v1, %v4922_v36  ;;  %v5022_v40 = vmul.f32 %v4965_v10, %v14088_v43  ;;  %v14097_v36 = vld [vmem:[#allocation176_spill] sm:$0xff] }
 0x4ed   :  { %5064 = vmatpush.bf16.msra.mxu2 %v14077_v9  ;;  %5076 = vmatpush.bf16.msra.mxu3 %v14078_v25  ;;  %v8420_v5 = vpop.eup %8419  ;;  %v14095_v25 = vld [vmem:[#allocation305_spill] sm:$0xff]  ;;  %v14100_v1 = vld [vmem:[#allocation304_spill] sm:$0xff] }
 0x4ee   :  { %v4990_v54 = vadd.f32 1.0, %v8420_v5  ;;  %v14096_v5 = vld [vmem:[#allocation300_spill] sm:$0xff] }
 0x4ef   :  { %5261 = vmatpush.bf16.msra.mxu1 %v13691_v2  ;;  %v14073_v2 = vld [vmem:[#allocation280_spill] sm:$0xff] }
 0x4f0   :  { %5251 = vmatpush.bf16.msra.mxu0 %v14072_v46  ;;  %v8422_v61 = vpop.eup %8421  ;;  %8423 = vrcp.f32 %v4990_v54  ;;  %v14089_v46 = vld [vmem:[#allocation168_spill] sm:$0xff]  ;;  %v5003_v9 = vand.u32 2147483648, %v4990_v54  ;;  %vm4997_vm14 = vweird.f32 %v4990_v54 }
 0x4f1   :  { %5065 = vmatpush.bf16.msra.mxu2 %v14083_v50  ;;  %5077 = vmatpush.bf16.msra.mxu3 %v14084_v41  ;;  %v5024_v6 = vmul.f32 %v8422_v61, %v4927_v35  ;;  %v14101_v10 = vld [vmem:[#allocation180_spill] sm:$0xff] }
 0x4f2   :  { %v5004_v61 = vor.u32 1.1754944e-38, %v5003_v9  ;;  %v14116_v9 = vld [vmem:[#allocation196_spill] sm:$0xff] }
 0x4f3   :  { %5262 = vmatpush.bf16.msra.mxu1 %v14073_v2  ;;  %v14090_v2 = vld [vmem:[#allocation165_spill] sm:$0xff]  ;;  %v5026_v0 = vadd.f32 %v5024_v6, %v5022_v40 }
 0x4f4   :  { %5296 = vmatpush.bf16.msrb.mxu0 %v14074_v24  ;;  %v14091_v24 = vld [vmem:[#allocation301_spill] sm:$0xff] }
 0x4f5   :  { %5066 = vmatpush.bf16.msra.mxu2 %v14089_v46  ;;  %5078 = vmatpush.bf16.msra.mxu3 %v14090_v2  ;;  %8425 = vtanh.f32 %v5026_v0  ;;  %v14106_v40 = vld [vmem:[#allocation181_spill] sm:$0xff]  ;;  %v14107_v46 = vld [vmem:[#allocation187_spill] sm:$0xff]  ;;  %v14110_v0 = vld [vmem:[#allocation314_spill] sm:$0xff] }
 0x4f6   :  { %v8424_v44 = vpop.eup %8423  ;;  %v14108_v2 = vld [vmem:[#allocation183_spill] sm:$0xff] }
 0x4f7   :  { %5263 = vmatpush.bf16.msra.mxu1 %v14081_v59  ;;  %v4993_v51 = vmul.f32 %v8424_v44, %v4990_v54  ;;  %vm4998_vm12 = vweird.f32 %v8424_v44  ;;  %v5001_v59 = vand.u32 2147483647, %v4990_v54  ;;  %v14105_v54 = vld [vmem:[#allocation308_spill] sm:$0xff] }
 0x4f8   :  { %5297 = vmatpush.bf16.msrb.mxu0 %v14082_v63  ;;  %vm4999_vm15 = vmor %vm4997_vm14, %vm4998_vm12 }
 0x4f9   :  { %5067 = vmatpush.bf16.msra.mxu2 %v14093_v26  ;;  %5079 = vmatpush.bf16.msra.mxu3 %v14094_v48  ;;  %v4994_v47 = vsub.f32 1.0, %v4993_v51  ;;  %vm5002_vm0 = vcmp.eq.f32.partialorder %v5001_v59, 8.507059e+37  ;;  %v14113_v51 = vld [vmem:[#allocation188_spill] sm:$0xff]  ;;  %v14118_v59 = vld [vmem:[#allocation325_spill] sm:$0xff] }
 0x4fa   :  { %v14114_v48 = vld [vmem:[#allocation320_spill] sm:$0xff] }
 0x4fb   :  { %5264 = vmatpush.bf16.msra.mxu1 %v14085_v42  ;;  %v4995_v37 = vmul.f32 %v8424_v44, %v4994_v47  ;;  %v8426_v41 = vpop.eup %8425  ;;  %v14102_v42 = vld [vmem:[#allocation177_spill] sm:$0xff]  ;;  %v14115_v47 = vld [vmem:[#allocation326_spill] sm:$0xff] }
 0x4fc   :  { %5298 = vmatpush.bf16.msrb.mxu0 %v14086_v17  ;;  %v14103_v17 = vld [vmem:[#allocation182_spill] sm:$0xff] }
 0x4fd   :  { %5068 = vmatpush.bf16.msra.mxu2 %v14097_v36  ;;  %5080 = vmatpush.bf16.msra.mxu3 %v14098_v11  ;;  %v4996_v63 = vadd.f32 %v8424_v44, %v4995_v37  ;;  %v14119_v11 = vld [vmem:[#allocation329_spill] sm:$0xff] }
 0x4ff   :  { %5309 = vmatpush.bf16.msrb.mxu1 %v14087_v15  ;;  %v5000_v50 = vsel %vm4999_vm15, %v8424_v44, %v4996_v63  ;;  %v14104_v15 = vld [vmem:[#allocation315_spill] sm:$0xff]  ;;  %v14109_v44 = vld [vmem:[#allocation321_spill] sm:$0xff] }
 0x500   :  { %5299 = vmatpush.bf16.msrb.mxu0 %v14091_v24  ;;  %v5005_v35 = vsel %vm5002_vm0, %v5004_v61, %v5000_v50  ;;  %v14111_v24 = vld [vmem:[#allocation322_spill] sm:$0xff]  ;;  %v8511_v63 = vld [vmem:[#allocation10] ss:$0 sm:$0xff] }
 0x501   :  { %5069 = vmatpush.bf16.msra.mxu2 %v14101_v10  ;;  %5081 = vmatpush.bf16.msra.mxu3 %v14102_v42  ;;  %v5030_v6 = vmul.f32 %v8426_v41, %v5005_v35  ;;  %v14122_v10 = vld [vmem:[#allocation333_spill] sm:$0xff]  ;;  %v14123_v42 = vld [vmem:[#allocation204_spill] sm:$0xff] }
 0x502   :  { %v5045_v26 = vpop.f32.mrf.mxu0 }
 0x503   :  { %5310 = vmatpush.bf16.msrb.mxu1 %v14092_v7  ;;  %v11825_v43 = vpack.c.bf16 %v5030_v6, %v5030_v6  ;;  %v14112_v7 = vld [vmem:[#allocation192_spill] sm:$0xff]  ;;  %v5058_v37 = vpop.f32.mrf.mxu1  ;;  %v14124_v6 = vld [vmem:[#allocation201_spill] sm:$0xff] }
 0x504   :  { %5300 = vmatpush.bf16.msrb.mxu0 %v14095_v25  ;;  %5070 = vmatmul.bf16.vlgmr.msra.gmra.mxu2 %v11624_v13  ;;  %v14117_v25 = vld [vmem:[#allocation193_spill] sm:$0xff]  ;;  %v11843_v36 = vadd.f32 %v5058_v37, %v5045_v26 }
 0x505   :  { %5114 = vmatpush.bf16.msrb.mxu2 %v14103_v17  ;;  %5082 = vmatpush.bf16.msra.mxu3 %v14106_v40  ;;  %v14125_v40 = vld [vmem:[#allocation336_spill] sm:$0xff] }
 0x506   :  { %5252 = vmatmul.bf16.vlgmr.msra.gmra.mxu0 %v11825_v43 }
 0x507   :  { %5311 = vmatpush.bf16.msrb.mxu1 %v14096_v5  ;;  %v4660_v5 = vpop.f32.mrf.mxu2  ;;  %v4680_v50 = vpop.f32.mrf.mxu3 }
 0x508   :  { %5301 = vmatpush.bf16.msrb.mxu0 %v14099_v21  ;;  %5083 = vmatmul.bf16.vlgmr.msra.gmra.mxu3 %v11630_v12  ;;  %v4661_v61 = vadd.f32 %v8511_v63, %v4660_v5  ;;  %v14120_v21 = vld [vmem:[#allocation200_spill] sm:$0xff]  ;;  %v14132_v5 = vld [vmem:[#allocation214_spill] sm:$0xff]  ;;  %v14133_v63 = vld [vmem:[#allocation343_spill] sm:$0xff] }
 0x509   :  { %5115 = vmatpush.bf16.msrb.mxu2 %v14107_v46  ;;  %5127 = vmatpush.bf16.msrb.mxu3 %v14108_v2  ;;  %v14126_v46 = vld [vmem:[#allocation208_spill] sm:$0xff]  ;;  %v14127_v2 = vld [vmem:[#allocation205_spill] sm:$0xff] }
 0x50a   :  { %v5047_v41 = vpop.f32.mrf.mxu0  ;;  %v4681_v35 = vadd.f32 %v4680_v50, %v4661_v61  ;;  %v14134_v61 = vld [vmem:[#allocation213_spill] sm:$0xff] }
 0x50b   :  { %5312 = vmatpush.bf16.msrb.mxu1 %v14100_v1  ;;  %v14121_v1 = vld [vmem:[#allocation197_spill] sm:$0xff] }
 0x50c   :  { %5302 = vmatpush.bf16.msrb.mxu0 %v14104_v15  ;;  %8427 = vtanh.f32 %v4681_v35  ;;  %v5060_v15 = vpop.f32.mrf.mxu1  ;;  %v14137_v35 = vld [vmem:[#allocation349_spill] sm:$0xff] }
 0x50d   :  { %5116 = vmatpush.bf16.msrb.mxu2 %v14112_v7  ;;  %5128 = vmatpush.bf16.msrb.mxu3 %v14113_v51  ;;  %v14141_v15 = vld [vmem:[#allocation354_spill] sm:$0xff] }
 0x50f   :  { %5313 = vmatpush.bf16.msrb.mxu1 %v14105_v54  ;;  %v4725_v17 = vpop.f32.mrf.mxu2  ;;  %v11854_v54 = vld [vmem:[%s12324_s2] sm:$0x3]  ;;  %s6095_s2 = sshll.u32 %s12336_s14, 4  ;;  %s6096_s2 = int_to_ptr.hbm [resolvable:$true] %s6095_s2 }
 0x510   :  { %5303 = vmatpush.bf16.msrb.mxu0 %v14109_v44  ;;  %v14128_v44 = vld [vmem:[#allocation34_spill] sm:$0xff] }
 0x511   :  { %5117 = vmatpush.bf16.msrb.mxu2 %v14116_v9  ;;  %5129 = vmatpush.bf16.msrb.mxu3 %v14117_v25  ;;  %v14130_v9 = vld [vmem:[#allocation212_spill] sm:$0xff]  ;;  %v14131_v25 = vld [vmem:[#allocation209_spill] sm:$0xff] }
 0x512   :  { %v8428_v7 = vpop.eup %8427  ;;  %v5097_v26 = vpop.f32.mrf.mxu0 }
 0x513   :  { %5314 = vmatpush.bf16.msrb.mxu1 %v14110_v0  ;;  %v3742_v0 = vadd.f32 %v14128_v44, %v11854_v54  ;;  %7812 = vst.msk [vmem:[%s12334_s12 + $0x2] sm:$0x3] %vm3740_vm13, %v8428_v7 }
 0x514   :  { %5348 = vmatpush.bf16.msra.mxu0 %v14111_v24  ;;  %v4738_v24 = vpop.f32.mrf.mxu3 }
 0x515   :  { %5118 = vmatpush.bf16.msrb.mxu2 %v14120_v21  ;;  %5130 = vmatpush.bf16.msrb.mxu3 %v14121_v1  ;;  %v11862_v51 = vadd.f32 %v4738_v24, %v4725_v17  ;;  %v14135_v21 = vld [vmem:[#allocation220_spill] sm:$0xff]  ;;  %v14136_v1 = vld [vmem:[#allocation215_spill] sm:$0xff] }
 0x516   :  { %5304 = vmatmul.bf16.vlgmr.msrb.gmra.mxu0 %v11825_v43  ;;  %v14146_v24 = vld [vmem:[#allocation231_spill] sm:$0xff] }
 0x517   :  { %5315 = vmatpush.bf16.msrb.mxu1 %v14114_v48  ;;  %v11868_v48 = vadd.f32 %v8428_v7, %v3742_v0  ;;  %v4727_v37 = vpop.f32.mrf.mxu2  ;;  %v14145_v0 = vld [vmem:[#allocation234_spill] sm:$0xff] }
 0x518   :  { %5349 = vmatpush.bf16.msra.mxu0 %v14115_v47  ;;  %v14129_v47 = vld [vmem:[#allocation339_spill] sm:$0xff] }
 0x519   :  { %5119 = vmatpush.bf16.msrb.mxu2 %v14123_v42  ;;  %5131 = vmatpush.bf16.msrb.mxu3 %v14124_v6  ;;  %v14139_v42 = vld [vmem:[#allocation225_spill] sm:$0xff] }
 0x51a   :  { %v5099_v41 = vpop.f32.mrf.mxu0  ;;  %v14140_v6 = vld [vmem:[#allocation221_spill] sm:$0xff] }
 0x51b   :  { %5316 = vmatpush.bf16.msrb.mxu1 %v14118_v59  ;;  %v5110_v59 = vpop.f32.mrf.mxu1  ;;  %v14154_v41 = vld [vmem:[#allocation246_spill] sm:$0xff] }
 0x51c   :  { %5350 = vmatpush.bf16.msra.mxu0 %v14119_v11  ;;  %v11874_v11 = vadd.f32 %v5110_v59, %v5097_v26  ;;  %v4740_v50 = vpop.f32.mrf.mxu3  ;;  %v14147_v26 = vld [vmem:[#allocation362_spill] sm:$0xff] }
 0x51d   :  { %5120 = vmatpush.bf16.msrb.mxu2 %v14126_v46  ;;  %5132 = vmatpush.bf16.msrb.mxu3 %v14127_v2  ;;  %v14143_v46 = vld [vmem:[#allocation227_spill] sm:$0xff]  ;;  %v14144_v2 = vld [vmem:[#allocation358_spill] sm:$0xff] }
 0x51e   :  { %v14151_v59 = vld [vmem:[#allocation242_spill] sm:$0xff] }
 0x520   :  { %5351 = vmatpush.bf16.msra.mxu0 %v14122_v10  ;;  %v14138_v10 = vld [vmem:[#allocation350_spill] sm:$0xff] }
 0x521   :  { %5121 = vmatpush.bf16.msrb.mxu2 %v14130_v9  ;;  %5133 = vmatpush.bf16.msrb.mxu3 %v14131_v25  ;;  %v14149_v9 = vld [vmem:[#allocation235_spill] sm:$0xff] }
 0x523   :  { %v5112_v17 = vpop.f32.mrf.mxu1 }
 0x524   :  { %5352 = vmatpush.bf16.msra.mxu0 %v14125_v40  ;;  %5122 = vmatmul.bf16.vlgmr.msrb.gmra.mxu2 %v11624_v13  ;;  %v14142_v40 = vld [vmem:[#allocation230_spill] sm:$0xff]  ;;  %v14158_v17 = vld [vmem:[#allocation247_spill] sm:$0xff] }
 0x525   :  { %5166 = vmatpush.bf16.msra.mxu2 %v14132_v5  ;;  %5134 = vmatpush.bf16.msrb.mxu3 %v14134_v61  ;;  %v14150_v5 = vld [vmem:[#allocation366_spill] sm:$0xff] }
 0x527   :  { %v4777_v7 = vpop.f32.mrf.mxu2 }
 0x528   :  { %5353 = vmatpush.bf16.msra.mxu0 %v14129_v47  ;;  %5135 = vmatmul.bf16.vlgmr.msrb.gmra.mxu3 %v11630_v12  ;;  %v14148_v47 = vld [vmem:[#allocation238_spill] sm:$0xff]  ;;  %v4790_v25 = vpop.f32.mrf.mxu3 }
 0x529   :  { %5167 = vmatpush.bf16.msra.mxu2 %v14135_v21  ;;  %5179 = vmatpush.bf16.msra.mxu3 %v14136_v1  ;;  %v14153_v1 = vld [vmem:[#allocation370_spill] sm:$0xff] }
 0x52c   :  { %5354 = vmatpush.bf16.msra.mxu0 %v14133_v63  ;;  %v14152_v63 = vld [vmem:[#allocation239_spill] sm:$0xff] }
 0x52d   :  { %5168 = vmatpush.bf16.msra.mxu2 %v14139_v42  ;;  %5180 = vmatpush.bf16.msra.mxu3 %v14140_v6  ;;  %v14156_v42 = vld [vmem:[#allocation248_spill] sm:$0xff]  ;;  %v14157_v6 = vld [vmem:[#allocation375_spill] sm:$0xff] }
 0x52f   :  { %v4779_v61 = vpop.f32.mrf.mxu2 }
 0x530   :  { %5355 = vmatpush.bf16.msra.mxu0 %v14137_v35  ;;  %v5149_v44 = vpop.f32.mrf.mxu0  ;;  %v14155_v35 = vld [vmem:[#allocation243_spill] sm:$0xff]  ;;  %v14166_v61 = vld [vmem:[#allocation268_spill] sm:$0xff] }
 0x531   :  { %5169 = vmatpush.bf16.msra.mxu2 %v14142_v40  ;;  %5181 = vmatpush.bf16.msra.mxu3 %v14143_v46  ;;  %v14160_v40 = vld [vmem:[#allocation249_spill] sm:$0xff] }
 0x533   :  { %5356 = vmatmul.bf16.vlgmr.msra.gmra.mxu0 %v11825_v43 }
 0x534   :  { %5400 = vmatpush.bf16.msrb.mxu0 %v14138_v10  ;;  %v4792_v10 = vpop.f32.mrf.mxu3 }
 0x535   :  { %5170 = vmatpush.bf16.msra.mxu2 %v14145_v0  ;;  %5182 = vmatpush.bf16.msra.mxu3 %v14146_v24  ;;  %v14162_v0 = vld [vmem:[#allocation258_spill] sm:$0xff] }
 0x536   :  { %v14163_v24 = vld [vmem:[#allocation254_spill] sm:$0xff] }
 0x537   :  { %v8516_v10 = vld [vmem:[%s12332_s10 + $0x58] sm:$0xff] }
 0x538   :  { %5401 = vmatpush.bf16.msrb.mxu0 %v14141_v15  ;;  %v5151_v37 = vpop.f32.mrf.mxu0  ;;  %v14159_v15 = vld [vmem:[#allocation253_spill] sm:$0xff] }
 0x539   :  { %5171 = vmatpush.bf16.msra.mxu2 %v14148_v47  ;;  %5183 = vmatpush.bf16.msra.mxu3 %v14149_v9  ;;  %v14164_v47 = vld [vmem:[#allocation263_spill] sm:$0xff]  ;;  %v4791_v37 = vadd.f32 %v4790_v25, %v4777_v7  ;;  %v14169_v7 = vld [vmem:[#allocation265_spill] sm:$0xff] }
 0x53a   :  { %v14165_v9 = vld [vmem:[#allocation259_spill] sm:$0xff] }
 0x53b   :  { %v5162_v21 = vpop.f32.mrf.mxu1  ;;  %v4901_v25 = vadd.f32 %v4791_v37, %v14169_v7  ;;  %v8521_v37 = vld [vmem:[%s12332_s10 + $0x30] sm:$0xff] }
 0x53c   :  { %5402 = vmatpush.bf16.msrb.mxu0 %v14144_v2  ;;  %v11900_v50 = vadd.f32 %v5162_v21, %v5149_v44  ;;  %v14161_v2 = vld [vmem:[#allocation381_spill] sm:$0xff]  ;;  %v8512_v44 = vld [vmem:[%s12332_s10 + $0x78] sm:$0xff]  ;;  %v14167_v21 = vld [vmem:[#allocation264_spill] sm:$0xff] }
 0x53d   :  { %5172 = vmatpush.bf16.msra.mxu2 %v14151_v59  ;;  %5184 = vmatpush.bf16.msra.mxu3 %v14152_v63  ;;  %v8515_v63 = vld [vmem:[%s12332_s10 + $0x60] sm:$0xff] }
 0x540   :  { %5403 = vmatpush.bf16.msrb.mxu0 %v14147_v26  ;;  %v8513_v26 = vld [vmem:[%s12332_s10 + $0x70] sm:$0xff] }
 0x541   :  { %5173 = vmatpush.bf16.msra.mxu2 %v14154_v41  ;;  %5185 = vmatpush.bf16.msra.mxu3 %v14155_v35  ;;  %v14168_v41 = vld [vmem:[#allocation261_spill] sm:$0xff] }
 0x542   :  { %v4899_v35 = vadd.f32 %v11862_v51, %v14168_v41  ;;  %v8518_v51 = vld [vmem:[%s12332_s10 + $0x48] sm:$0xff]  ;;  %v14176_v41 = vld [vmem:[#allocation283_spill] sm:$0xff] }
 0x543   :  { %v5164_v46 = vpop.f32.mrf.mxu1 }
 0x544   :  { %5404 = vmatpush.bf16.msrb.mxu0 %v14150_v5  ;;  %5174 = vmatmul.bf16.vlgmr.msra.gmra.mxu2 %v11624_v13  ;;  %v8514_v5 = vld [vmem:[%s12332_s10 + $0x68] sm:$0xff]  ;;  %v7817_v46 = vmul.f32 -1.442695, %v4901_v25  ;;  %v14177_v25 = vld [vmem:[#allocation282_spill] sm:$0xff] }
 0x545   :  { %5218 = vmatpush.bf16.msrb.mxu2 %v14156_v42  ;;  %5186 = vmatpush.bf16.msra.mxu3 %v14158_v17  ;;  %v8517_v42 = vld [vmem:[%s12332_s10 + $0x50] sm:$0xff] }
 0x546   :  { %v14171_v17 = vld [vmem:[#allocation269_spill] sm:$0xff] }
 0x548   :  { %5405 = vmatpush.bf16.msrb.mxu0 %v14153_v1  ;;  %5187 = vmatmul.bf16.vlgmr.msra.gmra.mxu3 %v11630_v12  ;;  %v11931_v1 = vpop.f32.mrf.mxu2 }
 0x549   :  { %5219 = vmatpush.bf16.msrb.mxu2 %v14159_v15  ;;  %5231 = vmatpush.bf16.msrb.mxu3 %v14160_v40  ;;  %v7815_v15 = vmul.f32 -1.442695, %v4899_v35  ;;  %v8522_v35 = vld [vmem:[%s12332_s10 + $0x28] sm:$0xff] }
 0x54b   :  { %v4842_v40 = vpop.f32.mrf.mxu3  ;;  %8429 = vpow2.f32 %v7815_v15 }
 0x54c   :  { %5406 = vmatpush.bf16.msrb.mxu0 %v14157_v6  ;;  %v14170_v6 = vld [vmem:[#allocation273_spill] sm:$0xff]  ;;  %8431 = vpow2.f32 %v7817_v46 }
 0x54d   :  { %5220 = vmatpush.bf16.msrb.mxu2 %v14162_v0  ;;  %5232 = vmatpush.bf16.msrb.mxu3 %v14163_v24  ;;  %v14172_v0 = vld [vmem:[#allocation278_spill] sm:$0xff]  ;;  %v14173_v24 = vld [vmem:[#allocation275_spill] sm:$0xff] }
 0x54e   :  { %v8525_v46 = vld [vmem:[%s12332_s10 + $0x10] sm:$0xff] }
 0x550   :  { %5407 = vmatpush.bf16.msrb.mxu0 %v14161_v2  ;;  %v5201_v59 = vpop.f32.mrf.mxu0 }
 0x551   :  { %5221 = vmatpush.bf16.msrb.mxu2 %v14164_v47  ;;  %5233 = vmatpush.bf16.msrb.mxu3 %v14165_v9  ;;  %v8520_v47 = vld [vmem:[%s12332_s10 + $0x38] sm:$0xff] }
 0x553   :  { %5408 = vmatmul.bf16.vlgmr.msrb.gmra.mxu0 %v11825_v43 }
 0x554   :  { %5586 = vmatpush.msra.mxu0 %v8512_v44  ;;  %v8519_v44 = vld [vmem:[%s12332_s10 + $0x40] sm:$0xff] }
 0x555   :  { %5222 = vmatpush.bf16.msrb.mxu2 %v14166_v61  ;;  %5234 = vmatpush.bf16.msrb.mxu3 %v14167_v21  ;;  %v14175_v61 = vld [vmem:[#allocation279_spill] sm:$0xff]  ;;  %v4844_v21 = vpop.f32.mrf.mxu3 }
 0x556   :  { %5587 = vmatpush.msra.mxu0 %v8513_v26  ;;  %v4831_v26 = vpop.f32.mrf.mxu2 }
 0x557   :  { %v14183_v26 = vld [vmem:[#allocation294_spill] sm:$0xff] }
 0x558   :  { %5588 = vmatpush.msra.mxu0 %v8514_v5  ;;  %v5203_v2 = vpop.f32.mrf.mxu0 }
 0x559   :  { %5223 = vmatpush.bf16.msrb.mxu2 %v14170_v6  ;;  %5235 = vmatpush.bf16.msrb.mxu3 %v14171_v17  ;;  %v14179_v6 = vld [vmem:[#allocation284_spill] sm:$0xff]  ;;  %v14180_v2 = vld [vmem:[#allocation293_spill] sm:$0xff] }
 0x55a   :  { %5589 = vmatpush.msra.mxu0 %v8515_v63  ;;  %v14174_v63 = vld [vmem:[#allocation281_spill] sm:$0xff] }
 0x55b   :  { %v5214_v9 = vpop.f32.mrf.mxu1 }
 0x55c   :  { %5590 = vmatpush.msra.mxu0 %v8516_v10  ;;  %v11955_v5 = vadd.f32 %v5214_v9, %v5201_v59  ;;  %v8430_v10 = vpop.eup %8429  ;;  %v8523_v59 = vld [vmem:[%s12332_s10 + $0x20] sm:$0xff] }
 0x55d   :  { %5224 = vmatpush.bf16.msrb.mxu2 %v14172_v0  ;;  %5236 = vmatpush.bf16.msrb.mxu3 %v14173_v24  ;;  %v8432_v7 = vpop.eup %8431  ;;  %v11973_v17 = vadd.f32 1.0, %v8430_v10  ;;  %v8526_v0 = vld [vmem:[%s12332_s10 + $0x8] sm:$0xff]  ;;  %v14182_v24 = vld [vmem:[#allocation298_spill] sm:$0xff]  ;;  %v4843_v10 = vadd.f32 %v4842_v40, %v11931_v1 }
 0x55e   :  { %5591 = vmatpush.msra.mxu0 %v8517_v42  ;;  %v14178_v42 = vld [vmem:[#allocation288_spill] sm:$0xff]  ;;  %v14189_v40 = vld [vmem:[#allocation318_spill] sm:$0xff] }
 0x55f   :  { %8433 = vrcp.f32 %v11973_v17  ;;  %vm4934_vm3 = vweird.f32 %v11973_v17 }
 0x560   :  { %5592 = vmatpush.msra.mxu0 %v8518_v51  ;;  %v8524_v51 = vld [vmem:[%s12332_s10 + $0x18] sm:$0xff] }
 0x561   :  { %5225 = vmatpush.bf16.msrb.mxu2 %v14174_v63  ;;  %5237 = vmatpush.bf16.msrb.mxu3 %v14175_v61 }
 0x562   :  { %5593 = vmatpush.msra.mxu0 %v8519_v44  ;;  %v14181_v44 = vld [vmem:[#allocation289_spill] sm:$0xff] }
 0x563   :  { %v5216_v15 = vpop.f32.mrf.mxu1 }
 0x564   :  { %5594 = vmatpush.msra.mxu0 %v8520_v47  ;;  %5226 = vmatmul.bf16.vlgmr.msrb.gmra.mxu2 %v11624_v13  ;;  %v11978_v13 = vadd.f32 1.0, %v8432_v7 }
 0x565   :  { %5270 = vmatpush.bf16.msra.mxu2 %v14176_v41  ;;  %5238 = vmatpush.bf16.msrb.mxu3 %v14177_v25  ;;  %v8434_v47 = vpop.eup %8433  ;;  %v14185_v41 = vld [vmem:[#allocation306_spill] sm:$0xff] }
 0x566   :  { %5595 = vmatpush.msra.mxu0 %v8521_v37  ;;  %8435 = vrcp.f32 %v11978_v13  ;;  %v14184_v37 = vld [vmem:[#allocation302_spill] sm:$0xff]  ;;  %v4930_v61 = vmul.f32 %v8434_v47, %v11973_v17  ;;  %vm4935_vm1 = vweird.f32 %v8434_v47  ;;  %vm4972_vm4 = vweird.f32 %v11978_v13 }
 0x567   :  { %v4881_v63 = vpop.f32.mrf.mxu2  ;;  %vm12016_vm5 = vmor %vm4934_vm3, %vm4935_vm1 }
 0x568   :  { %5596 = vmatpush.msra.mxu0 %v8522_v35  ;;  %5239 = vmatmul.bf16.vlgmr.msrb.gmra.mxu3 %v11630_v12  ;;  %v8527_v12 = vld [vmem:[%s12332_s10] sm:$0xff]  ;;  %v4931_v7 = vsub.f32 1.0, %v4930_v61 }
 0x569   :  { %5271 = vmatpush.bf16.msra.mxu2 %v14178_v42  ;;  %5283 = vmatpush.bf16.msra.mxu3 %v14179_v6  ;;  %v14186_v6 = vld [vmem:[#allocation312_spill] sm:$0xff] }
 0x56a   :  { %5597 = vmatpush.msra.mxu0 %v8523_v59  ;;  %v4903_v15 = vadd.f32 %v4843_v10, %v14186_v6  ;;  %v14194_v6 = vld [vmem:[#allocation334_spill] sm:$0xff] }
 0x56b   :  { %v4894_v35 = vpop.f32.mrf.mxu3 }
 0x56c   :  { %5598 = vmatpush.msra.mxu0 %v8524_v51  ;;  %v8436_v9 = vpop.eup %8435  ;;  %v4895_v59 = vadd.f32 %v4894_v35, %v4881_v63 }
 0x56d   :  { %5272 = vmatpush.bf16.msra.mxu2 %v14180_v2  ;;  %5284 = vmatpush.bf16.msra.mxu3 %v14181_v44  ;;  %v4968_v21 = vmul.f32 %v8436_v9, %v11978_v13  ;;  %v4932_v2 = vmul.f32 %v8434_v47, %v4931_v7  ;;  %v14188_v44 = vld [vmem:[#allocation313_spill] sm:$0xff]  ;;  %vm4973_vm2 = vweird.f32 %v8436_v9 }
 0x56e   :  { %5599 = vmatpush.msra.mxu0 %v8525_v46  ;;  %v4905_v42 = vadd.f32 %v4895_v59, %v13805_v22  ;;  %vm4974_vm6 = vmor %vm4972_vm4, %vm4973_vm2 }
 0x56f   :  { %v4969_v25 = vsub.f32 1.0, %v4968_v21 }
 0x570   :  { %5600 = vmatpush.msra.mxu0 %v8526_v0  ;;  %v7819_v51 = vmul.f32 -1.442695, %v4905_v42  ;;  %v4940_v0 = vand.u32 2147483648, %v11973_v17 }
 0x571   :  { %5273 = vmatpush.bf16.msra.mxu2 %v14182_v24  ;;  %5285 = vmatpush.bf16.msra.mxu3 %v14183_v26  ;;  %v4970_v46 = vmul.f32 %v8436_v9, %v4969_v25  ;;  %v4938_v24 = vand.u32 2147483647, %v11973_v17  ;;  %v4976_v26 = vand.u32 2147483647, %v11978_v13 }
 0x572   :  { %5601 = vmatpush.msra.mxu0 %v8527_v12  ;;  %8437 = vpow2.f32 %v7819_v51  ;;  %v4941_v10 = vor.u32 1.1754944e-38, %v4940_v0  ;;  %v14195_v51 = vld [vmem:[#allocation335_spill] sm:$0xff]  ;;  %v14198_v12 = vld [vmem:[#allocation344_spill] sm:$0xff] }
 0x573   :  { %v4896_v1 = vpop.f32.mrf.mxu3  ;;  %8439 = vtanh.f32 %v4903_v15  ;;  %v4971_v22 = vadd.f32 %v8436_v9, %v4970_v46  ;;  %vm4939_vm7 = vcmp.eq.f32.partialorder %v4938_v24, 8.507059e+37  ;;  %vm4977_vm8 = vcmp.eq.f32.partialorder %v4976_v26, 8.507059e+37  ;;  %v14199_v24 = vld [vmem:[#allocation341_spill] sm:$0xff] }
 0x575   :  { %5274 = vmatpush.bf16.msra.mxu2 %v14184_v37  ;;  %5286 = vmatpush.bf16.msra.mxu3 %v13804_v53  ;;  %v4883_v53 = vpop.f32.mrf.mxu2  ;;  %v14192_v37 = vld [vmem:[#allocation323_spill] sm:$0xff]  ;;  %v4975_v61 = vsel %vm4974_vm6, %v8436_v9, %v4971_v22  ;;  %v14197_v22 = vld [vmem:[#allocation338_spill] sm:$0xff] }
 0x578   :  { %v8438_v63 = vpop.eup %8437 }
 0x579   :  { %5275 = vmatpush.bf16.msra.mxu2 %v14185_v41  ;;  %5287 = vmatpush.bf16.msra.mxu3 %v13808_v28  ;;  %v14187_v28 = vld [vmem:[#allocation316_spill] sm:$0xff]  ;;  %v4991_v21 = vadd.f32 1.0, %v8438_v63  ;;  %v8440_v41 = vpop.eup %8439  ;;  %v14201_v63 = vld [vmem:[#allocation346_spill] sm:$0xff] }
 0x57b   :  { %8441 = vrcp.f32 %v4991_v21  ;;  %v5018_v15 = vand.u32 2147483648, %v4991_v21  ;;  %vm5012_vm10 = vweird.f32 %v4991_v21 }
 0x57d   :  { %5276 = vmatpush.bf16.msra.mxu2 %v13806_v56  ;;  %5288 = vmatpush.bf16.msra.mxu3 %v13811_v62  ;;  %v4933_v56 = vadd.f32 %v8434_v47, %v4932_v2  ;;  %v4978_v62 = vand.u32 2147483648, %v11978_v13 }
 0x57f   :  { %v4979_v35 = vor.u32 1.1754944e-38, %v4978_v62 }
 0x581   :  { %5277 = vmatpush.bf16.msra.mxu2 %v14187_v28  ;;  %5289 = vmatpush.bf16.msra.mxu3 %v14188_v44  ;;  %v8442_v9 = vpop.eup %8441 }
 0x582   :  { %v5008_v25 = vmul.f32 %v8442_v9, %v4991_v21  ;;  %vm5013_vm9 = vweird.f32 %v8442_v9 }
 0x583   :  { %v5253_v42 = vpop.f32.mrf.mxu0  ;;  %vm5014_vm11 = vmor %vm5012_vm10, %vm5013_vm9 }
 0x584   :  { %5278 = vmatmul.bf16.vlgmr.msra.gmra.mxu2 %v11825_v43  ;;  %v12033_v53 = vadd.f32 %v5253_v42, %v11843_v36  ;;  %v5019_v36 = vor.u32 1.1754944e-38, %v5018_v15  ;;  %v14215_v15 = vld [vmem:[#allocation364_spill] sm:$0xff] }
 0x585   :  { %5322 = vmatpush.bf16.msrb.mxu2 %v14189_v40  ;;  %5290 = vmatpush.bf16.msra.mxu3 %v13817_v14  ;;  %v4937_v14 = vsel %vm12016_vm5, %v8434_v47, %v4933_v56  ;;  %v14193_v47 = vld [vmem:[#allocation328_spill] sm:$0xff] }
 0x586   :  { %v4942_v17 = vsel %vm4939_vm7, %v4941_v10, %v4937_v14  ;;  %v14196_v56 = vld [vmem:[#allocation340_spill] sm:$0xff]  ;;  %v14205_v10 = vld [vmem:[#allocation351_spill] sm:$0xff] }
 0x587   :  { %v5025_v13 = vmul.f32 %v8440_v41, %v4942_v17  ;;  %v14203_v41 = vld [vmem:[#allocation347_spill] sm:$0xff]  ;;  %v14206_v17 = vld [vmem:[#allocation352_spill] sm:$0xff] }
 0x589   :  { %5323 = vmatpush.bf16.msrb.mxu2 %v14192_v37  ;;  %5335 = vmatpush.bf16.msrb.mxu3 %v13818_v55  ;;  %v4980_v55 = vsel %vm4977_vm8, %v4979_v35, %v4975_v61  ;;  %v14200_v37 = vld [vmem:[#allocation342_spill] sm:$0xff]  ;;  %v14204_v35 = vld [vmem:[#allocation348_spill] sm:$0xff] }
 0x58a   :  { %v5023_v59 = vmul.f32 %v4980_v55, %v11288_v38  ;;  %v14207_v55 = vld [vmem:[#allocation353_spill] sm:$0xff] }
 0x58b   :  { %v5084_v2 = vpop.f32.mrf.mxu3 }
 0x58c   :  { %v5027_v7 = vadd.f32 %v5025_v13, %v5023_v59  ;;  %v14208_v13 = vld [vmem:[#allocation355_spill] sm:$0xff] }
 0x58d   :  { %5324 = vmatpush.bf16.msrb.mxu2 %v13816_v33  ;;  %5336 = vmatpush.bf16.msrb.mxu3 %v13821_v18  ;;  %v5009_v33 = vsub.f32 1.0, %v5008_v25  ;;  %v5071_v18 = vpop.f32.mrf.mxu2  ;;  %v14213_v25 = vld [vmem:[#allocation363_spill] sm:$0xff] }
 0x58e   :  { %8443 = vtanh.f32 %v5027_v7  ;;  %v12039_v28 = vadd.f32 %v5084_v2, %v5071_v18  ;;  %v14212_v7 = vld [vmem:[#allocation360_spill] sm:$0xff] }
 0x58f   :  { %v5010_v38 = vmul.f32 %v8442_v9, %v5009_v33  ;;  %v14218_v2 = vld [vmem:[#allocation368_spill] sm:$0xff] }
 0x591   :  { %5325 = vmatpush.bf16.msrb.mxu2 %v13820_v29  ;;  %5337 = vmatpush.bf16.msrb.mxu3 %v14193_v47  ;;  %v5016_v29 = vand.u32 2147483647, %v4991_v21  ;;  %v5011_v46 = vadd.f32 %v8442_v9, %v5010_v38  ;;  %v14202_v21 = vld [vmem:[#allocation345_spill] sm:$0xff]  ;;  %v14209_v47 = vld [vmem:[#allocation356_spill] sm:$0xff]  ;;  %v14216_v38 = vld [vmem:[#allocation367_spill] sm:$0xff] }
 0x593   :  { %v5015_v44 = vsel %vm5014_vm11, %v8442_v9, %v5011_v46  ;;  %vm5017_vm12 = vcmp.eq.f32.partialorder %v5016_v29, 8.507059e+37  ;;  %v5086_v26 = vpop.f32.mrf.mxu3  ;;  %v14210_v9 = vld [vmem:[#allocation357_spill] sm:$0xff] }
 0x594   :  { %v8444_v1 = vpop.eup %8443  ;;  %v5020_v40 = vsel %vm5017_vm12, %v5019_v36, %v5015_v44  ;;  %v14219_v36 = vld [vmem:[#allocation371_spill] sm:$0xff]  ;;  %v14228_v26 = vld [vmem:[#allocation380_spill] sm:$0xff] }
 0x595   :  { %5326 = vmatpush.bf16.msrb.mxu2 %v14194_v6  ;;  %5338 = vmatpush.bf16.msrb.mxu3 %v13825_v52  ;;  %v5255_v52 = vpop.f32.mrf.mxu0  ;;  %v5031_v62 = vmul.f32 %v8444_v1, %v5020_v40  ;;  %v14214_v6 = vld [vmem:[#allocation361_spill] sm:$0xff]  ;;  %v14221_v40 = vld [vmem:[#allocation372_spill] sm:$0xff] }
 0x596   :  { %v14220_v52 = vld [vmem:[#allocation369_spill] sm:$0xff] }
 0x597   :  { %v12043_v0 = vpack.c.bf16 %v5031_v62, %v5031_v62  ;;  %v14224_v62 = vld [vmem:[#allocation374_spill] sm:$0xff] }
 0x599   :  { %5327 = vmatpush.bf16.msrb.mxu2 %v13824_v19  ;;  %5339 = vmatpush.bf16.msrb.mxu3 %v14195_v51  ;;  %v5073_v19 = vpop.f32.mrf.mxu2  ;;  %v14217_v51 = vld [vmem:[#allocation365_spill] sm:$0xff] }
 0x59a   :  { %5265 = vmatmul.bf16.vlgmr.msra.gmra.mxu1 %v12043_v0  ;;  %5291 = vmatmul.bf16.vlgmr.msra.gmra.mxu3 %v12043_v0  ;;  %v14225_v19 = vld [vmem:[#allocation377_spill] sm:$0xff] }
 0x59b   :  { %5361 = vmatpush.bf16.msra.mxu1 %v14200_v37  ;;  %v14229_v37 = vld [vmem:[#allocation383_spill] sm:$0xff] }
 0x59d   :  { %5328 = vmatpush.bf16.msrb.mxu2 %v14196_v56  ;;  %5340 = vmatpush.bf16.msrb.mxu3 %v14197_v22  ;;  %v5305_v14 = vpop.f32.mrf.mxu0  ;;  %v14223_v22 = vld [vmem:[#allocation373_spill] sm:$0xff] }
 0x59e   :  { %v12053_v61 = vadd.f32 %v5305_v14, %v11874_v11  ;;  %v14211_v11 = vld [vmem:[#allocation359_spill] sm:$0xff]  ;;  %v14231_v14 = vld [vmem:[#allocation386_spill] sm:$0xff] }
 0x59f   :  { %5362 = vmatpush.bf16.msra.mxu1 %v14204_v35 }
 0x5a1   :  { %5329 = vmatpush.bf16.msrb.mxu2 %v14198_v12  ;;  %5341 = vmatpush.bf16.msrb.mxu3 %v14199_v24  ;;  %v14226_v12 = vld [vmem:[#allocation379_spill] sm:$0xff]  ;;  %v14227_v24 = vld [vmem:[#allocation382_spill] sm:$0xff] }
 0x5a3   :  { %5363 = vmatpush.bf16.msra.mxu1 %v14207_v55  ;;  %v14236_v55 = vld [vmem:[#allocation397_spill] sm:$0xff] }
 0x5a4   :  { %5330 = vmatmul.bf16.vlgmr.msrb.gmra.mxu2 %v11825_v43 }
 0x5a5   :  { %5374 = vmatpush.bf16.msra.mxu2 %v14201_v63  ;;  %5342 = vmatpush.bf16.msrb.mxu3 %v14202_v21  ;;  %v5307_v59 = vpop.f32.mrf.mxu0  ;;  %v14230_v63 = vld [vmem:[#allocation385_spill] sm:$0xff]  ;;  %v14232_v21 = vld [vmem:[#allocation388_spill] sm:$0xff] }
 0x5a6   :  { %v8531_v59 = vld [vmem:[%s12332_s10 + $0xe0] sm:$0xff] }
 0x5a7   :  { %5364 = vmatpush.bf16.msra.mxu1 %v14210_v9  ;;  %v5123_v42 = vpop.f32.mrf.mxu2  ;;  %v8534_v9 = vld [vmem:[%s12332_s10 + $0xc8] sm:$0xff] }
 0x5a9   :  { %5387 = vmatpush.bf16.msra.mxu3 %v14203_v41  ;;  %5375 = vmatpush.bf16.msra.mxu2 %v14205_v10 }
 0x5aa   :  { %5317 = vmatmul.bf16.vlgmr.msrb.gmra.mxu1 %v12043_v0  ;;  %5343 = vmatmul.bf16.vlgmr.msrb.gmra.mxu3 %v12043_v0 }
 0x5ab   :  { %5365 = vmatpush.bf16.msra.mxu1 %v14212_v7  ;;  %v5136_v29 = vpop.f32.mrf.mxu3  ;;  %v8536_v7 = vld [vmem:[%s12332_s10 + $0xb8] sm:$0xff] }
 0x5ac   :  { %v12076_v46 = vadd.f32 %v5136_v29, %v5123_v42  ;;  %v8540_v29 = vld [vmem:[%s12332_s10 + $0x98] sm:$0xff] }
 0x5ad   :  { %5388 = vmatpush.bf16.msra.mxu3 %v14206_v17  ;;  %5376 = vmatpush.bf16.msra.mxu2 %v14208_v13  ;;  %v14235_v17 = vld [vmem:[#allocation395_spill] sm:$0xff]  ;;  %v8530_v13 = vld [vmem:[%s12332_s10 + $0xe8] sm:$0xff] }
 0x5af   :  { %5366 = vmatpush.bf16.msra.mxu1 %v14215_v15  ;;  %v5125_v44 = vpop.f32.mrf.mxu2  ;;  %v8539_v15 = vld [vmem:[%s12332_s10 + $0xa0] sm:$0xff] }
 0x5b0   :  { %v5357_v33 = vpop.f32.mrf.mxu0  ;;  %v8543_v44 = vld [vmem:[%s12332_s10 + $0x80] sm:$0xff] }
 0x5b1   :  { %5389 = vmatpush.bf16.msra.mxu3 %v14209_v47  ;;  %5377 = vmatpush.bf16.msra.mxu2 %v14211_v11  ;;  %v12071_v18 = vadd.f32 %v5357_v33, %v11900_v50  ;;  %v14222_v50 = vld [vmem:[#allocation376_spill] sm:$0xff]  ;;  %v8533_v47 = vld [vmem:[%s12332_s10 + $0xd0] sm:$0xff] }
 0x5b2   :  { %v8538_v33 = vld [vmem:[%s12332_s10 + $0xa8] sm:$0xff] }
 0x5b3   :  { %5367 = vmatpush.bf16.msra.mxu1 %v14218_v2  ;;  %v5138_v56 = vpop.f32.mrf.mxu3 }
 0x5b5   :  { %5378 = vmatpush.bf16.msra.mxu2 %v14213_v25  ;;  %5390 = vmatpush.bf16.msra.mxu3 %v14214_v6  ;;  %v8537_v25 = vld [vmem:[%s12332_s10 + $0xb0] sm:$0xff] }
 0x5b7   :  { %5368 = vmatpush.bf16.msra.mxu1 %v14221_v40 }
 0x5b8   :  { %v5359_v1 = vpop.f32.mrf.mxu0 }
 0x5b9   :  { %5379 = vmatpush.bf16.msra.mxu2 %v14216_v38  ;;  %5391 = vmatpush.bf16.msra.mxu3 %v14217_v51  ;;  %v8541_v51 = vld [vmem:[%s12332_s10 + $0x90] sm:$0xff] }
 0x5ba   :  { %5369 = vmatmul.bf16.vlgmr.msra.gmra.mxu1 %v12043_v0 }
 0x5bb   :  { %5413 = vmatpush.bf16.msrb.mxu1 %v14224_v62 }
 0x5bd   :  { %5380 = vmatpush.bf16.msra.mxu2 %v14219_v36  ;;  %5392 = vmatpush.bf16.msra.mxu3 %v14220_v52  ;;  %v8542_v36 = vld [vmem:[%s12332_s10 + $0x88] sm:$0xff] }
 0x5bf   :  { %5414 = vmatpush.bf16.msrb.mxu1 %v14226_v12 }
 0x5c1   :  { %5381 = vmatpush.bf16.msra.mxu2 %v14222_v50  ;;  %5393 = vmatpush.bf16.msra.mxu3 %v14223_v22 }
 0x5c3   :  { %5415 = vmatpush.bf16.msrb.mxu1 %v14229_v37  ;;  %v14239_v37 = vld [vmem:[#allocation399_spill] sm:$0xff] }
 0x5c4   :  { %5382 = vmatmul.bf16.vlgmr.msra.gmra.mxu2 %v11825_v43 }
 0x5c5   :  { %5426 = vmatpush.bf16.msrb.mxu2 %v14225_v19  ;;  %5394 = vmatpush.bf16.msra.mxu3 %v13861_v57 }
 0x5c7   :  { %5416 = vmatpush.bf16.msrb.mxu1 %v14231_v14  ;;  %v5175_v57 = vpop.f32.mrf.mxu2 }
 0x5c8   :  { %5395 = vmatmul.bf16.vlgmr.msra.gmra.mxu3 %v12043_v0 }
 0x5c9   :  { %5427 = vmatpush.bf16.msrb.mxu2 %v14227_v24  ;;  %5439 = vmatpush.bf16.msrb.mxu3 %v14228_v26 }
 0x5cb   :  { %5417 = vmatpush.bf16.msrb.mxu1 %v13867_v49  ;;  %v14233_v49 = vld [vmem:[#allocation394_spill] sm:$0xff] }
 0x5cd   :  { %5428 = vmatpush.bf16.msrb.mxu2 %v14230_v63  ;;  %5440 = vmatpush.bf16.msrb.mxu3 %v13865_v39  ;;  %v5188_v39 = vpop.f32.mrf.mxu3 }
 0x5ce   :  { %v12108_v10 = vadd.f32 %v5188_v39, %v5175_v57 }
 0x5cf   :  { %5418 = vmatpush.bf16.msrb.mxu1 %v10458_v31  ;;  %v14237_v31 = vld [vmem:[#allocation396_spill] sm:$0xff] }
 0x5d0   :  { %v5409_v41 = vpop.f32.mrf.mxu0 }
 0x5d1   :  { %5429 = vmatpush.bf16.msrb.mxu2 %v14232_v21  ;;  %5441 = vmatpush.bf16.msrb.mxu3 %v13868_v16  ;;  %v12103_v35 = vadd.f32 %v5409_v41, %v11955_v5  ;;  %v5177_v16 = vpop.f32.mrf.mxu2 }
 0x5d3   :  { %5419 = vmatpush.bf16.msrb.mxu1 %v10469_v34  ;;  %v8529_v34 = vld [vmem:[%s12332_s10 + $0xf0] sm:$0xff] }
 0x5d5   :  { %5430 = vmatpush.bf16.msrb.mxu2 %v13866_v27  ;;  %5442 = vmatpush.bf16.msrb.mxu3 %v13869_v23  ;;  %v14234_v27 = vld [vmem:[#allocation393_spill] sm:$0xff]  ;;  %v5190_v5 = vpop.f32.mrf.mxu3 }
 0x5d7   :  { %5420 = vmatpush.bf16.msrb.mxu1 %v14235_v17 }
 0x5d8   :  { %v5411_v23 = vpop.f32.mrf.mxu0 }
 0x5d9   :  { %5431 = vmatpush.bf16.msrb.mxu2 %v10465_v4  ;;  %5443 = vmatpush.bf16.msrb.mxu3 %v13870_v3  ;;  %v8528_v4 = vld [vmem:[%s12332_s10 + $0xf8] sm:$0xff] }
 0x5da   :  { %5421 = vmatmul.bf16.vlgmr.msrb.gmra.mxu1 %v12043_v0  ;;  %v14238_v3 = vld [vmem:[#allocation398_spill] sm:$0xff] }
 0x5db   :  { %5606 = vmatpush.msra.mxu1 %v8528_v4 }
 0x5dd   :  { %5432 = vmatpush.bf16.msrb.mxu2 %v14233_v49  ;;  %5444 = vmatpush.bf16.msrb.mxu3 %v14234_v27 }
 0x5de   :  { %5607 = vmatpush.msra.mxu1 %v8529_v34 }
 0x5e0   :  { %5608 = vmatpush.msra.mxu1 %v8530_v13 }
 0x5e1   :  { %5433 = vmatpush.bf16.msrb.mxu2 %v14236_v55  ;;  %5445 = vmatpush.bf16.msrb.mxu3 %v14237_v31 }
 0x5e2   :  { %5609 = vmatpush.msra.mxu1 %v8531_v59 }
 0x5e4   :  { %5434 = vmatmul.bf16.vlgmr.msrb.gmra.mxu2 %v11825_v43  ;;  %v8532_v43 = vld [vmem:[%s12332_s10 + $0xd8] sm:$0xff] }
 0x5e5   :  { %5446 = vmatpush.bf16.msrb.mxu3 %v14238_v3  ;;  %5610 = vmatpush.msra.mxu1 %v8532_v43  ;;  %v14241_v3 = vld [vmem:[#allocation400_spill] sm:$0xff] }
 0x5e7   :  { %5611 = vmatpush.msra.mxu1 %v8533_v47  ;;  %v5227_v11 = vpop.f32.mrf.mxu2 }
 0x5e8   :  { %5447 = vmatmul.bf16.vlgmr.msrb.gmra.mxu3 %v12043_v0  ;;  %v8535_v0 = vld [vmem:[%s12332_s10 + $0xc0] sm:$0xff] }
 0x5e9   :  { %5612 = vmatpush.msra.mxu1 %v8534_v9 }
 0x5eb   :  { %5613 = vmatpush.msra.mxu1 %v8535_v0  ;;  %v5240_v42 = vpop.f32.mrf.mxu3 }
 0x5ec   :  { %v12150_v6 = vadd.f32 %v5240_v42, %v5227_v11 }
 0x5ed   :  { %5614 = vmatpush.msra.mxu1 %v8536_v7 }
 0x5ef   :  { %5615 = vmatpush.msra.mxu1 %v8537_v25  ;;  %v5229_v38 = vpop.f32.mrf.mxu2 }
 0x5f1   :  { %5616 = vmatpush.msra.mxu1 %v8538_v33 }
 0x5f3   :  { %5617 = vmatpush.msra.mxu1 %v8539_v15  ;;  %v5242_v2 = vpop.f32.mrf.mxu3 }
 0x5f5   :  { %5618 = vmatpush.msra.mxu1 %v8540_v29 }
 0x5f7   :  { %5619 = vmatpush.msra.mxu1 %v8541_v51 }
 0x5f9   :  { %5620 = vmatpush.msra.mxu1 %v8542_v36 }
 0x5fb   :  { %5621 = vmatpush.msra.mxu1 %v8543_v44 }
 0x607   :  { %v5279_v52 = vpop.f32.mrf.mxu2 }
 0x608   :  { %v5280_v1 = vadd.f32 %v5279_v52, %v12039_v28 }
 0x60f   :  { %v5281_v40 = vpop.f32.mrf.mxu2 }
 0x617   :  { %v5266_v50 = vpop.f32.mrf.mxu1 }
 0x618   :  { %v5267_v56 = vadd.f32 %v5266_v50, %v12033_v53 }
 0x61a   :  { %v5452_v22 = vadd.f32 %v5267_v56, %v13928_v60  ;;  %v14240_v60 = vld [vmem:[#allocation401_spill] sm:$0xff] }
 0x61c   :  { %v7820_v62 = vmul.f32 -1.442695, %v5452_v22 }
 0x61d   :  { %v5292_v19 = vpop.f32.mrf.mxu3 }
 0x61e   :  { %8445 = vpow2.f32 %v7820_v62  ;;  %v5293_v12 = vadd.f32 %v5292_v19, %v5280_v1 }
 0x61f   :  { %v5268_v24 = vpop.f32.mrf.mxu1 }
 0x620   :  { %v5453_v63 = vadd.f32 %v5293_v12, %v14239_v37 }
 0x622   :  { %v7821_v14 = vmul.f32 -1.442695, %v5453_v63 }
 0x624   :  { %v8446_v21 = vpop.eup %8445  ;;  %8447 = vpow2.f32 %v7821_v14 }
 0x625   :  { %v5466_v57 = vadd.f32 1.0, %v8446_v21  ;;  %v5294_v41 = vpop.f32.mrf.mxu3 }
 0x627   :  { %v5331_v26 = vpop.f32.mrf.mxu2  ;;  %8449 = vrcp.f32 %v5466_v57  ;;  %v5318_v28 = vpop.f32.mrf.mxu1  ;;  %v5479_v29 = vand.u32 2147483648, %v5466_v57  ;;  %vm5473_vm15 = vweird.f32 %v5466_v57  ;;  %v5477_v51 = vand.u32 2147483647, %v5466_v57 }
 0x628   :  { %v5319_v53 = vadd.f32 %v5318_v28, %v12053_v61  ;;  %v5332_v27 = vadd.f32 %v5331_v26, %v12076_v46 }
 0x629   :  { %v5480_v1 = vor.u32 1.1754944e-38, %v5479_v29  ;;  %vm5478_vm1 = vcmp.eq.f32.partialorder %v5477_v51, 8.507059e+37 }
 0x62a   :  { %v8448_v16 = vpop.eup %8447  ;;  %v5454_v49 = vadd.f32 %v5319_v53, %v14240_v60 }
 0x62b   :  { %v12177_v5 = vadd.f32 1.0, %v8448_v16 }
 0x62c   :  { %v7822_v23 = vmul.f32 -1.442695, %v5454_v49 }
 0x62d   :  { %v8450_v17 = vpop.eup %8449  ;;  %v5344_v55 = vpop.f32.mrf.mxu3  ;;  %vm5488_vm4 = vweird.f32 %v12177_v5 }
 0x62e   :  { %v5469_v31 = vmul.f32 %v8450_v17, %v5466_v57  ;;  %8451 = vpow2.f32 %v7822_v23  ;;  %v5345_v4 = vadd.f32 %v5344_v55, %v5332_v27  ;;  %vm5474_vm14 = vweird.f32 %v8450_v17 }
 0x62f   :  { %v5333_v39 = vpop.f32.mrf.mxu2  ;;  %v5320_v34 = vpop.f32.mrf.mxu1  ;;  %8453 = vrcp.f32 %v12177_v5  ;;  %vm5475_vm0 = vmor %vm5473_vm15, %vm5474_vm14  ;;  %v5494_v23 = vand.u32 2147483648, %v12177_v5 }
 0x630   :  { %v5455_v13 = vadd.f32 %v5345_v4, %v14241_v3  ;;  %v5470_v59 = vsub.f32 1.0, %v5469_v31 }
 0x632   :  { %v7823_v61 = vmul.f32 -1.442695, %v5455_v13  ;;  %v5471_v46 = vmul.f32 %v8450_v17, %v5470_v59  ;;  %v5495_v59 = vor.u32 1.1754944e-38, %v5494_v23 }
 0x634   :  { %v8452_v43 = vpop.eup %8451  ;;  %8455 = vpow2.f32 %v7823_v61  ;;  %v5472_v15 = vadd.f32 %v8450_v17, %v5471_v46 }
 0x635   :  { %v5504_v47 = vadd.f32 1.0, %v8452_v43  ;;  %v5346_v9 = vpop.f32.mrf.mxu3  ;;  %v12181_v0 = vpop.eup %8453 }
 0x636   :  { %v5484_v42 = vmul.f32 %v12181_v0, %v12177_v5  ;;  %vm5489_vm6 = vweird.f32 %v12181_v0 }
 0x637   :  { %8457 = vrcp.f32 %v5504_v47  ;;  %v5370_v11 = vpop.f32.mrf.mxu1  ;;  %v5517_v56 = vand.u32 2147483648, %v5504_v47  ;;  %v5515_v12 = vand.u32 2147483647, %v5504_v47  ;;  %vm5511_vm3 = vweird.f32 %v5504_v47  ;;  %vm5490_vm9 = vmor %vm5488_vm4, %vm5489_vm6 }
 0x638   :  { %v5371_v7 = vadd.f32 %v5370_v11, %v12071_v18  ;;  %v5485_v44 = vsub.f32 1.0, %v5484_v42  ;;  %v5476_v18 = vsel %vm5475_vm0, %v8450_v17, %v5472_v15 }
 0x639   :  { %v5518_v41 = vor.u32 1.1754944e-38, %v5517_v56  ;;  %vm5516_vm7 = vcmp.eq.f32.partialorder %v5515_v12, 8.507059e+37 }
 0x63a   :  { %v8456_v25 = vpop.eup %8455  ;;  %v5456_v33 = vadd.f32 %v5371_v7, %v13953_v32  ;;  %v5481_v32 = vsel %vm5478_vm1, %v5480_v1, %v5476_v18  ;;  %v5486_v26 = vmul.f32 %v12181_v0, %v5485_v44 }
 0x63b   :  { %v5505_v38 = vadd.f32 1.0, %v8456_v25 }
 0x63c   :  { %8459 = vtanh.f32 %v5456_v33  ;;  %v5487_v60 = vadd.f32 %v12181_v0, %v5486_v26 }
 0x63d   :  { %v8458_v2 = vpop.eup %8457  ;;  %8461 = vrcp.f32 %v5505_v38  ;;  %v5532_v49 = vand.u32 2147483648, %v5505_v38  ;;  %vm5526_vm10 = vweird.f32 %v5505_v38 }
 0x63e   :  { %v5507_v52 = vmul.f32 %v8458_v2, %v5504_v47  ;;  %vm5512_vm2 = vweird.f32 %v8458_v2  ;;  %v5491_v4 = vsel %vm5490_vm9, %v12181_v0, %v5487_v60 }
 0x63f   :  { %v5372_v40 = vpop.f32.mrf.mxu1  ;;  %vm5513_vm5 = vmor %vm5511_vm3, %vm5512_vm2  ;;  %v5533_v13 = vor.u32 1.1754944e-38, %v5532_v49 }
 0x640   :  { %v5508_v50 = vsub.f32 1.0, %v5507_v52 }
 0x642   :  { %v8460_v62 = vpop.eup %8459  ;;  %v5509_v19 = vmul.f32 %v8458_v2, %v5508_v50 }
 0x643   :  { %v8462_v37 = vpop.eup %8461  ;;  %v5578_v63 = vmul.f32 %v8460_v62, %v5481_v32 }
 0x644   :  { %v5522_v21 = vmul.f32 %v8462_v37, %v5505_v38  ;;  %v5510_v57 = vadd.f32 %v8458_v2, %v5509_v19  ;;  %vm5527_vm8 = vweird.f32 %v8462_v37 }
 0x645   :  { %vm5528_vm11 = vmor %vm5526_vm10, %vm5527_vm8 }
 0x646   :  { %v5523_v53 = vsub.f32 1.0, %v5522_v21  ;;  %v5514_v16 = vsel %vm5513_vm5, %v8458_v2, %v5510_v57 }
 0x647   :  { %v5383_v36 = vpop.f32.mrf.mxu2  ;;  %v5519_v27 = vsel %vm5516_vm7, %v5518_v41, %v5514_v16  ;;  %v12206_v16 = vld [vmem:[#allocation2] sm:$0x3]  ;;  %vm862_vm7 = vcmask 41984  }
 0x648   :  { %v5384_v22 = vadd.f32 %v5383_v36, %v12108_v10  ;;  %v5492_v10 = vand.u32 2147483647, %v12177_v5  ;;  %v5524_v17 = vmul.f32 %v8462_v37, %v5523_v53  ;;  %v5576_v55 = vmul.f32 %v5519_v27, %v11608_v30 }
 0x649   :  { %v861_v60 = vsub.f32 %v12206_v16, %v11854_v54 }
 0x64a   :  { %v5580_v31 = vadd.f32 %v5578_v63, %v5576_v55  ;;  %v5525_v34 = vadd.f32 %v8462_v37, %v5524_v17  ;;  %vm5493_vm12 = vcmp.eq.f32.partialorder %v5492_v10, 8.507059e+37  ;;  %v8544_v17 = vld [vmem:[#allocation10] ss:$0 sm:$0xff] }
 0x64b   :  { %v5396_v24 = vpop.f32.mrf.mxu3  ;;  %v5496_v30 = vsel %vm5493_vm12, %v5495_v59, %v5491_v4  ;;  %v12211_v49 = vadd.f32 %v861_v60, %v11854_v54  ;;  %863 = vst.msk [vmem:[%s12335_s13] sm:$0x3] %vm862_vm7, %v861_v60 }
 0x64c   :  { %v5397_v14 = vadd.f32 %v5396_v24, %v5384_v22  ;;  %v5529_v61 = vsel %vm5528_vm11, %v8462_v37, %v5525_v34 }
 0x64d   :  { %v12215_v27 = vsub.f32 %v12206_v16, %v12211_v49 }
 0x64e   :  { %v5457_v28 = vadd.f32 %v5397_v14, %v13933_v45  ;;  %v5530_v45 = vand.u32 2147483647, %v5505_v38 }
 0x64f   :  { %v5385_v39 = vpop.f32.mrf.mxu2  ;;  %7799 = vst.msk [vmem:[%s12335_s13 + $0x2] sm:$0x3] %vm862_vm7, %v12215_v27 }
 0x650   :  { %8463 = vtanh.f32 %v5457_v28  ;;  %vm5531_vm14 = vcmp.eq.f32.partialorder %v5530_v45, 8.507059e+37 }
 0x651   :  { %v5534_v47 = vsel %vm5531_vm14, %v5533_v13, %v5529_v61 }
 0x652   :  { %v5577_v9 = vmul.f32 %v5534_v47, %v11553_v8 }
 0x653   :  { %v5398_v3 = vpop.f32.mrf.mxu3 }
 0x656   :  { %v8464_v43 = vpop.eup %8463 }
 0x657   :  { %v5579_v46 = vmul.f32 %v8464_v43, %v5496_v30  ;;  %v5422_v11 = vpop.f32.mrf.mxu1 }
 0x658   :  { %v5423_v7 = vadd.f32 %v5422_v11, %v12103_v35  ;;  %v8705_v11 = vmov 683565275  }
 0x659   :  { %v5581_v5 = vadd.f32 %v5579_v46, %v5577_v9 }
 0x65a   :  { %v5458_v0 = vadd.f32 %v5423_v7, %v13951_v58  ;;  %v8706_v7 = vmov 2475754826  }
 0x65c   :  { %v7824_v25 = vmul.f32 -1.442695, %v5458_v0 }
 0x65e   :  { %8465 = vpow2.f32 %v7824_v25 }
 0x65f   :  { %v5424_v33 = vpop.f32.mrf.mxu1 }
 0x664   :  { %v8466_v51 = vpop.eup %8465 }
 0x665   :  { %v5544_v2 = vadd.f32 1.0, %v8466_v51 }
 0x667   :  { %v5435_v42 = vpop.f32.mrf.mxu2  ;;  %8467 = vrcp.f32 %v5544_v2  ;;  %v5557_v50 = vand.u32 2147483648, %v5544_v2  ;;  %vm5551_vm0 = vweird.f32 %v5544_v2 }
 0x668   :  { %v5436_v15 = vadd.f32 %v5435_v42, %v12150_v6  ;;  %v5555_v6 = vand.u32 2147483647, %v5544_v2  ;;  %v8707_v42 = vmov 2131351028  }
 0x66a   :  { %vm5556_vm2 = vcmp.eq.f32.partialorder %v5555_v6, 8.507059e+37 }
 0x66b   :  { %v5448_v38 = vpop.f32.mrf.mxu3 }
 0x66c   :  { %v5449_v29 = vadd.f32 %v5448_v38, %v5436_v15  ;;  %v8708_v38 = vmov 2102212464  }
 0x66d   :  { %v8468_v35 = vpop.eup %8467 }
 0x66e   :  { %v5459_v36 = vadd.f32 %v5449_v29, %v13955_v20  ;;  %v5547_v18 = vmul.f32 %v8468_v35, %v5544_v2  ;;  %vm5552_vm15 = vweird.f32 %v8468_v35  ;;  %v5558_v20 = vor.u32 1.1754944e-38, %v5557_v50 }
 0x66f   :  { %v5437_v8 = vpop.f32.mrf.mxu2  ;;  %vm5553_vm1 = vmor %vm5551_vm0, %vm5552_vm15  ;;  %v8709_v2 = vmov 920167782  }
 0x670   :  { %v7825_v44 = vmul.f32 -1.442695, %v5459_v36  ;;  %v5548_v1 = vsub.f32 1.0, %v5547_v18 }
 0x672   :  { %8469 = vpow2.f32 %v7825_v44  ;;  %v5549_v56 = vmul.f32 %v8468_v35, %v5548_v1  ;;  %v8710_v44 = vmov 1326507024  }
 0x673   :  { %v5450_v52 = vpop.f32.mrf.mxu3  ;;  %8471 = vtanh.f32 %v5580_v31 }
 0x674   :  { %v5550_v32 = vadd.f32 %v8468_v35, %v5549_v56 }
 0x676   :  { %v5554_v22 = vsel %vm5553_vm1, %v8468_v35, %v5550_v32 }
 0x677   :  { %v5559_v19 = vsel %vm5556_vm2, %v5558_v20, %v5554_v22 }
 0x678   :  { %v8470_v58 = vpop.eup %8469 }
 0x679   :  { %v5545_v40 = vadd.f32 1.0, %v8470_v58  ;;  %v8472_v62 = vpop.eup %8471 }
 0x67a   :  { %v5584_v24 = vmul.f32 %v8472_v62, %v5559_v19 }
 0x67b   :  { %8473 = vrcp.f32 %v5545_v40  ;;  %v5572_v63 = vand.u32 2147483648, %v5545_v40  ;;  %v5570_v21 = vand.u32 2147483647, %v5545_v40  ;;  %vm5566_vm4 = vweird.f32 %v5545_v40 }
 0x67c   :  { %5602 = vmatmul.f32.vlgmr.msra.gmra.mxu0 %v5584_v24  ;;  %8475 = vtanh.f32 %v5581_v5 }
 0x67d   :  { %v5573_v41 = vor.u32 1.1754944e-38, %v5572_v63  ;;  %vm5571_vm6 = vcmp.eq.f32.partialorder %v5570_v21, 8.507059e+37 }
 0x681   :  { %v8474_v12 = vpop.eup %8473 }
 0x682   :  { %v5562_v26 = vmul.f32 %v8474_v12, %v5545_v40  ;;  %vm5567_vm3 = vweird.f32 %v8474_v12  ;;  %v8476_v10 = vpop.eup %8475 }
 0x683   :  { %vm5568_vm5 = vmor %vm5566_vm4, %vm5567_vm3 }
 0x684   :  { %v5563_v37 = vsub.f32 1.0, %v5562_v26 }
 0x686   :  { %v5564_v14 = vmul.f32 %v8474_v12, %v5563_v37 }
 0x688   :  { %v5565_v57 = vadd.f32 %v8474_v12, %v5564_v14 }
 0x68a   :  { %v5569_v28 = vsel %vm5568_vm5, %v8474_v12, %v5565_v57 }
 0x68b   :  { %v5574_v39 = vsel %vm5571_vm6, %v5573_v41, %v5569_v28 }
 0x68c   :  { %v5585_v53 = vmul.f32 %v8476_v10, %v5574_v39 }
 0x68e   :  { %5622 = vmatmul.f32.vlgmr.msra.gmra.mxu1 %v5585_v53 }
 0x6f9   :  { %v5603_v23 = vpop.f32.mrf.mxu0 }
 0x6fa   :  { %v5604_v54 = vadd.f32 %v8544_v17, %v5603_v23 }
 0x70b   :  { %v5623_v55 = vpop.f32.mrf.mxu1 }
 0x70c   :  { %v5624_v45 = vadd.f32 %v5623_v55, %v5604_v54 }
 0x70e   :  { %8477 = vtanh.f32 %v5624_v45 }
 0x714   :  { %v12226_v31 = vpop.eup %8477 }
 0x715   :  { %7826 = vst.msk [vmem:[%s12334_s12 + $0x4] sm:$0x3] %vm3740_vm13, %v12226_v31  ;;  %v5635_v4 = vand.u32 2139095040, %v12226_v31  ;;  %v5629_v34 = vadd.f32 %v12226_v31, %v11868_v48  ;;  %v5632_v59 = vand.u32 2147483647, %v12226_v31  ;;  %vm5634_vm4 = vcmp.lt.s32.totalorder %v12226_v31, 0 }
 0x716   :  { %s8712_s12 = smov 1  }
 0x717   :  { %v5636_v3 = vshrl.u32 %v5635_v4, 23  ;;  %6083 = vst.msk [vmem:[#allocation11] sm:$0x3] %vm862_vm7, %v5629_v34  ;;  %v5639_v43 = vand.u32 8388607, %v5632_v59  ;;  %v14242_v4 = vmov 0  }
 0x718   :  { %vm5633_vm5 = vcmp.le.f32.partialorder %v5632_v59, 0.7853982  ;;  %6098 = dma.vmem_to_hbm [thread:$0]  %s6094_s3, 32, %s6096_s2, [#allocation4]  }
 0x719   :  { %v7827_v13 = vadd.s32 4294967169, %v5636_v3  ;;  %v5640_v46 = vor.u32 8388608, %v5639_v43 }
 0x71b   :  { %v5642_v61 = vadd.s32 1, %v7827_v13  ;;  %v12251_v50 = vshll.u32 %v5640_v46, 8 }
 0x71d   :  { %vm5643_vm8 = vcmp.gt.s32.totalorder %v5642_v61, 0  ;;  %v5681_v24 = vand.u32 65535, %v12251_v50  ;;  %v5682_v26 = vshrl.u32 %v12251_v50, 16 }
 0x71e   :  { %v5644_v30 = vsel %vm5643_vm8, %v5642_v61, 0 }
 0x71f   :  { %v5646_v47 = vand.u32 31, %v5644_v30  ;;  %v12242_v5 = vshrl.u32 %v5644_v30, 5 }
 0x721   :  { %v12240_v9 = vsub.s32 32, %v5646_v47  ;;  %v5649_v48 = vshll.u32 %v8705_v11, %v5646_v47  ;;  %v5652_v0 = vshll.u32 %v8706_v7, %v5646_v47  ;;  %v5655_v15 = vshll.u32 %v8707_v42, %v5646_v47 }
 0x722   :  { %v5658_v51 = vshll.u32 %v8708_v38, %v5646_v47  ;;  %v5661_v8 = vshll.u32 %v8709_v2, %v5646_v47  ;;  %vm5664_vm13 = vcmp.lt.s32.totalorder %v12242_v5, 1  ;;  %vm5667_vm9 = vcmp.lt.s32.totalorder %v12242_v5, 4 }
 0x723   :  { %v5650_v25 = vshrl.u32 %v8706_v7, %v12240_v9  ;;  %v5653_v33 = vshrl.u32 %v8707_v42, %v12240_v9  ;;  %v5656_v29 = vshrl.u32 %v8708_v38, %v12240_v9  ;;  %v5659_v36 = vshrl.u32 %v8709_v2, %v12240_v9 }
 0x724   :  { %v5662_v52 = vshrl.u32 %v8710_v44, %v12240_v9  ;;  %vm5666_vm10 = vcmp.lt.s32.totalorder %v12242_v5, 3  ;;  %vm5665_vm11 = vcmp.lt.s32.totalorder %v12242_v5, 2 }
 0x725   :  { %v5651_v35 = vor.u32 %v5650_v25, %v5649_v48  ;;  %v5654_v18 = vor.u32 %v5653_v33, %v5652_v0  ;;  %v5657_v58 = vor.u32 %v5656_v29, %v5655_v15  ;;  %v5660_v1 = vor.u32 %v5659_v36, %v5658_v51 }
 0x726   :  { %v5663_v40 = vor.u32 %v5662_v52, %v5661_v8  ;;  %v5648_v48 = vshrl.u32 %v8705_v11, %v12240_v9 }
 0x727   :  { %v5672_v56 = vsel %vm5664_vm13, %v5651_v35, %v5654_v18  ;;  %v5676_v6 = vsel %vm5664_vm13, %v5654_v18, %v5657_v58  ;;  %v5673_v32 = vsel %vm5667_vm9, %v5660_v1, 920167782  ;;  %v5669_v30 = vsel %vm5667_vm9, %v5657_v58, 2102212464 }
 0x728   :  { %v5677_v20 = vsel %vm5667_vm9, %v5663_v40, 1326507024  ;;  %v5674_v22 = vsel %vm5666_vm10, %v5657_v58, %v5673_v32  ;;  %v5668_v15 = vsel %vm5664_vm13, %v5648_v48, %v5651_v35  ;;  %v5670_v38 = vsel %vm5666_vm10, %v5654_v18, %v5669_v30 }
 0x729   :  { %v5678_v62 = vsel %vm5666_vm10, %v5660_v1, %v5677_v20  ;;  %v5675_v19 = vsel %vm5665_vm11, %v5672_v56, %v5674_v22  ;;  %v5671_v9 = vsel %vm5665_vm11, %v5668_v15, %v5670_v38 }
 0x72a   :  { %v5679_v12 = vsel %vm5665_vm11, %v5676_v6, %v5678_v62  ;;  %v5705_v14 = vand.u32 65535, %v5675_v19  ;;  %v5706_v21 = vshrl.u32 %v5675_v19, 16  ;;  %v5725_v58 = vmul.u32 %v12251_v50, %v5671_v9 }
 0x72b   :  { %v5683_v37 = vand.u32 65535, %v5679_v12  ;;  %v5684_v63 = vshrl.u32 %v5679_v12, 16 }
 0x72c   :  { %v5708_v28 = vmul.u32 %v5706_v21, %v5681_v24  ;;  %v5709_v10 = vmul.u32 %v5705_v14, %v5682_v26  ;;  %v5707_v23 = vmul.u32 %v5705_v14, %v5681_v24  ;;  %v5710_v45 = vmul.u32 %v5706_v21, %v5682_v26 }
 0x72d   :  { %v5686_v57 = vmul.u32 %v5684_v63, %v5681_v24  ;;  %v5687_v41 = vmul.u32 %v5683_v37, %v5682_v26  ;;  %v5685_v39 = vmul.u32 %v5683_v37, %v5681_v24  ;;  %v5688_v60 = vmul.u32 %v5684_v63, %v5682_v26 }
 0x72e   :  { %v5711_v17 = vshll.u32 %v5708_v28, 16  ;;  %v5713_v3 = vshll.u32 %v5709_v10, 16  ;;  %v5712_v42 = vshrl.u32 %v5708_v28, 16  ;;  %v5714_v2 = vshrl.u32 %v5709_v10, 16 }
 0x72f   :  { %v5689_v53 = vshll.u32 %v5686_v57, 16  ;;  %v5691_v54 = vshll.u32 %v5687_v41, 16  ;;  %v5690_v7 = vshrl.u32 %v5686_v57, 16  ;;  %v5692_v29 = vshrl.u32 %v5687_v41, 16 }
 0x730   :  { %vm5715_vm14 = vc.u32 %v5707_v23, %v5711_v17  ;;  %v5717_v13 = vadd.s32 %v5711_v17, %v5707_v23  ;;  %v8711_v57 = vmov 4  }
 0x731   :  { %vm5693_vm12 = vc.u32 %v5685_v39, %v5689_v53  ;;  %v5695_v55 = vadd.s32 %v5689_v53, %v5685_v39  ;;  %v5716_v43 = vsel %vm5715_vm14, 1, %v14242_v4  ;;  %8271 = vset.pattern.permute.xlu2 %v8711_v57  ;;  %vm5980_vm14 = vcmask 1041409  }
 0x732   :  { %v5694_v34 = vsel %vm5693_vm12, 1, %v14242_v4  ;;  %v5718_v46 = vadd.s32 %v5716_v43, %v5710_v45  ;;  %vm5719_vm0 = vc.u32 %v5717_v13, %v5713_v3  ;;  %v5721_v44 = vadd.s32 %v5717_v13, %v5713_v3 }
 0x733   :  { %v5696_v61 = vadd.s32 %v5694_v34, %v5688_v60  ;;  %vm5697_vm15 = vc.u32 %v5695_v55, %v5691_v54  ;;  %v5720_v25 = vsel %vm5719_vm0, 1, %v14242_v4  ;;  %vm5775_vm12 = vweird.f32 %v12226_v31 }
 0x734   :  { %v5698_v47 = vsel %vm5697_vm15, 1, %v14242_v4  ;;  %v5722_v33 = vadd.s32 %v5720_v25, %v5718_v46  ;;  %vm6078_vm15 = vcmask 1041408  }
 0x735   :  { %v5700_v0 = vadd.s32 %v5698_v47, %v5696_v61 }
 0x736   :  { %v5723_v36 = vadd.s32 %v5722_v33, %v5712_v42 }
 0x737   :  { %v5701_v51 = vadd.s32 %v5700_v0, %v5690_v7 }
 0x738   :  { %v5724_v11 = vadd.s32 %v5723_v36, %v5714_v2 }
 0x739   :  { %v5702_v8 = vadd.s32 %v5701_v51, %v5692_v29 }
 0x73a   :  { %v5728_v52 = vadd.s32 1, %v5724_v11 }
 0x73b   :  { %vm5727_vm1 = vc.u32 %v5702_v8, %v5721_v44  ;;  %v5726_v5 = vadd.s32 %v5721_v44, %v5702_v8 }
 0x73c   :  { %v5729_v1 = vsel %vm5727_vm1, %v5728_v52, %v5724_v11  ;;  %v8714_v52 = vmov 5  }
 0x73d   :  { %v5730_v40 = vadd.s32 %v5729_v1, %v5725_v58  ;;  %8273 = vset.pattern.permute.xlu0 %v8714_v52 }
 0x73f   :  { %v5731_v35 = vadd.s32 536870912, %v5730_v40 }
 0x741   :  { %v5732_v56 = vshrl.u32 %v5731_v35, 30 }
 0x743   :  { %v5733_v6 = vshll.u32 %v5732_v56, 30  ;;  %v5756_v60 = vsub.s32 4, %v5732_v56 }
 0x745   :  { %v5734_v18 = vsub.s32 %v5730_v40, %v5733_v6  ;;  %v5757_v45 = vsel %vm5634_vm4, %v5756_v60, %v5732_v56 }
 0x746   :  { %v5759_v3 = vsel %vm5633_vm5, 0, %v5757_v45 }
 0x747   :  { %vm5735_vm2 = vcmp.lt.s32.totalorder %v5734_v18, 0  ;;  %v5736_v32 = vsub.s32 0, %v5734_v18  ;;  %v5930_v47 = vadd.s32 3, %v5759_v3  ;;  %v5776_v0 = vand.u32 3, %v5759_v3 }
 0x749   :  { %v5737_v20 = vsel %vm5735_vm2, %v5736_v32, %v5734_v18  ;;  %v5931_v25 = vand.u32 3, %v5930_v47  ;;  %vm5777_vm6 = vcmp.lt.s32.totalorder %v5776_v0, 2  ;;  %vm5778_vm8 = vcmp.eq.s32.totalorder %v5776_v0, 0 }
 0x74a   :  { %v5738_v22 = vclz %v5737_v20  ;;  %vm5781_vm11 = vcmp.eq.s32.totalorder %v5776_v0, 2 }
 0x74b   :  { %vm5932_vm13 = vcmp.lt.s32.totalorder %v5931_v25, 2  ;;  %vm5933_vm9 = vcmp.eq.s32.totalorder %v5931_v25, 0  ;;  %vm5936_vm10 = vcmp.eq.s32.totalorder %v5931_v25, 2 }
 0x74c   :  { %v7828_v62 = vadd.s32 4294967294, %v5738_v22 }
 0x74e   :  { %vm7829_vm3 = vcmp.lt.s32.totalorder %v7828_v62, 0 }
 0x74f   :  { %v5741_v19 = vsel %vm7829_vm3, 0, %v7828_v62 }
 0x750   :  { %v5742_v12 = vsub.s32 32, %v5741_v19  ;;  %v5746_v24 = vsub.s32 4294967266, %v5741_v19  ;;  %v5743_v26 = vshll.u32 %v5734_v18, %v5741_v19 }
 0x752   :  { %v5744_v37 = vshrl.u32 %v5726_v5, %v5742_v12  ;;  %v5747_v63 = vadd.s32 127, %v5746_v24 }
 0x754   :  { %v5745_v50 = vor.u32 %v5744_v37, %v5743_v26  ;;  %v5748_v14 = vshll.u32 %v5747_v63, 23 }
 0x756   :  { %v5749_v21 = vor.u32 4788187, %v5748_v14  ;;  %v5752_v28 = vcvt.s32.f32 %v5745_v50 }
 0x758   :  { %v5750_v41 = vand.u32 2147483647, %v5749_v21  ;;  %v8716_v21 = vmov 1  }
 0x75a   :  { %v5753_v10 = vmul.f32 %v5752_v28, %v5750_v41  ;;  %v8717_v41 = vmov 2  }
 0x75c   :  { %v5754_v39 = vxor.u32 2147483648, %v5753_v10 }
 0x75e   :  { %v5755_v53 = vsel %vm5634_vm4, %v5754_v39, %v5753_v10 }
 0x75f   :  { %v5758_v23 = vsel %vm5633_vm5, %v12226_v31, %v5755_v53  ;;  %v3746_v53 = vadd.f32 %v12215_v27, %v12211_v49 }
 0x760   :  { %v5760_v17 = vmul.f32 %v5758_v23, %v5758_v23 }
 0x762   :  { %v5761_v54 = vmul.f32 -0.001358992, %v5760_v17  ;;  %v5768_v55 = vmul.f32 -0.00019511016, %v5760_v17 }
 0x764   :  { %v5762_v4 = vadd.f32 0.041655596, %v5761_v54  ;;  %v5769_v34 = vadd.f32 0.008332121, %v5768_v55 }
 0x766   :  { %v5763_v13 = vmul.f32 %v5762_v4, %v5760_v17  ;;  %v5770_v61 = vmul.f32 %v5769_v34, %v5760_v17 }
 0x768   :  { %v5764_v43 = vadd.f32 -0.4999988, %v5763_v13  ;;  %v5771_v30 = vadd.f32 -0.16666654, %v5770_v61 }
 0x76a   :  { %v5765_v46 = vmul.f32 %v5764_v43, %v5760_v17  ;;  %v5772_v48 = vmul.f32 %v5771_v30, %v5760_v17 }
 0x76c   :  { %v5766_v7 = vadd.f32 1.0, %v5765_v46  ;;  %v5773_v59 = vadd.f32 1.0, %v5772_v48 }
 0x76e   :  { %v5774_v42 = vmul.f32 %v5773_v59, %v5758_v23  ;;  %v5782_v33 = vxor.u32 2147483648, %v5766_v7  ;;  %v4687_v23 = vsub.f32 %v12206_v16, %v3746_v53 }
 0x770   :  { %v5779_v15 = vxor.u32 2147483648, %v5774_v42  ;;  %v5938_v29 = vsel %vm5936_vm10, %v5782_v33, %v5774_v42  ;;  %v5783_v2 = vsel %vm5781_vm11, %v5782_v33, %v5774_v42  ;;  %7813 = vst.msk [vmem:[%s12335_s13 + $0x4] sm:$0x3] %vm862_vm7, %v4687_v23  ;;  %vm6075_vm7 = vcmask 1040384  }
 0x772   :  { %v5935_v38 = vsel %vm5933_vm9, %v5766_v7, %v5779_v15  ;;  %v5780_v51 = vsel %vm5778_vm8, %v5766_v7, %v5779_v15 }
 0x773   :  { %v5939_v36 = vsel %vm5932_vm13, %v5935_v38, %v5938_v29  ;;  %v5784_v8 = vsel %vm5777_vm6, %v5780_v51, %v5783_v2 }
 0x774   :  { %v5940_v44 = vsel %vm5775_vm12, nan, %v5939_v36  ;;  %v5785_v9 = vsel %vm5775_vm12, nan, %v5784_v8 }
 0x775   :  { %5947 = vrot.lane.b32.xlu0 %v5940_v44, %s8712_s12  ;;  %5955 = vrot.lane.b32.xlu1 %v5785_v9, %s8713_s24  ;;  %v5971_v11 = vsub.f32 0.0, %v5940_v44 }
 0x777   :  { %6038 = vperm.xlu2 %8271, %v5971_v11  }
 0x77d   :  { %5951 = vrot.lane.b32.xlu0 %v5940_v44, %s8713_s24  ;;  %5942 = vrot.lane.b32.xlu1 %v5785_v9, %s8712_s12 }
 0x77f   :  { %8272 = vset.pattern.permute.xlu2 %v8714_v52 }
 0x785   :  { %6007 = vperm.xlu1 %8270, %v12226_v31  }
 0x78d   :  { %8276 = vset.pattern.permute.xlu1 %v8714_v52 }
 0x7d1   :  { %v6039_v28 = vpop.permute.xlu2 %6038 }
 0x7e7   :  { %v5948_v58 = vpop.permute.xlu0 %5947  ;;  %v5956_v1 = vpop.permute.xlu1 %5955 }
 0x7e8   :  { %v5950_v40 = vmul.f32 %v5948_v58, %v5785_v9  ;;  %v5964_v35 = vmul.f32 %v5948_v58, %v5940_v44  ;;  %v5966_v32 = vmul.f32 %v5956_v1, %v5785_v9  ;;  %v5958_v50 = vmul.f32 %v5956_v1, %v5940_v44 }
 0x7ea   :  { %v5960_v18 = vmul.f32 %v5956_v1, %v5950_v40  ;;  %v5968_v24 = vmul.f32 %v5964_v35, %v5956_v1 }
 0x7ef   :  { %v5952_v56 = vpop.permute.xlu0 %5951  ;;  %v5943_v6 = vpop.permute.xlu1 %5942 }
 0x7f0   :  { %v5961_v20 = vmul.f32 %v5952_v56, %v5940_v44  ;;  %v5965_v22 = vmul.f32 %v5964_v35, %v5952_v56  ;;  %v5945_v62 = vmul.f32 %v5943_v6, %v5785_v9  ;;  %v5969_v12 = vmul.f32 %v5952_v56, %v5785_v9 }
 0x7f1   :  { %v5963_v26 = vmul.f32 %v5943_v6, %v5940_v44  ;;  %v5954_v63 = vmul.f32 %v5952_v56, %v5950_v40 }
 0x7f2   :  { %v5967_v19 = vadd.f32 %v5966_v32, %v5965_v22  ;;  %v5962_v5 = vadd.f32 %v5961_v20, %v5960_v18  ;;  %5974 = vperm.xlu2 %8272, %v5945_v62   ;;  %v5970_v37 = vsub.f32 %v5968_v24, %v5969_v12 }
 0x7f3   :  { %v5959_v14 = vsub.f32 %v5954_v63, %v5958_v50 }
 0x7f4   :  { %6019 = vperm.xlu1 %8276, %v5967_v19   ;;  %5996 = vperm.xlu0 %8273, %v5962_v5  }
 0x7f7   :  { %v6008_v60 = vpop.permute.xlu1 %6007 }
 0x7fa   :  { %6013 = vperm.xlu2 %8272, %v5963_v26  }
 0x7fc   :  { %6026 = vperm.xlu1 %8276, %v5970_v37   ;;  %8274 = vset.pattern.permute.xlu0 %v8711_v57 }
 0x7fd   :  { %6044 = vperm.xlu0 %8274, %v5950_v40  }
 0x802   :  { %5986 = vperm.xlu2 %8272, %v5959_v14  }
 0x804   :  { %8277 = vset.pattern.permute.xlu1 %v8716_v21 }
 0x805   :  { %6032 = vperm.xlu1 %8277, %v12226_v31   ;;  %8279 = vset.pattern.permute.xlu0 %v8717_v41 }
 0x80a   :  { %8275 = vset.pattern.permute.xlu2 %v8711_v57  ;;  %v5631_v57 = vld [vmem:[%s12323_s1 + $0x4] sm:$0x7] }
 0x80b   :  { %6050 = vperm.xlu2 %8275, %v5945_v62   ;;  %v5979_v27 = vrot.slane %v5631_v57, 7  ;;  %v6000_v45 = vrot.slane %v5631_v57, 1 }
 0x813   :  { %8278 = vset.pattern.permute.xlu2 %v8717_v41 }
 0x814   :  { %6056 = vperm.xlu2 %8278, %v12226_v31   ;;  %v5630_v31 = vld [vmem:[%s12323_s1] sm:$0x7] }
 0x815   :  { %v5989_v55 = vrot.slane %v5630_v31, 1  ;;  %v5999_v16 = vrot.slane %v5630_v31, 2  ;;  %v5981_v3 = vsel %vm5980_vm14, %v5979_v27, %v5630_v31 }
 0x816   :  { %v6041_v30 = vmul.f32 %v6039_v28, %v5981_v3 }
 0x817   :  { %v5990_v4 = vsel %vm5980_vm14, %v5631_v57, %v5989_v55  ;;  %v6001_v13 = vsel %vm5980_vm14, %v6000_v45, %v5999_v16 }
 0x84c   :  { %v5975_v10 = vpop.permute.xlu2 %5974 }
 0x84d   :  { %v5983_v46 = vmul.f32 %v5981_v3, %v5975_v10 }
 0x854   :  { %v6014_v39 = vpop.permute.xlu2 %6013 }
 0x855   :  { %v6016_v0 = vmul.f32 %v6014_v39, %v5981_v3 }
 0x85c   :  { %v5987_v17 = vpop.permute.xlu2 %5986 }
 0x85d   :  { %v5992_v61 = vmul.f32 %v5990_v4, %v5987_v17 }
 0x85f   :  { %v5993_v25 = vadd.f32 %v5992_v61, %v5983_v46 }
 0x865   :  { %v6051_v34 = vpop.permute.xlu2 %6050 }
 0x866   :  { %v6020_v54 = vpop.permute.xlu1 %6019  ;;  %v5997_v49 = vpop.permute.xlu0 %5996  ;;  %v6053_v42 = vmul.f32 %v6051_v34, %v6001_v13 }
 0x867   :  { %v6022_v48 = vmul.f32 %v6020_v54, %v5990_v4  ;;  %v6003_v7 = vmul.f32 %v6001_v13, %v5997_v49 }
 0x869   :  { %v6023_v38 = vadd.f32 %v6022_v48, %v6016_v0  ;;  %v6004_v29 = vadd.f32 %v6003_v7, %v5993_v25 }
 0x86b   :  { %v6010_v9 = vadd.f32 %v6008_v60, %v6004_v29 }
 0x86d   :  { %v6061_v35 = vrot.slane %v6010_v9, 1 }
 0x86e   :  { %v6027_v43 = vpop.permute.xlu1 %6026  ;;  %v6057_v2 = vpop.permute.xlu2 %6056 }
 0x86f   :  { %v6045_v47 = vpop.permute.xlu0 %6044  ;;  %v6029_v33 = vmul.f32 %v6027_v43, %v6001_v13 }
 0x870   :  { %v6047_v59 = vmul.f32 %v6045_v47, %v5990_v4 }
 0x871   :  { %v6030_v8 = vadd.f32 %v6029_v33, %v6023_v38 }
 0x872   :  { %v6048_v15 = vadd.f32 %v6047_v59, %v6041_v30 }
 0x874   :  { %v6054_v51 = vadd.f32 %v6053_v42, %v6048_v15 }
 0x876   :  { %v6059_v36 = vadd.f32 %v6057_v2, %v6054_v51 }
 0x877   :  { %v6033_v44 = vpop.permute.xlu1 %6032 }
 0x878   :  { %v6035_v11 = vadd.f32 %v6033_v44, %v6030_v8  ;;  %v6066_v52 = vrot.slane %v6059_v36, 1  ;;  %v6071_v40 = vperm.slane %v6059_v36, 0 }
 0x87a   :  { %v6064_v58 = vrot.slane %v6035_v11, 1  ;;  %v6067_v1 = vperm.slane %v6035_v11, 0  ;;  %v6072_v18 = vperm.slane %v6066_v52, 0 }
 0x87c   :  { %v6068_v56 = vperm.slane %v6064_v58, 0  ;;  %v6076_v6 = vsel %vm6075_vm7, %v6010_v9, %v6067_v1 }
 0x87d   :  { %v6079_v32 = vsel %vm6078_vm15, %v6076_v6, %v6071_v40 }
 0x87e   :  { %v6077_v20 = vsel %vm6075_vm7, %v6061_v35, %v6068_v56  ;;  %6081 = vst [vmem:[%s12337_s15] sm:$0x7] %v6079_v32 }
 0x87f   :  { %v6080_v22 = vsel %vm6078_vm15, %v6077_v20, %v6072_v18 }
 0x880   :  { %6082 = vst [vmem:[%s12337_s15 + $0x4] sm:$0x7] %v6080_v22 }
 0x881   :  { %8695 = dma.done.wait [#allocation4], 32  }
 0x882   :  { %8696 = vsyncadd [#allocation4], 4294967264 }
 0x883   :  { %6111 = vsyncpa [#allocation3], 1 }
 0x884   :  { %6112 = vsyncpa [#allocation6], 1 }
 0x885   :  { %6113 = vsyncpa [#allocation9], 1 }
 0x886   :  { %6114 = vsyncpa [#allocation4], 1 }

</bundles_post_ra>
